<compile_context>
chip_gen: v7x
topology: tpu7x:2x2x1
jax: 0.10.0
libtpu: 0.0.40
codegen_flags: <defaults>
</compile_context>

<pallas_src>
import functools

import jax
import jax.numpy as jnp
from jax import lax
from jax.experimental import pallas as pl
from jax.experimental.pallas import tpu as pltpu

_LANE = 128
_SUBLANE = 8
_BN_EPS = 1e-5
_LRELU_ALPHA = 0.2

# Flipped off at start-up (by _probe_weight_single_buffer) if this JAX build
# rejects pl.Buffered(1) on a pallas_call BlockSpec.
_WEIGHT_SINGLE_BUFFER = True


# ----------------------------------------------------------------------------
# Sizing helpers (per-generation VMEM budget, divisor-based M tiling)
# ----------------------------------------------------------------------------
def _round_up(v, m):
    return (v + m - 1) // m * m


def _vmem_budget_bytes():
    """(working-set budget, vmem_limit_bytes) derived from the chip."""
    try:
        cap = int(pltpu.get_tpu_info().vmem_capacity_bytes)
    except Exception:
        cap = 64 * 1024 * 1024  # conservative default: v7x per-TensorCore VMEM
    budget = max(16 * 1024 * 1024, min(cap * 3 // 4, 96 * 1024 * 1024))
    limit = min(budget + 8 * 1024 * 1024, cap - 4 * 1024 * 1024)
    return budget, limit


def _largest_divisor_leq(n, cap):
    cap = max(1, min(cap, n))
    for d in range(cap, 0, -1):
        if n % d == 0:
            return d
    return 1


def _choose_tile_m(m, resident_bytes, bytes_per_row, budget_bytes):
    """M tile: a divisor of M (no padding copies) whose double-buffered
    footprint plus the resident weight bytes fits the VMEM budget."""
    avail = max(budget_bytes - resident_bytes, 16 * bytes_per_row)
    max_tile = min(max(int(avail // bytes_per_row), 16), 1024)
    max_tile = (max_tile // _SUBLANE) * _SUBLANE
    if m <= max_tile:
        return m  # single step, full extent
    if m % 16 == 0:
        unit = 16
    elif m % _SUBLANE == 0:
        unit = _SUBLANE
    else:
        return max_tile  # rare; caller zero-pads the few trailing rows
    return unit * _largest_divisor_leq(m // unit, max_tile // unit)


# ----------------------------------------------------------------------------
# Pallas kernels
# ----------------------------------------------------------------------------
def _matmul_kernel(x_ref, w_ref, y_ref, *maybe_stats, act, alpha, with_stats):
    """One (M, OC) tile of y = x @ w: bf16 operands on the MXU, f32 accum,
    fused activation, optional per-tile partial BatchNorm statistics."""
    y = jnp.dot(x_ref[...], w_ref[...], preferred_element_type=jnp.float32)

    if with_stats:
        # Partial sums taken from the f32 accumulator, before any downcast.
        # Only rows 0 (sum) and 1 (sum of squares) of the stats slab are used.
        stats_ref = maybe_stats[0]
        stats_ref[0, 0:1, :] = jnp.sum(y, axis=0, keepdims=True)
        stats_ref[0, 1:2, :] = jnp.sum(y * y, axis=0, keepdims=True)

    if act == "leaky":
        y = jnp.where(y >= 0.0, y, alpha * y)
    elif act == "sigmoid":
        # sigmoid(y) == 0.5*(tanh(y/2)+1): routes the transcendental to the
        # EUP instead of a VPU divide sequence.
        y = 0.5 * (jnp.tanh(0.5 * y) + 1.0)

    y_ref[...] = y.astype(y_ref.dtype)


def _affine_act_kernel(y_ref, a_ref, b_ref, o_ref, *, alpha):
    """One M-tile of LeakyReLU(y * a + b)  (BatchNorm apply epilogue).
    bf16 in / bf16 out, f32 math in vregs."""
    y = y_ref[...].astype(jnp.float32) * a_ref[...] + b_ref[...]
    o_ref[...] = jnp.where(y >= 0.0, y, alpha * y).astype(o_ref.dtype)


# ----------------------------------------------------------------------------
# Pallas wrappers
# ----------------------------------------------------------------------------
def matmul_pallas(x_mat, w_mat, *, act, with_stats, out_dtype,
                  alpha=_LRELU_ALPHA):
    m, k = x_mat.shape
    k2, oc = w_mat.shape
    assert k == k2 and oc % _LANE == 0 and k % 16 == 0

    budget, vmem_limit = _vmem_budget_bytes()
    x_bytes = jnp.dtype(x_mat.dtype).itemsize
    w_bytes = jnp.dtype(w_mat.dtype).itemsize
    o_bytes = jnp.dtype(out_dtype).itemsize

    # --- OC tiling: keep the weight block comfortably inside the budget. ----
    tile_oc = oc
    while (tile_oc > _LANE and (tile_oc // 2) % _LANE == 0
           and oc % (tile_oc // 2) == 0
           and k * tile_oc * w_bytes > budget // 3):
        tile_oc //= 2
    oc_tiles = oc // tile_oc

    # --- M tiling: largest divisor of M whose footprint fits the budget. ----
    w_bufs = 1 if (oc_tiles == 1 and _WEIGHT_SINGLE_BUFFER) else 2
    resident = w_bufs * k * tile_oc * w_bytes
    per_row = 2 * k * x_bytes + 2 * tile_oc * o_bytes + tile_oc * 4
    tile_m = _choose_tile_m(m, resident, per_row, budget)
    m_pad = _round_up(m, tile_m)
    if m_pad != m:
        # Rare fallback (M not a multiple of 8 and larger than one tile).
        # Zero rows give zero outputs and contribute nothing to the BN sums.
        x_mat = jnp.pad(x_mat, ((0, m_pad - m), (0, 0)))
    m_tiles = m_pad // tile_m

    # --- Megacore: if M collapsed to one tile, split OC across the 2 TCs. ---
    if m_tiles == 1 and oc_tiles == 1 and oc % (2 * _LANE) == 0:
        tile_oc = oc // 2
        oc_tiles = 2

    if oc_tiles == 1 and _WEIGHT_SINGLE_BUFFER:
        # Constant index map -> the second weight buffer would never be used;
        # single-buffer it to reclaim VMEM (matters on v7x's 64 MiB VMEM).
        w_spec = pl.BlockSpec((k, oc), lambda i, j: (0, 0),
                              pipeline_mode=pl.Buffered(1))
    else:
        w_spec = pl.BlockSpec((k, tile_oc), lambda i, j: (0, j))

    grid = (m_tiles, oc_tiles)
    in_specs = [pl.BlockSpec((tile_m, k), lambda i, j: (i, 0)), w_spec]
    out_shape = [jax.ShapeDtypeStruct((m_pad, oc), out_dtype)]
    out_specs = [pl.BlockSpec((tile_m, tile_oc), lambda i, j: (i, j))]
    if with_stats:
        out_shape.append(
            jax.ShapeDtypeStruct((m_tiles, _SUBLANE, oc), jnp.float32))
        out_specs.append(
            pl.BlockSpec((1, _SUBLANE, tile_oc), lambda i, j: (i, 0, j)))

    kernel = functools.partial(_matmul_kernel, act=act, alpha=alpha,
                               with_stats=with_stats)
    cparams = pltpu.CompilerParams(
        dimension_semantics=("parallel", "parallel"),
        vmem_limit_bytes=int(vmem_limit))

    if with_stats:
        y, stats = pl.pallas_call(
            kernel, grid=grid, in_specs=in_specs,
            out_specs=tuple(out_specs), out_shape=tuple(out_shape),
            compiler_params=cparams)(x_mat, w_mat)
        return y, stats
    y = pl.pallas_call(
        kernel, grid=grid, in_specs=in_specs,
        out_specs=out_specs[0], out_shape=out_shape[0],
        compiler_params=cparams)(x_mat, w_mat)
    return y, None


def affine_act_pallas(y_mat, a, b, *, alpha=_LRELU_ALPHA,
                      out_dtype=jnp.bfloat16):
    m, oc = y_mat.shape
    budget, vmem_limit = _vmem_budget_bytes()
    y_bytes = jnp.dtype(y_mat.dtype).itemsize
    o_bytes = jnp.dtype(out_dtype).itemsize
    per_row = 2 * oc * y_bytes + 2 * oc * o_bytes + oc * 4
    tile_m = _choose_tile_m(m, 4 * oc * 4, per_row, budget)
    m_pad = _round_up(m, tile_m)
    if m_pad != m:
        y_mat = jnp.pad(y_mat, ((0, m_pad - m), (0, 0)))
    grid = (m_pad // tile_m,)
    return pl.pallas_call(
        functools.partial(_affine_act_kernel, alpha=alpha),
        grid=grid,
        in_specs=[pl.BlockSpec((tile_m, oc), lambda i: (i, 0)),
                  pl.BlockSpec((1, oc), lambda i: (0, 0)),
                  pl.BlockSpec((1, oc), lambda i: (0, 0))],
        out_specs=pl.BlockSpec((tile_m, oc), lambda i: (i, 0)),
        out_shape=jax.ShapeDtypeStruct((m_pad, oc), out_dtype),
        compiler_params=pltpu.CompilerParams(
            dimension_semantics=("parallel",),
            vmem_limit_bytes=int(vmem_limit)),
    )(y_mat, a, b)


def _probe_weight_single_buffer():
    """pl.Buffered(1) (single-buffered resident weight) is a VMEM win but is
    disabled cleanly if this JAX build rejects it on a pallas_call BlockSpec."""
    global _WEIGHT_SINGLE_BUFFER
    try:
        x = jnp.zeros((16, _LANE), jnp.bfloat16)
        w = jnp.zeros((_LANE, _LANE), jnp.bfloat16)
        y, _ = matmul_pallas(x, w, act=None, with_stats=False,
                             out_dtype=jnp.bfloat16)
        jax.block_until_ready(y)
    except Exception:
        _WEIGHT_SINGLE_BUFFER = False


# ----------------------------------------------------------------------------
# Layer wiring (JAX glue: patch extraction + BN stat finalize)
# ----------------------------------------------------------------------------
def conv_block(x_nhwc, w_mat, *, ksize, stride, pad, act, bn=None,
               eps=_BN_EPS, alpha=_LRELU_ALPHA, out_dtype=jnp.bfloat16):
    n, h, w, c = x_nhwc.shape
    k_dim, oc = w_mat.shape
    assert k_dim == ksize * ksize * c

    # im2col as one fused XLA op (no python slice/stack loop); bf16 patches.
    patches = lax.conv_general_dilated_patches(
        x_nhwc, (ksize, ksize), (stride, stride),
        [(pad, pad), (pad, pad)],
        dimension_numbers=("NHWC", "HWIO", "NHWC"))
    oh, ow = patches.shape[1], patches.shape[2]
    m = n * oh * ow
    x_mat = patches.reshape(m, k_dim)

    if bn is None:
        y, _ = matmul_pallas(x_mat, w_mat, act=act, with_stats=False,
                             out_dtype=out_dtype, alpha=alpha)
    else:
        gamma, beta = bn
        y_raw, stats = matmul_pallas(x_mat, w_mat, act=None, with_stats=True,
                                     out_dtype=jnp.bfloat16)
        total = jnp.sum(stats[:, 0, :], axis=0)      # per-channel sum(y)
        total_sq = jnp.sum(stats[:, 1, :], axis=0)   # per-channel sum(y^2)
        mean = total / m
        var = jnp.maximum(total_sq / m - mean * mean, 0.0)
        inv = lax.rsqrt(var + eps)
        a = (gamma * inv).reshape(1, oc)
        b = (beta - mean * gamma * inv).reshape(1, oc)
        y = affine_act_pallas(y_raw[:m], a, b, alpha=alpha,
                              out_dtype=out_dtype)

    return y[:m].reshape(n, oh, ow, oc)


# ----------------------------------------------------------------------------
# Parameter preparation (hoisted out of the forward path)
# ----------------------------------------------------------------------------
def _patch_perm(kh, kw, ic):
    """Map patch-channel position -> flat (ih, iw, ic) index, matching
    lax.conv_general_dilated_patches channel ordering (probed, not assumed)."""
    def probe_ids():
        probe = jnp.arange(kh * kw * ic, dtype=jnp.float32).reshape(1, kh, kw, ic)
        return lax.conv_general_dilated_patches(
            probe, (kh, kw), (1, 1), "VALID",
            dimension_numbers=("NHWC", "HWIO", "NHWC"),
            precision=lax.Precision.HIGHEST)
    try:
        with jax.default_device(jax.devices("cpu")[0]):
            ids = probe_ids()
    except Exception:
        ids = probe_ids()
    return jax.device_get(ids).reshape(-1).astype("int32")


def init_params(key, channels_img=3):
    ks = jax.random.split(key, 4)

    def w(k, oc, ic):
        return jax.random.normal(k, (oc, ic, 4, 4), jnp.float32) * 0.05

    return {
        "w1": w(ks[0], 128, channels_img),
        "w2": w(ks[1], 256, 128),
        "g2": jnp.ones((256,), jnp.float32),
        "b2": jnp.zeros((256,), jnp.float32),
        "w3": w(ks[2], 512, 256),
        "g3": jnp.ones((512,), jnp.float32),
        "b3": jnp.zeros((512,), jnp.float32),
        "w4": w(ks[3], 1, 512),
    }


def prepare_params(params):
    """OIHW conv weights -> (KH*KW*IC, OC) bf16 matmul weights in patch order.
    Layer-1 input channels zero-padded to a multiple of 8 (K 48 -> 128) and
    the final OC=1 weight zero-padded to 128 lanes for lane-dense stores."""
    def prep(w_oihw, ic_pad=None, oc_pad=None):
        oc, ic, kh, kw = w_oihw.shape
        if ic_pad is not None and ic_pad > ic:
            w_oihw = jnp.pad(w_oihw, ((0, 0), (0, ic_pad - ic), (0, 0), (0, 0)))
            ic = ic_pad
        perm = _patch_perm(kh, kw, ic)
        w_flat = jnp.transpose(w_oihw, (2, 3, 1, 0)).reshape(kh * kw * ic, oc)
        w_mat = jnp.take(w_flat, perm, axis=0)
        if oc_pad is not None and oc_pad > oc:
            w_mat = jnp.pad(w_mat, ((0, 0), (0, oc_pad - oc)))
        return w_mat.astype(jnp.bfloat16)

    ic1 = params["w1"].shape[1]
    return {
        "w1": prep(params["w1"], ic_pad=_round_up(max(ic1, _SUBLANE), _SUBLANE)),
        "w2": prep(params["w2"]), "g2": params["g2"], "b2": params["b2"],
        "w3": prep(params["w3"]), "g3": params["g3"], "b3": params["b3"],
        "w4": prep(params["w4"], oc_pad=_LANE),
    }


# ----------------------------------------------------------------------------
# Forward pass (matches the PyTorch Discriminator)
# ----------------------------------------------------------------------------
def discriminator_forward(prep, x_nchw):
    x = jnp.transpose(x_nchw, (0, 2, 3, 1)).astype(jnp.bfloat16)  # NCHW->NHWC
    c = x.shape[-1]
    c_pad = prep["w1"].shape[0] // 16        # layer-1 K = 4*4*c_pad (static)
    if c_pad > c:
        # Zero-pad input channels so layer-1's contraction dim is 128-aligned.
        x = jnp.pad(x, ((0, 0), (0, 0), (0, 0), (0, c_pad - c)))
    # Conv(3->128, k4 s2 p1) + LeakyReLU(0.2)
    x = conv_block(x, prep["w1"], ksize=4, stride=2, pad=1, act="leaky")
    # Conv(128->256) + BatchNorm (batch stats) + LeakyReLU
    x = conv_block(x, prep["w2"], ksize=4, stride=2, pad=1, act="leaky",
                   bn=(prep["g2"], prep["b2"]))
    # Conv(256->512) + BatchNorm + LeakyReLU
    x = conv_block(x, prep["w3"], ksize=4, stride=2, pad=1, act="leaky",
                   bn=(prep["g3"], prep["b3"]))
    # Conv(512->1, k4 s1 p0) + Sigmoid   (OC padded to 128 lanes; col 0 real)
    x = conv_block(x, prep["w4"], ksize=4, stride=1, pad=0, act="sigmoid",
                   out_dtype=jnp.float32)
    # (N,1,1,128) -> real channel 0 -> (N,)   (== .view(-1,1).squeeze(1))
    return x[..., 0].reshape(-1)


# ----------------------------------------------------------------------------
# References for correctness checking
# ----------------------------------------------------------------------------
def _reference_forward(params, x_nchw):
    """Pure f32 XLA reference."""
    x = jnp.transpose(x_nchw, (0, 2, 3, 1))

    def conv(x, w_oihw, stride, pad):
        w = jnp.transpose(w_oihw, (2, 3, 1, 0))  # HWIO
        return lax.conv_general_dilated(
            x, w, (stride, stride), [(pad, pad), (pad, pad)],
            dimension_numbers=("NHWC", "HWIO", "NHWC"))

    def bn(x):
        m = jnp.mean(x, axis=(0, 1, 2), keepdims=True)
        v = jnp.mean(jnp.square(x - m), axis=(0, 1, 2), keepdims=True)
        return (x - m) * lax.rsqrt(v + _BN_EPS)

    lrelu = lambda t: jnp.where(t >= 0, t, _LRELU_ALPHA * t)
    x = lrelu(conv(x, params["w1"], 2, 1))
    x = lrelu(bn(conv(x, params["w2"], 2, 1)) * params["g2"] + params["b2"])
    x = lrelu(bn(conv(x, params["w3"], 2, 1)) * params["g3"] + params["b3"])
    x = jax.nn.sigmoid(conv(x, params["w4"], 1, 0))
    return x.reshape(-1)


def _reference_forward_bf16(params, x_nchw):
    """Precision-matched XLA reference: bf16 conv operands, f32 accumulation,
    BN stats from the f32 conv output, affine applied to the bf16-rounded
    output, bf16 activations between layers (mirrors the Pallas pipeline)."""
    bf = jnp.bfloat16
    lrelu = lambda t: jnp.where(t >= 0, t, _LRELU_ALPHA * t)

    def conv(xb, w_oihw, stride, pad):
        w = jnp.transpose(w_oihw, (2, 3, 1, 0)).astype(bf)
        return lax.conv_general_dilated(
            xb, w, (stride, stride), [(pad, pad), (pad, pad)],
            dimension_numbers=("NHWC", "HWIO", "NHWC"),
            preferred_element_type=jnp.float32)

    def bn_affine(y, gamma, beta):
        mean = jnp.mean(y, axis=(0, 1, 2))
        var = jnp.maximum(jnp.mean(y * y, axis=(0, 1, 2)) - mean * mean, 0.0)
        a = gamma * lax.rsqrt(var + _BN_EPS)
        b = beta - mean * a
        yq = y.astype(bf).astype(jnp.float32)   # kernel A stores y_raw in bf16
        return yq * a + b

    x = jnp.transpose(x_nchw, (0, 2, 3, 1)).astype(bf)
    x = lrelu(conv(x, params["w1"], 2, 1)).astype(bf)
    x = lrelu(bn_affine(conv(x, params["w2"], 2, 1),
                        params["g2"], params["b2"])).astype(bf)
    x = lrelu(bn_affine(conv(x, params["w3"], 2, 1),
                        params["g3"], params["b3"])).astype(bf)
    x = jax.nn.sigmoid(conv(x, params["w4"], 1, 0))
    return x.reshape(-1).astype(jnp.float32)


if __name__ == "__main__":
    _probe_weight_single_buffer()

    key = jax.random.PRNGKey(0)
    pkey, xkey = jax.random.split(key)
    params = init_params(pkey, channels_img=3)
    prep = prepare_params(params)
    # DCGAN discriminator needs 32x32 inputs so the final 4x4 valid conv -> 1x1.
    x = jax.random.normal(xkey, (2, 3, 32, 32), jnp.float32)

    out = jax.block_until_ready(jax.jit(discriminator_forward)(prep, x))
    assert out.shape == (2,), out.shape
    assert bool(jnp.all(jnp.isfinite(out)))
    assert bool(jnp.all((out >= 0.0) & (out <= 1.0)))

    # Tight check vs a precision-matched (bf16 operand / f32 accum) reference,
    # loose check vs the pure-f32 reference.
    ref_bf16 = jax.block_until_ready(jax.jit(_reference_forward_bf16)(params, x))
    assert bool(jnp.allclose(out, ref_bf16, rtol=5e-3, atol=5e-3)), (out, ref_bf16)
    ref_f32 = jax.block_until_ready(jax.jit(_reference_forward)(params, x))
    assert bool(jnp.allclose(out, ref_f32, rtol=5e-2, atol=5e-2)), (out, ref_f32)

    print("KERNEL_OK")
</pallas_src>

<mosaic_0001>
module attributes {stable_mosaic.version = 11 : i64} {
  func.func @_matmul_kernel(%arg0: i32, %arg1: i32, %arg2: memref<16x128xbf16, #tpu.memory_space<vmem>>, %arg3: memref<128x128xbf16, #tpu.memory_space<vmem>>, %arg4: memref<16x128xbf16, #tpu.memory_space<vmem>>) attributes {dimension_semantics = [#tpu.dimension_semantics<parallel>, #tpu.dimension_semantics<parallel>], iteration_bounds = array<i64: 1, 1>, scalar_prefetch = 0 : i64, scratch_operands = 0 : i64, tpu.core_type = #tpu.core_type<tc>, window_params = [{transform_indices = @transform_0, window_bounds = array<i64: 16, 128>}, {pipeline_mode = #tpu.pipeline_mode<synchronous>, transform_indices = @transform_1, window_bounds = array<i64: 128, 128>}, {transform_indices = @transform_2, window_bounds = array<i64: 16, 128>}]} {
    %c0 = arith.constant 0 : index
    %c0_0 = arith.constant 0 : index
    %0 = vector.load %arg2[%c0, %c0_0] : memref<16x128xbf16, #tpu.memory_space<vmem>>, vector<16x128xbf16>
    %c0_1 = arith.constant 0 : index
    %c0_2 = arith.constant 0 : index
    %1 = vector.load %arg3[%c0_1, %c0_2] : memref<128x128xbf16, #tpu.memory_space<vmem>>, vector<128x128xbf16>
    %cst = arith.constant dense<0.000000e+00> : vector<16x128xf32>
    %2 = tpu.matmul %0, %1, %cst {dimension_numbers = #tpu.dot_dimension_numbers<[1], [0], [0], [1], [0, 0, 1, 1], [], []>} : vector<16x128xbf16>, vector<128x128xbf16>, vector<16x128xf32> -> vector<16x128xf32>
    %3 = arith.truncf %2 : vector<16x128xf32> to vector<16x128xbf16>
    %c0_3 = arith.constant 0 : index
    %c0_4 = arith.constant 0 : index
    %4 = vector.load %arg4[%c0_3, %c0_4] : memref<16x128xbf16, #tpu.memory_space<vmem>>, vector<16x128xbf16>
    tpu.vector_store %arg4[%c0_3, %c0_4], %3 {strides = array<i32>} : memref<16x128xbf16, #tpu.memory_space<vmem>>, vector<16x128xbf16>,
    return
  }
  func.func @transform_0(%arg0: i32, %arg1: i32) -> (i32, i32) {
    %c0_i32 = arith.constant 0 : i32
    %c0_i32_0 = arith.constant 0 : i32
    return %arg0, %c0_i32 : i32, i32
  }
  func.func @transform_1(%arg0: i32, %arg1: i32) -> (i32, i32) {
    %c0_i32 = arith.constant 0 : i32
    %c0_i32_0 = arith.constant 0 : i32
    %c0_i32_1 = arith.constant 0 : i32
    return %c0_i32, %c0_i32_0 : i32, i32
  }
  func.func @transform_2(%arg0: i32, %arg1: i32) -> (i32, i32) {
    %c0_i32 = arith.constant 0 : i32
    return %arg0, %arg1 : i32, i32
  }
}

module attributes {stable_mosaic.version = 11 : i64} {
  func.func @_matmul_kernel(%arg0: i32, %arg1: i32, %arg2: memref<512x128xbf16, #tpu.memory_space<vmem>>, %arg3: memref<128x128xbf16, #tpu.memory_space<vmem>>, %arg4: memref<512x128xbf16, #tpu.memory_space<vmem>>) attributes {dimension_semantics = [#tpu.dimension_semantics<parallel>, #tpu.dimension_semantics<parallel>], iteration_bounds = array<i64: 1, 1>, scalar_prefetch = 0 : i64, scratch_operands = 0 : i64, tpu.core_type = #tpu.core_type<tc>, window_params = [{transform_indices = @transform_0, window_bounds = array<i64: 512, 128>}, {transform_indices = @transform_1, window_bounds = array<i64: 128, 128>}, {transform_indices = @transform_2, window_bounds = array<i64: 512, 128>}]} {
    %c0 = arith.constant 0 : index
    %c0_0 = arith.constant 0 : index
    %0 = vector.load %arg2[%c0, %c0_0] : memref<512x128xbf16, #tpu.memory_space<vmem>>, vector<512x128xbf16>
    %c0_1 = arith.constant 0 : index
    %c0_2 = arith.constant 0 : index
    %1 = vector.load %arg3[%c0_1, %c0_2] : memref<128x128xbf16, #tpu.memory_space<vmem>>, vector<128x128xbf16>
    %cst = arith.constant dense<0.000000e+00> : vector<512x128xf32>
    %2 = tpu.matmul %0, %1, %cst {dimension_numbers = #tpu.dot_dimension_numbers<[1], [0], [0], [1], [0, 0, 1, 1], [], []>} : vector<512x128xbf16>, vector<128x128xbf16>, vector<512x128xf32> -> vector<512x128xf32>
    %cst_3 = arith.constant 0.000000e+00 : f32
    %3 = vector.broadcast %cst_3 : f32 to vector<512x128xf32>
    %4 = arith.cmpf oge, %2, %3 : vector<512x128xf32>
    %cst_4 = arith.constant 2.000000e-01 : f32
    %5 = vector.broadcast %cst_4 : f32 to vector<512x128xf32>
    %6 = arith.mulf %5, %2 : vector<512x128xf32>
    %7 = arith.select %4, %2, %6 : vector<512x128xi1>, vector<512x128xf32>
    %8 = arith.truncf %7 : vector<512x128xf32> to vector<512x128xbf16>
    %c0_5 = arith.constant 0 : index
    %c0_6 = arith.constant 0 : index
    %9 = vector.load %arg4[%c0_5, %c0_6] : memref<512x128xbf16, #tpu.memory_space<vmem>>, vector<512x128xbf16>
    tpu.vector_store %arg4[%c0_5, %c0_6], %8 {strides = array<i32>} : memref<512x128xbf16, #tpu.memory_space<vmem>>, vector<512x128xbf16>,
    return
  }
  func.func @transform_0(%arg0: i32, %arg1: i32) -> (i32, i32) {
    %c0_i32 = arith.constant 0 : i32
    %c0_i32_0 = arith.constant 0 : i32
    return %arg0, %c0_i32 : i32, i32
  }
  func.func @transform_1(%arg0: i32, %arg1: i32) -> (i32, i32) {
    %c0_i32 = arith.constant 0 : i32
    %c0_i32_0 = arith.constant 0 : i32
    return %c0_i32, %arg1 : i32, i32
  }
  func.func @transform_2(%arg0: i32, %arg1: i32) -> (i32, i32) {
    %c0_i32 = arith.constant 0 : i32
    return %arg0, %arg1 : i32, i32
  }
}

module attributes {stable_mosaic.version = 11 : i64} {
  func.func @_matmul_kernel(%arg0: i32, %arg1: i32, %arg2: memref<128x2048xbf16, #tpu.memory_space<vmem>>, %arg3: memref<2048x128xbf16, #tpu.memory_space<vmem>>, %arg4: memref<128x128xbf16, #tpu.memory_space<vmem>>, %arg5: memref<1x8x128xf32, #tpu.memory_space<vmem>>) attributes {dimension_semantics = [#tpu.dimension_semantics<parallel>, #tpu.dimension_semantics<parallel>], iteration_bounds = array<i64: 1, 2>, scalar_prefetch = 0 : i64, scratch_operands = 0 : i64, tpu.core_type = #tpu.core_type<tc>, window_params = [{transform_indices = @transform_0, window_bounds = array<i64: 128, 2048>}, {transform_indices = @transform_1, window_bounds = array<i64: 2048, 128>}, {transform_indices = @transform_2, window_bounds = array<i64: 128, 128>}, {transform_indices = @transform_3, window_bounds = array<i64: 1, 8, 128>}]} {
    %c0 = arith.constant 0 : index
    %c0_0 = arith.constant 0 : index
    %0 = vector.load %arg2[%c0, %c0_0] : memref<128x2048xbf16, #tpu.memory_space<vmem>>, vector<128x2048xbf16>
    %c0_1 = arith.constant 0 : index
    %c0_2 = arith.constant 0 : index
    %1 = vector.load %arg3[%c0_1, %c0_2] : memref<2048x128xbf16, #tpu.memory_space<vmem>>, vector<2048x128xbf16>
    %cst = arith.constant dense<0.000000e+00> : vector<128x128xf32>
    %2 = tpu.matmul %0, %1, %cst {dimension_numbers = #tpu.dot_dimension_numbers<[1], [0], [0], [1], [0, 0, 1, 1], [], []>} : vector<128x2048xbf16>, vector<2048x128xbf16>, vector<128x128xf32> -> vector<128x128xf32>
    %cst_3 = arith.constant dense<0.000000e+00> : vector<128xf32>
    %3 = vector.multi_reduction <add>, %2, %cst_3 [0] : vector<128x128xf32> to vector<128xf32>
    %4 = vector.shape_cast %3 : vector<128xf32> to vector<1x128xf32>
    %c0_4 = arith.constant 0 : index
    %c0_5 = arith.constant 0 : index
    %c0_6 = arith.constant 0 : index
    %5 = vector.load %arg5[%c0_4, %c0_5, %c0_6] : memref<1x8x128xf32, #tpu.memory_space<vmem>>, vector<1x1x128xf32>
    %6 = vector.shape_cast %5 : vector<1x1x128xf32> to vector<1x128xf32>
    %7 = vector.shape_cast %4 : vector<1x128xf32> to vector<1x1x128xf32>
    tpu.vector_store %arg5[%c0_4, %c0_5, %c0_6], %7 {strides = array<i32>} : memref<1x8x128xf32, #tpu.memory_space<vmem>>, vector<1x1x128xf32>,
    %8 = arith.mulf %2, %2 : vector<128x128xf32>
    %cst_7 = arith.constant dense<0.000000e+00> : vector<128xf32>
    %9 = vector.multi_reduction <add>, %8, %cst_7 [0] : vector<128x128xf32> to vector<128xf32>
    %10 = vector.shape_cast %9 : vector<128xf32> to vector<1x128xf32>
    %c0_8 = arith.constant 0 : index
    %c1 = arith.constant 1 : index
    %c0_9 = arith.constant 0 : index
    %11 = vector.load %arg5[%c0_8, %c1, %c0_9] : memref<1x8x128xf32, #tpu.memory_space<vmem>>, vector<1x1x128xf32>
    %12 = vector.shape_cast %11 : vector<1x1x128xf32> to vector<1x128xf32>
    %13 = vector.shape_cast %10 : vector<1x128xf32> to vector<1x1x128xf32>
    tpu.vector_store %arg5[%c0_8, %c1, %c0_9], %13 {strides = array<i32>} : memref<1x8x128xf32, #tpu.memory_space<vmem>>, vector<1x1x128xf32>,
    %14 = arith.truncf %2 : vector<128x128xf32> to vector<128x128xbf16>
    %c0_10 = arith.constant 0 : index
    %c0_11 = arith.constant 0 : index
    %15 = vector.load %arg4[%c0_10, %c0_11] : memref<128x128xbf16, #tpu.memory_space<vmem>>, vector<128x128xbf16>
    tpu.vector_store %arg4[%c0_10, %c0_11], %14 {strides = array<i32>} : memref<128x128xbf16, #tpu.memory_space<vmem>>, vector<128x128xbf16>,
    return
  }
  func.func @transform_0(%arg0: i32, %arg1: i32) -> (i32, i32) {
    %c0_i32 = arith.constant 0 : i32
    %c0_i32_0 = arith.constant 0 : i32
    return %arg0, %c0_i32 : i32, i32
  }
  func.func @transform_1(%arg0: i32, %arg1: i32) -> (i32, i32) {
    %c0_i32 = arith.constant 0 : i32
    %c0_i32_0 = arith.constant 0 : i32
    return %c0_i32, %arg1 : i32, i32
  }
  func.func @transform_2(%arg0: i32, %arg1: i32) -> (i32, i32) {
    %c0_i32 = arith.constant 0 : i32
    return %arg0, %arg1 : i32, i32
  }
  func.func @transform_3(%arg0: i32, %arg1: i32) -> (i32, i32, i32) {
    %c0_i32 = arith.constant 0 : i32
    %c0_i32_0 = arith.constant 0 : i32
    return %arg0, %c0_i32, %arg1 : i32, i32, i32
  }
}

module attributes {stable_mosaic.version = 11 : i64} {
  func.func @_affine_act_kernel(%arg0: i32, %arg1: memref<128x256xbf16, #tpu.memory_space<vmem>>, %arg2: memref<1x256xf32, #tpu.memory_space<vmem>>, %arg3: memref<1x256xf32, #tpu.memory_space<vmem>>, %arg4: memref<128x256xbf16, #tpu.memory_space<vmem>>) attributes {dimension_semantics = [#tpu.dimension_semantics<parallel>], iteration_bounds = array<i64: 1>, scalar_prefetch = 0 : i64, scratch_operands = 0 : i64, tpu.core_type = #tpu.core_type<tc>, window_params = [{transform_indices = @transform_0, window_bounds = array<i64: 128, 256>}, {pipeline_mode = #tpu.pipeline_mode<synchronous>, transform_indices = @transform_1, window_bounds = array<i64: 1, 256>}, {pipeline_mode = #tpu.pipeline_mode<synchronous>, transform_indices = @transform_2, window_bounds = array<i64: 1, 256>}, {transform_indices = @transform_3, window_bounds = array<i64: 128, 256>}]} {
    %c0 = arith.constant 0 : index
    %c0_0 = arith.constant 0 : index
    %0 = vector.load %arg1[%c0, %c0_0] : memref<128x256xbf16, #tpu.memory_space<vmem>>, vector<128x256xbf16>
    %1 = arith.extf %0 : vector<128x256xbf16> to vector<128x256xf32>
    %c0_1 = arith.constant 0 : index
    %c0_2 = arith.constant 0 : index
    %2 = vector.load %arg2[%c0_1, %c0_2] : memref<1x256xf32, #tpu.memory_space<vmem>>, vector<1x256xf32>
    %3 = vector.broadcast %2 : vector<1x256xf32> to vector<128x256xf32>
    %4 = arith.mulf %1, %3 : vector<128x256xf32>
    %c0_3 = arith.constant 0 : index
    %c0_4 = arith.constant 0 : index
    %5 = vector.load %arg3[%c0_3, %c0_4] : memref<1x256xf32, #tpu.memory_space<vmem>>, vector<1x256xf32>
    %6 = vector.broadcast %5 : vector<1x256xf32> to vector<128x256xf32>
    %7 = arith.addf %4, %6 : vector<128x256xf32>
    %cst = arith.constant 0.000000e+00 : f32
    %8 = vector.broadcast %cst : f32 to vector<128x256xf32>
    %9 = arith.cmpf oge, %7, %8 : vector<128x256xf32>
    %cst_5 = arith.constant 2.000000e-01 : f32
    %10 = vector.broadcast %cst_5 : f32 to vector<128x256xf32>
    %11 = arith.mulf %10, %7 : vector<128x256xf32>
    %12 = arith.select %9, %7, %11 : vector<128x256xi1>, vector<128x256xf32>
    %13 = arith.truncf %12 : vector<128x256xf32> to vector<128x256xbf16>
    %c0_6 = arith.constant 0 : index
    %c0_7 = arith.constant 0 : index
    %14 = vector.load %arg4[%c0_6, %c0_7] : memref<128x256xbf16, #tpu.memory_space<vmem>>, vector<128x256xbf16>
    tpu.vector_store %arg4[%c0_6, %c0_7], %13 {strides = array<i32>} : memref<128x256xbf16, #tpu.memory_space<vmem>>, vector<128x256xbf16>,
    return
  }
  func.func @transform_0(%arg0: i32) -> (i32, i32) {
    %c0_i32 = arith.constant 0 : i32
    %c0_i32_0 = arith.constant 0 : i32
    return %arg0, %c0_i32 : i32, i32
  }
  func.func @transform_1(%arg0: i32) -> (i32, i32) {
    %c0_i32 = arith.constant 0 : i32
    %c0_i32_0 = arith.constant 0 : i32
    %c0_i32_1 = arith.constant 0 : i32
    return %c0_i32, %c0_i32_0 : i32, i32
  }
  func.func @transform_2(%arg0: i32) -> (i32, i32) {
    %c0_i32 = arith.constant 0 : i32
    %c0_i32_0 = arith.constant 0 : i32
    %c0_i32_1 = arith.constant 0 : i32
    return %c0_i32, %c0_i32_0 : i32, i32
  }
  func.func @transform_3(%arg0: i32) -> (i32, i32) {
    %c0_i32 = arith.constant 0 : i32
    %c0_i32_0 = arith.constant 0 : i32
    return %arg0, %c0_i32 : i32, i32
  }
}

module attributes {stable_mosaic.version = 11 : i64} {
  func.func @_matmul_kernel(%arg0: i32, %arg1: i32, %arg2: memref<32x4096xbf16, #tpu.memory_space<vmem>>, %arg3: memref<4096x256xbf16, #tpu.memory_space<vmem>>, %arg4: memref<32x256xbf16, #tpu.memory_space<vmem>>, %arg5: memref<1x8x256xf32, #tpu.memory_space<vmem>>) attributes {dimension_semantics = [#tpu.dimension_semantics<parallel>, #tpu.dimension_semantics<parallel>], iteration_bounds = array<i64: 1, 2>, scalar_prefetch = 0 : i64, scratch_operands = 0 : i64, tpu.core_type = #tpu.core_type<tc>, window_params = [{transform_indices = @transform_0, window_bounds = array<i64: 32, 4096>}, {transform_indices = @transform_1, window_bounds = array<i64: 4096, 256>}, {transform_indices = @transform_2, window_bounds = array<i64: 32, 256>}, {transform_indices = @transform_3, window_bounds = array<i64: 1, 8, 256>}]} {
    %c0 = arith.constant 0 : index
    %c0_0 = arith.constant 0 : index
    %0 = vector.load %arg2[%c0, %c0_0] : memref<32x4096xbf16, #tpu.memory_space<vmem>>, vector<32x4096xbf16>
    %c0_1 = arith.constant 0 : index
    %c0_2 = arith.constant 0 : index
    %1 = vector.load %arg3[%c0_1, %c0_2] : memref<4096x256xbf16, #tpu.memory_space<vmem>>, vector<4096x256xbf16>
    %cst = arith.constant dense<0.000000e+00> : vector<32x256xf32>
    %2 = tpu.matmul %0, %1, %cst {dimension_numbers = #tpu.dot_dimension_numbers<[1], [0], [0], [1], [0, 0, 1, 1], [], []>} : vector<32x4096xbf16>, vector<4096x256xbf16>, vector<32x256xf32> -> vector<32x256xf32>
    %cst_3 = arith.constant dense<0.000000e+00> : vector<256xf32>
    %3 = vector.multi_reduction <add>, %2, %cst_3 [0] : vector<32x256xf32> to vector<256xf32>
    %4 = vector.shape_cast %3 : vector<256xf32> to vector<1x256xf32>
    %c0_4 = arith.constant 0 : index
    %c0_5 = arith.constant 0 : index
    %c0_6 = arith.constant 0 : index
    %5 = vector.load %arg5[%c0_4, %c0_5, %c0_6] : memref<1x8x256xf32, #tpu.memory_space<vmem>>, vector<1x1x256xf32>
    %6 = vector.shape_cast %5 : vector<1x1x256xf32> to vector<1x256xf32>
    %7 = vector.shape_cast %4 : vector<1x256xf32> to vector<1x1x256xf32>
    tpu.vector_store %arg5[%c0_4, %c0_5, %c0_6], %7 {strides = array<i32>} : memref<1x8x256xf32, #tpu.memory_space<vmem>>, vector<1x1x256xf32>,
    %8 = arith.mulf %2, %2 : vector<32x256xf32>
    %cst_7 = arith.constant dense<0.000000e+00> : vector<256xf32>
    %9 = vector.multi_reduction <add>, %8, %cst_7 [0] : vector<32x256xf32> to vector<256xf32>
    %10 = vector.shape_cast %9 : vector<256xf32> to vector<1x256xf32>
    %c0_8 = arith.constant 0 : index
    %c1 = arith.constant 1 : index
    %c0_9 = arith.constant 0 : index
    %11 = vector.load %arg5[%c0_8, %c1, %c0_9] : memref<1x8x256xf32, #tpu.memory_space<vmem>>, vector<1x1x256xf32>
    %12 = vector.shape_cast %11 : vector<1x1x256xf32> to vector<1x256xf32>
    %13 = vector.shape_cast %10 : vector<1x256xf32> to vector<1x1x256xf32>
    tpu.vector_store %arg5[%c0_8, %c1, %c0_9], %13 {strides = array<i32>} : memref<1x8x256xf32, #tpu.memory_space<vmem>>, vector<1x1x256xf32>,
    %14 = arith.truncf %2 : vector<32x256xf32> to vector<32x256xbf16>
    %c0_10 = arith.constant 0 : index
    %c0_11 = arith.constant 0 : index
    %15 = vector.load %arg4[%c0_10, %c0_11] : memref<32x256xbf16, #tpu.memory_space<vmem>>, vector<32x256xbf16>
    tpu.vector_store %arg4[%c0_10, %c0_11], %14 {strides = array<i32>} : memref<32x256xbf16, #tpu.memory_space<vmem>>, vector<32x256xbf16>,
    return
  }
  func.func @transform_0(%arg0: i32, %arg1: i32) -> (i32, i32) {
    %c0_i32 = arith.constant 0 : i32
    %c0_i32_0 = arith.constant 0 : i32
    return %arg0, %c0_i32 : i32, i32
  }
  func.func @transform_1(%arg0: i32, %arg1: i32) -> (i32, i32) {
    %c0_i32 = arith.constant 0 : i32
    %c0_i32_0 = arith.constant 0 : i32
    return %c0_i32, %arg1 : i32, i32
  }
  func.func @transform_2(%arg0: i32, %arg1: i32) -> (i32, i32) {
    %c0_i32 = arith.constant 0 : i32
    return %arg0, %arg1 : i32, i32
  }
  func.func @transform_3(%arg0: i32, %arg1: i32) -> (i32, i32, i32) {
    %c0_i32 = arith.constant 0 : i32
    %c0_i32_0 = arith.constant 0 : i32
    return %arg0, %c0_i32, %arg1 : i32, i32, i32
  }
}

module attributes {stable_mosaic.version = 11 : i64} {
  func.func @_affine_act_kernel(%arg0: i32, %arg1: memref<32x512xbf16, #tpu.memory_space<vmem>>, %arg2: memref<1x512xf32, #tpu.memory_space<vmem>>, %arg3: memref<1x512xf32, #tpu.memory_space<vmem>>, %arg4: memref<32x512xbf16, #tpu.memory_space<vmem>>) attributes {dimension_semantics = [#tpu.dimension_semantics<parallel>], iteration_bounds = array<i64: 1>, scalar_prefetch = 0 : i64, scratch_operands = 0 : i64, tpu.core_type = #tpu.core_type<tc>, window_params = [{transform_indices = @transform_0, window_bounds = array<i64: 32, 512>}, {pipeline_mode = #tpu.pipeline_mode<synchronous>, transform_indices = @transform_1, window_bounds = array<i64: 1, 512>}, {pipeline_mode = #tpu.pipeline_mode<synchronous>, transform_indices = @transform_2, window_bounds = array<i64: 1, 512>}, {transform_indices = @transform_3, window_bounds = array<i64: 32, 512>}]} {
    %c0 = arith.constant 0 : index
    %c0_0 = arith.constant 0 : index
    %0 = vector.load %arg1[%c0, %c0_0] : memref<32x512xbf16, #tpu.memory_space<vmem>>, vector<32x512xbf16>
    %1 = arith.extf %0 : vector<32x512xbf16> to vector<32x512xf32>
    %c0_1 = arith.constant 0 : index
    %c0_2 = arith.constant 0 : index
    %2 = vector.load %arg2[%c0_1, %c0_2] : memref<1x512xf32, #tpu.memory_space<vmem>>, vector<1x512xf32>
    %3 = vector.broadcast %2 : vector<1x512xf32> to vector<32x512xf32>
    %4 = arith.mulf %1, %3 : vector<32x512xf32>
    %c0_3 = arith.constant 0 : index
    %c0_4 = arith.constant 0 : index
    %5 = vector.load %arg3[%c0_3, %c0_4] : memref<1x512xf32, #tpu.memory_space<vmem>>, vector<1x512xf32>
    %6 = vector.broadcast %5 : vector<1x512xf32> to vector<32x512xf32>
    %7 = arith.addf %4, %6 : vector<32x512xf32>
    %cst = arith.constant 0.000000e+00 : f32
    %8 = vector.broadcast %cst : f32 to vector<32x512xf32>
    %9 = arith.cmpf oge, %7, %8 : vector<32x512xf32>
    %cst_5 = arith.constant 2.000000e-01 : f32
    %10 = vector.broadcast %cst_5 : f32 to vector<32x512xf32>
    %11 = arith.mulf %10, %7 : vector<32x512xf32>
    %12 = arith.select %9, %7, %11 : vector<32x512xi1>, vector<32x512xf32>
    %13 = arith.truncf %12 : vector<32x512xf32> to vector<32x512xbf16>
    %c0_6 = arith.constant 0 : index
    %c0_7 = arith.constant 0 : index
    %14 = vector.load %arg4[%c0_6, %c0_7] : memref<32x512xbf16, #tpu.memory_space<vmem>>, vector<32x512xbf16>
    tpu.vector_store %arg4[%c0_6, %c0_7], %13 {strides = array<i32>} : memref<32x512xbf16, #tpu.memory_space<vmem>>, vector<32x512xbf16>,
    return
  }
  func.func @transform_0(%arg0: i32) -> (i32, i32) {
    %c0_i32 = arith.constant 0 : i32
    %c0_i32_0 = arith.constant 0 : i32
    return %arg0, %c0_i32 : i32, i32
  }
  func.func @transform_1(%arg0: i32) -> (i32, i32) {
    %c0_i32 = arith.constant 0 : i32
    %c0_i32_0 = arith.constant 0 : i32
    %c0_i32_1 = arith.constant 0 : i32
    return %c0_i32, %c0_i32_0 : i32, i32
  }
  func.func @transform_2(%arg0: i32) -> (i32, i32) {
    %c0_i32 = arith.constant 0 : i32
    %c0_i32_0 = arith.constant 0 : i32
    %c0_i32_1 = arith.constant 0 : i32
    return %c0_i32, %c0_i32_0 : i32, i32
  }
  func.func @transform_3(%arg0: i32) -> (i32, i32) {
    %c0_i32 = arith.constant 0 : i32
    %c0_i32_0 = arith.constant 0 : i32
    return %arg0, %c0_i32 : i32, i32
  }
}

module attributes {stable_mosaic.version = 11 : i64} {
  func.func @_matmul_kernel(%arg0: i32, %arg1: i32, %arg2: memref<2x8192xbf16, #tpu.memory_space<vmem>>, %arg3: memref<8192x128xbf16, #tpu.memory_space<vmem>>, %arg4: memref<2x128xf32, #tpu.memory_space<vmem>>) attributes {dimension_semantics = [#tpu.dimension_semantics<parallel>, #tpu.dimension_semantics<parallel>], iteration_bounds = array<i64: 1, 1>, scalar_prefetch = 0 : i64, scratch_operands = 0 : i64, tpu.core_type = #tpu.core_type<tc>, window_params = [{transform_indices = @transform_0, window_bounds = array<i64: 2, 8192>}, {transform_indices = @transform_1, window_bounds = array<i64: 8192, 128>}, {transform_indices = @transform_2, window_bounds = array<i64: 2, 128>}]} {
    %c0 = arith.constant 0 : index
    %c0_0 = arith.constant 0 : index
    %0 = vector.load %arg2[%c0, %c0_0] : memref<2x8192xbf16, #tpu.memory_space<vmem>>, vector<2x8192xbf16>
    %c0_1 = arith.constant 0 : index
    %c0_2 = arith.constant 0 : index
    %1 = vector.load %arg3[%c0_1, %c0_2] : memref<8192x128xbf16, #tpu.memory_space<vmem>>, vector<8192x128xbf16>
    %cst = arith.constant dense<0.000000e+00> : vector<2x128xf32>
    %2 = tpu.matmul %0, %1, %cst {dimension_numbers = #tpu.dot_dimension_numbers<[1], [0], [0], [1], [0, 0, 1, 1], [], []>} : vector<2x8192xbf16>, vector<8192x128xbf16>, vector<2x128xf32> -> vector<2x128xf32>
    %cst_3 = arith.constant 5.000000e-01 : f32
    %3 = vector.broadcast %cst_3 : f32 to vector<2x128xf32>
    %4 = arith.mulf %3, %2 : vector<2x128xf32>
    %5 = math.tanh %4 : vector<2x128xf32>
    %cst_4 = arith.constant 1.000000e+00 : f32
    %6 = vector.broadcast %cst_4 : f32 to vector<2x128xf32>
    %7 = arith.addf %5, %6 : vector<2x128xf32>
    %cst_5 = arith.constant 5.000000e-01 : f32
    %8 = vector.broadcast %cst_5 : f32 to vector<2x128xf32>
    %9 = arith.mulf %8, %7 : vector<2x128xf32>
    %c0_6 = arith.constant 0 : index
    %c0_7 = arith.constant 0 : index
    %10 = vector.load %arg4[%c0_6, %c0_7] : memref<2x128xf32, #tpu.memory_space<vmem>>, vector<2x128xf32>
    tpu.vector_store %arg4[%c0_6, %c0_7], %9 {strides = array<i32>} : memref<2x128xf32, #tpu.memory_space<vmem>>, vector<2x128xf32>,
    return
  }
  func.func @transform_0(%arg0: i32, %arg1: i32) -> (i32, i32) {
    %c0_i32 = arith.constant 0 : i32
    %c0_i32_0 = arith.constant 0 : i32
    return %arg0, %c0_i32 : i32, i32
  }
  func.func @transform_1(%arg0: i32, %arg1: i32) -> (i32, i32) {
    %c0_i32 = arith.constant 0 : i32
    %c0_i32_0 = arith.constant 0 : i32
    return %c0_i32, %arg1 : i32, i32
  }
  func.func @transform_2(%arg0: i32, %arg1: i32) -> (i32, i32) {
    %c0_i32 = arith.constant 0 : i32
    return %arg0, %arg1 : i32, i32
  }
}

</mosaic_0001>

<bundles_post_ra>
// kernel: tpu_custom_call.1
= control target key start
LH: loop header
LB: loop body
LE: loop exit
PB: predicated region body
PF: predicated region fallthrough
CT: control target
= control target key end

     0   :  { %7 = vsyncpa [#allocation3], 0  ;;  %s384_s0 = inlined_call_operand.hbm [shape: bf16[16,128], index: 0, kind: input, shape index: {}]   ;;  %s385_s1 = inlined_call_operand.hbm [shape: bf16[128,128], index: 1, kind: input, shape index: {}]   ;;  %s386_s2 = inlined_call_operand.hbm [shape: bf16[16,128], index: 2, kind: output, shape index: {}]  }
   0x1   :  { %8 = vsyncpa [#allocation6], 0 }
   0x2   :  { %9 = vsyncpa [#allocation4], 0  ;;  %s317_s9 = smov [#allocation2]   ;;  %s245_s13 = scalar_lea.hbm %s384_s0, 128 }
   0x3   :  { %s15_s10 = sshll.u32 %s317_s9, 4  ;;  %p246_p0 = scmp.ne.s32.totalorder %s384_s0, %s245_s13  ;;  %s16_s10 = int_to_ptr.vmem [resolvable:$true] %s15_s10 }
   0x4   :  { %p249_p1 = scmp.lt.u32.totalorder %s245_s13, %s384_s0 }
   0x6   :  { %p251_p2 = pnand %p249_p1, %p246_p0 }
   0x8   :  { %254 = shalt.err (!%p251_p2)
}
   0x9   :  { %s255_s18 = scalar_lea.vmem %s16_s10, 128  ;;  %p260_p4 = scmp.lt.s32.totalorder %s16_s10, %s16_s10 }
   0xa   :  { %p256_p3 = scmp.ne.s32.totalorder %s16_s10, %s255_s18  ;;  %p261_p5 = scmp.lt.s32.totalorder %s255_s18, %s255_s18 }
   0xc   :  { %p262_p6 = por %p261_p5, %p260_p4 }
   0xe   :  { %p263_p7 = pnand %p262_p6, %p256_p3 }
  0x10   :  { %266 = shalt.err (!%p263_p7)
}
  0x11   :  { %s318_s19 = smov 64   ;;  %s319_s20 = smov 4  }
  0x12   :  { %21 = dma.hbm_to_vmem [thread:$0]  %s384_s0, 128, %s16_s10, [#allocation3], %s318_s19, %s318_s19, %s319_s20  }
  0x13   :  { %s320_s23 = smov [#allocation5]   ;;  %s267_s27 = scalar_lea.hbm %s385_s1, 1024 }
  0x14   :  { %s27_s24 = sshll.u32 %s320_s23, 4  ;;  %p268_p8 = scmp.ne.s32.totalorder %s385_s1, %s267_s27  ;;  %s28_s24 = int_to_ptr.vmem [resolvable:$true] %s27_s24 }
  0x15   :  { %p271_p9 = scmp.lt.u32.totalorder %s267_s27, %s385_s1 }
  0x17   :  { %p273_p10 = pnand %p271_p9, %p268_p8 }
  0x19   :  { %276 = shalt.err (!%p273_p10)
}
  0x1a   :  { %s277_s4 = scalar_lea.vmem %s28_s24, 1024  ;;  %p282_p12 = scmp.lt.s32.totalorder %s28_s24, %s28_s24 }
  0x1b   :  { %p278_p11 = scmp.ne.s32.totalorder %s28_s24, %s277_s4  ;;  %p283_p13 = scmp.lt.s32.totalorder %s277_s4, %s277_s4 }
  0x1d   :  { %p284_p0 = por %p283_p13, %p282_p12 }
  0x1f   :  { %p285_p1 = pnand %p284_p0, %p278_p11 }
  0x21   :  { %288 = shalt.err (!%p285_p1)
}
  0x22   :  { %33 = dma.hbm_to_vmem [thread:$0]  %s385_s1, 1024, %s28_s24, [#allocation6], %s318_s19, %s318_s19, %s319_s20  }
  0x23   :  { %311 = dma.done.wait [#allocation3], 128  }
  0x24   :  { %312 = vsyncadd [#allocation3], 4294967168 }
  0x25   :  { %313 = dma.done.wait [#allocation6], 1024  }
  0x26   :  { %314 = vsyncadd [#allocation6], 4294966272  ;;  %v321_v0 = vmov 0.0   ;;  %vm322_vm0 = vmmov 0   ;;  %v236_v1 = vld [vmem:[#allocation5] sm:$0xff]   ;;  %v237_v2 = vld [vmem:[#allocation5 + $0x8] sm:$0xff]  }
  0x27   :  { %209 = vmatprep.subr.bf16.mxu0 %v321_v0  ;;  %225 = vmatprep.mubr.msk.bf16.mxu0 %vm322_vm0, %v321_v0  ;;  %v238_v3 = vld [vmem:[#allocation5 + $0x10] sm:$0xff]   ;;  %v239_v4 = vld [vmem:[#allocation5 + $0x18] sm:$0xff]   ;;  %v240_v5 = vld [vmem:[#allocation5 + $0x20] sm:$0xff]   ;;  %s323_s1 = smov [#allocation7]  }
  0x28   :  { %210 = vmatpush3.bf16.msra.mxu0 %v236_v1  ;;  %v241_v6 = vld [vmem:[#allocation5 + $0x28] sm:$0xff]   ;;  %v242_v7 = vld [vmem:[#allocation5 + $0x30] sm:$0xff]   ;;  %v243_v8 = vld [vmem:[#allocation5 + $0x38] sm:$0xff]   ;;  %s169_s6 = sshll.u32 %s323_s1, 4  ;;  %s170_s6 = int_to_ptr.vmem [resolvable:$true] %s169_s6 }
  0x29   :  { %211 = vmatprep.subr.bf16.mxu0 %v321_v0  ;;  %v244_v9 = vld [vmem:[#allocation2] sm:$0xff]   ;;  %s289_s7 = scalar_lea.vmem %s170_s6, 128  ;;  %p294_p3 = scmp.lt.s32.totalorder %s170_s6, %s170_s6 }
  0x2a   :  { %p290_p2 = scmp.ne.s32.totalorder %s170_s6, %s289_s7  ;;  %p295_p4 = scmp.lt.s32.totalorder %s289_s7, %s289_s7 }
  0x2c   :  { %212 = vmatpush3.bf16.msra.mxu0 %v237_v2  ;;  %p296_p5 = por %p295_p4, %p294_p3 }
  0x2d   :  { %213 = vmatprep.subr.bf16.mxu0 %v321_v0 }
  0x2e   :  { %p297_p6 = pnand %p296_p5, %p290_p2 }
  0x30   :  { %214 = vmatpush3.bf16.msra.mxu0 %v238_v3 }
  0x31   :  { %215 = vmatprep.subr.bf16.mxu0 %v321_v0 }
  0x34   :  { %216 = vmatpush3.bf16.msra.mxu0 %v239_v4 }
  0x35   :  { %217 = vmatprep.subr.bf16.mxu0 %v321_v0 }
  0x38   :  { %218 = vmatpush3.bf16.msra.mxu0 %v240_v5 }
  0x39   :  { %219 = vmatprep.subr.bf16.mxu0 %v321_v0 }
  0x3c   :  { %220 = vmatpush3.bf16.msra.mxu0 %v241_v6 }
  0x3d   :  { %221 = vmatprep.subr.bf16.mxu0 %v321_v0 }
  0x40   :  { %222 = vmatpush3.bf16.msra.mxu0 %v242_v7 }
  0x41   :  { %223 = vmatprep.subr.bf16.mxu0 %v321_v0 }
  0x44   :  { %224 = vmatpush3.bf16.msra.mxu0 %v243_v8 }
  0x47   :  { %226 = vmatmul.mubr.bf16.vlgmr.msra.gmra.mrb[0].mxu0 %v244_v9 }
 0x11a   :  { %v147_v10 = vpop.f32.mrb[0].mxu0 }
 0x11b   :  { %v227_v11 = vpop.f32.mrb[1].mxu0 }
 0x11c   :  { %v150_v12 = vpop.f32.mrb[2].mxu0 }
 0x11d   :  { %v198_v13 = vpack.c.bf16 %v150_v12, %v147_v10  ;;  %v228_v14 = vpop.f32.mrb[3].mxu0 }
 0x11f   :  { %199 = vst [vmem:[#allocation7] sm:$0xff] %v198_v13  }
 0x120   :  { %300 = shalt.err (!%p297_p6)
}
 0x121   :  { %s301_s10 = scalar_lea.hbm %s386_s2, 128 }
 0x122   :  { %p302_p7 = scmp.ne.s32.totalorder %s386_s2, %s301_s10  ;;  %p305_p8 = scmp.lt.u32.totalorder %s301_s10, %s386_s2 }
 0x124   :  { %p307_p9 = pnand %p305_p8, %p302_p7 }
 0x126   :  { %310 = shalt.err (!%p307_p9)
}
 0x127   :  { %175 = dma.vmem_to_hbm [thread:$0]  %s170_s6, 128, %s386_s2, [#allocation4], %s318_s19, %s318_s19, %s319_s20  }
 0x128   :  { %315 = dma.done.wait [#allocation4], 128  }
 0x129   :  { %316 = vsyncadd [#allocation4], 4294967168 }
 0x12a   :  { %179 = vsyncpa [#allocation3], 1 }
 0x12b   :  { %180 = vsyncpa [#allocation6], 1 }
 0x12c   :  { %181 = vsyncpa [#allocation4], 1 }

// kernel: discriminator_forward.6
= control target key start
LH: loop header
LB: loop body
LE: loop exit
PB: predicated region body
PF: predicated region fallthrough
CT: control target
= control target key end

     0   :  { %s1910_s1 = inlined_call_operand.vmem [shape: bf16[128,128], index: 1, kind: input, shape index: {}]   ;;  %s1911_s0 = inlined_call_operand.vmem [shape: bf16[512,128], index: 0, kind: input, shape index: {}]   ;;  %s1912_s2 = inlined_call_operand.vmem [shape: bf16[512,128], index: 2, kind: output, shape index: {}]  }
   0x1   :  { %v1632_v0 = vld [vmem:[%s1910_s1] sm:$0xff]   ;;  %v1633_v1 = vld [vmem:[%s1910_s1 + $0x8] sm:$0xff]   ;;  %v1634_v2 = vld [vmem:[%s1910_s1 + $0x10] sm:$0xff]  }
   0x2   :  { %1536 = vmatprep.subr.bf16.mxu0 %v1632_v0  ;;  %1616 = vmatprep.subr.bf16.mxu1 %v1632_v0  ;;  %v1635_v3 = vld [vmem:[%s1910_s1 + $0x18] sm:$0xff]   ;;  %v1640_v4 = vld [vmem:[%s1911_s0] sm:$0xff]   ;;  %v1637_v7 = vld [vmem:[%s1910_s1 + $0x28] sm:$0xff]  }
   0x3   :  { %1537 = vmatpush3.bf16.msra.mxu0 %v1632_v0  ;;  %1624 = vmatpush3.bf16.msra.mxu1 %v1632_v0  ;;  %v1641_v5 = vld [vmem:[%s1911_s0 + $0x80] sm:$0xff]   ;;  %v1638_v8 = vld [vmem:[%s1910_s1 + $0x30] sm:$0xff]   ;;  %v1639_v9 = vld [vmem:[%s1910_s1 + $0x38] sm:$0xff]  }
   0x4   :  { %1538 = vmatprep.subr.bf16.mxu0 %v1633_v1  ;;  %1617 = vmatprep.subr.bf16.mxu1 %v1633_v1  ;;  %v1636_v6 = vld [vmem:[%s1910_s1 + $0x20] sm:$0xff]   ;;  %v1642_v10 = vld [vmem:[%s1911_s0 + $0x8] sm:$0xff]   ;;  %v1644_v12 = vld [vmem:[%s1911_s0 + $0x10] sm:$0xff]  }
   0x5   :  { %1552 = vmatprep.mubr.bf16.mxu0 %v1640_v4  ;;  %1584 = vmatprep.mubr.bf16.mxu1 %v1641_v5  ;;  %v1643_v11 = vld [vmem:[%s1911_s0 + $0x88] sm:$0xff]   ;;  %v1645_v13 = vld [vmem:[%s1911_s0 + $0x90] sm:$0xff]   ;;  %v1646_v14 = vld [vmem:[%s1911_s0 + $0x18] sm:$0xff]  }
   0x6   :  { %v1647_v15 = vld [vmem:[%s1911_s0 + $0x98] sm:$0xff]   ;;  %v1648_v16 = vld [vmem:[%s1911_s0 + $0x20] sm:$0xff]   ;;  %v1650_v18 = vld [vmem:[%s1911_s0 + $0x28] sm:$0xff]  }
   0x7   :  { %1539 = vmatpush3.bf16.msra.mxu0 %v1633_v1  ;;  %1625 = vmatpush3.bf16.msra.mxu1 %v1633_v1  ;;  %v1649_v17 = vld [vmem:[%s1911_s0 + $0xa0] sm:$0xff]   ;;  %v1651_v19 = vld [vmem:[%s1911_s0 + $0xa8] sm:$0xff]   ;;  %v1652_v20 = vld [vmem:[%s1911_s0 + $0x30] sm:$0xff]  }
   0x8   :  { %1540 = vmatprep.subr.bf16.mxu0 %v1634_v2  ;;  %1618 = vmatprep.subr.bf16.mxu1 %v1634_v2  ;;  %v1653_v21 = vld [vmem:[%s1911_s0 + $0xb0] sm:$0xff]   ;;  %v1654_v22 = vld [vmem:[%s1911_s0 + $0x38] sm:$0xff]   ;;  %v1656_v24 = vld [vmem:[%s1911_s0 + $0x40] sm:$0xff]  }
   0x9   :  { %v1655_v23 = vld [vmem:[%s1911_s0 + $0xb8] sm:$0xff]   ;;  %v1657_v25 = vld [vmem:[%s1911_s0 + $0xc0] sm:$0xff]   ;;  %v1658_v26 = vld [vmem:[%s1911_s0 + $0x48] sm:$0xff]  }
   0xa   :  { %v1659_v27 = vld [vmem:[%s1911_s0 + $0xc8] sm:$0xff]   ;;  %v1660_v28 = vld [vmem:[%s1911_s0 + $0x50] sm:$0xff]   ;;  %v1662_v30 = vld [vmem:[%s1911_s0 + $0x58] sm:$0xff]  }
   0xb   :  { %1541 = vmatpush3.bf16.msra.mxu0 %v1634_v2  ;;  %1626 = vmatpush3.bf16.msra.mxu1 %v1634_v2  ;;  %v1661_v29 = vld [vmem:[%s1911_s0 + $0xd0] sm:$0xff]   ;;  %v1663_v31 = vld [vmem:[%s1911_s0 + $0xd8] sm:$0xff]   ;;  %v1664_v32 = vld [vmem:[%s1911_s0 + $0x60] sm:$0xff]  }
   0xc   :  { %1542 = vmatprep.subr.bf16.mxu0 %v1635_v3  ;;  %1619 = vmatprep.subr.bf16.mxu1 %v1635_v3  ;;  %v1665_v33 = vld [vmem:[%s1911_s0 + $0xe0] sm:$0xff]   ;;  %v1666_v34 = vld [vmem:[%s1911_s0 + $0x68] sm:$0xff]   ;;  %v1668_v36 = vld [vmem:[%s1911_s0 + $0x70] sm:$0xff]  }
   0xd   :  { %v1667_v35 = vld [vmem:[%s1911_s0 + $0xe8] sm:$0xff]   ;;  %v1669_v37 = vld [vmem:[%s1911_s0 + $0xf0] sm:$0xff]   ;;  %v1670_v38 = vld [vmem:[%s1911_s0 + $0x78] sm:$0xff]  }
   0xe   :  { %v1671_v39 = vld [vmem:[%s1911_s0 + $0xf8] sm:$0xff]  }
   0xf   :  { %1543 = vmatpush3.bf16.msra.mxu0 %v1635_v3  ;;  %1627 = vmatpush3.bf16.msra.mxu1 %v1635_v3 }
  0x10   :  { %1544 = vmatprep.subr.bf16.mxu0 %v1636_v6  ;;  %1620 = vmatprep.subr.bf16.mxu1 %v1636_v6 }
  0x13   :  { %1545 = vmatpush3.bf16.msra.mxu0 %v1636_v6  ;;  %1628 = vmatpush3.bf16.msra.mxu1 %v1636_v6 }
  0x14   :  { %1546 = vmatprep.subr.bf16.mxu0 %v1637_v7  ;;  %1621 = vmatprep.subr.bf16.mxu1 %v1637_v7 }
  0x17   :  { %1547 = vmatpush3.bf16.msra.mxu0 %v1637_v7  ;;  %1629 = vmatpush3.bf16.msra.mxu1 %v1637_v7 }
  0x18   :  { %1548 = vmatprep.subr.bf16.mxu0 %v1638_v8  ;;  %1622 = vmatprep.subr.bf16.mxu1 %v1638_v8 }
  0x1b   :  { %1549 = vmatpush3.bf16.msra.mxu0 %v1638_v8  ;;  %1630 = vmatpush3.bf16.msra.mxu1 %v1638_v8 }
  0x1c   :  { %1550 = vmatprep.subr.bf16.mxu0 %v1639_v9  ;;  %1623 = vmatprep.subr.bf16.mxu1 %v1639_v9 }
  0x1f   :  { %1551 = vmatpush3.bf16.msra.mxu0 %v1639_v9  ;;  %1631 = vmatpush3.bf16.msra.mxu1 %v1639_v9 }
  0x22   :  { %1553 = vmatmul.mubr.bf16.vlgmr.msra.gmra.mrb[0].mxu0 %v1642_v10  ;;  %1585 = vmatmul.mubr.bf16.vlgmr.msra.gmra.mrb[0].mxu1 %v1643_v11 }
  0x23   :  { %1556 = vmatprep.mubr.bf16.mxu0 %v1644_v12  ;;  %1588 = vmatprep.mubr.bf16.mxu1 %v1645_v13 }
  0x2a   :  { %1557 = vmatmul.mubr.bf16.gmra.mrb[4].mxu0 %v1646_v14  ;;  %1589 = vmatmul.mubr.bf16.gmra.mrb[4].mxu1 %v1647_v15 }
  0x2b   :  { %1560 = vmatprep.mubr.bf16.mxu0 %v1648_v16  ;;  %1592 = vmatprep.mubr.bf16.mxu1 %v1649_v17 }
  0x32   :  { %1561 = vmatmul.mubr.bf16.gmra.mrb[8].mxu0 %v1650_v18  ;;  %1593 = vmatmul.mubr.bf16.gmra.mrb[8].mxu1 %v1651_v19 }
  0x33   :  { %1564 = vmatprep.mubr.bf16.mxu0 %v1652_v20  ;;  %1596 = vmatprep.mubr.bf16.mxu1 %v1653_v21 }
  0x3a   :  { %1565 = vmatmul.mubr.bf16.gmra.mrb[12].mxu0 %v1654_v22  ;;  %1597 = vmatmul.mubr.bf16.gmra.mrb[12].mxu1 %v1655_v23 }
  0x3b   :  { %1568 = vmatprep.mubr.bf16.mxu0 %v1656_v24  ;;  %1600 = vmatprep.mubr.bf16.mxu1 %v1657_v25 }
  0x42   :  { %1569 = vmatmul.mubr.bf16.gmra.mrb[16].mxu0 %v1658_v26  ;;  %1601 = vmatmul.mubr.bf16.gmra.mrb[16].mxu1 %v1659_v27 }
  0x43   :  { %1572 = vmatprep.mubr.bf16.mxu0 %v1660_v28  ;;  %1604 = vmatprep.mubr.bf16.mxu1 %v1661_v29 }
  0x4a   :  { %1573 = vmatmul.mubr.bf16.gmra.mrb[20].mxu0 %v1662_v30  ;;  %1605 = vmatmul.mubr.bf16.gmra.mrb[20].mxu1 %v1663_v31 }
  0x4b   :  { %1576 = vmatprep.mubr.bf16.mxu0 %v1664_v32  ;;  %1608 = vmatprep.mubr.bf16.mxu1 %v1665_v33 }
  0x52   :  { %1577 = vmatmul.mubr.bf16.gmra.mrb[24].mxu0 %v1666_v34  ;;  %1609 = vmatmul.mubr.bf16.gmra.mrb[24].mxu1 %v1667_v35 }
  0x53   :  { %1580 = vmatprep.mubr.bf16.mxu0 %v1668_v36  ;;  %1612 = vmatprep.mubr.bf16.mxu1 %v1669_v37 }
  0x5a   :  { %1581 = vmatmul.mubr.bf16.gmra.mrb[28].mxu0 %v1670_v38  ;;  %1613 = vmatmul.mubr.bf16.gmra.mrb[28].mxu1 %v1671_v39 }
  0xf5   :  { %v1554_v40 = vpop.f32.mrb[0].mxu0  ;;  %v1586_v41 = vpop.f32.mrb[0].mxu1 }
  0xf6   :  { %vm623_vm0 = vcmp.ge.f32.partialorder %v1554_v40, 0.0  ;;  %v687_v42 = vmul.f32 0.2, %v1554_v40  ;;  %v719_v43 = vmul.f32 0.2, %v1586_v41  ;;  %vm655_vm1 = vcmp.ge.f32.partialorder %v1586_v41, 0.0 }
  0xf7   :  { %v366_v44 = vpop.f32.mrb[1].mxu0  ;;  %v494_v45 = vpop.f32.mrb[1].mxu1 }
  0xf8   :  { %v685_v46 = vmul.f32 0.2, %v366_v44  ;;  %v1555_v47 = vpop.f32.mrb[2].mxu0  ;;  %v1587_v48 = vpop.f32.mrb[2].mxu1  ;;  %v751_v49 = vsel %vm623_vm0, %v1554_v40, %v687_v42  ;;  %v717_v50 = vmul.f32 0.2, %v494_v45  ;;  %v783_v52 = vsel %vm655_vm1, %v1586_v41, %v719_v43 }
  0xf9   :  { %vm624_vm2 = vcmp.ge.f32.partialorder %v1555_v47, 0.0  ;;  %v688_v51 = vmul.f32 0.2, %v1555_v47  ;;  %vm621_vm3 = vcmp.ge.f32.partialorder %v366_v44, 0.0  ;;  %vm656_vm4 = vcmp.ge.f32.partialorder %v1587_v48, 0.0  ;;  %v369_v54 = vpop.f32.mrb[3].mxu0 }
  0xfa   :  { %v720_v53 = vmul.f32 0.2, %v1587_v48  ;;  %v497_v55 = vpop.f32.mrb[3].mxu1  ;;  %vm653_vm5 = vcmp.ge.f32.partialorder %v494_v45, 0.0  ;;  %vm622_vm6 = vcmp.ge.f32.partialorder %v369_v54, 0.0  ;;  %v749_v61 = vsel %vm621_vm3, %v366_v44, %v685_v46 }
  0xfb   :  { %v752_v56 = vsel %vm624_vm2, %v1555_v47, %v688_v51  ;;  %v686_v57 = vmul.f32 0.2, %v369_v54  ;;  %vm654_vm7 = vcmp.ge.f32.partialorder %v497_v55, 0.0  ;;  %v718_v60 = vmul.f32 0.2, %v497_v55 }
  0xfc   :  { %v1313_v58 = vpack.c.bf16 %v752_v56, %v751_v49  ;;  %v784_v59 = vsel %vm656_vm4, %v1587_v48, %v720_v53  ;;  %v781_v2 = vsel %vm653_vm5, %v494_v45, %v717_v50 }
  0xfd   :  { %v1393_v62 = vpack.c.bf16 %v784_v59, %v783_v52  ;;  %v750_v63 = vsel %vm622_vm6, %v369_v54, %v686_v57  ;;  %v1558_v0 = vpop.f32.mrb[4].mxu0  ;;  %v1590_v1 = vpop.f32.mrb[4].mxu1  ;;  %v782_v4 = vsel %vm654_vm7, %v497_v55, %v718_v60 }
  0xfe   :  { %1465 = vst [vmem:[%s1912_s2 + $0x8] sm:$0xff] %v1313_v58   ;;  %v1308_v3 = vpack.c.bf16 %v750_v63, %v749_v61  ;;  %v691_v5 = vmul.f32 0.2, %v1558_v0  ;;  %v382_v6 = vpop.f32.mrb[5].mxu0  ;;  %v510_v7 = vpop.f32.mrb[5].mxu1  ;;  %v1388_v8 = vpack.c.bf16 %v782_v4, %v781_v2  ;;  %vm627_vm8 = vcmp.ge.f32.partialorder %v1558_v0, 0.0 }
  0xff   :  { %1481 = vst [vmem:[%s1912_s2 + $0x88] sm:$0xff] %v1393_v62   ;;  %v723_v9 = vmul.f32 0.2, %v1590_v1  ;;  %v1559_v10 = vpop.f32.mrb[6].mxu0  ;;  %v1591_v11 = vpop.f32.mrb[6].mxu1  ;;  %vm659_vm9 = vcmp.ge.f32.partialorder %v1590_v1, 0.0 }
 0x100   :  { %1309 = vst [vmem:[%s1912_s2] sm:$0xff] %v1308_v3   ;;  %v689_v12 = vmul.f32 0.2, %v382_v6  ;;  %v721_v13 = vmul.f32 0.2, %v510_v7  ;;  %v385_v14 = vpop.f32.mrb[7].mxu0  ;;  %1480 = vst [vmem:[%s1912_s2 + $0x80] sm:$0xff] %v1388_v8   ;;  %v755_v17 = vsel %vm627_vm8, %v1558_v0, %v691_v5 }
 0x101   :  { %vm625_vm10 = vcmp.ge.f32.partialorder %v382_v6, 0.0  ;;  %vm628_vm11 = vcmp.ge.f32.partialorder %v1559_v10, 0.0  ;;  %v692_v15 = vmul.f32 0.2, %v1559_v10  ;;  %vm660_vm12 = vcmp.ge.f32.partialorder %v1591_v11, 0.0  ;;  %v513_v16 = vpop.f32.mrb[7].mxu1 }
 0x102   :  { %vm657_vm13 = vcmp.ge.f32.partialorder %v510_v7, 0.0  ;;  %v724_v18 = vmul.f32 0.2, %v1591_v11  ;;  %vm626_vm14 = vcmp.ge.f32.partialorder %v385_v14, 0.0  ;;  %v690_v20 = vmul.f32 0.2, %v385_v14 }
 0x103   :  { %v756_v19 = vsel %vm628_vm11, %v1559_v10, %v692_v15  ;;  %vm658_vm15 = vcmp.ge.f32.partialorder %v513_v16, 0.0  ;;  %v722_v21 = vmul.f32 0.2, %v513_v16  ;;  %v787_v22 = vsel %vm659_vm9, %v1590_v1, %v723_v9 }
 0x104   :  { %v753_v23 = vsel %vm625_vm10, %v382_v6, %v689_v12  ;;  %v1323_v24 = vpack.c.bf16 %v756_v19, %v755_v17  ;;  %v788_v25 = vsel %vm660_vm12, %v1591_v11, %v724_v18  ;;  %v785_v26 = vsel %vm657_vm13, %v510_v7, %v721_v13 }
 0x105   :  { %v1403_v27 = vpack.c.bf16 %v788_v25, %v787_v22  ;;  %v754_v28 = vsel %vm626_vm14, %v385_v14, %v690_v20  ;;  %v786_v29 = vsel %vm658_vm15, %v513_v16, %v722_v21  ;;  %v1562_v30 = vpop.f32.mrb[8].mxu0  ;;  %v1594_v31 = vpop.f32.mrb[8].mxu1 }
 0x106   :  { %1467 = vst [vmem:[%s1912_s2 + $0x18] sm:$0xff] %v1323_v24   ;;  %v1318_v32 = vpack.c.bf16 %v754_v28, %v753_v23  ;;  %v1398_v33 = vpack.c.bf16 %v786_v29, %v785_v26  ;;  %vm631_vm0 = vcmp.ge.f32.partialorder %v1562_v30, 0.0  ;;  %v695_v34 = vmul.f32 0.2, %v1562_v30  ;;  %v398_v35 = vpop.f32.mrb[9].mxu0  ;;  %v526_v36 = vpop.f32.mrb[9].mxu1 }
 0x107   :  { %1483 = vst [vmem:[%s1912_s2 + $0x98] sm:$0xff] %v1403_v27   ;;  %vm663_vm1 = vcmp.ge.f32.partialorder %v1594_v31, 0.0  ;;  %v727_v37 = vmul.f32 0.2, %v1594_v31  ;;  %v693_v38 = vmul.f32 0.2, %v398_v35 }
 0x108   :  { %1466 = vst [vmem:[%s1912_s2 + $0x10] sm:$0xff] %v1318_v32   ;;  %1482 = vst [vmem:[%s1912_s2 + $0x90] sm:$0xff] %v1398_v33   ;;  %v725_v39 = vmul.f32 0.2, %v526_v36  ;;  %v1563_v40 = vpop.f32.mrb[10].mxu0  ;;  %v1595_v41 = vpop.f32.mrb[10].mxu1  ;;  %v759_v42 = vsel %vm631_vm0, %v1562_v30, %v695_v34 }
 0x109   :  { %vm629_vm2 = vcmp.ge.f32.partialorder %v398_v35, 0.0  ;;  %vm632_vm3 = vcmp.ge.f32.partialorder %v1563_v40, 0.0  ;;  %v696_v43 = vmul.f32 0.2, %v1563_v40  ;;  %v401_v44 = vpop.f32.mrb[11].mxu0  ;;  %v529_v45 = vpop.f32.mrb[11].mxu1  ;;  %v791_v50 = vsel %vm663_vm1, %v1594_v31, %v727_v37 }
 0x10a   :  { %vm661_vm4 = vcmp.ge.f32.partialorder %v526_v36, 0.0  ;;  %vm664_vm5 = vcmp.ge.f32.partialorder %v1595_v41, 0.0  ;;  %v728_v46 = vmul.f32 0.2, %v1595_v41  ;;  %vm630_vm6 = vcmp.ge.f32.partialorder %v401_v44, 0.0 }
 0x10b   :  { %v760_v47 = vsel %vm632_vm3, %v1563_v40, %v696_v43  ;;  %v694_v48 = vmul.f32 0.2, %v401_v44  ;;  %vm662_vm7 = vcmp.ge.f32.partialorder %v529_v45, 0.0  ;;  %v726_v49 = vmul.f32 0.2, %v529_v45 }
 0x10c   :  { %v757_v51 = vsel %vm629_vm2, %v398_v35, %v693_v38  ;;  %v1333_v52 = vpack.c.bf16 %v760_v47, %v759_v42  ;;  %v792_v53 = vsel %vm664_vm5, %v1595_v41, %v728_v46  ;;  %v789_v54 = vsel %vm661_vm4, %v526_v36, %v725_v39 }
 0x10d   :  { %v1413_v55 = vpack.c.bf16 %v792_v53, %v791_v50  ;;  %v758_v56 = vsel %vm630_vm6, %v401_v44, %v694_v48  ;;  %v790_v57 = vsel %vm662_vm7, %v529_v45, %v726_v49  ;;  %v1566_v58 = vpop.f32.mrb[12].mxu0  ;;  %v1598_v59 = vpop.f32.mrb[12].mxu1 }
 0x10e   :  { %1469 = vst [vmem:[%s1912_s2 + $0x28] sm:$0xff] %v1333_v52   ;;  %v1328_v60 = vpack.c.bf16 %v758_v56, %v757_v51  ;;  %v1408_v61 = vpack.c.bf16 %v790_v57, %v789_v54  ;;  %vm635_vm8 = vcmp.ge.f32.partialorder %v1566_v58, 0.0  ;;  %v699_v62 = vmul.f32 0.2, %v1566_v58  ;;  %v414_v63 = vpop.f32.mrb[13].mxu0  ;;  %v542_v0 = vpop.f32.mrb[13].mxu1 }
 0x10f   :  { %1485 = vst [vmem:[%s1912_s2 + $0xa8] sm:$0xff] %v1413_v55   ;;  %vm667_vm9 = vcmp.ge.f32.partialorder %v1598_v59, 0.0  ;;  %v731_v1 = vmul.f32 0.2, %v1598_v59  ;;  %v697_v2 = vmul.f32 0.2, %v414_v63 }
 0x110   :  { %1468 = vst [vmem:[%s1912_s2 + $0x20] sm:$0xff] %v1328_v60   ;;  %1484 = vst [vmem:[%s1912_s2 + $0xa0] sm:$0xff] %v1408_v61   ;;  %v729_v3 = vmul.f32 0.2, %v542_v0  ;;  %v1567_v4 = vpop.f32.mrb[14].mxu0  ;;  %v1599_v5 = vpop.f32.mrb[14].mxu1  ;;  %v763_v6 = vsel %vm635_vm8, %v1566_v58, %v699_v62 }
 0x111   :  { %vm633_vm10 = vcmp.ge.f32.partialorder %v414_v63, 0.0  ;;  %vm636_vm11 = vcmp.ge.f32.partialorder %v1567_v4, 0.0  ;;  %v700_v7 = vmul.f32 0.2, %v1567_v4  ;;  %v417_v8 = vpop.f32.mrb[15].mxu0  ;;  %v545_v9 = vpop.f32.mrb[15].mxu1  ;;  %v795_v14 = vsel %vm667_vm9, %v1598_v59, %v731_v1 }
 0x112   :  { %vm665_vm12 = vcmp.ge.f32.partialorder %v542_v0, 0.0  ;;  %vm668_vm13 = vcmp.ge.f32.partialorder %v1599_v5, 0.0  ;;  %v732_v10 = vmul.f32 0.2, %v1599_v5  ;;  %vm634_vm14 = vcmp.ge.f32.partialorder %v417_v8, 0.0 }
 0x113   :  { %v764_v11 = vsel %vm636_vm11, %v1567_v4, %v700_v7  ;;  %v698_v12 = vmul.f32 0.2, %v417_v8  ;;  %vm666_vm15 = vcmp.ge.f32.partialorder %v545_v9, 0.0  ;;  %v730_v13 = vmul.f32 0.2, %v545_v9 }
 0x114   :  { %v761_v15 = vsel %vm633_vm10, %v414_v63, %v697_v2  ;;  %v1343_v16 = vpack.c.bf16 %v764_v11, %v763_v6  ;;  %v796_v17 = vsel %vm668_vm13, %v1599_v5, %v732_v10  ;;  %v793_v18 = vsel %vm665_vm12, %v542_v0, %v729_v3 }
 0x115   :  { %v1423_v19 = vpack.c.bf16 %v796_v17, %v795_v14  ;;  %v762_v20 = vsel %vm634_vm14, %v417_v8, %v698_v12  ;;  %v794_v21 = vsel %vm666_vm15, %v545_v9, %v730_v13  ;;  %v1570_v22 = vpop.f32.mrb[16].mxu0  ;;  %v1602_v23 = vpop.f32.mrb[16].mxu1 }
 0x116   :  { %1471 = vst [vmem:[%s1912_s2 + $0x38] sm:$0xff] %v1343_v16   ;;  %v1338_v24 = vpack.c.bf16 %v762_v20, %v761_v15  ;;  %v1418_v25 = vpack.c.bf16 %v794_v21, %v793_v18  ;;  %vm639_vm0 = vcmp.ge.f32.partialorder %v1570_v22, 0.0  ;;  %v703_v26 = vmul.f32 0.2, %v1570_v22  ;;  %v430_v27 = vpop.f32.mrb[17].mxu0  ;;  %v558_v28 = vpop.f32.mrb[17].mxu1 }
 0x117   :  { %1487 = vst [vmem:[%s1912_s2 + $0xb8] sm:$0xff] %v1423_v19   ;;  %vm671_vm1 = vcmp.ge.f32.partialorder %v1602_v23, 0.0  ;;  %v735_v29 = vmul.f32 0.2, %v1602_v23  ;;  %v701_v30 = vmul.f32 0.2, %v430_v27 }
 0x118   :  { %1470 = vst [vmem:[%s1912_s2 + $0x30] sm:$0xff] %v1338_v24   ;;  %1486 = vst [vmem:[%s1912_s2 + $0xb0] sm:$0xff] %v1418_v25   ;;  %v733_v31 = vmul.f32 0.2, %v558_v28  ;;  %v1571_v32 = vpop.f32.mrb[18].mxu0  ;;  %v1603_v33 = vpop.f32.mrb[18].mxu1  ;;  %v767_v34 = vsel %vm639_vm0, %v1570_v22, %v703_v26 }
 0x119   :  { %vm637_vm2 = vcmp.ge.f32.partialorder %v430_v27, 0.0  ;;  %vm640_vm3 = vcmp.ge.f32.partialorder %v1571_v32, 0.0  ;;  %v704_v35 = vmul.f32 0.2, %v1571_v32  ;;  %v433_v36 = vpop.f32.mrb[19].mxu0  ;;  %v561_v37 = vpop.f32.mrb[19].mxu1  ;;  %v799_v42 = vsel %vm671_vm1, %v1602_v23, %v735_v29 }
 0x11a   :  { %vm669_vm4 = vcmp.ge.f32.partialorder %v558_v28, 0.0  ;;  %vm672_vm5 = vcmp.ge.f32.partialorder %v1603_v33, 0.0  ;;  %v736_v38 = vmul.f32 0.2, %v1603_v33  ;;  %vm638_vm6 = vcmp.ge.f32.partialorder %v433_v36, 0.0 }
 0x11b   :  { %v768_v39 = vsel %vm640_vm3, %v1571_v32, %v704_v35  ;;  %v702_v40 = vmul.f32 0.2, %v433_v36  ;;  %vm670_vm7 = vcmp.ge.f32.partialorder %v561_v37, 0.0  ;;  %v734_v41 = vmul.f32 0.2, %v561_v37 }
 0x11c   :  { %v765_v43 = vsel %vm637_vm2, %v430_v27, %v701_v30  ;;  %v1353_v44 = vpack.c.bf16 %v768_v39, %v767_v34  ;;  %v800_v45 = vsel %vm672_vm5, %v1603_v33, %v736_v38  ;;  %v797_v46 = vsel %vm669_vm4, %v558_v28, %v733_v31 }
 0x11d   :  { %v1433_v47 = vpack.c.bf16 %v800_v45, %v799_v42  ;;  %v766_v48 = vsel %vm638_vm6, %v433_v36, %v702_v40  ;;  %v798_v49 = vsel %vm670_vm7, %v561_v37, %v734_v41  ;;  %v1574_v50 = vpop.f32.mrb[20].mxu0  ;;  %v1606_v51 = vpop.f32.mrb[20].mxu1 }
 0x11e   :  { %1473 = vst [vmem:[%s1912_s2 + $0x48] sm:$0xff] %v1353_v44   ;;  %v1348_v52 = vpack.c.bf16 %v766_v48, %v765_v43  ;;  %v1428_v53 = vpack.c.bf16 %v798_v49, %v797_v46  ;;  %vm643_vm8 = vcmp.ge.f32.partialorder %v1574_v50, 0.0  ;;  %v707_v54 = vmul.f32 0.2, %v1574_v50  ;;  %v446_v55 = vpop.f32.mrb[21].mxu0  ;;  %v574_v56 = vpop.f32.mrb[21].mxu1 }
 0x11f   :  { %1489 = vst [vmem:[%s1912_s2 + $0xc8] sm:$0xff] %v1433_v47   ;;  %vm675_vm9 = vcmp.ge.f32.partialorder %v1606_v51, 0.0  ;;  %v739_v57 = vmul.f32 0.2, %v1606_v51  ;;  %v705_v58 = vmul.f32 0.2, %v446_v55 }
 0x120   :  { %1472 = vst [vmem:[%s1912_s2 + $0x40] sm:$0xff] %v1348_v52   ;;  %1488 = vst [vmem:[%s1912_s2 + $0xc0] sm:$0xff] %v1428_v53   ;;  %v737_v59 = vmul.f32 0.2, %v574_v56  ;;  %v1575_v60 = vpop.f32.mrb[22].mxu0  ;;  %v1607_v61 = vpop.f32.mrb[22].mxu1  ;;  %v771_v62 = vsel %vm643_vm8, %v1574_v50, %v707_v54 }
 0x121   :  { %vm641_vm10 = vcmp.ge.f32.partialorder %v446_v55, 0.0  ;;  %vm644_vm11 = vcmp.ge.f32.partialorder %v1575_v60, 0.0  ;;  %v708_v63 = vmul.f32 0.2, %v1575_v60  ;;  %v449_v0 = vpop.f32.mrb[23].mxu0  ;;  %v577_v1 = vpop.f32.mrb[23].mxu1  ;;  %v803_v6 = vsel %vm675_vm9, %v1606_v51, %v739_v57 }
 0x122   :  { %vm673_vm12 = vcmp.ge.f32.partialorder %v574_v56, 0.0  ;;  %vm676_vm13 = vcmp.ge.f32.partialorder %v1607_v61, 0.0  ;;  %v740_v2 = vmul.f32 0.2, %v1607_v61  ;;  %vm642_vm14 = vcmp.ge.f32.partialorder %v449_v0, 0.0 }
 0x123   :  { %v772_v3 = vsel %vm644_vm11, %v1575_v60, %v708_v63  ;;  %v706_v4 = vmul.f32 0.2, %v449_v0  ;;  %vm674_vm15 = vcmp.ge.f32.partialorder %v577_v1, 0.0  ;;  %v738_v5 = vmul.f32 0.2, %v577_v1 }
 0x124   :  { %v769_v7 = vsel %vm641_vm10, %v446_v55, %v705_v58  ;;  %v1363_v8 = vpack.c.bf16 %v772_v3, %v771_v62  ;;  %v804_v9 = vsel %vm676_vm13, %v1607_v61, %v740_v2  ;;  %v801_v10 = vsel %vm673_vm12, %v574_v56, %v737_v59 }
 0x125   :  { %v1443_v11 = vpack.c.bf16 %v804_v9, %v803_v6  ;;  %v770_v12 = vsel %vm642_vm14, %v449_v0, %v706_v4  ;;  %v802_v13 = vsel %vm674_vm15, %v577_v1, %v738_v5  ;;  %v1578_v14 = vpop.f32.mrb[24].mxu0  ;;  %v1610_v15 = vpop.f32.mrb[24].mxu1 }
 0x126   :  { %1475 = vst [vmem:[%s1912_s2 + $0x58] sm:$0xff] %v1363_v8   ;;  %v1358_v16 = vpack.c.bf16 %v770_v12, %v769_v7  ;;  %v1438_v17 = vpack.c.bf16 %v802_v13, %v801_v10  ;;  %vm647_vm0 = vcmp.ge.f32.partialorder %v1578_v14, 0.0  ;;  %v711_v18 = vmul.f32 0.2, %v1578_v14  ;;  %v462_v19 = vpop.f32.mrb[25].mxu0  ;;  %v590_v20 = vpop.f32.mrb[25].mxu1 }
 0x127   :  { %1491 = vst [vmem:[%s1912_s2 + $0xd8] sm:$0xff] %v1443_v11   ;;  %vm679_vm1 = vcmp.ge.f32.partialorder %v1610_v15, 0.0  ;;  %v743_v21 = vmul.f32 0.2, %v1610_v15  ;;  %v709_v22 = vmul.f32 0.2, %v462_v19 }
 0x128   :  { %1474 = vst [vmem:[%s1912_s2 + $0x50] sm:$0xff] %v1358_v16   ;;  %1490 = vst [vmem:[%s1912_s2 + $0xd0] sm:$0xff] %v1438_v17   ;;  %v741_v23 = vmul.f32 0.2, %v590_v20  ;;  %v1579_v24 = vpop.f32.mrb[26].mxu0  ;;  %v1611_v25 = vpop.f32.mrb[26].mxu1  ;;  %v775_v26 = vsel %vm647_vm0, %v1578_v14, %v711_v18 }
 0x129   :  { %vm645_vm2 = vcmp.ge.f32.partialorder %v462_v19, 0.0  ;;  %vm648_vm3 = vcmp.ge.f32.partialorder %v1579_v24, 0.0  ;;  %v712_v27 = vmul.f32 0.2, %v1579_v24  ;;  %v465_v28 = vpop.f32.mrb[27].mxu0  ;;  %v593_v29 = vpop.f32.mrb[27].mxu1  ;;  %v807_v34 = vsel %vm679_vm1, %v1610_v15, %v743_v21 }
 0x12a   :  { %vm677_vm4 = vcmp.ge.f32.partialorder %v590_v20, 0.0  ;;  %vm680_vm5 = vcmp.ge.f32.partialorder %v1611_v25, 0.0  ;;  %v744_v30 = vmul.f32 0.2, %v1611_v25  ;;  %vm646_vm6 = vcmp.ge.f32.partialorder %v465_v28, 0.0 }
 0x12b   :  { %v776_v31 = vsel %vm648_vm3, %v1579_v24, %v712_v27  ;;  %v710_v32 = vmul.f32 0.2, %v465_v28  ;;  %vm678_vm7 = vcmp.ge.f32.partialorder %v593_v29, 0.0  ;;  %v742_v33 = vmul.f32 0.2, %v593_v29 }
 0x12c   :  { %v773_v35 = vsel %vm645_vm2, %v462_v19, %v709_v22  ;;  %v1373_v36 = vpack.c.bf16 %v776_v31, %v775_v26  ;;  %v808_v37 = vsel %vm680_vm5, %v1611_v25, %v744_v30  ;;  %v805_v38 = vsel %vm677_vm4, %v590_v20, %v741_v23 }
 0x12d   :  { %v1453_v39 = vpack.c.bf16 %v808_v37, %v807_v34  ;;  %v774_v40 = vsel %vm646_vm6, %v465_v28, %v710_v32  ;;  %v806_v41 = vsel %vm678_vm7, %v593_v29, %v742_v33  ;;  %v1582_v42 = vpop.f32.mrb[28].mxu0  ;;  %v1614_v43 = vpop.f32.mrb[28].mxu1 }
 0x12e   :  { %1477 = vst [vmem:[%s1912_s2 + $0x68] sm:$0xff] %v1373_v36   ;;  %v1368_v44 = vpack.c.bf16 %v774_v40, %v773_v35  ;;  %v1448_v45 = vpack.c.bf16 %v806_v41, %v805_v38  ;;  %vm651_vm8 = vcmp.ge.f32.partialorder %v1582_v42, 0.0  ;;  %v715_v46 = vmul.f32 0.2, %v1582_v42  ;;  %v478_v47 = vpop.f32.mrb[29].mxu0  ;;  %v606_v48 = vpop.f32.mrb[29].mxu1 }
 0x12f   :  { %1493 = vst [vmem:[%s1912_s2 + $0xe8] sm:$0xff] %v1453_v39   ;;  %vm683_vm9 = vcmp.ge.f32.partialorder %v1614_v43, 0.0  ;;  %v747_v49 = vmul.f32 0.2, %v1614_v43  ;;  %v713_v50 = vmul.f32 0.2, %v478_v47 }
 0x130   :  { %1476 = vst [vmem:[%s1912_s2 + $0x60] sm:$0xff] %v1368_v44   ;;  %1492 = vst [vmem:[%s1912_s2 + $0xe0] sm:$0xff] %v1448_v45   ;;  %v745_v51 = vmul.f32 0.2, %v606_v48  ;;  %v1583_v52 = vpop.f32.mrb[30].mxu0  ;;  %v1615_v53 = vpop.f32.mrb[30].mxu1  ;;  %v779_v54 = vsel %vm651_vm8, %v1582_v42, %v715_v46 }
 0x131   :  { %vm649_vm10 = vcmp.ge.f32.partialorder %v478_v47, 0.0  ;;  %vm652_vm11 = vcmp.ge.f32.partialorder %v1583_v52, 0.0  ;;  %v716_v55 = vmul.f32 0.2, %v1583_v52  ;;  %v481_v56 = vpop.f32.mrb[31].mxu0  ;;  %v609_v57 = vpop.f32.mrb[31].mxu1  ;;  %v811_v62 = vsel %vm683_vm9, %v1614_v43, %v747_v49 }
 0x132   :  { %vm681_vm12 = vcmp.ge.f32.partialorder %v606_v48, 0.0  ;;  %vm684_vm13 = vcmp.ge.f32.partialorder %v1615_v53, 0.0  ;;  %v748_v58 = vmul.f32 0.2, %v1615_v53  ;;  %vm650_vm14 = vcmp.ge.f32.partialorder %v481_v56, 0.0 }
 0x133   :  { %v780_v59 = vsel %vm652_vm11, %v1583_v52, %v716_v55  ;;  %v714_v60 = vmul.f32 0.2, %v481_v56  ;;  %vm682_vm15 = vcmp.ge.f32.partialorder %v609_v57, 0.0  ;;  %v746_v61 = vmul.f32 0.2, %v609_v57 }
 0x134   :  { %v777_v63 = vsel %vm649_vm10, %v478_v47, %v713_v50  ;;  %v1383_v0 = vpack.c.bf16 %v780_v59, %v779_v54  ;;  %v812_v1 = vsel %vm684_vm13, %v1615_v53, %v748_v58  ;;  %v809_v2 = vsel %vm681_vm12, %v606_v48, %v745_v51 }
 0x135   :  { %v1463_v3 = vpack.c.bf16 %v812_v1, %v811_v62  ;;  %v778_v4 = vsel %vm650_vm14, %v481_v56, %v714_v60  ;;  %v810_v5 = vsel %vm682_vm15, %v609_v57, %v746_v61 }
 0x136   :  { %1479 = vst [vmem:[%s1912_s2 + $0x78] sm:$0xff] %v1383_v0   ;;  %v1378_v6 = vpack.c.bf16 %v778_v4, %v777_v63  ;;  %v1458_v7 = vpack.c.bf16 %v810_v5, %v809_v2 }
 0x137   :  { %1495 = vst [vmem:[%s1912_s2 + $0xf8] sm:$0xff] %v1463_v3  }
 0x138   :  { %1478 = vst [vmem:[%s1912_s2 + $0x70] sm:$0xff] %v1378_v6   ;;  %1494 = vst [vmem:[%s1912_s2 + $0xf0] sm:$0xff] %v1458_v7  }

// kernel: discriminator_forward.8
= control target key start
LH: loop header
LB: loop body
LE: loop exit
PB: predicated region body
PF: predicated region fallthrough
CT: control target
= control target key end

     0   :  { %v64_v0 = vlaneseq  ;;  %s608_s0 = inlined_call_operand.vmem [shape: bf16[128,256], index: 0, kind: input, shape index: {}]   ;;  %s609_s1 = inlined_call_operand.vmem [shape: f32[1,256], index: 1, kind: input, shape index: {}]   ;;  %s610_s2 = inlined_call_operand.vmem [shape: f32[1,256], index: 2, kind: input, shape index: {}]   ;;  %s611_s3 = inlined_call_operand.vmem [shape: bf16[128,256], index: 3, kind: output, shape index: {}]  }
   0x1   :  { %v14_v1 = vld [vmem:[%s608_s0] sm:$0xff]  ;;  %v15_v6 = vld [vmem:[%s608_s0 + $0x8] sm:$0xff]  ;;  %v16_v7 = vld [vmem:[%s608_s0 + $0x10] sm:$0xff] }
   0x2   :  { %v62_v2 = vld [vmem:[%s609_s1] sm:$0x3]  ;;  %v30_v3 = vunpack.c.l.bf16 %v14_v1  ;;  %v31_v4 = vunpack.c.h.bf16 %v14_v1  ;;  %v65_v5 = vshrl.u32 %v64_v0, 7  ;;  %v17_v8 = vld [vmem:[%s608_s0 + $0x18] sm:$0xff]  ;;  %v32_v10 = vunpack.c.l.bf16 %v15_v6  ;;  %v440_v15 = vld [vmem:[%s608_s0 + $0x28] sm:$0xff] }
   0x3   :  { %v106_v9 = vld [vmem:[%s610_s2] sm:$0x3]  ;;  %v33_v11 = vunpack.c.h.bf16 %v15_v6  ;;  %v34_v12 = vunpack.c.l.bf16 %v16_v7  ;;  %v35_v13 = vunpack.c.h.bf16 %v16_v7  ;;  %v36_v18 = vunpack.c.l.bf16 %v17_v8  ;;  %v445_v20 = vld [vmem:[%s608_s0 + $0x30] sm:$0xff]  ;;  %v450_v21 = vld [vmem:[%s608_s0 + $0x38] sm:$0xff] }
   0x4   :  { %v435_v14 = vld [vmem:[%s608_s0 + $0x20] sm:$0xff]  ;;  %v66_v16 = vsub.s32 0, %v65_v5  ;;  %v70_v17 = vsub.s32 1, %v65_v5  ;;  %v37_v19 = vunpack.c.h.bf16 %v17_v8  ;;  %v40_v24 = vunpack.c.l.bf16 %v440_v15 }
   0x5   :  { %v38_v22 = vunpack.c.l.bf16 %v435_v14  ;;  %v39_v23 = vunpack.c.h.bf16 %v435_v14  ;;  %v41_v25 = vunpack.c.h.bf16 %v440_v15  ;;  %v42_v30 = vunpack.c.l.bf16 %v445_v20 }
   0x6   :  { %v456_v26 = vrot.slane %v62_v2, %v66_v16  ;;  %v458_v27 = vrot.slane %v62_v2, %v70_v17  ;;  %v460_v28 = vrot.slane %v106_v9, %v66_v16  ;;  %v462_v29 = vrot.slane %v106_v9, %v70_v17 }
   0x7   :  { %v43_v31 = vunpack.c.h.bf16 %v445_v20  ;;  %v44_v32 = vunpack.c.l.bf16 %v450_v21  ;;  %v45_v33 = vunpack.c.h.bf16 %v450_v21 }
   0x8   :  { %v74_v34 = vmul.f32 %v456_v26, %v30_v3  ;;  %v75_v35 = vmul.f32 %v458_v27, %v31_v4  ;;  %v76_v36 = vmul.f32 %v456_v26, %v32_v10  ;;  %v77_v37 = vmul.f32 %v458_v27, %v33_v11 }
   0x9   :  { %v78_v38 = vmul.f32 %v456_v26, %v34_v12  ;;  %v79_v39 = vmul.f32 %v458_v27, %v35_v13  ;;  %v80_v40 = vmul.f32 %v456_v26, %v36_v18  ;;  %v81_v41 = vmul.f32 %v458_v27, %v37_v19 }
   0xa   :  { %v118_v42 = vadd.f32 %v460_v28, %v74_v34  ;;  %v119_v43 = vadd.f32 %v462_v29, %v75_v35  ;;  %v120_v44 = vadd.f32 %v460_v28, %v76_v36  ;;  %v121_v45 = vadd.f32 %v462_v29, %v77_v37  ;;  %v23_v37 = vld [vmem:[%s608_s0 + $0x48] sm:$0xff] }
   0xb   :  { %v122_v46 = vadd.f32 %v460_v28, %v78_v38  ;;  %v123_v47 = vadd.f32 %v462_v29, %v79_v39  ;;  %v124_v48 = vadd.f32 %v460_v28, %v80_v40  ;;  %v125_v49 = vadd.f32 %v462_v29, %v81_v41 }
   0xc   :  { %vm150_vm0 = vcmp.ge.f32.partialorder %v118_v42, 0.0  ;;  %vm151_vm1 = vcmp.ge.f32.partialorder %v119_v43, 0.0  ;;  %v182_v50 = vmul.f32 0.2, %v118_v42  ;;  %v183_v51 = vmul.f32 0.2, %v119_v43 }
   0xd   :  { %vm152_vm2 = vcmp.ge.f32.partialorder %v120_v44, 0.0  ;;  %vm153_vm3 = vcmp.ge.f32.partialorder %v121_v45, 0.0  ;;  %v184_v52 = vmul.f32 0.2, %v120_v44  ;;  %v185_v53 = vmul.f32 0.2, %v121_v45 }
   0xe   :  { %v214_v54 = vsel %vm150_vm0, %v118_v42, %v182_v50  ;;  %v215_v55 = vsel %vm151_vm1, %v119_v43, %v183_v51  ;;  %vm154_vm4 = vcmp.ge.f32.partialorder %v122_v46, 0.0  ;;  %vm155_vm5 = vcmp.ge.f32.partialorder %v123_v47, 0.0 }
   0xf   :  { %v378_v56 = vpack.c.bf16 %v215_v55, %v214_v54  ;;  %v216_v57 = vsel %vm152_vm2, %v120_v44, %v184_v52  ;;  %v217_v58 = vsel %vm153_vm3, %v121_v45, %v185_v53  ;;  %v186_v59 = vmul.f32 0.2, %v122_v46 }
  0x10   :  { %v379_v60 = vpack.c.bf16 %v217_v58, %v216_v57  ;;  %v187_v61 = vmul.f32 0.2, %v123_v47  ;;  %vm156_vm6 = vcmp.ge.f32.partialorder %v124_v48, 0.0  ;;  %vm157_vm7 = vcmp.ge.f32.partialorder %v125_v49, 0.0 }
  0x11   :  { %342 = vst [vmem:[%s611_s3] sm:$0xff] %v378_v56  ;;  %v218_v62 = vsel %vm154_vm4, %v122_v46, %v186_v59  ;;  %v188_v63 = vmul.f32 0.2, %v124_v48  ;;  %v189_v0 = vmul.f32 0.2, %v125_v49  ;;  %v82_v1 = vmul.f32 %v456_v26, %v38_v22  ;;  %v24_v46 = vld [vmem:[%s608_s0 + $0x50] sm:$0xff] }
  0x12   :  { %343 = vst [vmem:[%s611_s3 + $0x8] sm:$0xff] %v379_v60  ;;  %v219_v2 = vsel %vm155_vm5, %v123_v47, %v187_v61  ;;  %v83_v3 = vmul.f32 %v458_v27, %v39_v23  ;;  %v84_v4 = vmul.f32 %v456_v26, %v40_v24  ;;  %v85_v5 = vmul.f32 %v458_v27, %v41_v25 }
  0x13   :  { %v380_v6 = vpack.c.bf16 %v219_v2, %v218_v62  ;;  %v220_v7 = vsel %vm156_vm6, %v124_v48, %v188_v63  ;;  %v221_v8 = vsel %vm157_vm7, %v125_v49, %v189_v0  ;;  %v126_v9 = vadd.f32 %v460_v28, %v82_v1  ;;  %v25_v1 = vld [vmem:[%s608_s0 + $0x58] sm:$0xff] }
  0x14   :  { %v381_v10 = vpack.c.bf16 %v221_v8, %v220_v7  ;;  %v127_v11 = vadd.f32 %v462_v29, %v83_v3  ;;  %v128_v12 = vadd.f32 %v460_v28, %v84_v4  ;;  %v129_v13 = vadd.f32 %v462_v29, %v85_v5 }
  0x15   :  { %344 = vst [vmem:[%s611_s3 + $0x10] sm:$0xff] %v380_v6  ;;  %vm158_vm8 = vcmp.ge.f32.partialorder %v126_v9, 0.0  ;;  %v190_v14 = vmul.f32 0.2, %v126_v9  ;;  %v86_v15 = vmul.f32 %v456_v26, %v42_v30  ;;  %v87_v16 = vmul.f32 %v458_v27, %v43_v31  ;;  %v22_v31 = vld [vmem:[%s608_s0 + $0x40] sm:$0xff] }
  0x16   :  { %345 = vst [vmem:[%s611_s3 + $0x18] sm:$0xff] %v381_v10  ;;  %vm159_vm9 = vcmp.ge.f32.partialorder %v127_v11, 0.0  ;;  %v191_v17 = vmul.f32 0.2, %v127_v11  ;;  %vm160_vm10 = vcmp.ge.f32.partialorder %v128_v12, 0.0  ;;  %vm161_vm11 = vcmp.ge.f32.partialorder %v129_v13, 0.0 }
  0x17   :  { %v222_v18 = vsel %vm158_vm8, %v126_v9, %v190_v14  ;;  %v192_v19 = vmul.f32 0.2, %v128_v12  ;;  %v193_v20 = vmul.f32 0.2, %v129_v13  ;;  %v130_v22 = vadd.f32 %v460_v28, %v86_v15  ;;  %v26_v10 = vld [vmem:[%s608_s0 + $0x60] sm:$0xff]  ;;  %v27_v15 = vld [vmem:[%s608_s0 + $0x68] sm:$0xff] }
  0x18   :  { %v223_v23 = vsel %vm159_vm9, %v127_v11, %v191_v17  ;;  %v131_v24 = vadd.f32 %v462_v29, %v87_v16  ;;  %v88_v25 = vmul.f32 %v456_v26, %v44_v32  ;;  %v89_v30 = vmul.f32 %v458_v27, %v45_v33 }
  0x19   :  { %v382_v34 = vpack.c.bf16 %v223_v23, %v222_v18  ;;  %v224_v35 = vsel %vm160_vm10, %v128_v12, %v192_v19  ;;  %v225_v36 = vsel %vm161_vm11, %v129_v13, %v193_v20  ;;  %vm162_vm12 = vcmp.ge.f32.partialorder %v130_v22, 0.0 }
  0x1a   :  { %v383_v38 = vpack.c.bf16 %v225_v36, %v224_v35  ;;  %vm163_vm13 = vcmp.ge.f32.partialorder %v131_v24, 0.0  ;;  %v194_v39 = vmul.f32 0.2, %v130_v22  ;;  %v195_v32 = vmul.f32 0.2, %v131_v24 }
  0x1b   :  { %346 = vst [vmem:[%s611_s3 + $0x20] sm:$0xff] %v382_v34  ;;  %v132_v21 = vadd.f32 %v460_v28, %v88_v25  ;;  %v133_v33 = vadd.f32 %v462_v29, %v89_v30  ;;  %v46_v40 = vunpack.c.l.bf16 %v22_v31  ;;  %v47_v41 = vunpack.c.h.bf16 %v22_v31 }
  0x1c   :  { %347 = vst [vmem:[%s611_s3 + $0x28] sm:$0xff] %v383_v38  ;;  %v226_v42 = vsel %vm162_vm12, %v130_v22, %v194_v39  ;;  %v227_v43 = vsel %vm163_vm13, %v131_v24, %v195_v32  ;;  %v48_v44 = vunpack.c.l.bf16 %v23_v37  ;;  %v49_v45 = vunpack.c.h.bf16 %v23_v37  ;;  %v28_v37 = vld [vmem:[%s608_s0 + $0x70] sm:$0xff] }
  0x1d   :  { %v384_v47 = vpack.c.bf16 %v227_v43, %v226_v42  ;;  %vm164_vm14 = vcmp.ge.f32.partialorder %v132_v21, 0.0  ;;  %vm165_vm15 = vcmp.ge.f32.partialorder %v133_v33, 0.0  ;;  %v196_v48 = vmul.f32 0.2, %v132_v21 }
  0x1e   :  { %v197_v49 = vmul.f32 0.2, %v133_v33  ;;  %v90_v50 = vmul.f32 %v456_v26, %v46_v40  ;;  %v91_v51 = vmul.f32 %v458_v27, %v47_v41  ;;  %v92_v52 = vmul.f32 %v456_v26, %v48_v44 }
  0x1f   :  { %348 = vst [vmem:[%s611_s3 + $0x30] sm:$0xff] %v384_v47  ;;  %v228_v53 = vsel %vm164_vm14, %v132_v21, %v196_v48  ;;  %v93_v54 = vmul.f32 %v458_v27, %v49_v45  ;;  %v50_v55 = vunpack.c.l.bf16 %v24_v46  ;;  %v51_v56 = vunpack.c.h.bf16 %v24_v46 }
  0x20   :  { %v229_v57 = vsel %vm165_vm15, %v133_v33, %v197_v49  ;;  %v134_v58 = vadd.f32 %v460_v28, %v90_v50  ;;  %v135_v59 = vadd.f32 %v462_v29, %v91_v51  ;;  %v136_v60 = vadd.f32 %v460_v28, %v92_v52 }
  0x21   :  { %v385_v61 = vpack.c.bf16 %v229_v57, %v228_v53  ;;  %v137_v62 = vadd.f32 %v462_v29, %v93_v54  ;;  %v94_v63 = vmul.f32 %v456_v26, %v50_v55  ;;  %v95_v0 = vmul.f32 %v458_v27, %v51_v56  ;;  %v29_v53 = vld [vmem:[%s608_s0 + $0x78] sm:$0xff] }
  0x22   :  { %vm166_vm0 = vcmp.ge.f32.partialorder %v134_v58, 0.0  ;;  %vm167_vm1 = vcmp.ge.f32.partialorder %v135_v59, 0.0  ;;  %v198_v2 = vmul.f32 0.2, %v134_v58  ;;  %v199_v3 = vmul.f32 0.2, %v135_v59 }
  0x23   :  { %349 = vst [vmem:[%s611_s3 + $0x38] sm:$0xff] %v385_v61  ;;  %vm168_vm2 = vcmp.ge.f32.partialorder %v136_v60, 0.0  ;;  %vm169_vm3 = vcmp.ge.f32.partialorder %v137_v62, 0.0  ;;  %v200_v4 = vmul.f32 0.2, %v136_v60  ;;  %v138_v8 = vadd.f32 %v460_v28, %v94_v63 }
  0x24   :  { %v201_v5 = vmul.f32 0.2, %v137_v62  ;;  %v230_v6 = vsel %vm166_vm0, %v134_v58, %v198_v2  ;;  %v231_v7 = vsel %vm167_vm1, %v135_v59, %v199_v3  ;;  %v139_v9 = vadd.f32 %v462_v29, %v95_v0 }
  0x25   :  { %v386_v11 = vpack.c.bf16 %v231_v7, %v230_v6  ;;  %v232_v12 = vsel %vm168_vm2, %v136_v60, %v200_v4  ;;  %v52_v14 = vunpack.c.l.bf16 %v25_v1  ;;  %vm170_vm4 = vcmp.ge.f32.partialorder %v138_v8, 0.0 }
  0x26   :  { %v233_v13 = vsel %vm169_vm3, %v137_v62, %v201_v5  ;;  %vm171_vm5 = vcmp.ge.f32.partialorder %v139_v9, 0.0  ;;  %v202_v17 = vmul.f32 0.2, %v138_v8  ;;  %v203_v18 = vmul.f32 0.2, %v139_v9 }
  0x27   :  { %v387_v16 = vpack.c.bf16 %v233_v13, %v232_v12  ;;  %350 = vst [vmem:[%s611_s3 + $0x40] sm:$0xff] %v386_v11  ;;  %v53_v19 = vunpack.c.h.bf16 %v25_v1  ;;  %v96_v20 = vmul.f32 %v456_v26, %v52_v14  ;;  %v54_v22 = vunpack.c.l.bf16 %v26_v10 }
  0x28   :  { %v234_v23 = vsel %vm170_vm4, %v138_v8, %v202_v17  ;;  %v55_v24 = vunpack.c.h.bf16 %v26_v10  ;;  %v56_v25 = vunpack.c.l.bf16 %v27_v15  ;;  %v57_v30 = vunpack.c.h.bf16 %v27_v15 }
  0x29   :  { %351 = vst [vmem:[%s611_s3 + $0x48] sm:$0xff] %v387_v16  ;;  %v235_v31 = vsel %vm171_vm5, %v139_v9, %v203_v18  ;;  %v97_v34 = vmul.f32 %v458_v27, %v53_v19  ;;  %v140_v35 = vadd.f32 %v460_v28, %v96_v20  ;;  %v98_v36 = vmul.f32 %v456_v26, %v54_v22 }
  0x2a   :  { %v388_v38 = vpack.c.bf16 %v235_v31, %v234_v23  ;;  %v99_v39 = vmul.f32 %v458_v27, %v55_v24  ;;  %v100_v32 = vmul.f32 %v456_v26, %v56_v25  ;;  %v101_v21 = vmul.f32 %v458_v27, %v57_v30 }
  0x2b   :  { %v141_v33 = vadd.f32 %v462_v29, %v97_v34  ;;  %vm172_vm6 = vcmp.ge.f32.partialorder %v140_v35, 0.0  ;;  %v204_v40 = vmul.f32 0.2, %v140_v35  ;;  %v142_v41 = vadd.f32 %v460_v28, %v98_v36 }
  0x2c   :  { %352 = vst [vmem:[%s611_s3 + $0x50] sm:$0xff] %v388_v38  ;;  %v143_v42 = vadd.f32 %v462_v29, %v99_v39  ;;  %v144_v43 = vadd.f32 %v460_v28, %v100_v32  ;;  %v145_v44 = vadd.f32 %v462_v29, %v101_v21  ;;  %v58_v45 = vunpack.c.l.bf16 %v28_v37 }
  0x2d   :  { %vm173_vm7 = vcmp.ge.f32.partialorder %v141_v33, 0.0  ;;  %v205_v46 = vmul.f32 0.2, %v141_v33  ;;  %v236_v47 = vsel %vm172_vm6, %v140_v35, %v204_v40  ;;  %vm174_vm8 = vcmp.ge.f32.partialorder %v142_v41, 0.0 }
  0x2e   :  { %vm175_vm9 = vcmp.ge.f32.partialorder %v143_v42, 0.0  ;;  %v206_v48 = vmul.f32 0.2, %v142_v41  ;;  %v207_v49 = vmul.f32 0.2, %v143_v42  ;;  %vm176_vm10 = vcmp.ge.f32.partialorder %v144_v43, 0.0 }
  0x2f   :  { %v237_v50 = vsel %vm173_vm7, %v141_v33, %v205_v46  ;;  %vm177_vm11 = vcmp.ge.f32.partialorder %v145_v44, 0.0  ;;  %v208_v51 = vmul.f32 0.2, %v144_v43  ;;  %v209_v52 = vmul.f32 0.2, %v145_v44 }
  0x30   :  { %v389_v54 = vpack.c.bf16 %v237_v50, %v236_v47  ;;  %v238_v55 = vsel %vm174_vm8, %v142_v41, %v206_v48  ;;  %v239_v56 = vsel %vm175_vm9, %v143_v42, %v207_v49  ;;  %v59_v57 = vunpack.c.h.bf16 %v28_v37 }
  0x31   :  { %v390_v58 = vpack.c.bf16 %v239_v56, %v238_v55  ;;  %v240_v59 = vsel %vm176_vm10, %v144_v43, %v208_v51  ;;  %v241_v60 = vsel %vm177_vm11, %v145_v44, %v209_v52  ;;  %v102_v61 = vmul.f32 %v456_v26, %v58_v45 }
  0x32   :  { %353 = vst [vmem:[%s611_s3 + $0x58] sm:$0xff] %v389_v54  ;;  %v391_v62 = vpack.c.bf16 %v241_v60, %v240_v59  ;;  %v103_v63 = vmul.f32 %v458_v27, %v59_v57  ;;  %v60_v0 = vunpack.c.l.bf16 %v29_v53  ;;  %v61_v1 = vunpack.c.h.bf16 %v29_v53 }
  0x33   :  { %354 = vst [vmem:[%s611_s3 + $0x60] sm:$0xff] %v390_v58  ;;  %v146_v2 = vadd.f32 %v460_v28, %v102_v61 }
  0x34   :  { %355 = vst [vmem:[%s611_s3 + $0x68] sm:$0xff] %v391_v62  ;;  %v147_v3 = vadd.f32 %v462_v29, %v103_v63  ;;  %v104_v4 = vmul.f32 %v456_v26, %v60_v0  ;;  %v105_v5 = vmul.f32 %v458_v27, %v61_v1 }
  0x35   :  { %vm178_vm12 = vcmp.ge.f32.partialorder %v146_v2, 0.0  ;;  %v210_v6 = vmul.f32 0.2, %v146_v2 }
  0x36   :  { %vm179_vm13 = vcmp.ge.f32.partialorder %v147_v3, 0.0  ;;  %v211_v7 = vmul.f32 0.2, %v147_v3  ;;  %v148_v8 = vadd.f32 %v460_v28, %v104_v4  ;;  %v149_v9 = vadd.f32 %v462_v29, %v105_v5 }
  0x37   :  { %v242_v10 = vsel %vm178_vm12, %v146_v2, %v210_v6 }
  0x38   :  { %v243_v11 = vsel %vm179_vm13, %v147_v3, %v211_v7  ;;  %vm180_vm14 = vcmp.ge.f32.partialorder %v148_v8, 0.0  ;;  %vm181_vm15 = vcmp.ge.f32.partialorder %v149_v9, 0.0  ;;  %v212_v12 = vmul.f32 0.2, %v148_v8 }
  0x39   :  { %v392_v13 = vpack.c.bf16 %v243_v11, %v242_v10  ;;  %v213_v14 = vmul.f32 0.2, %v149_v9 }
  0x3a   :  { %v244_v15 = vsel %vm180_vm14, %v148_v8, %v212_v12 }
  0x3b   :  { %356 = vst [vmem:[%s611_s3 + $0x70] sm:$0xff] %v392_v13  ;;  %v245_v26 = vsel %vm181_vm15, %v149_v9, %v213_v14 }
  0x3c   :  { %v393_v27 = vpack.c.bf16 %v245_v26, %v244_v15 }
  0x3e   :  { %357 = vst [vmem:[%s611_s3 + $0x78] sm:$0xff] %v393_v27 }

// kernel: discriminator_forward.7
= control target key start
LH: loop header
LB: loop body
LE: loop exit
PB: predicated region body
PF: predicated region fallthrough
CT: control target
= control target key end

     0   :  { %s5326_s12 = smov 0   ;;  %s5328_s13 = smov 0   ;;  %s6623_s0 = inlined_call_operand.vmem [shape: bf16[128,2048], index: 0, kind: input, shape index: {}]   ;;  %s6624_s1 = inlined_call_operand.vmem [shape: bf16[2048,256], index: 1, kind: input, shape index: {}]   ;;  %s6625_s2 = inlined_call_operand.vmem [shape: bf16[128,256], index: 2, kind: output, shape index: {0}]   ;;  %s6626_s3 = inlined_call_operand.vmem [shape: f32[1,8,256], index: 3, kind: output, shape index: {1}]  }
   0x1   :  { %s5330_s14 = smov 0   ;;  %s5332_s15 = smov 0  }
   0x2   :  { %s5334_s16 = smov 0  }
   0x3 LB: > { %s23_s17 = sadd.s32 1, %s5300_s15  ;;  %s4236_s18 = sadd.s32 4294967295, %s5304_s16   ;;  %s5304_s16 = sphi %s5334_s16, %s14_s16   ;;  %s5300_s15 = sphi %s5332_s15, %s6631_s15   ;;  %s5296_s14 = sphi %s5330_s14, %s6630_s14   ;;  %s5292_s13 = sphi %s5328_s13, %s6629_s13   ;;  %s5288_s12 = sphi %s5326_s12, %s6628_s12  }
   0x4   : > { %p24_p0 = scmp.ge.s32.totalorder %s23_s17, 2  ;;  %p66_p1 = scmp.ne.s32.totalorder %s5292_s13, %s5288_s12 }
   0x5   : > { %p67_p2 = scmp.eq.s32.totalorder %s5304_s16, 0  ;;  %p98_p4 = scmp.eq.s32.totalorder %s4236_s18, 1 }
   0x6   : > { %s6633_s17 = smov (%p24_p0, %s23_s17), 0  ;;  %s59_s20 = sadd.s32 1, %s5292_s13 }
   0x7   : > { %p68_p3 = por %p67_p2, %p66_p1  ;;  %s56_s19 = ssub.s32 %s5300_s15, %s6633_s17 }
   0x8   : > { %p57_p5 = scmp.eq.s32.totalorder %s56_s19, 0  ;;  %p5361_p6 = por %p98_p4, %p66_p1 }
   0x9   : > { %p4240_p7 = scmp.ge.s32.totalorder %s5304_s16, 2 }
   0xa   : > { %s5366_s22 = scalar_select %p57_p5, %s5292_s13, %s59_s20  }
   0xb   : > { %158 = sbr.rel (%p4240_p7) target bundleno = 192 (0xc0), region = 20 }
  0x12   : > { %161 = sbr.rel (!%p68_p3) target bundleno = 192 (0xc0), region = 24  ;;  %s163_s23 = sand.u32 (%p68_p3), 1, %s5292_s13  }
  0x13   : > { %s4242_s24 = sshll.u32 (%p68_p3), %s5300_s15, 2  ;;  %s4241_s25 = sshll.u32 (%p68_p3), %s163_s23, 10 }
  0x14   : > { %s5374_s28 = scalar_lea.vmem (%p68_p3), %s6624_s1, %s4242_s24  ;;  %s5378_s29 = scalar_lea.vmem (%p68_p3), [#allocation2], %s4241_s25 }
  0x15   : > { %v183_v0 = vld [vmem:[%s5374_s28] sm:$0xf] (%p68_p3)  ;;  %v185_v1 = vld [vmem:[%s5374_s28 + $0x8] sm:$0xf] (%p68_p3)  ;;  %v187_v2 = vld [vmem:[%s5374_s28 + $0x10] sm:$0xf] (%p68_p3) }
  0x16   : > { %184 = vst [vmem:[%s5378_s29] sm:$0xf] (%p68_p3), %v183_v0  ;;  %186 = vst [vmem:[%s5378_s29 + $0x4] sm:$0xf] (%p68_p3), %v185_v1  ;;  %v189_v3 = vld [vmem:[%s5374_s28 + $0x18] sm:$0xf] (%p68_p3) }
  0x17   : > { %v191_v4 = vld [vmem:[%s5374_s28 + $0x20] sm:$0xf] (%p68_p3)  ;;  %188 = vst [vmem:[%s5378_s29 + $0x8] sm:$0xf] (%p68_p3), %v187_v2  ;;  %190 = vst [vmem:[%s5378_s29 + $0xc] sm:$0xf] (%p68_p3), %v189_v3 }
  0x18   : > { %192 = vst [vmem:[%s5378_s29 + $0x10] sm:$0xf] (%p68_p3), %v191_v4  ;;  %v193_v5 = vld [vmem:[%s5374_s28 + $0x28] sm:$0xf] (%p68_p3)  ;;  %v195_v6 = vld [vmem:[%s5374_s28 + $0x30] sm:$0xf] (%p68_p3) }
  0x19   : > { %v197_v7 = vld [vmem:[%s5374_s28 + $0x38] sm:$0xf]  ;;  %194 = vst [vmem:[%s5378_s29 + $0x14] sm:$0xf] %v193_v5  ;;  %196 = vst [vmem:[%s5378_s29 + $0x18] sm:$0xf] %v195_v6 }
  0x1a   : > { %198 = vst [vmem:[%s5378_s29 + $0x1c] sm:$0xf] %v197_v7  ;;  %v199_v8 = vld [vmem:[%s5374_s28 + $0x40] sm:$0xf]  ;;  %v201_v9 = vld [vmem:[%s5374_s28 + $0x48] sm:$0xf] }
  0x1b   : > { %v203_v10 = vld [vmem:[%s5374_s28 + $0x50] sm:$0xf]  ;;  %200 = vst [vmem:[%s5378_s29 + $0x20] sm:$0xf] %v199_v8  ;;  %202 = vst [vmem:[%s5378_s29 + $0x24] sm:$0xf] %v201_v9 }
  0x1c   : > { %204 = vst [vmem:[%s5378_s29 + $0x28] sm:$0xf] %v203_v10  ;;  %v205_v11 = vld [vmem:[%s5374_s28 + $0x58] sm:$0xf]  ;;  %v207_v12 = vld [vmem:[%s5374_s28 + $0x60] sm:$0xf] }
  0x1d   : > { %v209_v13 = vld [vmem:[%s5374_s28 + $0x68] sm:$0xf]  ;;  %206 = vst [vmem:[%s5378_s29 + $0x2c] sm:$0xf] %v205_v11  ;;  %208 = vst [vmem:[%s5378_s29 + $0x30] sm:$0xf] %v207_v12 }
  0x1e   : > { %210 = vst [vmem:[%s5378_s29 + $0x34] sm:$0xf] %v209_v13  ;;  %v211_v14 = vld [vmem:[%s5374_s28 + $0x70] sm:$0xf]  ;;  %v213_v15 = vld [vmem:[%s5374_s28 + $0x78] sm:$0xf] }
  0x1f   : > { %v215_v16 = vld [vmem:[%s5374_s28 + $0x80] sm:$0xf]  ;;  %212 = vst [vmem:[%s5378_s29 + $0x38] sm:$0xf] %v211_v14  ;;  %214 = vst [vmem:[%s5378_s29 + $0x3c] sm:$0xf] %v213_v15 }
  0x20   : > { %216 = vst [vmem:[%s5378_s29 + $0x40] sm:$0xf] %v215_v16  ;;  %v217_v17 = vld [vmem:[%s5374_s28 + $0x88] sm:$0xf]  ;;  %v219_v18 = vld [vmem:[%s5374_s28 + $0x90] sm:$0xf] }
  0x21   : > { %v221_v19 = vld [vmem:[%s5374_s28 + $0x98] sm:$0xf]  ;;  %218 = vst [vmem:[%s5378_s29 + $0x44] sm:$0xf] %v217_v17  ;;  %220 = vst [vmem:[%s5378_s29 + $0x48] sm:$0xf] %v219_v18 }
  0x22   : > { %222 = vst [vmem:[%s5378_s29 + $0x4c] sm:$0xf] %v221_v19  ;;  %v223_v20 = vld [vmem:[%s5374_s28 + $0xa0] sm:$0xf]  ;;  %v225_v21 = vld [vmem:[%s5374_s28 + $0xa8] sm:$0xf] }
  0x23   : > { %v227_v22 = vld [vmem:[%s5374_s28 + $0xb0] sm:$0xf]  ;;  %224 = vst [vmem:[%s5378_s29 + $0x50] sm:$0xf] %v223_v20  ;;  %226 = vst [vmem:[%s5378_s29 + $0x54] sm:$0xf] %v225_v21 }
  0x24   : > { %228 = vst [vmem:[%s5378_s29 + $0x58] sm:$0xf] %v227_v22  ;;  %v229_v23 = vld [vmem:[%s5374_s28 + $0xb8] sm:$0xf]  ;;  %v231_v24 = vld [vmem:[%s5374_s28 + $0xc0] sm:$0xf] }
  0x25   : > { %v233_v25 = vld [vmem:[%s5374_s28 + $0xc8] sm:$0xf]  ;;  %230 = vst [vmem:[%s5378_s29 + $0x5c] sm:$0xf] %v229_v23  ;;  %232 = vst [vmem:[%s5378_s29 + $0x60] sm:$0xf] %v231_v24 }
  0x26   : > { %234 = vst [vmem:[%s5378_s29 + $0x64] sm:$0xf] %v233_v25  ;;  %v235_v26 = vld [vmem:[%s5374_s28 + $0xd0] sm:$0xf]  ;;  %v237_v27 = vld [vmem:[%s5374_s28 + $0xd8] sm:$0xf] }
  0x27   : > { %v239_v28 = vld [vmem:[%s5374_s28 + $0xe0] sm:$0xf]  ;;  %236 = vst [vmem:[%s5378_s29 + $0x68] sm:$0xf] %v235_v26  ;;  %238 = vst [vmem:[%s5378_s29 + $0x6c] sm:$0xf] %v237_v27 }
  0x28   : > { %240 = vst [vmem:[%s5378_s29 + $0x70] sm:$0xf] %v239_v28  ;;  %v241_v29 = vld [vmem:[%s5374_s28 + $0xe8] sm:$0xf]  ;;  %v243_v30 = vld [vmem:[%s5374_s28 + $0xf0] sm:$0xf] }
  0x29   : > { %v245_v31 = vld [vmem:[%s5374_s28 + $0xf8] sm:$0xf]  ;;  %242 = vst [vmem:[%s5378_s29 + $0x74] sm:$0xf] %v241_v29  ;;  %244 = vst [vmem:[%s5378_s29 + $0x78] sm:$0xf] %v243_v30 }
  0x2a   : > { %246 = vst [vmem:[%s5378_s29 + $0x7c] sm:$0xf] %v245_v31  ;;  %v247_v32 = vld [vmem:[%s5374_s28 + $0x100] sm:$0xf]  ;;  %v249_v33 = vld [vmem:[%s5374_s28 + $0x108] sm:$0xf] }
  0x2b   : > { %v251_v34 = vld [vmem:[%s5374_s28 + $0x110] sm:$0xf]  ;;  %248 = vst [vmem:[%s5378_s29 + $0x80] sm:$0xf] %v247_v32  ;;  %250 = vst [vmem:[%s5378_s29 + $0x84] sm:$0xf] %v249_v33 }
  0x2c   : > { %252 = vst [vmem:[%s5378_s29 + $0x88] sm:$0xf] %v251_v34  ;;  %v253_v35 = vld [vmem:[%s5374_s28 + $0x118] sm:$0xf]  ;;  %v255_v36 = vld [vmem:[%s5374_s28 + $0x120] sm:$0xf] }
  0x2d   : > { %v257_v37 = vld [vmem:[%s5374_s28 + $0x128] sm:$0xf]  ;;  %254 = vst [vmem:[%s5378_s29 + $0x8c] sm:$0xf] %v253_v35  ;;  %256 = vst [vmem:[%s5378_s29 + $0x90] sm:$0xf] %v255_v36 }
  0x2e   : > { %258 = vst [vmem:[%s5378_s29 + $0x94] sm:$0xf] %v257_v37  ;;  %v259_v38 = vld [vmem:[%s5374_s28 + $0x130] sm:$0xf]  ;;  %v261_v39 = vld [vmem:[%s5374_s28 + $0x138] sm:$0xf] }
  0x2f   : > { %v263_v40 = vld [vmem:[%s5374_s28 + $0x140] sm:$0xf]  ;;  %260 = vst [vmem:[%s5378_s29 + $0x98] sm:$0xf] %v259_v38  ;;  %262 = vst [vmem:[%s5378_s29 + $0x9c] sm:$0xf] %v261_v39 }
  0x30   : > { %264 = vst [vmem:[%s5378_s29 + $0xa0] sm:$0xf] %v263_v40  ;;  %v265_v41 = vld [vmem:[%s5374_s28 + $0x148] sm:$0xf]  ;;  %v267_v42 = vld [vmem:[%s5374_s28 + $0x150] sm:$0xf] }
  0x31   : > { %v269_v43 = vld [vmem:[%s5374_s28 + $0x158] sm:$0xf]  ;;  %266 = vst [vmem:[%s5378_s29 + $0xa4] sm:$0xf] %v265_v41  ;;  %268 = vst [vmem:[%s5378_s29 + $0xa8] sm:$0xf] %v267_v42 }
  0x32   : > { %270 = vst [vmem:[%s5378_s29 + $0xac] sm:$0xf] %v269_v43  ;;  %v271_v44 = vld [vmem:[%s5374_s28 + $0x160] sm:$0xf]  ;;  %v273_v45 = vld [vmem:[%s5374_s28 + $0x168] sm:$0xf] }
  0x33   : > { %v275_v46 = vld [vmem:[%s5374_s28 + $0x170] sm:$0xf]  ;;  %272 = vst [vmem:[%s5378_s29 + $0xb0] sm:$0xf] %v271_v44  ;;  %274 = vst [vmem:[%s5378_s29 + $0xb4] sm:$0xf] %v273_v45 }
  0x34   : > { %276 = vst [vmem:[%s5378_s29 + $0xb8] sm:$0xf] %v275_v46  ;;  %v277_v47 = vld [vmem:[%s5374_s28 + $0x178] sm:$0xf]  ;;  %v279_v48 = vld [vmem:[%s5374_s28 + $0x180] sm:$0xf] }
  0x35   : > { %v281_v49 = vld [vmem:[%s5374_s28 + $0x188] sm:$0xf]  ;;  %278 = vst [vmem:[%s5378_s29 + $0xbc] sm:$0xf] %v277_v47  ;;  %280 = vst [vmem:[%s5378_s29 + $0xc0] sm:$0xf] %v279_v48 }
  0x36   : > { %282 = vst [vmem:[%s5378_s29 + $0xc4] sm:$0xf] %v281_v49  ;;  %v283_v50 = vld [vmem:[%s5374_s28 + $0x190] sm:$0xf]  ;;  %v285_v51 = vld [vmem:[%s5374_s28 + $0x198] sm:$0xf] }
  0x37   : > { %v287_v52 = vld [vmem:[%s5374_s28 + $0x1a0] sm:$0xf]  ;;  %284 = vst [vmem:[%s5378_s29 + $0xc8] sm:$0xf] %v283_v50  ;;  %286 = vst [vmem:[%s5378_s29 + $0xcc] sm:$0xf] %v285_v51 }
  0x38   : > { %288 = vst [vmem:[%s5378_s29 + $0xd0] sm:$0xf] %v287_v52  ;;  %v289_v53 = vld [vmem:[%s5374_s28 + $0x1a8] sm:$0xf]  ;;  %v291_v54 = vld [vmem:[%s5374_s28 + $0x1b0] sm:$0xf] }
  0x39   : > { %v293_v55 = vld [vmem:[%s5374_s28 + $0x1b8] sm:$0xf]  ;;  %290 = vst [vmem:[%s5378_s29 + $0xd4] sm:$0xf] %v289_v53  ;;  %292 = vst [vmem:[%s5378_s29 + $0xd8] sm:$0xf] %v291_v54 }
  0x3a   : > { %294 = vst [vmem:[%s5378_s29 + $0xdc] sm:$0xf] %v293_v55  ;;  %v295_v56 = vld [vmem:[%s5374_s28 + $0x1c0] sm:$0xf]  ;;  %v297_v57 = vld [vmem:[%s5374_s28 + $0x1c8] sm:$0xf] }
  0x3b   : > { %v299_v58 = vld [vmem:[%s5374_s28 + $0x1d0] sm:$0xf]  ;;  %296 = vst [vmem:[%s5378_s29 + $0xe0] sm:$0xf] %v295_v56  ;;  %298 = vst [vmem:[%s5378_s29 + $0xe4] sm:$0xf] %v297_v57 }
  0x3c   : > { %300 = vst [vmem:[%s5378_s29 + $0xe8] sm:$0xf] %v299_v58  ;;  %v301_v59 = vld [vmem:[%s5374_s28 + $0x1d8] sm:$0xf]  ;;  %v303_v60 = vld [vmem:[%s5374_s28 + $0x1e0] sm:$0xf] }
  0x3d   : > { %v305_v61 = vld [vmem:[%s5374_s28 + $0x1e8] sm:$0xf]  ;;  %302 = vst [vmem:[%s5378_s29 + $0xec] sm:$0xf] %v301_v59  ;;  %304 = vst [vmem:[%s5378_s29 + $0xf0] sm:$0xf] %v303_v60 }
  0x3e   : > { %306 = vst [vmem:[%s5378_s29 + $0xf4] sm:$0xf] %v305_v61  ;;  %v307_v62 = vld [vmem:[%s5374_s28 + $0x1f0] sm:$0xf]  ;;  %v309_v63 = vld [vmem:[%s5374_s28 + $0x1f8] sm:$0xf] }
  0x3f   : > { %v311_v0 = vld [vmem:[%s5374_s28 + $0x200] sm:$0xf]  ;;  %308 = vst [vmem:[%s5378_s29 + $0xf8] sm:$0xf] %v307_v62  ;;  %310 = vst [vmem:[%s5378_s29 + $0xfc] sm:$0xf] %v309_v63 }
  0x40   : > { %312 = vst [vmem:[%s5378_s29 + $0x100] sm:$0xf] %v311_v0  ;;  %v313_v1 = vld [vmem:[%s5374_s28 + $0x208] sm:$0xf]  ;;  %v315_v2 = vld [vmem:[%s5374_s28 + $0x210] sm:$0xf] }
  0x41   : > { %v317_v3 = vld [vmem:[%s5374_s28 + $0x218] sm:$0xf]  ;;  %314 = vst [vmem:[%s5378_s29 + $0x104] sm:$0xf] %v313_v1  ;;  %316 = vst [vmem:[%s5378_s29 + $0x108] sm:$0xf] %v315_v2 }
  0x42   : > { %318 = vst [vmem:[%s5378_s29 + $0x10c] sm:$0xf] %v317_v3  ;;  %v319_v4 = vld [vmem:[%s5374_s28 + $0x220] sm:$0xf]  ;;  %v321_v5 = vld [vmem:[%s5374_s28 + $0x228] sm:$0xf] }
  0x43   : > { %v323_v6 = vld [vmem:[%s5374_s28 + $0x230] sm:$0xf]  ;;  %320 = vst [vmem:[%s5378_s29 + $0x110] sm:$0xf] %v319_v4  ;;  %322 = vst [vmem:[%s5378_s29 + $0x114] sm:$0xf] %v321_v5 }
  0x44   : > { %324 = vst [vmem:[%s5378_s29 + $0x118] sm:$0xf] %v323_v6  ;;  %v325_v7 = vld [vmem:[%s5374_s28 + $0x238] sm:$0xf]  ;;  %v327_v8 = vld [vmem:[%s5374_s28 + $0x240] sm:$0xf] }
  0x45   : > { %v329_v9 = vld [vmem:[%s5374_s28 + $0x248] sm:$0xf]  ;;  %326 = vst [vmem:[%s5378_s29 + $0x11c] sm:$0xf] %v325_v7  ;;  %328 = vst [vmem:[%s5378_s29 + $0x120] sm:$0xf] %v327_v8 }
  0x46   : > { %330 = vst [vmem:[%s5378_s29 + $0x124] sm:$0xf] %v329_v9  ;;  %v331_v10 = vld [vmem:[%s5374_s28 + $0x250] sm:$0xf]  ;;  %v333_v11 = vld [vmem:[%s5374_s28 + $0x258] sm:$0xf] }
  0x47   : > { %v335_v12 = vld [vmem:[%s5374_s28 + $0x260] sm:$0xf]  ;;  %332 = vst [vmem:[%s5378_s29 + $0x128] sm:$0xf] %v331_v10  ;;  %334 = vst [vmem:[%s5378_s29 + $0x12c] sm:$0xf] %v333_v11 }
  0x48   : > { %336 = vst [vmem:[%s5378_s29 + $0x130] sm:$0xf] %v335_v12  ;;  %v337_v13 = vld [vmem:[%s5374_s28 + $0x268] sm:$0xf]  ;;  %v339_v14 = vld [vmem:[%s5374_s28 + $0x270] sm:$0xf] }
  0x49   : > { %v341_v15 = vld [vmem:[%s5374_s28 + $0x278] sm:$0xf]  ;;  %338 = vst [vmem:[%s5378_s29 + $0x134] sm:$0xf] %v337_v13  ;;  %340 = vst [vmem:[%s5378_s29 + $0x138] sm:$0xf] %v339_v14 }
  0x4a   : > { %342 = vst [vmem:[%s5378_s29 + $0x13c] sm:$0xf] %v341_v15  ;;  %v343_v16 = vld [vmem:[%s5374_s28 + $0x280] sm:$0xf]  ;;  %v345_v17 = vld [vmem:[%s5374_s28 + $0x288] sm:$0xf] }
  0x4b   : > { %v347_v18 = vld [vmem:[%s5374_s28 + $0x290] sm:$0xf]  ;;  %344 = vst [vmem:[%s5378_s29 + $0x140] sm:$0xf] %v343_v16  ;;  %346 = vst [vmem:[%s5378_s29 + $0x144] sm:$0xf] %v345_v17 }
  0x4c   : > { %348 = vst [vmem:[%s5378_s29 + $0x148] sm:$0xf] %v347_v18  ;;  %v349_v19 = vld [vmem:[%s5374_s28 + $0x298] sm:$0xf]  ;;  %v351_v20 = vld [vmem:[%s5374_s28 + $0x2a0] sm:$0xf] }
  0x4d   : > { %v353_v21 = vld [vmem:[%s5374_s28 + $0x2a8] sm:$0xf]  ;;  %350 = vst [vmem:[%s5378_s29 + $0x14c] sm:$0xf] %v349_v19  ;;  %352 = vst [vmem:[%s5378_s29 + $0x150] sm:$0xf] %v351_v20 }
  0x4e   : > { %354 = vst [vmem:[%s5378_s29 + $0x154] sm:$0xf] %v353_v21  ;;  %v355_v22 = vld [vmem:[%s5374_s28 + $0x2b0] sm:$0xf]  ;;  %v357_v23 = vld [vmem:[%s5374_s28 + $0x2b8] sm:$0xf] }
  0x4f   : > { %v359_v24 = vld [vmem:[%s5374_s28 + $0x2c0] sm:$0xf]  ;;  %356 = vst [vmem:[%s5378_s29 + $0x158] sm:$0xf] %v355_v22  ;;  %358 = vst [vmem:[%s5378_s29 + $0x15c] sm:$0xf] %v357_v23 }
  0x50   : > { %360 = vst [vmem:[%s5378_s29 + $0x160] sm:$0xf] %v359_v24  ;;  %v361_v25 = vld [vmem:[%s5374_s28 + $0x2c8] sm:$0xf]  ;;  %v363_v26 = vld [vmem:[%s5374_s28 + $0x2d0] sm:$0xf] }
  0x51   : > { %v365_v27 = vld [vmem:[%s5374_s28 + $0x2d8] sm:$0xf]  ;;  %362 = vst [vmem:[%s5378_s29 + $0x164] sm:$0xf] %v361_v25  ;;  %364 = vst [vmem:[%s5378_s29 + $0x168] sm:$0xf] %v363_v26 }
  0x52   : > { %366 = vst [vmem:[%s5378_s29 + $0x16c] sm:$0xf] %v365_v27  ;;  %v367_v28 = vld [vmem:[%s5374_s28 + $0x2e0] sm:$0xf]  ;;  %v369_v29 = vld [vmem:[%s5374_s28 + $0x2e8] sm:$0xf] }
  0x53   : > { %v371_v30 = vld [vmem:[%s5374_s28 + $0x2f0] sm:$0xf]  ;;  %368 = vst [vmem:[%s5378_s29 + $0x170] sm:$0xf] %v367_v28  ;;  %370 = vst [vmem:[%s5378_s29 + $0x174] sm:$0xf] %v369_v29 }
  0x54   : > { %372 = vst [vmem:[%s5378_s29 + $0x178] sm:$0xf] %v371_v30  ;;  %v373_v31 = vld [vmem:[%s5374_s28 + $0x2f8] sm:$0xf]  ;;  %v375_v32 = vld [vmem:[%s5374_s28 + $0x300] sm:$0xf] }
  0x55   : > { %v377_v33 = vld [vmem:[%s5374_s28 + $0x308] sm:$0xf]  ;;  %374 = vst [vmem:[%s5378_s29 + $0x17c] sm:$0xf] %v373_v31  ;;  %376 = vst [vmem:[%s5378_s29 + $0x180] sm:$0xf] %v375_v32 }
  0x56   : > { %378 = vst [vmem:[%s5378_s29 + $0x184] sm:$0xf] %v377_v33  ;;  %v379_v34 = vld [vmem:[%s5374_s28 + $0x310] sm:$0xf]  ;;  %v381_v35 = vld [vmem:[%s5374_s28 + $0x318] sm:$0xf] }
  0x57   : > { %v383_v36 = vld [vmem:[%s5374_s28 + $0x320] sm:$0xf]  ;;  %380 = vst [vmem:[%s5378_s29 + $0x188] sm:$0xf] %v379_v34  ;;  %382 = vst [vmem:[%s5378_s29 + $0x18c] sm:$0xf] %v381_v35 }
  0x58   : > { %384 = vst [vmem:[%s5378_s29 + $0x190] sm:$0xf] %v383_v36  ;;  %v385_v37 = vld [vmem:[%s5374_s28 + $0x328] sm:$0xf]  ;;  %v387_v38 = vld [vmem:[%s5374_s28 + $0x330] sm:$0xf] }
  0x59   : > { %v389_v39 = vld [vmem:[%s5374_s28 + $0x338] sm:$0xf]  ;;  %386 = vst [vmem:[%s5378_s29 + $0x194] sm:$0xf] %v385_v37  ;;  %388 = vst [vmem:[%s5378_s29 + $0x198] sm:$0xf] %v387_v38 }
  0x5a   : > { %390 = vst [vmem:[%s5378_s29 + $0x19c] sm:$0xf] %v389_v39  ;;  %v391_v40 = vld [vmem:[%s5374_s28 + $0x340] sm:$0xf]  ;;  %v393_v41 = vld [vmem:[%s5374_s28 + $0x348] sm:$0xf] }
  0x5b   : > { %v395_v42 = vld [vmem:[%s5374_s28 + $0x350] sm:$0xf]  ;;  %392 = vst [vmem:[%s5378_s29 + $0x1a0] sm:$0xf] %v391_v40  ;;  %394 = vst [vmem:[%s5378_s29 + $0x1a4] sm:$0xf] %v393_v41 }
  0x5c   : > { %396 = vst [vmem:[%s5378_s29 + $0x1a8] sm:$0xf] %v395_v42  ;;  %v397_v43 = vld [vmem:[%s5374_s28 + $0x358] sm:$0xf]  ;;  %v399_v44 = vld [vmem:[%s5374_s28 + $0x360] sm:$0xf] }
  0x5d   : > { %v401_v45 = vld [vmem:[%s5374_s28 + $0x368] sm:$0xf]  ;;  %398 = vst [vmem:[%s5378_s29 + $0x1ac] sm:$0xf] %v397_v43  ;;  %400 = vst [vmem:[%s5378_s29 + $0x1b0] sm:$0xf] %v399_v44 }
  0x5e   : > { %402 = vst [vmem:[%s5378_s29 + $0x1b4] sm:$0xf] %v401_v45  ;;  %v403_v46 = vld [vmem:[%s5374_s28 + $0x370] sm:$0xf]  ;;  %v405_v47 = vld [vmem:[%s5374_s28 + $0x378] sm:$0xf] }
  0x5f   : > { %v407_v48 = vld [vmem:[%s5374_s28 + $0x380] sm:$0xf]  ;;  %404 = vst [vmem:[%s5378_s29 + $0x1b8] sm:$0xf] %v403_v46  ;;  %406 = vst [vmem:[%s5378_s29 + $0x1bc] sm:$0xf] %v405_v47 }
  0x60   : > { %408 = vst [vmem:[%s5378_s29 + $0x1c0] sm:$0xf] %v407_v48  ;;  %v409_v49 = vld [vmem:[%s5374_s28 + $0x388] sm:$0xf]  ;;  %v411_v50 = vld [vmem:[%s5374_s28 + $0x390] sm:$0xf] }
  0x61   : > { %v413_v51 = vld [vmem:[%s5374_s28 + $0x398] sm:$0xf]  ;;  %410 = vst [vmem:[%s5378_s29 + $0x1c4] sm:$0xf] %v409_v49  ;;  %412 = vst [vmem:[%s5378_s29 + $0x1c8] sm:$0xf] %v411_v50 }
  0x62   : > { %414 = vst [vmem:[%s5378_s29 + $0x1cc] sm:$0xf] %v413_v51  ;;  %v415_v52 = vld [vmem:[%s5374_s28 + $0x3a0] sm:$0xf]  ;;  %v417_v53 = vld [vmem:[%s5374_s28 + $0x3a8] sm:$0xf] }
  0x63   : > { %v419_v54 = vld [vmem:[%s5374_s28 + $0x3b0] sm:$0xf]  ;;  %416 = vst [vmem:[%s5378_s29 + $0x1d0] sm:$0xf] %v415_v52  ;;  %418 = vst [vmem:[%s5378_s29 + $0x1d4] sm:$0xf] %v417_v53 }
  0x64   : > { %420 = vst [vmem:[%s5378_s29 + $0x1d8] sm:$0xf] %v419_v54  ;;  %v421_v55 = vld [vmem:[%s5374_s28 + $0x3b8] sm:$0xf]  ;;  %v423_v56 = vld [vmem:[%s5374_s28 + $0x3c0] sm:$0xf] }
  0x65   : > { %v425_v57 = vld [vmem:[%s5374_s28 + $0x3c8] sm:$0xf]  ;;  %422 = vst [vmem:[%s5378_s29 + $0x1dc] sm:$0xf] %v421_v55  ;;  %424 = vst [vmem:[%s5378_s29 + $0x1e0] sm:$0xf] %v423_v56 }
  0x66   : > { %426 = vst [vmem:[%s5378_s29 + $0x1e4] sm:$0xf] %v425_v57  ;;  %v427_v58 = vld [vmem:[%s5374_s28 + $0x3d0] sm:$0xf]  ;;  %v429_v59 = vld [vmem:[%s5374_s28 + $0x3d8] sm:$0xf] }
  0x67   : > { %v431_v60 = vld [vmem:[%s5374_s28 + $0x3e0] sm:$0xf]  ;;  %428 = vst [vmem:[%s5378_s29 + $0x1e8] sm:$0xf] %v427_v58  ;;  %430 = vst [vmem:[%s5378_s29 + $0x1ec] sm:$0xf] %v429_v59 }
  0x68   : > { %432 = vst [vmem:[%s5378_s29 + $0x1f0] sm:$0xf] %v431_v60  ;;  %v433_v61 = vld [vmem:[%s5374_s28 + $0x3e8] sm:$0xf]  ;;  %v435_v62 = vld [vmem:[%s5374_s28 + $0x3f0] sm:$0xf] }
  0x69   : > { %v437_v63 = vld [vmem:[%s5374_s28 + $0x3f8] sm:$0xf]  ;;  %434 = vst [vmem:[%s5378_s29 + $0x1f4] sm:$0xf] %v433_v61  ;;  %436 = vst [vmem:[%s5378_s29 + $0x1f8] sm:$0xf] %v435_v62 }
  0x6a   : > { %438 = vst [vmem:[%s5378_s29 + $0x1fc] sm:$0xf] %v437_v63  ;;  %v439_v0 = vld [vmem:[%s5374_s28 + $0x400] sm:$0xf]  ;;  %v441_v1 = vld [vmem:[%s5374_s28 + $0x408] sm:$0xf] }
  0x6b   : > { %v443_v2 = vld [vmem:[%s5374_s28 + $0x410] sm:$0xf]  ;;  %440 = vst [vmem:[%s5378_s29 + $0x200] sm:$0xf] %v439_v0  ;;  %442 = vst [vmem:[%s5378_s29 + $0x204] sm:$0xf] %v441_v1 }
  0x6c   : > { %444 = vst [vmem:[%s5378_s29 + $0x208] sm:$0xf] %v443_v2  ;;  %v445_v3 = vld [vmem:[%s5374_s28 + $0x418] sm:$0xf]  ;;  %v447_v4 = vld [vmem:[%s5374_s28 + $0x420] sm:$0xf] }
  0x6d   : > { %v449_v5 = vld [vmem:[%s5374_s28 + $0x428] sm:$0xf]  ;;  %446 = vst [vmem:[%s5378_s29 + $0x20c] sm:$0xf] %v445_v3  ;;  %448 = vst [vmem:[%s5378_s29 + $0x210] sm:$0xf] %v447_v4 }
  0x6e   : > { %450 = vst [vmem:[%s5378_s29 + $0x214] sm:$0xf] %v449_v5  ;;  %v451_v6 = vld [vmem:[%s5374_s28 + $0x430] sm:$0xf]  ;;  %v453_v7 = vld [vmem:[%s5374_s28 + $0x438] sm:$0xf] }
  0x6f   : > { %v455_v8 = vld [vmem:[%s5374_s28 + $0x440] sm:$0xf]  ;;  %452 = vst [vmem:[%s5378_s29 + $0x218] sm:$0xf] %v451_v6  ;;  %454 = vst [vmem:[%s5378_s29 + $0x21c] sm:$0xf] %v453_v7 }
  0x70   : > { %456 = vst [vmem:[%s5378_s29 + $0x220] sm:$0xf] %v455_v8  ;;  %v457_v9 = vld [vmem:[%s5374_s28 + $0x448] sm:$0xf]  ;;  %v459_v10 = vld [vmem:[%s5374_s28 + $0x450] sm:$0xf] }
  0x71   : > { %v461_v11 = vld [vmem:[%s5374_s28 + $0x458] sm:$0xf]  ;;  %458 = vst [vmem:[%s5378_s29 + $0x224] sm:$0xf] %v457_v9  ;;  %460 = vst [vmem:[%s5378_s29 + $0x228] sm:$0xf] %v459_v10 }
  0x72   : > { %462 = vst [vmem:[%s5378_s29 + $0x22c] sm:$0xf] %v461_v11  ;;  %v463_v12 = vld [vmem:[%s5374_s28 + $0x460] sm:$0xf]  ;;  %v465_v13 = vld [vmem:[%s5374_s28 + $0x468] sm:$0xf] }
  0x73   : > { %v467_v14 = vld [vmem:[%s5374_s28 + $0x470] sm:$0xf]  ;;  %464 = vst [vmem:[%s5378_s29 + $0x230] sm:$0xf] %v463_v12  ;;  %466 = vst [vmem:[%s5378_s29 + $0x234] sm:$0xf] %v465_v13 }
  0x74   : > { %468 = vst [vmem:[%s5378_s29 + $0x238] sm:$0xf] %v467_v14  ;;  %v469_v15 = vld [vmem:[%s5374_s28 + $0x478] sm:$0xf]  ;;  %v471_v16 = vld [vmem:[%s5374_s28 + $0x480] sm:$0xf] }
  0x75   : > { %v473_v17 = vld [vmem:[%s5374_s28 + $0x488] sm:$0xf]  ;;  %470 = vst [vmem:[%s5378_s29 + $0x23c] sm:$0xf] %v469_v15  ;;  %472 = vst [vmem:[%s5378_s29 + $0x240] sm:$0xf] %v471_v16 }
  0x76   : > { %474 = vst [vmem:[%s5378_s29 + $0x244] sm:$0xf] %v473_v17  ;;  %v475_v18 = vld [vmem:[%s5374_s28 + $0x490] sm:$0xf]  ;;  %v477_v19 = vld [vmem:[%s5374_s28 + $0x498] sm:$0xf] }
  0x77   : > { %v479_v20 = vld [vmem:[%s5374_s28 + $0x4a0] sm:$0xf]  ;;  %476 = vst [vmem:[%s5378_s29 + $0x248] sm:$0xf] %v475_v18  ;;  %478 = vst [vmem:[%s5378_s29 + $0x24c] sm:$0xf] %v477_v19 }
  0x78   : > { %480 = vst [vmem:[%s5378_s29 + $0x250] sm:$0xf] %v479_v20  ;;  %v481_v21 = vld [vmem:[%s5374_s28 + $0x4a8] sm:$0xf]  ;;  %v483_v22 = vld [vmem:[%s5374_s28 + $0x4b0] sm:$0xf] }
  0x79   : > { %v485_v23 = vld [vmem:[%s5374_s28 + $0x4b8] sm:$0xf]  ;;  %482 = vst [vmem:[%s5378_s29 + $0x254] sm:$0xf] %v481_v21  ;;  %484 = vst [vmem:[%s5378_s29 + $0x258] sm:$0xf] %v483_v22 }
  0x7a   : > { %486 = vst [vmem:[%s5378_s29 + $0x25c] sm:$0xf] %v485_v23  ;;  %v487_v24 = vld [vmem:[%s5374_s28 + $0x4c0] sm:$0xf]  ;;  %v489_v25 = vld [vmem:[%s5374_s28 + $0x4c8] sm:$0xf] }
  0x7b   : > { %v491_v26 = vld [vmem:[%s5374_s28 + $0x4d0] sm:$0xf]  ;;  %488 = vst [vmem:[%s5378_s29 + $0x260] sm:$0xf] %v487_v24  ;;  %490 = vst [vmem:[%s5378_s29 + $0x264] sm:$0xf] %v489_v25 }
  0x7c   : > { %492 = vst [vmem:[%s5378_s29 + $0x268] sm:$0xf] %v491_v26  ;;  %v493_v27 = vld [vmem:[%s5374_s28 + $0x4d8] sm:$0xf]  ;;  %v495_v28 = vld [vmem:[%s5374_s28 + $0x4e0] sm:$0xf] }
  0x7d   : > { %v497_v29 = vld [vmem:[%s5374_s28 + $0x4e8] sm:$0xf]  ;;  %494 = vst [vmem:[%s5378_s29 + $0x26c] sm:$0xf] %v493_v27  ;;  %496 = vst [vmem:[%s5378_s29 + $0x270] sm:$0xf] %v495_v28 }
  0x7e   : > { %498 = vst [vmem:[%s5378_s29 + $0x274] sm:$0xf] %v497_v29  ;;  %v499_v30 = vld [vmem:[%s5374_s28 + $0x4f0] sm:$0xf]  ;;  %v501_v31 = vld [vmem:[%s5374_s28 + $0x4f8] sm:$0xf] }
  0x7f   : > { %v503_v32 = vld [vmem:[%s5374_s28 + $0x500] sm:$0xf]  ;;  %500 = vst [vmem:[%s5378_s29 + $0x278] sm:$0xf] %v499_v30  ;;  %502 = vst [vmem:[%s5378_s29 + $0x27c] sm:$0xf] %v501_v31 }
  0x80   : > { %504 = vst [vmem:[%s5378_s29 + $0x280] sm:$0xf] %v503_v32  ;;  %v505_v33 = vld [vmem:[%s5374_s28 + $0x508] sm:$0xf]  ;;  %v507_v34 = vld [vmem:[%s5374_s28 + $0x510] sm:$0xf] }
  0x81   : > { %v509_v35 = vld [vmem:[%s5374_s28 + $0x518] sm:$0xf]  ;;  %506 = vst [vmem:[%s5378_s29 + $0x284] sm:$0xf] %v505_v33  ;;  %508 = vst [vmem:[%s5378_s29 + $0x288] sm:$0xf] %v507_v34 }
  0x82   : > { %510 = vst [vmem:[%s5378_s29 + $0x28c] sm:$0xf] %v509_v35  ;;  %v511_v36 = vld [vmem:[%s5374_s28 + $0x520] sm:$0xf]  ;;  %v513_v37 = vld [vmem:[%s5374_s28 + $0x528] sm:$0xf] }
  0x83   : > { %v515_v38 = vld [vmem:[%s5374_s28 + $0x530] sm:$0xf]  ;;  %512 = vst [vmem:[%s5378_s29 + $0x290] sm:$0xf] %v511_v36  ;;  %514 = vst [vmem:[%s5378_s29 + $0x294] sm:$0xf] %v513_v37 }
  0x84   : > { %516 = vst [vmem:[%s5378_s29 + $0x298] sm:$0xf] %v515_v38  ;;  %v517_v39 = vld [vmem:[%s5374_s28 + $0x538] sm:$0xf]  ;;  %v519_v40 = vld [vmem:[%s5374_s28 + $0x540] sm:$0xf] }
  0x85   : > { %v521_v41 = vld [vmem:[%s5374_s28 + $0x548] sm:$0xf]  ;;  %518 = vst [vmem:[%s5378_s29 + $0x29c] sm:$0xf] %v517_v39  ;;  %520 = vst [vmem:[%s5378_s29 + $0x2a0] sm:$0xf] %v519_v40 }
  0x86   : > { %522 = vst [vmem:[%s5378_s29 + $0x2a4] sm:$0xf] %v521_v41  ;;  %v523_v42 = vld [vmem:[%s5374_s28 + $0x550] sm:$0xf]  ;;  %v525_v43 = vld [vmem:[%s5374_s28 + $0x558] sm:$0xf] }
  0x87   : > { %v527_v44 = vld [vmem:[%s5374_s28 + $0x560] sm:$0xf]  ;;  %524 = vst [vmem:[%s5378_s29 + $0x2a8] sm:$0xf] %v523_v42  ;;  %526 = vst [vmem:[%s5378_s29 + $0x2ac] sm:$0xf] %v525_v43 }
  0x88   : > { %528 = vst [vmem:[%s5378_s29 + $0x2b0] sm:$0xf] %v527_v44  ;;  %v529_v45 = vld [vmem:[%s5374_s28 + $0x568] sm:$0xf]  ;;  %v531_v46 = vld [vmem:[%s5374_s28 + $0x570] sm:$0xf] }
  0x89   : > { %v533_v47 = vld [vmem:[%s5374_s28 + $0x578] sm:$0xf]  ;;  %530 = vst [vmem:[%s5378_s29 + $0x2b4] sm:$0xf] %v529_v45  ;;  %532 = vst [vmem:[%s5378_s29 + $0x2b8] sm:$0xf] %v531_v46 }
  0x8a   : > { %534 = vst [vmem:[%s5378_s29 + $0x2bc] sm:$0xf] %v533_v47  ;;  %v535_v48 = vld [vmem:[%s5374_s28 + $0x580] sm:$0xf]  ;;  %v537_v49 = vld [vmem:[%s5374_s28 + $0x588] sm:$0xf] }
  0x8b   : > { %v539_v50 = vld [vmem:[%s5374_s28 + $0x590] sm:$0xf]  ;;  %536 = vst [vmem:[%s5378_s29 + $0x2c0] sm:$0xf] %v535_v48  ;;  %538 = vst [vmem:[%s5378_s29 + $0x2c4] sm:$0xf] %v537_v49 }
  0x8c   : > { %540 = vst [vmem:[%s5378_s29 + $0x2c8] sm:$0xf] %v539_v50  ;;  %v541_v51 = vld [vmem:[%s5374_s28 + $0x598] sm:$0xf]  ;;  %v543_v52 = vld [vmem:[%s5374_s28 + $0x5a0] sm:$0xf] }
  0x8d   : > { %v545_v53 = vld [vmem:[%s5374_s28 + $0x5a8] sm:$0xf]  ;;  %542 = vst [vmem:[%s5378_s29 + $0x2cc] sm:$0xf] %v541_v51  ;;  %544 = vst [vmem:[%s5378_s29 + $0x2d0] sm:$0xf] %v543_v52 }
  0x8e   : > { %546 = vst [vmem:[%s5378_s29 + $0x2d4] sm:$0xf] %v545_v53  ;;  %v547_v54 = vld [vmem:[%s5374_s28 + $0x5b0] sm:$0xf]  ;;  %v549_v55 = vld [vmem:[%s5374_s28 + $0x5b8] sm:$0xf] }
  0x8f   : > { %v551_v56 = vld [vmem:[%s5374_s28 + $0x5c0] sm:$0xf]  ;;  %548 = vst [vmem:[%s5378_s29 + $0x2d8] sm:$0xf] %v547_v54  ;;  %550 = vst [vmem:[%s5378_s29 + $0x2dc] sm:$0xf] %v549_v55 }
  0x90   : > { %552 = vst [vmem:[%s5378_s29 + $0x2e0] sm:$0xf] %v551_v56  ;;  %v553_v57 = vld [vmem:[%s5374_s28 + $0x5c8] sm:$0xf]  ;;  %v555_v58 = vld [vmem:[%s5374_s28 + $0x5d0] sm:$0xf] }
  0x91   : > { %v557_v59 = vld [vmem:[%s5374_s28 + $0x5d8] sm:$0xf]  ;;  %554 = vst [vmem:[%s5378_s29 + $0x2e4] sm:$0xf] %v553_v57  ;;  %556 = vst [vmem:[%s5378_s29 + $0x2e8] sm:$0xf] %v555_v58 }
  0x92   : > { %558 = vst [vmem:[%s5378_s29 + $0x2ec] sm:$0xf] %v557_v59  ;;  %v559_v60 = vld [vmem:[%s5374_s28 + $0x5e0] sm:$0xf]  ;;  %v561_v61 = vld [vmem:[%s5374_s28 + $0x5e8] sm:$0xf] }
  0x93   : > { %v563_v62 = vld [vmem:[%s5374_s28 + $0x5f0] sm:$0xf]  ;;  %560 = vst [vmem:[%s5378_s29 + $0x2f0] sm:$0xf] %v559_v60  ;;  %562 = vst [vmem:[%s5378_s29 + $0x2f4] sm:$0xf] %v561_v61 }
  0x94   : > { %564 = vst [vmem:[%s5378_s29 + $0x2f8] sm:$0xf] %v563_v62  ;;  %v565_v63 = vld [vmem:[%s5374_s28 + $0x5f8] sm:$0xf]  ;;  %v567_v0 = vld [vmem:[%s5374_s28 + $0x600] sm:$0xf] }
  0x95   : > { %v569_v1 = vld [vmem:[%s5374_s28 + $0x608] sm:$0xf]  ;;  %566 = vst [vmem:[%s5378_s29 + $0x2fc] sm:$0xf] %v565_v63  ;;  %568 = vst [vmem:[%s5378_s29 + $0x300] sm:$0xf] %v567_v0 }
  0x96   : > { %570 = vst [vmem:[%s5378_s29 + $0x304] sm:$0xf] %v569_v1  ;;  %v571_v2 = vld [vmem:[%s5374_s28 + $0x610] sm:$0xf]  ;;  %v573_v3 = vld [vmem:[%s5374_s28 + $0x618] sm:$0xf] }
  0x97   : > { %v575_v4 = vld [vmem:[%s5374_s28 + $0x620] sm:$0xf]  ;;  %572 = vst [vmem:[%s5378_s29 + $0x308] sm:$0xf] %v571_v2  ;;  %574 = vst [vmem:[%s5378_s29 + $0x30c] sm:$0xf] %v573_v3 }
  0x98   : > { %576 = vst [vmem:[%s5378_s29 + $0x310] sm:$0xf] %v575_v4  ;;  %v577_v5 = vld [vmem:[%s5374_s28 + $0x628] sm:$0xf]  ;;  %v579_v6 = vld [vmem:[%s5374_s28 + $0x630] sm:$0xf] }
  0x99   : > { %v581_v7 = vld [vmem:[%s5374_s28 + $0x638] sm:$0xf]  ;;  %578 = vst [vmem:[%s5378_s29 + $0x314] sm:$0xf] %v577_v5  ;;  %580 = vst [vmem:[%s5378_s29 + $0x318] sm:$0xf] %v579_v6 }
  0x9a   : > { %582 = vst [vmem:[%s5378_s29 + $0x31c] sm:$0xf] %v581_v7  ;;  %v583_v8 = vld [vmem:[%s5374_s28 + $0x640] sm:$0xf]  ;;  %v585_v9 = vld [vmem:[%s5374_s28 + $0x648] sm:$0xf] }
  0x9b   : > { %v587_v10 = vld [vmem:[%s5374_s28 + $0x650] sm:$0xf]  ;;  %584 = vst [vmem:[%s5378_s29 + $0x320] sm:$0xf] %v583_v8  ;;  %586 = vst [vmem:[%s5378_s29 + $0x324] sm:$0xf] %v585_v9 }
  0x9c   : > { %588 = vst [vmem:[%s5378_s29 + $0x328] sm:$0xf] %v587_v10  ;;  %v589_v11 = vld [vmem:[%s5374_s28 + $0x658] sm:$0xf]  ;;  %v591_v12 = vld [vmem:[%s5374_s28 + $0x660] sm:$0xf] }
  0x9d   : > { %v593_v13 = vld [vmem:[%s5374_s28 + $0x668] sm:$0xf]  ;;  %590 = vst [vmem:[%s5378_s29 + $0x32c] sm:$0xf] %v589_v11  ;;  %592 = vst [vmem:[%s5378_s29 + $0x330] sm:$0xf] %v591_v12 }
  0x9e   : > { %594 = vst [vmem:[%s5378_s29 + $0x334] sm:$0xf] %v593_v13  ;;  %v595_v14 = vld [vmem:[%s5374_s28 + $0x670] sm:$0xf]  ;;  %v597_v15 = vld [vmem:[%s5374_s28 + $0x678] sm:$0xf] }
  0x9f   : > { %v599_v16 = vld [vmem:[%s5374_s28 + $0x680] sm:$0xf]  ;;  %596 = vst [vmem:[%s5378_s29 + $0x338] sm:$0xf] %v595_v14  ;;  %598 = vst [vmem:[%s5378_s29 + $0x33c] sm:$0xf] %v597_v15 }
  0xa0   : > { %600 = vst [vmem:[%s5378_s29 + $0x340] sm:$0xf] %v599_v16  ;;  %v601_v17 = vld [vmem:[%s5374_s28 + $0x688] sm:$0xf]  ;;  %v603_v18 = vld [vmem:[%s5374_s28 + $0x690] sm:$0xf] }
  0xa1   : > { %v605_v19 = vld [vmem:[%s5374_s28 + $0x698] sm:$0xf]  ;;  %602 = vst [vmem:[%s5378_s29 + $0x344] sm:$0xf] %v601_v17  ;;  %604 = vst [vmem:[%s5378_s29 + $0x348] sm:$0xf] %v603_v18 }
  0xa2   : > { %606 = vst [vmem:[%s5378_s29 + $0x34c] sm:$0xf] %v605_v19  ;;  %v607_v20 = vld [vmem:[%s5374_s28 + $0x6a0] sm:$0xf]  ;;  %v609_v21 = vld [vmem:[%s5374_s28 + $0x6a8] sm:$0xf] }
  0xa3   : > { %v611_v22 = vld [vmem:[%s5374_s28 + $0x6b0] sm:$0xf]  ;;  %608 = vst [vmem:[%s5378_s29 + $0x350] sm:$0xf] %v607_v20  ;;  %610 = vst [vmem:[%s5378_s29 + $0x354] sm:$0xf] %v609_v21 }
  0xa4   : > { %612 = vst [vmem:[%s5378_s29 + $0x358] sm:$0xf] %v611_v22  ;;  %v613_v23 = vld [vmem:[%s5374_s28 + $0x6b8] sm:$0xf]  ;;  %v615_v24 = vld [vmem:[%s5374_s28 + $0x6c0] sm:$0xf] }
  0xa5   : > { %v617_v25 = vld [vmem:[%s5374_s28 + $0x6c8] sm:$0xf]  ;;  %614 = vst [vmem:[%s5378_s29 + $0x35c] sm:$0xf] %v613_v23  ;;  %616 = vst [vmem:[%s5378_s29 + $0x360] sm:$0xf] %v615_v24 }
  0xa6   : > { %618 = vst [vmem:[%s5378_s29 + $0x364] sm:$0xf] %v617_v25  ;;  %v619_v26 = vld [vmem:[%s5374_s28 + $0x6d0] sm:$0xf]  ;;  %v621_v27 = vld [vmem:[%s5374_s28 + $0x6d8] sm:$0xf] }
  0xa7   : > { %v623_v28 = vld [vmem:[%s5374_s28 + $0x6e0] sm:$0xf]  ;;  %620 = vst [vmem:[%s5378_s29 + $0x368] sm:$0xf] %v619_v26  ;;  %622 = vst [vmem:[%s5378_s29 + $0x36c] sm:$0xf] %v621_v27 }
  0xa8   : > { %624 = vst [vmem:[%s5378_s29 + $0x370] sm:$0xf] %v623_v28  ;;  %v625_v29 = vld [vmem:[%s5374_s28 + $0x6e8] sm:$0xf]  ;;  %v627_v30 = vld [vmem:[%s5374_s28 + $0x6f0] sm:$0xf] }
  0xa9   : > { %v629_v31 = vld [vmem:[%s5374_s28 + $0x6f8] sm:$0xf]  ;;  %626 = vst [vmem:[%s5378_s29 + $0x374] sm:$0xf] %v625_v29  ;;  %628 = vst [vmem:[%s5378_s29 + $0x378] sm:$0xf] %v627_v30 }
  0xaa   : > { %630 = vst [vmem:[%s5378_s29 + $0x37c] sm:$0xf] %v629_v31  ;;  %v631_v32 = vld [vmem:[%s5374_s28 + $0x700] sm:$0xf]  ;;  %v633_v33 = vld [vmem:[%s5374_s28 + $0x708] sm:$0xf] }
  0xab   : > { %v635_v34 = vld [vmem:[%s5374_s28 + $0x710] sm:$0xf]  ;;  %632 = vst [vmem:[%s5378_s29 + $0x380] sm:$0xf] %v631_v32  ;;  %634 = vst [vmem:[%s5378_s29 + $0x384] sm:$0xf] %v633_v33 }
  0xac   : > { %636 = vst [vmem:[%s5378_s29 + $0x388] sm:$0xf] %v635_v34  ;;  %v637_v35 = vld [vmem:[%s5374_s28 + $0x718] sm:$0xf]  ;;  %v639_v36 = vld [vmem:[%s5374_s28 + $0x720] sm:$0xf] }
  0xad   : > { %v641_v37 = vld [vmem:[%s5374_s28 + $0x728] sm:$0xf]  ;;  %638 = vst [vmem:[%s5378_s29 + $0x38c] sm:$0xf] %v637_v35  ;;  %640 = vst [vmem:[%s5378_s29 + $0x390] sm:$0xf] %v639_v36 }
  0xae   : > { %642 = vst [vmem:[%s5378_s29 + $0x394] sm:$0xf] %v641_v37  ;;  %v643_v38 = vld [vmem:[%s5374_s28 + $0x730] sm:$0xf]  ;;  %v645_v39 = vld [vmem:[%s5374_s28 + $0x738] sm:$0xf] }
  0xaf   : > { %v647_v40 = vld [vmem:[%s5374_s28 + $0x740] sm:$0xf]  ;;  %644 = vst [vmem:[%s5378_s29 + $0x398] sm:$0xf] %v643_v38  ;;  %646 = vst [vmem:[%s5378_s29 + $0x39c] sm:$0xf] %v645_v39 }
  0xb0   : > { %648 = vst [vmem:[%s5378_s29 + $0x3a0] sm:$0xf] %v647_v40  ;;  %v649_v41 = vld [vmem:[%s5374_s28 + $0x748] sm:$0xf]  ;;  %v651_v42 = vld [vmem:[%s5374_s28 + $0x750] sm:$0xf] }
  0xb1   : > { %v653_v43 = vld [vmem:[%s5374_s28 + $0x758] sm:$0xf]  ;;  %650 = vst [vmem:[%s5378_s29 + $0x3a4] sm:$0xf] %v649_v41  ;;  %652 = vst [vmem:[%s5378_s29 + $0x3a8] sm:$0xf] %v651_v42 }
  0xb2   : > { %654 = vst [vmem:[%s5378_s29 + $0x3ac] sm:$0xf] %v653_v43  ;;  %v655_v44 = vld [vmem:[%s5374_s28 + $0x760] sm:$0xf]  ;;  %v657_v45 = vld [vmem:[%s5374_s28 + $0x768] sm:$0xf] }
  0xb3   : > { %v659_v46 = vld [vmem:[%s5374_s28 + $0x770] sm:$0xf]  ;;  %656 = vst [vmem:[%s5378_s29 + $0x3b0] sm:$0xf] %v655_v44  ;;  %658 = vst [vmem:[%s5378_s29 + $0x3b4] sm:$0xf] %v657_v45 }
  0xb4   : > { %660 = vst [vmem:[%s5378_s29 + $0x3b8] sm:$0xf] %v659_v46  ;;  %v661_v47 = vld [vmem:[%s5374_s28 + $0x778] sm:$0xf]  ;;  %v663_v48 = vld [vmem:[%s5374_s28 + $0x780] sm:$0xf] }
  0xb5   : > { %v665_v49 = vld [vmem:[%s5374_s28 + $0x788] sm:$0xf]  ;;  %662 = vst [vmem:[%s5378_s29 + $0x3bc] sm:$0xf] %v661_v47  ;;  %664 = vst [vmem:[%s5378_s29 + $0x3c0] sm:$0xf] %v663_v48 }
  0xb6   : > { %666 = vst [vmem:[%s5378_s29 + $0x3c4] sm:$0xf] %v665_v49  ;;  %v667_v50 = vld [vmem:[%s5374_s28 + $0x790] sm:$0xf]  ;;  %v669_v51 = vld [vmem:[%s5374_s28 + $0x798] sm:$0xf] }
  0xb7   : > { %v671_v52 = vld [vmem:[%s5374_s28 + $0x7a0] sm:$0xf]  ;;  %668 = vst [vmem:[%s5378_s29 + $0x3c8] sm:$0xf] %v667_v50  ;;  %670 = vst [vmem:[%s5378_s29 + $0x3cc] sm:$0xf] %v669_v51 }
  0xb8   : > { %672 = vst [vmem:[%s5378_s29 + $0x3d0] sm:$0xf] %v671_v52  ;;  %v673_v53 = vld [vmem:[%s5374_s28 + $0x7a8] sm:$0xf]  ;;  %v675_v54 = vld [vmem:[%s5374_s28 + $0x7b0] sm:$0xf] }
  0xb9   : > { %v677_v55 = vld [vmem:[%s5374_s28 + $0x7b8] sm:$0xf]  ;;  %674 = vst [vmem:[%s5378_s29 + $0x3d4] sm:$0xf] %v673_v53  ;;  %676 = vst [vmem:[%s5378_s29 + $0x3d8] sm:$0xf] %v675_v54 }
  0xba   : > { %678 = vst [vmem:[%s5378_s29 + $0x3dc] sm:$0xf] %v677_v55  ;;  %v679_v56 = vld [vmem:[%s5374_s28 + $0x7c0] sm:$0xf]  ;;  %v681_v57 = vld [vmem:[%s5374_s28 + $0x7c8] sm:$0xf] }
  0xbb   : > { %v683_v58 = vld [vmem:[%s5374_s28 + $0x7d0] sm:$0xf]  ;;  %680 = vst [vmem:[%s5378_s29 + $0x3e0] sm:$0xf] %v679_v56  ;;  %682 = vst [vmem:[%s5378_s29 + $0x3e4] sm:$0xf] %v681_v57 }
  0xbc   : > { %684 = vst [vmem:[%s5378_s29 + $0x3e8] sm:$0xf] %v683_v58  ;;  %v685_v59 = vld [vmem:[%s5374_s28 + $0x7d8] sm:$0xf]  ;;  %v687_v60 = vld [vmem:[%s5374_s28 + $0x7e0] sm:$0xf] }
  0xbd   : > { %v689_v61 = vld [vmem:[%s5374_s28 + $0x7e8] sm:$0xf]  ;;  %686 = vst [vmem:[%s5378_s29 + $0x3ec] sm:$0xf] %v685_v59  ;;  %688 = vst [vmem:[%s5378_s29 + $0x3f0] sm:$0xf] %v687_v60 }
  0xbe   : > { %690 = vst [vmem:[%s5378_s29 + $0x3f4] sm:$0xf] %v689_v61  ;;  %v691_v62 = vld [vmem:[%s5374_s28 + $0x7f0] sm:$0xf]  ;;  %v693_v63 = vld [vmem:[%s5374_s28 + $0x7f8] sm:$0xf] }
  0xbf   : > { %692 = vst [vmem:[%s5378_s29 + $0x3f8] sm:$0xf] %v691_v62  ;;  %694 = vst [vmem:[%s5378_s29 + $0x3fc] sm:$0xf] %v693_v63 }
  0xc0 PF: > { %p4243_p8 = scmp.ge.s32.totalorder %s5304_s16, 1  ;;  %p1228_p9 = scmp.lt.s32.totalorder %s5304_s16, 3 }
  0xc2   : > { %p1229_p10 = pnand %p4243_p8, %p1228_p9 }
  0xc3   : > { %s1235_s30 = sand.u32 (!%p1229_p10), 1, %s5288_s12   ;;  %v5896_v0 = vld [vmem:[%s6623_s0] sm:$0xff] (!%p1229_p10)  ;;  %v5906_v2 = vld [vmem:[%s6623_s0 + $0x8] sm:$0xff] (!%p1229_p10)  ;;  %p1281_p11 = scmp.lt.s32.totalorder (!%p1229_p10), %s5296_s14, 1 }
  0xc4   : > { %1232 = sbr.rel (%p1229_p10) target bundleno = 718 (0x2ce), region = 65  ;;  %v5901_v1 = vld [vmem:[%s6623_s0 + $0x40] sm:$0xff] (!%p1229_p10)  ;;  %s4244_s10 = sshll.u32 (!%p1229_p10), %s1235_s30, 10  ;;  %v5915_v4 = vld [vmem:[%s6623_s0 + $0x48] sm:$0xff] (!%p1229_p10) }
  0xc5   : > { %v4248_v3 = vcombine.high (!%p1229_p10), %v5896_v0, %v5901_v1  ;;  %v4250_v5 = vcombine.high (!%p1229_p10), %v5906_v2, %v5915_v4  ;;  %s5919_s19 = scalar_lea.vmem (!%p1229_p10), [#allocation2], %s4244_s10  ;;  %v1304_v35 = vld [vmem:[%s6623_s0 + $0x80] sm:$0xff] (!%p1229_p10)  ;;  %v1305_v38 = vld [vmem:[%s6623_s0 + $0x88] sm:$0xff] (!%p1229_p10)  ;;  %v4247_v42 = vcombine.low (!%p1229_p10), %v5896_v0, %v5901_v1  ;;  %v4249_v43 = vcombine.low (!%p1229_p10), %v5906_v2, %v5915_v4  ;;  %s4245_s27 = sshll.u32 (!%p1229_p10), %s1235_s30, 6 }
  0xc6   : > { %v5138_v6 = vld [vmem:[%s5919_s19 + $0x40] sm:$0xff] (!%p1229_p10)   ;;  %v5142_v10 = vld [vmem:[%s5919_s19 + $0x48] sm:$0xff] (!%p1229_p10)   ;;  %v5146_v14 = vld [vmem:[%s5919_s19 + $0x50] sm:$0xff] (!%p1229_p10)   ;;  %s6557_s28 = scalar_lea.vmem (!%p1229_p10), [#allocation3], %s4245_s27 }
  0xc7   : > { %3112 = vmatprep.mubr.bf16.mxu0 (!%p1229_p10), %v4248_v3  ;;  %v5139_v7 = vld [vmem:[%s5919_s19 + $0xc0] sm:$0xff] (!%p1229_p10)   ;;  %3209 = vmatprep.mubr.bf16.mxu1 (!%p1229_p10), %v4250_v5  ;;  %v5143_v11 = vld [vmem:[%s5919_s19 + $0xc8] sm:$0xff] (!%p1229_p10)   ;;  %v5147_v15 = vld [vmem:[%s5919_s19 + $0xd0] sm:$0xff] (!%p1229_p10)  }
  0xc8   : > { %4586 = vmatprep.subr.bf16.mxu0 (!%p1229_p10), %v5138_v6  ;;  %v5140_v8 = vld [vmem:[%s5919_s19] sm:$0xff] (!%p1229_p10)   ;;  %4650 = vmatprep.subr.bf16.mxu1 (!%p1229_p10), %v5139_v7  ;;  %v5144_v12 = vld [vmem:[%s5919_s19 + $0x8] sm:$0xff] (!%p1229_p10)   ;;  %v5148_v16 = vld [vmem:[%s5919_s19 + $0x10] sm:$0xff] (!%p1229_p10)  }
  0xc9   : > { %v5141_v9 = vld [vmem:[%s5919_s19 + $0x80] sm:$0xff] (!%p1229_p10)   ;;  %4587 = vmatpush3.bf16.msra.mxu0 (!%p1229_p10), %v5140_v8  ;;  %v5145_v13 = vld [vmem:[%s5919_s19 + $0x88] sm:$0xff] (!%p1229_p10)   ;;  %v5149_v17 = vld [vmem:[%s5919_s19 + $0x90] sm:$0xff] (!%p1229_p10)  }
  0xca   : > { %4651 = vmatpush3.bf16.msra.mxu1 (!%p1229_p10), %v5141_v9  ;;  %4588 = vmatprep.subr.bf16.mxu0 (!%p1229_p10), %v5142_v10  ;;  %v5150_v18 = vld [vmem:[%s5919_s19 + $0x58] sm:$0xff] (!%p1229_p10)   ;;  %v5154_v22 = vld [vmem:[%s5919_s19 + $0x60] sm:$0xff] (!%p1229_p10)   ;;  %v5158_v26 = vld [vmem:[%s5919_s19 + $0x68] sm:$0xff] (!%p1229_p10)  }
  0xcb   : > { %4652 = vmatprep.subr.bf16.mxu1 %v5143_v11  ;;  %v5151_v19 = vld [vmem:[%s5919_s19 + $0xd8] sm:$0xff]   ;;  %v5155_v23 = vld [vmem:[%s5919_s19 + $0xe0] sm:$0xff]   ;;  %v5159_v27 = vld [vmem:[%s5919_s19 + $0xe8] sm:$0xff]   ;;  %s1282_s12 = scalar_select %p1281_p11, %s5296_s14, 1 }
  0xcc   : > { %v5152_v20 = vld [vmem:[%s5919_s19 + $0x18] sm:$0xff]   ;;  %v5156_v24 = vld [vmem:[%s5919_s19 + $0x20] sm:$0xff]   ;;  %v5160_v28 = vld [vmem:[%s5919_s19 + $0x28] sm:$0xff]   ;;  %s4520_s6 = sshll.u32 (%p5361_p6), %s5296_s14, 2 }
  0xcd   : > { %4589 = vmatpush3.bf16.msra.mxu0 %v5144_v12  ;;  %v5153_v21 = vld [vmem:[%s5919_s19 + $0x98] sm:$0xff]   ;;  %v5157_v25 = vld [vmem:[%s5919_s19 + $0xa0] sm:$0xff]   ;;  %v5161_v29 = vld [vmem:[%s5919_s19 + $0xa8] sm:$0xff]   ;;  %s4246_s30 = sshll.u32 %s1282_s12, 3  ;;  %s4015_s9 = scalar_lea.vmem (%p5361_p6), %s6625_s2, %s4520_s6 }
  0xce   : > { %4653 = vmatpush3.bf16.msra.mxu1 %v5145_v13  ;;  %4590 = vmatprep.subr.bf16.mxu0 %v5146_v14  ;;  %v5162_v30 = vld [vmem:[%s5919_s19 + $0x70] sm:$0xff]   ;;  %v5166_v34 = vld [vmem:[%s5919_s19 + $0x78] sm:$0xff]   ;;  %v1312_v36 = vld [vmem:[%s6623_s0 + $0xc0] sm:$0xff]  ;;  %s1286_s5 = scalar_lea.vmem %s6626_s3, %s4246_s30 }
  0xcf   : > { %4654 = vmatprep.subr.bf16.mxu1 %v5147_v15  ;;  %v5163_v31 = vld [vmem:[%s5919_s19 + $0xf0] sm:$0xff]   ;;  %v5167_v37 = vld [vmem:[%s5919_s19 + $0xf8] sm:$0xff]   ;;  %v1313_v39 = vld [vmem:[%s6623_s0 + $0xc8] sm:$0xff]  ;;  %v4264_v46 = vcombine.high %v1304_v35, %v1312_v36  ;;  %v4263_v54 = vcombine.low %v1304_v35, %v1312_v36 }
  0xd0   : > { %v5164_v32 = vld [vmem:[%s5919_s19 + $0x30] sm:$0xff]   ;;  %v5168_v40 = vld [vmem:[%s5919_s19 + $0x38] sm:$0xff]   ;;  %v5170_v44 = vld [vmem:[%s5919_s19 + $0x140] sm:$0xff]   ;;  %v4266_v48 = vcombine.high %v1305_v38, %v1313_v39  ;;  %v4265_v56 = vcombine.low %v1305_v38, %v1313_v39 }
  0xd1   : > { %4591 = vmatpush3.bf16.msra.mxu0 %v5148_v16  ;;  %v5165_v33 = vld [vmem:[%s5919_s19 + $0xb0] sm:$0xff]   ;;  %v5169_v41 = vld [vmem:[%s5919_s19 + $0xb8] sm:$0xff]   ;;  %v5171_v45 = vld [vmem:[%s5919_s19 + $0x100] sm:$0xff]  }
  0xd2   : > { %4655 = vmatpush3.bf16.msra.mxu1 %v5149_v17  ;;  %4592 = vmatprep.subr.bf16.mxu0 %v5150_v18  ;;  %v5172_v47 = vld [vmem:[%s5919_s19 + $0x1c0] sm:$0xff]   ;;  %v5174_v50 = vld [vmem:[%s5919_s19 + $0x148] sm:$0xff]   ;;  %v5178_v62 = vld [vmem:[%s5919_s19 + $0x150] sm:$0xff]  }
  0xd3   : > { %4656 = vmatprep.subr.bf16.mxu1 %v5151_v19  ;;  %v5173_v49 = vld [vmem:[%s5919_s19 + $0x180] sm:$0xff]   ;;  %v5175_v52 = vld [vmem:[%s5919_s19 + $0x108] sm:$0xff]   ;;  %v5179_v63 = vld [vmem:[%s5919_s19 + $0x110] sm:$0xff]  }
  0xd4   : > { %v1320_v51 = vld [vmem:[%s6623_s0 + $0x100] sm:$0xff]  ;;  %v5176_v53 = vld [vmem:[%s5919_s19 + $0x1c8] sm:$0xff]   ;;  %v5180_v0 = vld [vmem:[%s5919_s19 + $0x1d0] sm:$0xff]  }
  0xd5   : > { %4593 = vmatpush3.bf16.msra.mxu0 %v5152_v20  ;;  %v5177_v55 = vld [vmem:[%s5919_s19 + $0x188] sm:$0xff]   ;;  %v1328_v57 = vld [vmem:[%s6623_s0 + $0x140] sm:$0xff]  ;;  %v5181_v1 = vld [vmem:[%s5919_s19 + $0x190] sm:$0xff]  }
  0xd6   : > { %4657 = vmatpush3.bf16.msra.mxu1 %v5153_v21  ;;  %4594 = vmatprep.subr.bf16.mxu0 %v5154_v22  ;;  %v1321_v58 = vld [vmem:[%s6623_s0 + $0x108] sm:$0xff]  ;;  %v4280_v60 = vcombine.high %v1320_v51, %v1328_v57  ;;  %v1336_v2 = vld [vmem:[%s6623_s0 + $0x180] sm:$0xff]  ;;  %v4279_v6 = vcombine.low %v1320_v51, %v1328_v57  ;;  %v5182_v7 = vld [vmem:[%s5919_s19 + $0x158] sm:$0xff]  }
  0xd7   : > { %4658 = vmatprep.subr.bf16.mxu1 %v5155_v23  ;;  %v1329_v59 = vld [vmem:[%s6623_s0 + $0x148] sm:$0xff]  ;;  %v1344_v3 = vld [vmem:[%s6623_s0 + $0x1c0] sm:$0xff]  ;;  %v5183_v10 = vld [vmem:[%s5919_s19 + $0x118] sm:$0xff]  }
  0xd8   : > { %v4282_v61 = vcombine.high %v1321_v58, %v1329_v59  ;;  %v1337_v4 = vld [vmem:[%s6623_s0 + $0x188] sm:$0xff]  ;;  %v4281_v8 = vcombine.low %v1321_v58, %v1329_v59  ;;  %v4296_v9 = vcombine.high %v1336_v2, %v1344_v3  ;;  %v5184_v12 = vld [vmem:[%s5919_s19 + $0x1d8] sm:$0xff]   ;;  %v1352_v14 = vld [vmem:[%s6623_s0 + $0x200] sm:$0xff]  ;;  %v4295_v21 = vcombine.low %v1336_v2, %v1344_v3 }
  0xd9   : > { %4595 = vmatpush3.bf16.msra.mxu0 %v5156_v24  ;;  %v1345_v5 = vld [vmem:[%s6623_s0 + $0x1c8] sm:$0xff]  ;;  %v5185_v13 = vld [vmem:[%s5919_s19 + $0x198] sm:$0xff]   ;;  %v1360_v15 = vld [vmem:[%s6623_s0 + $0x240] sm:$0xff] }
  0xda   : > { %4659 = vmatpush3.bf16.msra.mxu1 %v5157_v25  ;;  %4596 = vmatprep.subr.bf16.mxu0 %v5158_v26  ;;  %v4298_v11 = vcombine.high %v1337_v4, %v1345_v5  ;;  %v1353_v16 = vld [vmem:[%s6623_s0 + $0x208] sm:$0xff]  ;;  %v5186_v18 = vld [vmem:[%s5919_s19 + $0x160] sm:$0xff]   ;;  %v4297_v23 = vcombine.low %v1337_v4, %v1345_v5  ;;  %v4312_v24 = vcombine.high %v1352_v14, %v1360_v15  ;;  %v5194_v35 = vld [vmem:[%s5919_s19 + $0x170] sm:$0xff]  }
  0xdb   : > { %4660 = vmatprep.subr.bf16.mxu1 %v5159_v27  ;;  %v1361_v17 = vld [vmem:[%s6623_s0 + $0x248] sm:$0xff]  ;;  %v5187_v19 = vld [vmem:[%s5919_s19 + $0x120] sm:$0xff]   ;;  %v5195_v38 = vld [vmem:[%s5919_s19 + $0x130] sm:$0xff]  }
  0xdc   : > { %v5188_v20 = vld [vmem:[%s5919_s19 + $0x1e0] sm:$0xff]   ;;  %v4314_v25 = vcombine.high %v1353_v16, %v1361_v17  ;;  %v5190_v26 = vld [vmem:[%s5919_s19 + $0x168] sm:$0xff]   ;;  %v4313_v36 = vcombine.low %v1353_v16, %v1361_v17  ;;  %v1291_v2 = vld [vmem:[%s6623_s0 + $0x18] sm:$0xff] }
  0xdd   : > { %4597 = vmatpush3.bf16.msra.mxu0 %v5160_v28  ;;  %v5189_v22 = vld [vmem:[%s5919_s19 + $0x1a0] sm:$0xff]   ;;  %v5191_v27 = vld [vmem:[%s5919_s19 + $0x128] sm:$0xff]   ;;  %v1299_v3 = vld [vmem:[%s6623_s0 + $0x58] sm:$0xff] }
  0xde   : > { %4661 = vmatpush3.bf16.msra.mxu1 %v5161_v29  ;;  %4598 = vmatprep.subr.bf16.mxu0 %v5162_v30  ;;  %v5192_v28 = vld [vmem:[%s5919_s19 + $0x1e8] sm:$0xff]   ;;  %v1368_v30 = vld [vmem:[%s6623_s0 + $0x280] sm:$0xff] }
  0xdf   : > { %4662 = vmatprep.subr.bf16.mxu1 %v5163_v31  ;;  %v5193_v29 = vld [vmem:[%s5919_s19 + $0x1a8] sm:$0xff]   ;;  %v1376_v31 = vld [vmem:[%s6623_s0 + $0x2c0] sm:$0xff] }
  0xe0   : > { %v1408_v57 = vld [vmem:[%s6623_s0 + $0x3c0] sm:$0xff]  ;;  %v1401_v58 = vld [vmem:[%s6623_s0 + $0x388] sm:$0xff] }
  0xe1   : > { %4599 = vmatpush3.bf16.msra.mxu0 %v5164_v32  ;;  %v1369_v32 = vld [vmem:[%s6623_s0 + $0x288] sm:$0xff] }
  0xe2   : > { %4663 = vmatpush3.bf16.msra.mxu1 %v5165_v33  ;;  %4600 = vmatprep.subr.bf16.mxu0 %v5166_v34  ;;  %v1377_v33 = vld [vmem:[%s6623_s0 + $0x2c8] sm:$0xff]  ;;  %v4311_v34 = vcombine.low %v1352_v14, %v1360_v15  ;;  %v5203_v14 = vld [vmem:[%s5919_s19 + $0x200] sm:$0xff]  }
  0xe3   : > { %4664 = vmatprep.subr.bf16.mxu1 %v5167_v37  ;;  %v4328_v37 = vcombine.high %v1368_v30, %v1376_v31  ;;  %v4330_v39 = vcombine.high %v1369_v32, %v1377_v33  ;;  %v4329_v51 = vcombine.low %v1369_v32, %v1377_v33  ;;  %v1409_v59 = vld [vmem:[%s6623_s0 + $0x3c8] sm:$0xff]  ;;  %v5205_v15 = vld [vmem:[%s5919_s19 + $0x280] sm:$0xff]   ;;  %v5213_v33 = vld [vmem:[%s5919_s19 + $0x290] sm:$0xff]  }
  0xe4   : > { %v4361_v5 = vcombine.low %v1401_v58, %v1409_v59 }
  0xe5   : > { %4601 = vmatpush3.bf16.msra.mxu0 %v5168_v40  ;;  %v5196_v40 = vld [vmem:[%s5919_s19 + $0x1f0] sm:$0xff]  }
  0xe6   : > { %4665 = vmatpush3.bf16.msra.mxu1 %v5169_v41  ;;  %4714 = vmatprep.subr.bf16.mxu0 %v5170_v44  ;;  %v5197_v41 = vld [vmem:[%s5919_s19 + $0x1b0] sm:$0xff]   ;;  %v1385_v44 = vld [vmem:[%s6623_s0 + $0x308] sm:$0xff] }
  0xe7   : > { %4778 = vmatprep.subr.bf16.mxu1 %v5172_v47  ;;  %v5199_v47 = vld [vmem:[%s5919_s19 + $0x138] sm:$0xff]  }
  0xe8   : > { %3113 = vmatmul.mubr.bf16.vlgmr.msra.gmra.mrb[0].mxu0 %v4247_v42  ;;  %v1384_v42 = vld [vmem:[%s6623_s0 + $0x300] sm:$0xff] }
  0xe9   : > { %3210 = vmatmul.mubr.bf16.vlgmr.msra.gmra.mrb[0].mxu1 %v4249_v43  ;;  %4715 = vmatpush3.bf16.msra.mxu0 %v5171_v45  ;;  %v1392_v43 = vld [vmem:[%s6623_s0 + $0x340] sm:$0xff]  ;;  %v1393_v45 = vld [vmem:[%s6623_s0 + $0x348] sm:$0xff] }
  0xea   : > { %3120 = vmatprep.mubr.bf16.mxu0 %v4264_v46  ;;  %4779 = vmatpush3.bf16.msra.mxu1 %v5173_v49  ;;  %v5198_v46 = vld [vmem:[%s5919_s19 + $0x178] sm:$0xff]   ;;  %v4327_v49 = vcombine.low %v1368_v30, %v1376_v31  ;;  %v5211_v31 = vld [vmem:[%s5919_s19 + $0x210] sm:$0xff]  }
  0xeb   : > { %3217 = vmatprep.mubr.bf16.mxu1 %v4266_v48  ;;  %4716 = vmatprep.subr.bf16.mxu0 %v5174_v50  ;;  %v5200_v48 = vld [vmem:[%s5919_s19 + $0x1f8] sm:$0xff]  }
  0xec   : > { %4780 = vmatprep.subr.bf16.mxu1 %v5176_v53  ;;  %v5201_v50 = vld [vmem:[%s5919_s19 + $0x1b8] sm:$0xff]   ;;  %v4346_v53 = vcombine.high %v1385_v44, %v1393_v45 }
  0xed   : > { %4717 = vmatpush3.bf16.msra.mxu0 %v5175_v52  ;;  %v4344_v52 = vcombine.high %v1384_v42, %v1392_v43 }
  0xee   : > { %4781 = vmatpush3.bf16.msra.mxu1 %v5177_v55  ;;  %4718 = vmatprep.subr.bf16.mxu0 %v5178_v62  ;;  %v5204_v55 = vld [vmem:[%s5919_s19 + $0x2c0] sm:$0xff]  }
  0xef   : > { %4782 = vmatprep.subr.bf16.mxu1 %v5180_v0  ;;  %v1290_v0 = vld [vmem:[%s6623_s0 + $0x10] sm:$0xff] }
  0xf0   : > { %3121 = vmatmul.mubr.bf16.gmra.mrb[4].mxu0 %v4263_v54  ;;  %v5202_v54 = vld [vmem:[%s5919_s19 + $0x240] sm:$0xff]  }
  0xf1   : > { %3218 = vmatmul.mubr.bf16.gmra.mrb[4].mxu1 %v4265_v56  ;;  %3128 = vmatprep.mubr.bf16.mxu0 %v4280_v60  ;;  %v1400_v56 = vld [vmem:[%s6623_s0 + $0x380] sm:$0xff]  ;;  %v4343_v60 = vcombine.low %v1384_v42, %v1392_v43 }
  0xf2   : > { %3225 = vmatprep.mubr.bf16.mxu1 %v4282_v61  ;;  %4719 = vmatpush3.bf16.msra.mxu0 %v5179_v63  ;;  %v4345_v61 = vcombine.low %v1385_v44, %v1393_v45  ;;  %v4360_v62 = vcombine.high %v1400_v56, %v1408_v57  ;;  %v4362_v63 = vcombine.high %v1401_v58, %v1409_v59  ;;  %v5218_v42 = vld [vmem:[%s5919_s19 + $0x260] sm:$0xff]   ;;  %v5226_v58 = vld [vmem:[%s5919_s19 + $0x270] sm:$0xff]  }
  0xf3   : > { %4783 = vmatpush3.bf16.msra.mxu1 %v5181_v1  ;;  %4720 = vmatprep.subr.bf16.mxu0 %v5182_v7  ;;  %v1298_v1 = vld [vmem:[%s6623_s0 + $0x50] sm:$0xff]  ;;  %v4359_v4 = vcombine.low %v1400_v56, %v1408_v57  ;;  %v4254_v7 = vcombine.high %v1291_v2, %v1299_v3  ;;  %v5220_v44 = vld [vmem:[%s5919_s19 + $0x2e0] sm:$0xff]   ;;  %v5223_v56 = vld [vmem:[%s5919_s19 + $0x228] sm:$0xff]  }
  0xf4   : > { %4784 = vmatprep.subr.bf16.mxu1 %v5184_v12  ;;  %v1315_v12 = vld [vmem:[%s6623_s0 + $0xd8] sm:$0xff]  ;;  %v5225_v57 = vld [vmem:[%s5919_s19 + $0x2a8] sm:$0xff]  }
  0xf6   : > { %4721 = vmatpush3.bf16.msra.mxu0 %v5183_v10  ;;  %v1307_v10 = vld [vmem:[%s6623_s0 + $0x98] sm:$0xff] }
  0xf7   : > { %4785 = vmatpush3.bf16.msra.mxu1 %v5185_v13  ;;  %4722 = vmatprep.subr.bf16.mxu0 %v5186_v18  ;;  %v4253_v13 = vcombine.low %v1291_v2, %v1299_v3  ;;  %v4270_v17 = vcombine.high %v1307_v10, %v1315_v12  ;;  %v5206_v18 = vld [vmem:[%s5919_s19 + $0x248] sm:$0xff]   ;;  %v5230_v2 = vld [vmem:[%s5919_s19 + $0x278] sm:$0xff]   ;;  %v1370_v3 = vld [vmem:[%s6623_s0 + $0x290] sm:$0xff] }
  0xf8   : > { %3129 = vmatmul.mubr.bf16.gmra.mrb[8].mxu0 %v4279_v6  ;;  %4786 = vmatprep.subr.bf16.mxu1 %v5188_v20  ;;  %v4252_v6 = vcombine.high %v1290_v0, %v1298_v1  ;;  %v5208_v20 = vld [vmem:[%s5919_s19 + $0x2c8] sm:$0xff]  }
  0xf9   : > { %3226 = vmatmul.mubr.bf16.gmra.mrb[8].mxu1 %v4281_v8  ;;  %3136 = vmatprep.mubr.bf16.mxu0 %v4296_v9  ;;  %v1306_v8 = vld [vmem:[%s6623_s0 + $0x90] sm:$0xff] }
  0xfa   : > { %3233 = vmatprep.mubr.bf16.mxu1 %v4298_v11  ;;  %4723 = vmatpush3.bf16.msra.mxu0 %v5187_v19  ;;  %v1314_v9 = vld [vmem:[%s6623_s0 + $0xd0] sm:$0xff]  ;;  %v4251_v11 = vcombine.low %v1290_v0, %v1298_v1  ;;  %v5207_v19 = vld [vmem:[%s5919_s19 + $0x208] sm:$0xff]  }
  0xfb   : > { %4787 = vmatpush3.bf16.msra.mxu1 %v5189_v22  ;;  %4724 = vmatprep.subr.bf16.mxu0 %v5190_v26  ;;  %v4268_v16 = vcombine.high %v1306_v8, %v1314_v9  ;;  %v1322_v22 = vld [vmem:[%s6623_s0 + $0x110] sm:$0xff] }
  0xfc   : > { %4788 = vmatprep.subr.bf16.mxu1 %v5192_v28  ;;  %v5210_v26 = vld [vmem:[%s5919_s19 + $0x250] sm:$0xff]   ;;  %v4267_v28 = vcombine.low %v1306_v8, %v1314_v9  ;;  %v5231_v8 = vld [vmem:[%s5919_s19 + $0x238] sm:$0xff]  }
  0xfd   : > { %v5229_v1 = vld [vmem:[%s5919_s19 + $0x2b0] sm:$0xff]   ;;  %v5233_v9 = vld [vmem:[%s5919_s19 + $0x2b8] sm:$0xff]  }
  0xfe   : > { %4725 = vmatpush3.bf16.msra.mxu0 %v5191_v27  ;;  %v5212_v27 = vld [vmem:[%s5919_s19 + $0x2d0] sm:$0xff]  }
  0xff   : > { %4789 = vmatpush3.bf16.msra.mxu1 %v5193_v29  ;;  %4726 = vmatprep.subr.bf16.mxu0 %v5194_v35  ;;  %v4269_v29 = vcombine.low %v1307_v10, %v1315_v12  ;;  %v1338_v35 = vld [vmem:[%s6623_s0 + $0x190] sm:$0xff]  ;;  %v5234_v10 = vld [vmem:[%s5919_s19 + $0x340] sm:$0xff]  }
 0x100   : > { %3137 = vmatmul.mubr.bf16.gmra.mrb[12].mxu0 %v4295_v21  ;;  %4790 = vmatprep.subr.bf16.mxu1 %v5196_v40  ;;  %v5209_v21 = vld [vmem:[%s5919_s19 + $0x288] sm:$0xff]   ;;  %v5215_v40 = vld [vmem:[%s5919_s19 + $0x218] sm:$0xff]   ;;  %v5236_v12 = vld [vmem:[%s5919_s19 + $0x3c0] sm:$0xff]  }
 0x101   : > { %3234 = vmatmul.mubr.bf16.gmra.mrb[12].mxu1 %v4297_v23  ;;  %3144 = vmatprep.mubr.bf16.mxu0 %v4312_v24  ;;  %v1330_v23 = vld [vmem:[%s6623_s0 + $0x150] sm:$0xff]  ;;  %v1323_v24 = vld [vmem:[%s6623_s0 + $0x118] sm:$0xff] }
 0x102   : > { %3241 = vmatprep.mubr.bf16.mxu1 %v4314_v25  ;;  %4727 = vmatpush3.bf16.msra.mxu0 %v5195_v38  ;;  %v1331_v25 = vld [vmem:[%s6623_s0 + $0x158] sm:$0xff]  ;;  %v4284_v30 = vcombine.high %v1322_v22, %v1330_v23  ;;  %v4283_v43 = vcombine.low %v1322_v22, %v1330_v23 }
 0x103   : > { %4791 = vmatpush3.bf16.msra.mxu1 %v5197_v41  ;;  %4728 = vmatprep.subr.bf16.mxu0 %v5198_v46  ;;  %v4286_v32 = vcombine.high %v1323_v24, %v1331_v25  ;;  %v1339_v38 = vld [vmem:[%s6623_s0 + $0x198] sm:$0xff]  ;;  %v4285_v45 = vcombine.low %v1323_v24, %v1331_v25  ;;  %v1402_v24 = vld [vmem:[%s6623_s0 + $0x390] sm:$0xff] }
 0x104   : > { %4792 = vmatprep.subr.bf16.mxu1 %v5200_v48  ;;  %v5217_v41 = vld [vmem:[%s5919_s19 + $0x298] sm:$0xff]   ;;  %v5219_v48 = vld [vmem:[%s5919_s19 + $0x220] sm:$0xff]   ;;  %v1410_v25 = vld [vmem:[%s6623_s0 + $0x3d0] sm:$0xff] }
 0x106   : > { %4729 = vmatpush3.bf16.msra.mxu0 %v5199_v47 }
 0x107   : > { %4793 = vmatpush3.bf16.msra.mxu1 %v5201_v50  ;;  %4842 = vmatprep.subr.bf16.mxu0 %v5202_v54  ;;  %v5222_v50 = vld [vmem:[%s5919_s19 + $0x268] sm:$0xff]   ;;  %v1355_v54 = vld [vmem:[%s6623_s0 + $0x218] sm:$0xff] }
 0x108   : > { %3145 = vmatmul.mubr.bf16.gmra.mrb[16].mxu0 %v4311_v34  ;;  %4906 = vmatprep.subr.bf16.mxu1 %v5204_v55  ;;  %v5214_v34 = vld [vmem:[%s5919_s19 + $0x258] sm:$0xff]  }
 0x109   : > { %3242 = vmatmul.mubr.bf16.gmra.mrb[16].mxu1 %v4313_v36  ;;  %3152 = vmatprep.mubr.bf16.mxu0 %v4328_v37  ;;  %v1346_v36 = vld [vmem:[%s6623_s0 + $0x1d0] sm:$0xff]  ;;  %v5216_v37 = vld [vmem:[%s5919_s19 + $0x2d8] sm:$0xff]  }
 0x10a   : > { %3249 = vmatprep.mubr.bf16.mxu1 %v4330_v39  ;;  %v1347_v39 = vld [vmem:[%s6623_s0 + $0x1d8] sm:$0xff]  ;;  %v4300_v46 = vcombine.high %v1338_v35, %v1346_v36  ;;  %v4299_v59 = vcombine.low %v1338_v35, %v1346_v36  ;;  %v1301_v35 = vld [vmem:[%s6623_s0 + $0x68] sm:$0xff]  ;;  %v4363_v36 = vcombine.low %v1402_v24, %v1410_v25 }
 0x10b   : > { %v4302_v47 = vcombine.high %v1339_v38, %v1347_v39  ;;  %v1363_v55 = vld [vmem:[%s6623_s0 + $0x258] sm:$0xff] }
 0x10c   : > { %v4318_v0 = vcombine.high %v1355_v54, %v1363_v55 }
 0x110   : > { %3153 = vmatmul.mubr.bf16.gmra.mrb[20].mxu0 %v4327_v49  ;;  %v5221_v49 = vld [vmem:[%s5919_s19 + $0x2a0] sm:$0xff]  }
 0x111   : > { %3250 = vmatmul.mubr.bf16.gmra.mrb[20].mxu1 %v4329_v51  ;;  %3160 = vmatprep.mubr.bf16.mxu0 %v4344_v52  ;;  %v1354_v51 = vld [vmem:[%s6623_s0 + $0x210] sm:$0xff] }
 0x112   : > { %3257 = vmatprep.mubr.bf16.mxu1 %v4346_v53  ;;  %v1362_v52 = vld [vmem:[%s6623_s0 + $0x250] sm:$0xff]  ;;  %v5224_v53 = vld [vmem:[%s5919_s19 + $0x2e8] sm:$0xff]  }
 0x118   : > { %3161 = vmatmul.mubr.bf16.gmra.mrb[24].mxu0 %v4343_v60  ;;  %v5228_v60 = vld [vmem:[%s5919_s19 + $0x2f0] sm:$0xff]  }
 0x119   : > { %3258 = vmatmul.mubr.bf16.gmra.mrb[24].mxu1 %v4345_v61  ;;  %3168 = vmatprep.mubr.bf16.mxu0 %v4360_v62  ;;  %v4301_v61 = vcombine.low %v1339_v38, %v1347_v39  ;;  %v4316_v62 = vcombine.high %v1354_v51, %v1362_v52 }
 0x11a   : > { %3265 = vmatprep.mubr.bf16.mxu1 %v4362_v63  ;;  %v5227_v63 = vld [vmem:[%s5919_s19 + $0x230] sm:$0xff]  }
 0x120   : > { %3169 = vmatmul.mubr.bf16.gmra.mrb[28].mxu0 %v4359_v4  ;;  %v1378_v4 = vld [vmem:[%s6623_s0 + $0x2d0] sm:$0xff] }
 0x121   : > { %3266 = vmatmul.mubr.bf16.gmra.mrb[28].mxu1 %v4361_v5  ;;  %3306 = vmatprep.mubr.bf16.mxu0 %v4252_v6  ;;  %v5232_v5 = vld [vmem:[%s5919_s19 + $0x2f8] sm:$0xff]  }
 0x122   : > { %3403 = vmatprep.mubr.bf16.mxu1 %v4254_v7  ;;  %v1371_v6 = vld [vmem:[%s6623_s0 + $0x298] sm:$0xff] }
 0x123   : > { %v1379_v7 = vld [vmem:[%s6623_s0 + $0x2d8] sm:$0xff] }
 0x128   : > { %3307 = vmatmul.mubr.bf16.vlgmr.msra.gmra.mrb[32].mxu0 %v4251_v11  ;;  %v4315_v11 = vcombine.low %v1354_v51, %v1362_v52  ;;  %v5240_v51 = vld [vmem:[%s5919_s19 + $0x3c8] sm:$0xff]  }
 0x129   : > { %3404 = vmatmul.mubr.bf16.vlgmr.msra.gmra.mrb[32].mxu1 %v4253_v13  ;;  %4843 = vmatpush3.bf16.msra.mxu0 %v5203_v14  ;;  %v4317_v13 = vcombine.low %v1355_v54, %v1363_v55  ;;  %v4332_v14 = vcombine.high %v1370_v3, %v1378_v4  ;;  %v5239_v52 = vld [vmem:[%s5919_s19 + $0x308] sm:$0xff]   ;;  %v1324_v54 = vld [vmem:[%s6623_s0 + $0x120] sm:$0xff] }
 0x12a   : > { %4907 = vmatpush3.bf16.msra.mxu1 %v5205_v15  ;;  %3314 = vmatprep.mubr.bf16.mxu0 %v4268_v16  ;;  %v4334_v15 = vcombine.high %v1371_v6, %v1379_v7  ;;  %v1386_v16 = vld [vmem:[%s6623_s0 + $0x310] sm:$0xff]  ;;  %v1332_v55 = vld [vmem:[%s6623_s0 + $0x160] sm:$0xff] }
 0x12b   : > { %3411 = vmatprep.mubr.bf16.mxu1 %v4270_v17  ;;  %4844 = vmatprep.subr.bf16.mxu0 %v5206_v18  ;;  %v1394_v17 = vld [vmem:[%s6623_s0 + $0x350] sm:$0xff]  ;;  %v1387_v18 = vld [vmem:[%s6623_s0 + $0x318] sm:$0xff] }
 0x12c   : > { %4908 = vmatprep.subr.bf16.mxu1 %v5208_v20  ;;  %v4331_v20 = vcombine.low %v1370_v3, %v1378_v4  ;;  %v4348_v22 = vcombine.high %v1386_v16, %v1394_v17  ;;  %v5248_v3 = vld [vmem:[%s5919_s19 + $0x3d8] sm:$0xff]   ;;  %v1340_v4 = vld [vmem:[%s6623_s0 + $0x1a0] sm:$0xff] }
 0x12d   : > { %4845 = vmatpush3.bf16.msra.mxu0 %v5207_v19  ;;  %v1395_v19 = vld [vmem:[%s6623_s0 + $0x358] sm:$0xff] }
 0x12e   : > { %4909 = vmatpush3.bf16.msra.mxu1 %v5209_v21  ;;  %4846 = vmatprep.subr.bf16.mxu0 %v5210_v26  ;;  %v4333_v21 = vcombine.low %v1371_v6, %v1379_v7  ;;  %v4350_v23 = vcombine.high %v1387_v18, %v1395_v19  ;;  %v1403_v26 = vld [vmem:[%s6623_s0 + $0x398] sm:$0xff]  ;;  %v1341_v6 = vld [vmem:[%s6623_s0 + $0x1a8] sm:$0xff] }
 0x12f   : > { %4910 = vmatprep.subr.bf16.mxu1 %v5212_v27  ;;  %v1411_v27 = vld [vmem:[%s6623_s0 + $0x3d8] sm:$0xff] }
 0x130   : > { %3315 = vmatmul.mubr.bf16.gmra.mrb[36].mxu0 %v4267_v28  ;;  %v4347_v28 = vcombine.low %v1386_v16, %v1394_v17  ;;  %v5247_v7 = vld [vmem:[%s5919_s19 + $0x318] sm:$0xff]   ;;  %v5251_v16 = vld [vmem:[%s5919_s19 + $0x320] sm:$0xff]  }
 0x131   : > { %3412 = vmatmul.mubr.bf16.gmra.mrb[36].mxu1 %v4269_v29  ;;  %3322 = vmatprep.mubr.bf16.mxu0 %v4284_v30  ;;  %v4349_v29 = vcombine.low %v1387_v18, %v1395_v19  ;;  %v4364_v30 = vcombine.high %v1402_v24, %v1410_v25  ;;  %v5253_v17 = vld [vmem:[%s5919_s19 + $0x3a0] sm:$0xff]   ;;  %v5254_v18 = vld [vmem:[%s5919_s19 + $0x368] sm:$0xff]  }
 0x132   : > { %3419 = vmatprep.mubr.bf16.mxu1 %v4286_v32  ;;  %4847 = vmatpush3.bf16.msra.mxu0 %v5211_v31  ;;  %v4366_v31 = vcombine.high %v1403_v26, %v1411_v27  ;;  %v1292_v32 = vld [vmem:[%s6623_s0 + $0x20] sm:$0xff]  ;;  %v5256_v19 = vld [vmem:[%s5919_s19 + $0x3e8] sm:$0xff]  }
 0x133   : > { %4911 = vmatpush3.bf16.msra.mxu1 %v5213_v33  ;;  %4848 = vmatprep.subr.bf16.mxu0 %v5214_v34  ;;  %v1300_v33 = vld [vmem:[%s6623_s0 + $0x60] sm:$0xff]  ;;  %v1293_v34 = vld [vmem:[%s6623_s0 + $0x28] sm:$0xff] }
 0x134   : > { %4912 = vmatprep.subr.bf16.mxu1 %v5216_v37  ;;  %v4365_v37 = vcombine.low %v1403_v26, %v1411_v27  ;;  %v4256_v38 = vcombine.high %v1292_v32, %v1300_v33  ;;  %v4258_v39 = vcombine.high %v1293_v34, %v1301_v35  ;;  %v1365_v24 = vld [vmem:[%s6623_s0 + $0x268] sm:$0xff]  ;;  %v5258_v26 = vld [vmem:[%s5919_s19 + $0x370] sm:$0xff]  }
 0x135   : > { %v5257_v25 = vld [vmem:[%s5919_s19 + $0x3a8] sm:$0xff]  }
 0x136   : > { %4849 = vmatpush3.bf16.msra.mxu0 %v5215_v40  ;;  %v1308_v40 = vld [vmem:[%s6623_s0 + $0xa0] sm:$0xff] }
 0x137   : > { %4913 = vmatpush3.bf16.msra.mxu1 %v5217_v41  ;;  %4850 = vmatprep.subr.bf16.mxu0 %v5218_v42  ;;  %v1316_v41 = vld [vmem:[%s6623_s0 + $0xe0] sm:$0xff]  ;;  %v4255_v42 = vcombine.low %v1292_v32, %v1300_v33  ;;  %v5259_v32 = vld [vmem:[%s5919_s19 + $0x330] sm:$0xff]  }
 0x138   : > { %3323 = vmatmul.mubr.bf16.gmra.mrb[40].mxu0 %v4283_v43  ;;  %4914 = vmatprep.subr.bf16.mxu1 %v5220_v44  ;;  %v1309_v43 = vld [vmem:[%s6623_s0 + $0xa8] sm:$0xff]  ;;  %v5261_v33 = vld [vmem:[%s5919_s19 + $0x3b0] sm:$0xff]  }
 0x139   : > { %3420 = vmatmul.mubr.bf16.gmra.mrb[40].mxu1 %v4285_v45  ;;  %3330 = vmatprep.mubr.bf16.mxu0 %v4300_v46  ;;  %v1317_v44 = vld [vmem:[%s6623_s0 + $0xe8] sm:$0xff]  ;;  %v4257_v45 = vcombine.low %v1293_v34, %v1301_v35  ;;  %v5235_v46 = vld [vmem:[%s5919_s19 + $0x300] sm:$0xff]   ;;  %v5262_v34 = vld [vmem:[%s5919_s19 + $0x378] sm:$0xff]  }
 0x13a   : > { %3427 = vmatprep.mubr.bf16.mxu1 %v4302_v47  ;;  %4851 = vmatpush3.bf16.msra.mxu0 %v5219_v48  ;;  %v5237_v47 = vld [vmem:[%s5919_s19 + $0x380] sm:$0xff]   ;;  %v4272_v48 = vcombine.high %v1308_v40, %v1316_v41  ;;  %v5264_v35 = vld [vmem:[%s5919_s19 + $0x3f8] sm:$0xff]  }
 0x13b   : > { %4915 = vmatpush3.bf16.msra.mxu1 %v5221_v49  ;;  %4852 = vmatprep.subr.bf16.mxu0 %v5222_v50  ;;  %v4274_v49 = vcombine.high %v1309_v43, %v1317_v44  ;;  %v5238_v50 = vld [vmem:[%s5919_s19 + $0x348] sm:$0xff]  }
 0x13c   : > { %4916 = vmatprep.subr.bf16.mxu1 %v5224_v53  ;;  %v5241_v53 = vld [vmem:[%s5919_s19 + $0x388] sm:$0xff]  }
 0x13e   : > { %4853 = vmatpush3.bf16.msra.mxu0 %v5223_v56  ;;  %v5242_v56 = vld [vmem:[%s5919_s19 + $0x350] sm:$0xff]  }
 0x13f   : > { %4917 = vmatpush3.bf16.msra.mxu1 %v5225_v57  ;;  %4854 = vmatprep.subr.bf16.mxu0 %v5226_v58  ;;  %v1325_v57 = vld [vmem:[%s6623_s0 + $0x128] sm:$0xff] }
 0x140   : > { %3331 = vmatmul.mubr.bf16.gmra.mrb[44].mxu0 %v4299_v59  ;;  %4918 = vmatprep.subr.bf16.mxu1 %v5228_v60  ;;  %v1333_v58 = vld [vmem:[%s6623_s0 + $0x168] sm:$0xff]  ;;  %v5244_v59 = vld [vmem:[%s5919_s19 + $0x3d0] sm:$0xff]   ;;  %v4271_v60 = vcombine.low %v1308_v40, %v1316_v41  ;;  %v5265_v41 = vld [vmem:[%s5919_s19 + $0x3b8] sm:$0xff]  }
 0x141   : > { %3428 = vmatmul.mubr.bf16.gmra.mrb[44].mxu1 %v4301_v61  ;;  %3338 = vmatprep.mubr.bf16.mxu0 %v4316_v62  ;;  %v4273_v61 = vcombine.low %v1309_v43, %v1317_v44  ;;  %v4288_v62 = vcombine.high %v1324_v54, %v1332_v55  ;;  %v1381_v40 = vld [vmem:[%s6623_s0 + $0x2e8] sm:$0xff] }
 0x142   : > { %3435 = vmatprep.mubr.bf16.mxu1 %v4318_v0  ;;  %4855 = vmatpush3.bf16.msra.mxu0 %v5227_v63  ;;  %v4290_v63 = vcombine.high %v1325_v57, %v1333_v58  ;;  %v5243_v0 = vld [vmem:[%s5919_s19 + $0x310] sm:$0xff]  }
 0x143   : > { %4919 = vmatpush3.bf16.msra.mxu1 %v5229_v1  ;;  %4856 = vmatprep.subr.bf16.mxu0 %v5230_v2  ;;  %v5245_v1 = vld [vmem:[%s5919_s19 + $0x390] sm:$0xff]   ;;  %v5246_v2 = vld [vmem:[%s5919_s19 + $0x358] sm:$0xff]  }
 0x144   : > { %4920 = vmatprep.subr.bf16.mxu1 %v5232_v5  ;;  %v1348_v5 = vld [vmem:[%s6623_s0 + $0x1e0] sm:$0xff] }
 0x145   : > { %v4303_v27 = vcombine.low %v1340_v4, %v1348_v5 }
 0x146   : > { %4857 = vmatpush3.bf16.msra.mxu0 %v5231_v8  ;;  %v1349_v8 = vld [vmem:[%s6623_s0 + $0x1e8] sm:$0xff] }
 0x147   : > { %4921 = vmatpush3.bf16.msra.mxu1 %v5233_v9  ;;  %4970 = vmatprep.subr.bf16.mxu0 %v5234_v10  ;;  %v5249_v9 = vld [vmem:[%s5919_s19 + $0x398] sm:$0xff]   ;;  %v5250_v10 = vld [vmem:[%s5919_s19 + $0x360] sm:$0xff]  }
 0x148   : > { %3339 = vmatmul.mubr.bf16.gmra.mrb[48].mxu0 %v4315_v11  ;;  %5034 = vmatprep.subr.bf16.mxu1 %v5236_v12  ;;  %v4287_v11 = vcombine.low %v1324_v54, %v1332_v55  ;;  %v5252_v12 = vld [vmem:[%s5919_s19 + $0x3e0] sm:$0xff]  }
 0x149   : > { %3436 = vmatmul.mubr.bf16.gmra.mrb[48].mxu1 %v4317_v13  ;;  %3346 = vmatprep.mubr.bf16.mxu0 %v4332_v14  ;;  %v4289_v13 = vcombine.low %v1325_v57, %v1333_v58  ;;  %v4304_v14 = vcombine.high %v1340_v4, %v1348_v5  ;;  %v1404_v54 = vld [vmem:[%s6623_s0 + $0x3a0] sm:$0xff]  ;;  %v1413_v57 = vld [vmem:[%s6623_s0 + $0x3e8] sm:$0xff] }
 0x14a   : > { %3443 = vmatprep.mubr.bf16.mxu1 %v4334_v15  ;;  %v4306_v15 = vcombine.high %v1341_v6, %v1349_v8  ;;  %v1412_v55 = vld [vmem:[%s6623_s0 + $0x3e0] sm:$0xff] }
 0x150   : > { %3347 = vmatmul.mubr.bf16.gmra.mrb[52].mxu0 %v4331_v20  ;;  %v1356_v20 = vld [vmem:[%s6623_s0 + $0x220] sm:$0xff] }
 0x151   : > { %3444 = vmatmul.mubr.bf16.gmra.mrb[52].mxu1 %v4333_v21  ;;  %3354 = vmatprep.mubr.bf16.mxu0 %v4348_v22  ;;  %v1364_v21 = vld [vmem:[%s6623_s0 + $0x260] sm:$0xff]  ;;  %v1357_v22 = vld [vmem:[%s6623_s0 + $0x228] sm:$0xff] }
 0x152   : > { %3451 = vmatprep.mubr.bf16.mxu1 %v4350_v23  ;;  %v5255_v23 = vld [vmem:[%s5919_s19 + $0x328] sm:$0xff]   ;;  %v4321_v43 = vcombine.low %v1357_v22, %v1365_v24 }
 0x158   : > { %3355 = vmatmul.mubr.bf16.gmra.mrb[56].mxu0 %v4347_v28  ;;  %v5260_v28 = vld [vmem:[%s5919_s19 + $0x3f0] sm:$0xff]  }
 0x159   : > { %3452 = vmatmul.mubr.bf16.gmra.mrb[56].mxu1 %v4349_v29  ;;  %3362 = vmatprep.mubr.bf16.mxu0 %v4364_v30  ;;  %v4305_v29 = vcombine.low %v1341_v6, %v1349_v8  ;;  %v4320_v30 = vcombine.high %v1356_v20, %v1364_v21  ;;  %v1310_v6 = vld [vmem:[%s6623_s0 + $0xb0] sm:$0xff]  ;;  %v1311_v8 = vld [vmem:[%s6623_s0 + $0xb8] sm:$0xff] }
 0x15a   : > { %3459 = vmatprep.mubr.bf16.mxu1 %v4366_v31  ;;  %v4322_v31 = vcombine.high %v1357_v22, %v1365_v24  ;;  %v1342_v22 = vld [vmem:[%s6623_s0 + $0x1b0] sm:$0xff]  ;;  %v1343_v24 = vld [vmem:[%s6623_s0 + $0x1b8] sm:$0xff] }
 0x160   : > { %3363 = vmatmul.mubr.bf16.gmra.mrb[60].mxu0 %v4363_v36  ;;  %v1372_v36 = vld [vmem:[%s6623_s0 + $0x2a0] sm:$0xff] }
 0x161   : > { %3460 = vmatmul.mubr.bf16.gmra.mrb[60].mxu1 %v4365_v37  ;;  %3500 = vmatprep.mubr.bf16.mxu0 %v4256_v38  ;;  %v1380_v37 = vld [vmem:[%s6623_s0 + $0x2e0] sm:$0xff]  ;;  %v5263_v38 = vld [vmem:[%s5919_s19 + $0x338] sm:$0xff]  }
 0x162   : > { %3597 = vmatprep.mubr.bf16.mxu1 %v4258_v39  ;;  %v1373_v39 = vld [vmem:[%s6623_s0 + $0x2a8] sm:$0xff]  ;;  %v4336_v44 = vcombine.high %v1372_v36, %v1380_v37 }
 0x168   : > { %3501 = vmatmul.mubr.bf16.vlgmr.msra.gmra.mrb[64].mxu0 %v4255_v42  ;;  %v4319_v42 = vcombine.low %v1356_v20, %v1364_v21 }
 0x169   : > { %3598 = vmatmul.mubr.bf16.vlgmr.msra.gmra.mrb[64].mxu1 %v4257_v45  ;;  %4971 = vmatpush3.bf16.msra.mxu0 %v5235_v46  ;;  %v4338_v45 = vcombine.high %v1373_v39, %v1381_v40  ;;  %v1388_v46 = vld [vmem:[%s6623_s0 + $0x320] sm:$0xff] }
 0x16a   : > { %5035 = vmatpush3.bf16.msra.mxu1 %v5237_v47  ;;  %3508 = vmatprep.mubr.bf16.mxu0 %v4272_v48  ;;  %v1396_v47 = vld [vmem:[%s6623_s0 + $0x360] sm:$0xff]  ;;  %v1389_v48 = vld [vmem:[%s6623_s0 + $0x328] sm:$0xff] }
 0x16b   : > { %3605 = vmatprep.mubr.bf16.mxu1 %v4274_v49  ;;  %4972 = vmatprep.subr.bf16.mxu0 %v5238_v50  ;;  %v1397_v49 = vld [vmem:[%s6623_s0 + $0x368] sm:$0xff]  ;;  %v4335_v50 = vcombine.low %v1372_v36, %v1380_v37  ;;  %v4351_v58 = vcombine.low %v1388_v46, %v1396_v47 }
 0x16c   : > { %5036 = vmatprep.subr.bf16.mxu1 %v5240_v51  ;;  %v4337_v51 = vcombine.low %v1373_v39, %v1381_v40 }
 0x16d   : > { %4973 = vmatpush3.bf16.msra.mxu0 %v5239_v52  ;;  %v4352_v52 = vcombine.high %v1388_v46, %v1396_v47 }
 0x16e   : > { %5037 = vmatpush3.bf16.msra.mxu1 %v5241_v53  ;;  %4974 = vmatprep.subr.bf16.mxu0 %v5242_v56  ;;  %v4354_v53 = vcombine.high %v1389_v48, %v1397_v49  ;;  %v1405_v56 = vld [vmem:[%s6623_s0 + $0x3a8] sm:$0xff] }
 0x16f   : > { %5038 = vmatprep.subr.bf16.mxu1 %v5244_v59  ;;  %v4353_v59 = vcombine.low %v1389_v48, %v1397_v49 }
 0x170   : > { %3509 = vmatmul.mubr.bf16.gmra.mrb[68].mxu0 %v4271_v60  ;;  %v4368_v60 = vcombine.high %v1404_v54, %v1412_v55 }
 0x171   : > { %3606 = vmatmul.mubr.bf16.gmra.mrb[68].mxu1 %v4273_v61  ;;  %3516 = vmatprep.mubr.bf16.mxu0 %v4288_v62  ;;  %v4370_v61 = vcombine.high %v1405_v56, %v1413_v57  ;;  %v1294_v62 = vld [vmem:[%s6623_s0 + $0x30] sm:$0xff] }
 0x172   : > { %3613 = vmatprep.mubr.bf16.mxu1 %v4290_v63  ;;  %4975 = vmatpush3.bf16.msra.mxu0 %v5243_v0  ;;  %v1302_v63 = vld [vmem:[%s6623_s0 + $0x70] sm:$0xff]  ;;  %v1295_v0 = vld [vmem:[%s6623_s0 + $0x38] sm:$0xff] }
 0x173   : > { %5039 = vmatpush3.bf16.msra.mxu1 %v5245_v1  ;;  %4976 = vmatprep.subr.bf16.mxu0 %v5246_v2  ;;  %v1303_v1 = vld [vmem:[%s6623_s0 + $0x78] sm:$0xff]  ;;  %v4367_v2 = vcombine.low %v1404_v54, %v1412_v55  ;;  %v4260_v4 = vcombine.high %v1294_v62, %v1302_v63 }
 0x174   : > { %5040 = vmatprep.subr.bf16.mxu1 %v5248_v3  ;;  %v4369_v3 = vcombine.low %v1405_v56, %v1413_v57  ;;  %v4262_v5 = vcombine.high %v1295_v0, %v1303_v1  ;;  %v1375_v55 = vld [vmem:[%s6623_s0 + $0x2b8] sm:$0xff] }
 0x175   : > { %v1383_v56 = vld [vmem:[%s6623_s0 + $0x2f8] sm:$0xff] }
 0x176   : > { %4977 = vmatpush3.bf16.msra.mxu0 %v5247_v7  ;;  %v1318_v7 = vld [vmem:[%s6623_s0 + $0xf0] sm:$0xff] }
 0x177   : > { %5041 = vmatpush3.bf16.msra.mxu1 %v5249_v9  ;;  %4978 = vmatprep.subr.bf16.mxu0 %v5250_v10  ;;  %v1319_v9 = vld [vmem:[%s6623_s0 + $0xf8] sm:$0xff]  ;;  %v4259_v10 = vcombine.low %v1294_v62, %v1302_v63 }
 0x178   : > { %3517 = vmatmul.mubr.bf16.gmra.mrb[72].mxu0 %v4287_v11  ;;  %5042 = vmatprep.subr.bf16.mxu1 %v5252_v12  ;;  %v4261_v11 = vcombine.low %v1295_v0, %v1303_v1  ;;  %v4276_v12 = vcombine.high %v1310_v6, %v1318_v7 }
 0x179   : > { %3614 = vmatmul.mubr.bf16.gmra.mrb[72].mxu1 %v4289_v13  ;;  %3524 = vmatprep.mubr.bf16.mxu0 %v4304_v14  ;;  %v4278_v13 = vcombine.high %v1311_v8, %v1319_v9  ;;  %v1326_v14 = vld [vmem:[%s6623_s0 + $0x130] sm:$0xff] }
 0x17a   : > { %3621 = vmatprep.mubr.bf16.mxu1 %v4306_v15  ;;  %4979 = vmatpush3.bf16.msra.mxu0 %v5251_v16  ;;  %v1334_v15 = vld [vmem:[%s6623_s0 + $0x170] sm:$0xff]  ;;  %v1327_v16 = vld [vmem:[%s6623_s0 + $0x138] sm:$0xff] }
 0x17b   : > { %5043 = vmatpush3.bf16.msra.mxu1 %v5253_v17  ;;  %4980 = vmatprep.subr.bf16.mxu0 %v5254_v18  ;;  %v1335_v17 = vld [vmem:[%s6623_s0 + $0x178] sm:$0xff]  ;;  %v4275_v18 = vcombine.low %v1310_v6, %v1318_v7  ;;  %v4292_v20 = vcombine.high %v1326_v14, %v1334_v15 }
 0x17c   : > { %5044 = vmatprep.subr.bf16.mxu1 %v5256_v19  ;;  %v4277_v19 = vcombine.low %v1311_v8, %v1319_v9  ;;  %v4294_v21 = vcombine.high %v1327_v16, %v1335_v17 }
 0x17e   : > { %4981 = vmatpush3.bf16.msra.mxu0 %v5255_v23  ;;  %v1350_v23 = vld [vmem:[%s6623_s0 + $0x1f0] sm:$0xff] }
 0x17f   : > { %5045 = vmatpush3.bf16.msra.mxu1 %v5257_v25  ;;  %4982 = vmatprep.subr.bf16.mxu0 %v5258_v26  ;;  %v1351_v25 = vld [vmem:[%s6623_s0 + $0x1f8] sm:$0xff]  ;;  %v4291_v26 = vcombine.low %v1326_v14, %v1334_v15  ;;  %v4307_v37 = vcombine.low %v1342_v22, %v1350_v23 }
 0x180   : > { %3525 = vmatmul.mubr.bf16.gmra.mrb[76].mxu0 %v4303_v27  ;;  %5046 = vmatprep.subr.bf16.mxu1 %v5260_v28  ;;  %v4293_v27 = vcombine.low %v1327_v16, %v1335_v17  ;;  %v4308_v28 = vcombine.high %v1342_v22, %v1350_v23  ;;  %v1399_v14 = vld [vmem:[%s6623_s0 + $0x378] sm:$0xff] }
 0x181   : > { %3622 = vmatmul.mubr.bf16.gmra.mrb[76].mxu1 %v4305_v29  ;;  %3532 = vmatprep.mubr.bf16.mxu0 %v4320_v30  ;;  %v4310_v29 = vcombine.high %v1343_v24, %v1351_v25  ;;  %v1358_v30 = vld [vmem:[%s6623_s0 + $0x230] sm:$0xff] }
 0x182   : > { %3629 = vmatprep.mubr.bf16.mxu1 %v4322_v31  ;;  %4983 = vmatpush3.bf16.msra.mxu0 %v5259_v32  ;;  %v1366_v31 = vld [vmem:[%s6623_s0 + $0x270] sm:$0xff] }
 0x183   : > { %5047 = vmatpush3.bf16.msra.mxu1 %v5261_v33  ;;  %4984 = vmatprep.subr.bf16.mxu0 %v5262_v34  ;;  %v1359_v33 = vld [vmem:[%s6623_s0 + $0x238] sm:$0xff] }
 0x184   : > { %5048 = vmatprep.subr.bf16.mxu1 %v5264_v35  ;;  %v1367_v34 = vld [vmem:[%s6623_s0 + $0x278] sm:$0xff] }
 0x185   : > { %v4326_v46 = vcombine.high %v1359_v33, %v1367_v34  ;;  %v4325_v63 = vcombine.low %v1359_v33, %v1367_v34  ;;  %v1414_v33 = vld [vmem:[%s6623_s0 + $0x3f0] sm:$0xff] }
 0x186   : > { %4985 = vmatpush3.bf16.msra.mxu0 %v5263_v38 }
 0x187   : > { %5049 = vmatpush3.bf16.msra.mxu1 %v5265_v41  ;;  %v4309_v41 = vcombine.low %v1343_v24, %v1351_v25 }
 0x188   : > { %3533 = vmatmul.mubr.bf16.gmra.mrb[80].mxu0 %v4319_v42  ;;  %v4324_v42 = vcombine.high %v1358_v30, %v1366_v31 }
 0x189   : > { %3630 = vmatmul.mubr.bf16.gmra.mrb[80].mxu1 %v4321_v43  ;;  %3540 = vmatprep.mubr.bf16.mxu0 %v4336_v44 }
 0x18a   : > { %3637 = vmatprep.mubr.bf16.mxu1 %v4338_v45 }
 0x190   : > { %3541 = vmatmul.mubr.bf16.gmra.mrb[84].mxu0 %v4335_v50 }
 0x191   : > { %3638 = vmatmul.mubr.bf16.gmra.mrb[84].mxu1 %v4337_v51  ;;  %3548 = vmatprep.mubr.bf16.mxu0 %v4352_v52  ;;  %v1374_v52 = vld [vmem:[%s6623_s0 + $0x2b0] sm:$0xff] }
 0x192   : > { %3645 = vmatprep.mubr.bf16.mxu1 %v4354_v53  ;;  %v1382_v53 = vld [vmem:[%s6623_s0 + $0x2f0] sm:$0xff] }
 0x193   : > { %v4340_v0 = vcombine.high %v1374_v52, %v1382_v53  ;;  %v4339_v17 = vcombine.low %v1374_v52, %v1382_v53 }
 0x198   : > { %3549 = vmatmul.mubr.bf16.gmra.mrb[88].mxu0 %v4351_v58 }
 0x199   : > { %3646 = vmatmul.mubr.bf16.gmra.mrb[88].mxu1 %v4353_v59  ;;  %3556 = vmatprep.mubr.bf16.mxu0 %v4368_v60  ;;  %v4323_v59 = vcombine.low %v1358_v30, %v1366_v31 }
 0x19a   : > { %3653 = vmatprep.mubr.bf16.mxu1 %v4370_v61 }
 0x1a0   : > { %3557 = vmatmul.mubr.bf16.gmra.mrb[92].mxu0 %v4367_v2 }
 0x1a1   : > { %3654 = vmatmul.mubr.bf16.gmra.mrb[92].mxu1 %v4369_v3  ;;  %3694 = vmatprep.mubr.bf16.mxu0 %v4260_v4  ;;  %v4342_v4 = vcombine.high %v1375_v55, %v1383_v56 }
 0x1a2   : > { %3791 = vmatprep.mubr.bf16.mxu1 %v4262_v5 }
 0x1a8   : > { %3695 = vmatmul.mubr.bf16.vlgmr.msra.gmra.mrb[96].mxu0 %v4259_v10  ;;  %v1390_v10 = vld [vmem:[%s6623_s0 + $0x330] sm:$0xff] }
 0x1a9   : > { %3792 = vmatmul.mubr.bf16.vlgmr.msra.gmra.mrb[96].mxu1 %v4261_v11  ;;  %3702 = vmatprep.mubr.bf16.mxu0 %v4276_v12  ;;  %v1398_v11 = vld [vmem:[%s6623_s0 + $0x370] sm:$0xff] }
 0x1aa   : > { %3799 = vmatprep.mubr.bf16.mxu1 %v4278_v13  ;;  %v1391_v13 = vld [vmem:[%s6623_s0 + $0x338] sm:$0xff]  ;;  %v4356_v22 = vcombine.high %v1390_v10, %v1398_v11 }
 0x1b0   : > { %3703 = vmatmul.mubr.bf16.gmra.mrb[100].mxu0 %v4275_v18 }
 0x1b1   : > { %3800 = vmatmul.mubr.bf16.gmra.mrb[100].mxu1 %v4277_v19  ;;  %3710 = vmatprep.mubr.bf16.mxu0 %v4292_v20 }
 0x1b2   : > { %3807 = vmatprep.mubr.bf16.mxu1 %v4294_v21  ;;  %v4341_v21 = vcombine.low %v1375_v55, %v1383_v56 }
 0x1b8   : > { %3711 = vmatmul.mubr.bf16.gmra.mrb[104].mxu0 %v4291_v26  ;;  %v4358_v26 = vcombine.high %v1391_v13, %v1399_v14 }
 0x1b9   : > { %3808 = vmatmul.mubr.bf16.gmra.mrb[104].mxu1 %v4293_v27  ;;  %3718 = vmatprep.mubr.bf16.mxu0 %v4308_v28 }
 0x1ba   : > { %3815 = vmatprep.mubr.bf16.mxu1 %v4310_v29 }
 0x1bb   : > { %v4602_v32 = vpop.f32.mrb[0].mxu0 }
 0x1bc   : > { %v4666_v35 = vpop.f32.mrb[0].mxu1  ;;  %v4603_v36 = vpop.f32.mrb[1].mxu0 }
 0x1bd   : > { %v4604_v38 = vadd.f32 %v4603_v36, %v4602_v32  ;;  %v4667_v39 = vpop.f32.mrb[1].mxu1  ;;  %v4605_v40 = vpop.f32.mrb[2].mxu0  ;;  %v1406_v32 = vld [vmem:[%s6623_s0 + $0x3b0] sm:$0xff]  ;;  %v1415_v36 = vld [vmem:[%s6623_s0 + $0x3f8] sm:$0xff] }
 0x1be   : > { %v4668_v43 = vadd.f32 %v4667_v39, %v4666_v35  ;;  %v4669_v44 = vpop.f32.mrb[2].mxu1  ;;  %v4606_v45 = vpop.f32.mrb[3].mxu0  ;;  %v1407_v35 = vld [vmem:[%s6623_s0 + $0x3b8] sm:$0xff]  ;;  %v4355_v39 = vcombine.low %v1390_v10, %v1398_v11 }
 0x1bf   : > { %v4607_v47 = vadd.f32 %v4606_v45, %v4605_v40  ;;  %v4670_v48 = vpop.f32.mrb[3].mxu1 }
 0x1c0   : > { %v6389_v49 = vadd.f32 %v4668_v43, %v4604_v38  ;;  %v4671_v50 = vadd.f32 %v4670_v48, %v4669_v44  ;;  %3719 = vmatmul.mubr.bf16.gmra.mrb[108].mxu0 %v4307_v37  ;;  %v4357_v43 = vcombine.low %v1391_v13, %v1399_v14  ;;  %v4372_v44 = vcombine.high %v1406_v32, %v1414_v33 }
 0x1c1   : > { %3816 = vmatmul.mubr.bf16.gmra.mrb[108].mxu1 %v4309_v41  ;;  %3726 = vmatprep.mubr.bf16.mxu0 %v4324_v42  ;;  %v4374_v48 = vcombine.high %v1407_v35, %v1415_v36 }
 0x1c2   : > { %v6391_v51 = vadd.f32 %v4671_v50, %v4607_v47  ;;  %3823 = vmatprep.mubr.bf16.mxu1 %v4326_v46 }
 0x1c3   : > { %v4608_v54 = vpop.f32.mrb[4].mxu0 }
 0x1c4   : > { %v4672_v57 = vpop.f32.mrb[4].mxu1  ;;  %v4609_v58 = vpop.f32.mrb[5].mxu0 }
 0x1c5   : > { %v4610_v60 = vadd.f32 %v4609_v58, %v4608_v54  ;;  %v4673_v61 = vpop.f32.mrb[5].mxu1  ;;  %v4611_v62 = vpop.f32.mrb[6].mxu0 }
 0x1c6   : > { %v4674_v1 = vadd.f32 %v4673_v61, %v4672_v57  ;;  %v4675_v2 = vpop.f32.mrb[6].mxu1  ;;  %v4612_v3 = vpop.f32.mrb[7].mxu0 }
 0x1c7   : > { %v4613_v5 = vadd.f32 %v4612_v3, %v4611_v62  ;;  %v4676_v6 = vpop.f32.mrb[7].mxu1 }
 0x1c8   : > { %v6405_v7 = vadd.f32 %v4674_v1, %v4610_v60  ;;  %v4677_v8 = vadd.f32 %v4676_v6, %v4675_v2  ;;  %3727 = vmatmul.mubr.bf16.gmra.mrb[112].mxu0 %v4323_v59  ;;  %v4371_v59 = vcombine.low %v1406_v32, %v1414_v33 }
 0x1c9   : > { %3824 = vmatmul.mubr.bf16.gmra.mrb[112].mxu1 %v4325_v63  ;;  %3734 = vmatprep.mubr.bf16.mxu0 %v4340_v0  ;;  %v4373_v63 = vcombine.low %v1407_v35, %v1415_v36 }
 0x1ca   : > { %v6407_v9 = vadd.f32 %v4677_v8, %v4613_v5  ;;  %3831 = vmatprep.mubr.bf16.mxu1 %v4342_v4 }
 0x1cb   : > { %v4614_v12 = vpop.f32.mrb[8].mxu0 }
 0x1cc   : > { %v4678_v15 = vpop.f32.mrb[8].mxu1  ;;  %v4615_v16 = vpop.f32.mrb[9].mxu0 }
 0x1cd   : > { %v4616_v18 = vadd.f32 %v4615_v16, %v4614_v12  ;;  %v4679_v19 = vpop.f32.mrb[9].mxu1  ;;  %v4617_v20 = vpop.f32.mrb[10].mxu0 }
 0x1ce   : > { %v4680_v23 = vadd.f32 %v4679_v19, %v4678_v15  ;;  %v4681_v24 = vpop.f32.mrb[10].mxu1  ;;  %v4618_v25 = vpop.f32.mrb[11].mxu0 }
 0x1cf   : > { %v4619_v27 = vadd.f32 %v4618_v25, %v4617_v20  ;;  %v4682_v28 = vpop.f32.mrb[11].mxu1 }
 0x1d0   : > { %v6421_v29 = vadd.f32 %v4680_v23, %v4616_v18  ;;  %v4683_v30 = vadd.f32 %v4682_v28, %v4681_v24  ;;  %3735 = vmatmul.mubr.bf16.gmra.mrb[116].mxu0 %v4339_v17 }
 0x1d1   : > { %3832 = vmatmul.mubr.bf16.gmra.mrb[116].mxu1 %v4341_v21  ;;  %3742 = vmatprep.mubr.bf16.mxu0 %v4356_v22 }
 0x1d2   : > { %v6423_v31 = vadd.f32 %v4683_v30, %v4619_v27  ;;  %3839 = vmatprep.mubr.bf16.mxu1 %v4358_v26 }
 0x1d3   : > { %v4620_v34 = vpop.f32.mrb[12].mxu0 }
 0x1d4   : > { %v4684_v37 = vpop.f32.mrb[12].mxu1  ;;  %v4621_v38 = vpop.f32.mrb[13].mxu0 }
 0x1d5   : > { %v4622_v40 = vadd.f32 %v4621_v38, %v4620_v34  ;;  %v4685_v41 = vpop.f32.mrb[13].mxu1  ;;  %v4623_v42 = vpop.f32.mrb[14].mxu0 }
 0x1d6   : > { %v4686_v45 = vadd.f32 %v4685_v41, %v4684_v37  ;;  %v4687_v46 = vpop.f32.mrb[14].mxu1  ;;  %v4624_v47 = vpop.f32.mrb[15].mxu0 }
 0x1d7   : > { %v4625_v50 = vadd.f32 %v4624_v47, %v4623_v42  ;;  %v4688_v52 = vpop.f32.mrb[15].mxu1 }
 0x1d8   : > { %v6437_v53 = vadd.f32 %v4686_v45, %v4622_v40  ;;  %v4689_v54 = vadd.f32 %v4688_v52, %v4687_v46  ;;  %3743 = vmatmul.mubr.bf16.gmra.mrb[120].mxu0 %v4355_v39 }
 0x1d9   : > { %3840 = vmatmul.mubr.bf16.gmra.mrb[120].mxu1 %v4357_v43  ;;  %3750 = vmatprep.mubr.bf16.mxu0 %v4372_v44 }
 0x1da   : > { %v6439_v55 = vadd.f32 %v4689_v54, %v4625_v50  ;;  %3847 = vmatprep.mubr.bf16.mxu1 %v4374_v48 }
 0x1db   : > { %v4626_v56 = vpop.f32.mrb[16].mxu0 }
 0x1dc   : > { %v4690_v57 = vpop.f32.mrb[16].mxu1  ;;  %v4627_v58 = vpop.f32.mrb[17].mxu0 }
 0x1dd   : > { %v4628_v60 = vadd.f32 %v4627_v58, %v4626_v56  ;;  %v4691_v61 = vpop.f32.mrb[17].mxu1  ;;  %v4629_v62 = vpop.f32.mrb[18].mxu0 }
 0x1de   : > { %v4692_v0 = vadd.f32 %v4691_v61, %v4690_v57  ;;  %v4693_v1 = vpop.f32.mrb[18].mxu1  ;;  %v4630_v2 = vpop.f32.mrb[19].mxu0 }
 0x1df   : > { %v4631_v3 = vadd.f32 %v4630_v2, %v4629_v62  ;;  %v4694_v4 = vpop.f32.mrb[19].mxu1 }
 0x1e0   : > { %v6441_v5 = vadd.f32 %v4692_v0, %v4628_v60  ;;  %v4695_v6 = vadd.f32 %v4694_v4, %v4693_v1  ;;  %3751 = vmatmul.mubr.bf16.gmra.mrb[124].mxu0 %v4371_v59 }
 0x1e1   : > { %3848 = vmatmul.mubr.bf16.gmra.mrb[124].mxu1 %v4373_v63 }
 0x1e2   : > { %v6443_v8 = vadd.f32 %v4695_v6, %v4631_v3 }
 0x1e3   : > { %v4632_v10 = vpop.f32.mrb[20].mxu0 }
 0x1e4   : > { %v4696_v11 = vpop.f32.mrb[20].mxu1  ;;  %v4633_v12 = vpop.f32.mrb[21].mxu0 }
 0x1e5   : > { %v4634_v13 = vadd.f32 %v4633_v12, %v4632_v10  ;;  %v4697_v14 = vpop.f32.mrb[21].mxu1  ;;  %v4635_v15 = vpop.f32.mrb[22].mxu0 }
 0x1e6   : > { %v4698_v16 = vadd.f32 %v4697_v14, %v4696_v11  ;;  %v4699_v17 = vpop.f32.mrb[22].mxu1  ;;  %v4636_v18 = vpop.f32.mrb[23].mxu0 }
 0x1e7   : > { %v4637_v19 = vadd.f32 %v4636_v18, %v4635_v15  ;;  %v4700_v20 = vpop.f32.mrb[23].mxu1 }
 0x1e8   : > { %v6445_v21 = vadd.f32 %v4698_v16, %v4634_v13  ;;  %v4701_v22 = vadd.f32 %v4700_v20, %v4699_v17 }
 0x1ea   : > { %v6447_v23 = vadd.f32 %v4701_v22, %v4637_v19 }
 0x1eb   : > { %v4638_v24 = vpop.f32.mrb[24].mxu0 }
 0x1ec   : > { %v4702_v25 = vpop.f32.mrb[24].mxu1  ;;  %v4639_v26 = vpop.f32.mrb[25].mxu0 }
 0x1ed   : > { %v4640_v27 = vadd.f32 %v4639_v26, %v4638_v24  ;;  %v4703_v28 = vpop.f32.mrb[25].mxu1  ;;  %v4641_v30 = vpop.f32.mrb[26].mxu0 }
 0x1ee   : > { %v4704_v32 = vadd.f32 %v4703_v28, %v4702_v25  ;;  %v4705_v33 = vpop.f32.mrb[26].mxu1  ;;  %v4642_v34 = vpop.f32.mrb[27].mxu0 }
 0x1ef   : > { %v4643_v35 = vadd.f32 %v4642_v34, %v4641_v30  ;;  %v4706_v36 = vpop.f32.mrb[27].mxu1 }
 0x1f0   : > { %v6449_v37 = vadd.f32 %v4704_v32, %v4640_v27  ;;  %v4707_v38 = vadd.f32 %v4706_v36, %v4705_v33 }
 0x1f2   : > { %v6451_v39 = vadd.f32 %v4707_v38, %v4643_v35 }
 0x1f3   : > { %v4644_v40 = vpop.f32.mrb[28].mxu0 }
 0x1f4   : > { %v4708_v41 = vpop.f32.mrb[28].mxu1  ;;  %v4645_v42 = vpop.f32.mrb[29].mxu0 }
 0x1f5   : > { %v4646_v43 = vadd.f32 %v4645_v42, %v4644_v40  ;;  %v4709_v44 = vpop.f32.mrb[29].mxu1  ;;  %v4647_v45 = vpop.f32.mrb[30].mxu0 }
 0x1f6   : > { %v4710_v46 = vadd.f32 %v4709_v44, %v4708_v41  ;;  %v4711_v47 = vpop.f32.mrb[30].mxu1  ;;  %v4648_v48 = vpop.f32.mrb[31].mxu0 }
 0x1f7   : > { %v4649_v50 = vadd.f32 %v4648_v48, %v4647_v45  ;;  %v4712_v52 = vpop.f32.mrb[31].mxu1 }
 0x1f8   : > { %v6453_v54 = vadd.f32 %v4710_v46, %v4646_v43  ;;  %v4713_v56 = vadd.f32 %v4712_v52, %v4711_v47 }
 0x1fa   : > { %v6455_v57 = vadd.f32 %v4713_v56, %v4649_v50 }
 0x1fb   : > { %v4730_v58 = vpop.f32.mrb[32].mxu0 }
 0x1fc   : > { %v4794_v59 = vpop.f32.mrb[32].mxu1  ;;  %v4731_v60 = vpop.f32.mrb[33].mxu0 }
 0x1fd   : > { %v4732_v61 = vadd.f32 %v4731_v60, %v4730_v58  ;;  %v4795_v62 = vpop.f32.mrb[33].mxu1  ;;  %v4733_v63 = vpop.f32.mrb[34].mxu0 }
 0x1fe   : > { %v4796_v0 = vadd.f32 %v4795_v62, %v4794_v59  ;;  %v4797_v1 = vpop.f32.mrb[34].mxu1  ;;  %v4734_v2 = vpop.f32.mrb[35].mxu0 }
 0x1ff   : > { %v3309_v3 = vadd.f32 %v4732_v61, %v6389_v49  ;;  %v4735_v4 = vadd.f32 %v4734_v2, %v4733_v63  ;;  %v4798_v6 = vpop.f32.mrb[35].mxu1 }
 0x200   : > { %v4799_v10 = vadd.f32 %v4798_v6, %v4797_v1 }
 0x201   : > { %v6458_v11 = vadd.f32 %v4796_v0, %v3309_v3  ;;  %v3312_v12 = vadd.f32 %v4735_v4, %v6391_v51 }
 0x203   : > { %v6461_v13 = vadd.f32 %v4799_v10, %v3312_v12  ;;  %v4736_v14 = vpop.f32.mrb[36].mxu0 }
 0x204   : > { %v4800_v15 = vpop.f32.mrb[36].mxu1  ;;  %v4737_v16 = vpop.f32.mrb[37].mxu0 }
 0x205   : > { %v4738_v17 = vadd.f32 %v4737_v16, %v4736_v14  ;;  %v4801_v18 = vpop.f32.mrb[37].mxu1  ;;  %v4739_v19 = vpop.f32.mrb[38].mxu0 }
 0x206   : > { %v4802_v20 = vadd.f32 %v4801_v18, %v4800_v15  ;;  %v4803_v22 = vpop.f32.mrb[38].mxu1  ;;  %v4740_v24 = vpop.f32.mrb[39].mxu0 }
 0x207   : > { %v3317_v49 = vadd.f32 %v4738_v17, %v6405_v7  ;;  %v4741_v25 = vadd.f32 %v4740_v24, %v4739_v19  ;;  %v4804_v26 = vpop.f32.mrb[39].mxu1 }
 0x208   : > { %v4805_v27 = vadd.f32 %v4804_v26, %v4803_v22 }
 0x209   : > { %v6464_v28 = vadd.f32 %v4802_v20, %v3317_v49  ;;  %v3320_v51 = vadd.f32 %v4741_v25, %v6407_v9 }
 0x20b   : > { %v6467_v30 = vadd.f32 %v4805_v27, %v3320_v51  ;;  %v4742_v32 = vpop.f32.mrb[40].mxu0 }
 0x20c   : > { %v4806_v33 = vpop.f32.mrb[40].mxu1  ;;  %v4743_v34 = vpop.f32.mrb[41].mxu0 }
 0x20d   : > { %v4744_v35 = vadd.f32 %v4743_v34, %v4742_v32  ;;  %v4807_v36 = vpop.f32.mrb[41].mxu1  ;;  %v4745_v38 = vpop.f32.mrb[42].mxu0 }
 0x20e   : > { %v4808_v40 = vadd.f32 %v4807_v36, %v4806_v33  ;;  %v4809_v41 = vpop.f32.mrb[42].mxu1  ;;  %v4746_v42 = vpop.f32.mrb[43].mxu0 }
 0x20f   : > { %v3325_v7 = vadd.f32 %v4744_v35, %v6421_v29  ;;  %v4747_v43 = vadd.f32 %v4746_v42, %v4745_v38  ;;  %v4810_v44 = vpop.f32.mrb[43].mxu1 }
 0x210   : > { %v4811_v45 = vadd.f32 %v4810_v44, %v4809_v41 }
 0x211   : > { %v6470_v46 = vadd.f32 %v4808_v40, %v3325_v7  ;;  %v3328_v9 = vadd.f32 %v4747_v43, %v6423_v31 }
 0x213   : > { %v6473_v47 = vadd.f32 %v4811_v45, %v3328_v9  ;;  %v4748_v48 = vpop.f32.mrb[44].mxu0 }
 0x214   : > { %v4812_v50 = vpop.f32.mrb[44].mxu1  ;;  %v4749_v52 = vpop.f32.mrb[45].mxu0 }
 0x215   : > { %v4750_v56 = vadd.f32 %v4749_v52, %v4748_v48  ;;  %v4813_v58 = vpop.f32.mrb[45].mxu1  ;;  %v4751_v59 = vpop.f32.mrb[46].mxu0 }
 0x216   : > { %v4814_v60 = vadd.f32 %v4813_v58, %v4812_v50  ;;  %v4815_v61 = vpop.f32.mrb[46].mxu1  ;;  %v4752_v62 = vpop.f32.mrb[47].mxu0 }
 0x217   : > { %v3333_v29 = vadd.f32 %v4750_v56, %v6437_v53  ;;  %v4753_v63 = vadd.f32 %v4752_v62, %v4751_v59  ;;  %v4816_v0 = vpop.f32.mrb[47].mxu1 }
 0x218   : > { %v4817_v1 = vadd.f32 %v4816_v0, %v4815_v61 }
 0x219   : > { %v6476_v2 = vadd.f32 %v4814_v60, %v3333_v29  ;;  %v3336_v31 = vadd.f32 %v4753_v63, %v6439_v55 }
 0x21b   : > { %v6479_v3 = vadd.f32 %v4817_v1, %v3336_v31  ;;  %v4754_v4 = vpop.f32.mrb[48].mxu0 }
 0x21c   : > { %v4818_v6 = vpop.f32.mrb[48].mxu1  ;;  %v4755_v10 = vpop.f32.mrb[49].mxu0 }
 0x21d   : > { %v4756_v12 = vadd.f32 %v4755_v10, %v4754_v4  ;;  %v4819_v14 = vpop.f32.mrb[49].mxu1  ;;  %v4757_v15 = vpop.f32.mrb[50].mxu0 }
 0x21e   : > { %v4820_v16 = vadd.f32 %v4819_v14, %v4818_v6  ;;  %v4821_v17 = vpop.f32.mrb[50].mxu1  ;;  %v4758_v18 = vpop.f32.mrb[51].mxu0 }
 0x21f   : > { %v3341_v53 = vadd.f32 %v4756_v12, %v6441_v5  ;;  %v4759_v19 = vadd.f32 %v4758_v18, %v4757_v15  ;;  %v4822_v20 = vpop.f32.mrb[51].mxu1 }
 0x220   : > { %v4823_v22 = vadd.f32 %v4822_v20, %v4821_v17 }
 0x221   : > { %v6482_v24 = vadd.f32 %v4820_v16, %v3341_v53  ;;  %v3344_v55 = vadd.f32 %v4759_v19, %v6443_v8 }
 0x223   : > { %v6485_v49 = vadd.f32 %v4823_v22, %v3344_v55  ;;  %v4760_v25 = vpop.f32.mrb[52].mxu0 }
 0x224   : > { %v4824_v26 = vpop.f32.mrb[52].mxu1  ;;  %v4761_v27 = vpop.f32.mrb[53].mxu0 }
 0x225   : > { %v4762_v51 = vadd.f32 %v4761_v27, %v4760_v25  ;;  %v4825_v32 = vpop.f32.mrb[53].mxu1  ;;  %v4763_v33 = vpop.f32.mrb[54].mxu0 }
 0x226   : > { %v4826_v34 = vadd.f32 %v4825_v32, %v4824_v26  ;;  %v4827_v35 = vpop.f32.mrb[54].mxu1  ;;  %v4764_v36 = vpop.f32.mrb[55].mxu0 }
 0x227   : > { %v3349_v5 = vadd.f32 %v4762_v51, %v6445_v21  ;;  %v4765_v38 = vadd.f32 %v4764_v36, %v4763_v33  ;;  %v4828_v40 = vpop.f32.mrb[55].mxu1 }
 0x228   : > { %v4829_v41 = vadd.f32 %v4828_v40, %v4827_v35 }
 0x229   : > { %v6488_v42 = vadd.f32 %v4826_v34, %v3349_v5  ;;  %v3352_v8 = vadd.f32 %v4765_v38, %v6447_v23 }
 0x22b   : > { %v6491_v7 = vadd.f32 %v4829_v41, %v3352_v8  ;;  %v4766_v43 = vpop.f32.mrb[56].mxu0 }
 0x22c   : > { %v4830_v44 = vpop.f32.mrb[56].mxu1  ;;  %v4767_v45 = vpop.f32.mrb[57].mxu0 }
 0x22d   : > { %v4768_v9 = vadd.f32 %v4767_v45, %v4766_v43  ;;  %v4831_v48 = vpop.f32.mrb[57].mxu1  ;;  %v4769_v50 = vpop.f32.mrb[58].mxu0 }
 0x22e   : > { %v4832_v52 = vadd.f32 %v4831_v48, %v4830_v44  ;;  %v4833_v56 = vpop.f32.mrb[58].mxu1  ;;  %v4770_v58 = vpop.f32.mrb[59].mxu0 }
 0x22f   : > { %v3357_v21 = vadd.f32 %v4768_v9, %v6449_v37  ;;  %v4771_v59 = vadd.f32 %v4770_v58, %v4769_v50  ;;  %v4834_v60 = vpop.f32.mrb[59].mxu1 }
 0x230   : > { %v4835_v61 = vadd.f32 %v4834_v60, %v4833_v56 }
 0x231   : > { %v6494_v62 = vadd.f32 %v4832_v52, %v3357_v21  ;;  %v3360_v23 = vadd.f32 %v4771_v59, %v6451_v39 }
 0x233   : > { %v6497_v29 = vadd.f32 %v4835_v61, %v3360_v23  ;;  %v4772_v63 = vpop.f32.mrb[60].mxu0 }
 0x234   : > { %v4836_v0 = vpop.f32.mrb[60].mxu1  ;;  %v4773_v1 = vpop.f32.mrb[61].mxu0 }
 0x235   : > { %v4774_v31 = vadd.f32 %v4773_v1, %v4772_v63  ;;  %v4837_v4 = vpop.f32.mrb[61].mxu1  ;;  %v4775_v6 = vpop.f32.mrb[62].mxu0 }
 0x236   : > { %v4838_v10 = vadd.f32 %v4837_v4, %v4836_v0  ;;  %v4839_v12 = vpop.f32.mrb[62].mxu1  ;;  %v4776_v14 = vpop.f32.mrb[63].mxu0 }
 0x237   : > { %v3365_v37 = vadd.f32 %v4774_v31, %v6453_v54  ;;  %v4777_v15 = vadd.f32 %v4776_v14, %v4775_v6  ;;  %v4840_v16 = vpop.f32.mrb[63].mxu1 }
 0x238   : > { %v4841_v17 = vadd.f32 %v4840_v16, %v4839_v12 }
 0x239   : > { %v6500_v18 = vadd.f32 %v4838_v10, %v3365_v37  ;;  %v3368_v39 = vadd.f32 %v4777_v15, %v6455_v57 }
 0x23b   : > { %v6503_v53 = vadd.f32 %v4841_v17, %v3368_v39  ;;  %v4858_v19 = vpop.f32.mrb[64].mxu0 }
 0x23c   : > { %v4922_v20 = vpop.f32.mrb[64].mxu1  ;;  %v4859_v22 = vpop.f32.mrb[65].mxu0 }
 0x23d   : > { %v4860_v55 = vadd.f32 %v4859_v22, %v4858_v19  ;;  %v4923_v25 = vpop.f32.mrb[65].mxu1  ;;  %v4861_v26 = vpop.f32.mrb[66].mxu0 }
 0x23e   : > { %v4924_v27 = vadd.f32 %v4923_v25, %v4922_v20  ;;  %v4925_v51 = vpop.f32.mrb[66].mxu1  ;;  %v4862_v32 = vpop.f32.mrb[67].mxu0 }
 0x23f   : > { %v3503_v54 = vadd.f32 %v4860_v55, %v6458_v11  ;;  %v4863_v33 = vadd.f32 %v4862_v32, %v4861_v26  ;;  %v4926_v34 = vpop.f32.mrb[67].mxu1 }
 0x240   : > { %v4927_v35 = vadd.f32 %v4926_v34, %v4925_v51 }
 0x241   : > { %v6506_v36 = vadd.f32 %v4924_v27, %v3503_v54  ;;  %v3506_v57 = vadd.f32 %v4863_v33, %v6461_v13 }
 0x243   : > { %v6509_v5 = vadd.f32 %v4927_v35, %v3506_v57  ;;  %v4864_v38 = vpop.f32.mrb[68].mxu0 }
 0x244   : > { %v4928_v40 = vpop.f32.mrb[68].mxu1  ;;  %v4865_v41 = vpop.f32.mrb[69].mxu0 }
 0x245   : > { %v4866_v8 = vadd.f32 %v4865_v41, %v4864_v38  ;;  %v4929_v43 = vpop.f32.mrb[69].mxu1  ;;  %v4867_v44 = vpop.f32.mrb[70].mxu0 }
 0x246   : > { %v4930_v45 = vadd.f32 %v4929_v43, %v4928_v40  ;;  %v4931_v9 = vpop.f32.mrb[70].mxu1  ;;  %v4868_v48 = vpop.f32.mrb[71].mxu0 }
 0x247   : > { %v3511_v11 = vadd.f32 %v4866_v8, %v6464_v28  ;;  %v4869_v50 = vadd.f32 %v4868_v48, %v4867_v44  ;;  %v4932_v52 = vpop.f32.mrb[71].mxu1 }
 0x248   : > { %v4933_v56 = vadd.f32 %v4932_v52, %v4931_v9 }
 0x249   : > { %v6512_v58 = vadd.f32 %v4930_v45, %v3511_v11  ;;  %v3514_v13 = vadd.f32 %v4869_v50, %v6467_v30 }
 0x24b   : > { %v6515_v21 = vadd.f32 %v4933_v56, %v3514_v13  ;;  %v4870_v59 = vpop.f32.mrb[72].mxu0 }
 0x24c   : > { %v4934_v60 = vpop.f32.mrb[72].mxu1  ;;  %v4871_v61 = vpop.f32.mrb[73].mxu0 }
 0x24d   : > { %v4872_v23 = vadd.f32 %v4871_v61, %v4870_v59  ;;  %v4935_v63 = vpop.f32.mrb[73].mxu1  ;;  %v4873_v0 = vpop.f32.mrb[74].mxu0 }
 0x24e   : > { %v4936_v1 = vadd.f32 %v4935_v63, %v4934_v60  ;;  %v4937_v31 = vpop.f32.mrb[74].mxu1  ;;  %v4874_v4 = vpop.f32.mrb[75].mxu0 }
 0x24f   : > { %v3519_v28 = vadd.f32 %v4872_v23, %v6470_v46  ;;  %v4875_v6 = vadd.f32 %v4874_v4, %v4873_v0  ;;  %v4938_v10 = vpop.f32.mrb[75].mxu1 }
 0x250   : > { %v4939_v12 = vadd.f32 %v4938_v10, %v4937_v31 }
 0x251   : > { %v6518_v14 = vadd.f32 %v4936_v1, %v3519_v28  ;;  %v3522_v30 = vadd.f32 %v4875_v6, %v6473_v47 }
 0x253   : > { %v6521_v37 = vadd.f32 %v4939_v12, %v3522_v30  ;;  %v4876_v15 = vpop.f32.mrb[76].mxu0 }
 0x254   : > { %v4940_v16 = vpop.f32.mrb[76].mxu1  ;;  %v4877_v17 = vpop.f32.mrb[77].mxu0 }
 0x255   : > { %v4878_v39 = vadd.f32 %v4877_v17, %v4876_v15  ;;  %v4941_v19 = vpop.f32.mrb[77].mxu1  ;;  %v4879_v20 = vpop.f32.mrb[78].mxu0 }
 0x256   : > { %v4942_v22 = vadd.f32 %v4941_v19, %v4940_v16  ;;  %v4943_v55 = vpop.f32.mrb[78].mxu1  ;;  %v4880_v25 = vpop.f32.mrb[79].mxu0 }
 0x257   : > { %v3527_v46 = vadd.f32 %v4878_v39, %v6476_v2  ;;  %v4881_v26 = vadd.f32 %v4880_v25, %v4879_v20  ;;  %v4944_v27 = vpop.f32.mrb[79].mxu1 }
 0x258   : > { %v4945_v51 = vadd.f32 %v4944_v27, %v4943_v55 }
 0x259   : > { %v6524_v32 = vadd.f32 %v4942_v22, %v3527_v46  ;;  %v3530_v47 = vadd.f32 %v4881_v26, %v6479_v3 }
 0x25b   : > { %v6527_v54 = vadd.f32 %v4945_v51, %v3530_v47  ;;  %v4882_v33 = vpop.f32.mrb[80].mxu0 }
 0x25c   : > { %v4946_v34 = vpop.f32.mrb[80].mxu1  ;;  %v4883_v35 = vpop.f32.mrb[81].mxu0 }
 0x25d   : > { %v4884_v57 = vadd.f32 %v4883_v35, %v4882_v33  ;;  %v4947_v38 = vpop.f32.mrb[81].mxu1  ;;  %v4885_v40 = vpop.f32.mrb[82].mxu0 }
 0x25e   : > { %v4948_v41 = vadd.f32 %v4947_v38, %v4946_v34  ;;  %v4949_v8 = vpop.f32.mrb[82].mxu1  ;;  %v4886_v43 = vpop.f32.mrb[83].mxu0 }
 0x25f   : > { %v3535_v2 = vadd.f32 %v4884_v57, %v6482_v24  ;;  %v4887_v44 = vadd.f32 %v4886_v43, %v4885_v40  ;;  %v4950_v45 = vpop.f32.mrb[83].mxu1 }
 0x260   : > { %v4951_v9 = vadd.f32 %v4950_v45, %v4949_v8 }
 0x261   : > { %v6530_v48 = vadd.f32 %v4948_v41, %v3535_v2  ;;  %v3538_v3 = vadd.f32 %v4887_v44, %v6485_v49 }
 0x263   : > { %v6533_v11 = vadd.f32 %v4951_v9, %v3538_v3  ;;  %v4888_v50 = vpop.f32.mrb[84].mxu0 }
 0x264   : > { %v4952_v52 = vpop.f32.mrb[84].mxu1  ;;  %v4889_v56 = vpop.f32.mrb[85].mxu0 }
 0x265   : > { %v4890_v13 = vadd.f32 %v4889_v56, %v4888_v50  ;;  %v4953_v59 = vpop.f32.mrb[85].mxu1  ;;  %v4891_v60 = vpop.f32.mrb[86].mxu0 }
 0x266   : > { %v4954_v61 = vadd.f32 %v4953_v59, %v4952_v52  ;;  %v4955_v23 = vpop.f32.mrb[86].mxu1  ;;  %v4892_v63 = vpop.f32.mrb[87].mxu0 }
 0x267   : > { %v3543_v24 = vadd.f32 %v4890_v13, %v6488_v42  ;;  %v4893_v0 = vadd.f32 %v4892_v63, %v4891_v60  ;;  %v4956_v1 = vpop.f32.mrb[87].mxu1 }
 0x268   : > { %v4957_v31 = vadd.f32 %v4956_v1, %v4955_v23 }
 0x269   : > { %v6536_v4 = vadd.f32 %v4954_v61, %v3543_v24  ;;  %v3546_v49 = vadd.f32 %v4893_v0, %v6491_v7 }
 0x26b   : > { %v6539_v28 = vadd.f32 %v4957_v31, %v3546_v49  ;;  %v4894_v6 = vpop.f32.mrb[88].mxu0 }
 0x26c   : > { %v4958_v10 = vpop.f32.mrb[88].mxu1  ;;  %v4895_v12 = vpop.f32.mrb[89].mxu0 }
 0x26d   : > { %v4896_v30 = vadd.f32 %v4895_v12, %v4894_v6  ;;  %v4959_v15 = vpop.f32.mrb[89].mxu1  ;;  %v4897_v16 = vpop.f32.mrb[90].mxu0 }
 0x26e   : > { %v4960_v17 = vadd.f32 %v4959_v15, %v4958_v10  ;;  %v4961_v39 = vpop.f32.mrb[90].mxu1  ;;  %v4898_v19 = vpop.f32.mrb[91].mxu0 }
 0x26f   : > { %v3551_v42 = vadd.f32 %v4896_v30, %v6494_v62  ;;  %v4899_v20 = vadd.f32 %v4898_v19, %v4897_v16  ;;  %v4962_v22 = vpop.f32.mrb[91].mxu1 }
 0x270   : > { %v4963_v55 = vadd.f32 %v4962_v22, %v4961_v39 }
 0x271   : > { %v6542_v25 = vadd.f32 %v4960_v17, %v3551_v42  ;;  %v3554_v7 = vadd.f32 %v4899_v20, %v6497_v29 }
 0x273   : > { %v6545_v46 = vadd.f32 %v4963_v55, %v3554_v7  ;;  %v4900_v26 = vpop.f32.mrb[92].mxu0 }
 0x274   : > { %v4964_v27 = vpop.f32.mrb[92].mxu1  ;;  %v4901_v51 = vpop.f32.mrb[93].mxu0 }
 0x275   : > { %v4902_v47 = vadd.f32 %v4901_v51, %v4900_v26  ;;  %v4965_v33 = vpop.f32.mrb[93].mxu1  ;;  %v4903_v34 = vpop.f32.mrb[94].mxu0 }
 0x276   : > { %v4966_v35 = vadd.f32 %v4965_v33, %v4964_v27  ;;  %v4967_v57 = vpop.f32.mrb[94].mxu1  ;;  %v4904_v38 = vpop.f32.mrb[95].mxu0 }
 0x277   : > { %v3559_v62 = vadd.f32 %v4902_v47, %v6500_v18  ;;  %v4905_v40 = vadd.f32 %v4904_v38, %v4903_v34  ;;  %v4968_v41 = vpop.f32.mrb[95].mxu1 }
 0x278   : > { %v4969_v8 = vadd.f32 %v4968_v41, %v4967_v57 }
 0x279   : > { %v6548_v43 = vadd.f32 %v4966_v35, %v3559_v62  ;;  %v3562_v29 = vadd.f32 %v4905_v40, %v6503_v53 }
 0x27b   : > { %v6551_v2 = vadd.f32 %v4969_v8, %v3562_v29  ;;  %v4986_v44 = vpop.f32.mrb[96].mxu0 }
 0x27c   : > { %v5050_v45 = vpop.f32.mrb[96].mxu1  ;;  %v4987_v9 = vpop.f32.mrb[97].mxu0 }
 0x27d   : > { %v4988_v3 = vadd.f32 %v4987_v9, %v4986_v44  ;;  %v5051_v50 = vpop.f32.mrb[97].mxu1  ;;  %v4989_v52 = vpop.f32.mrb[98].mxu0 }
 0x27e   : > { %v5052_v56 = vadd.f32 %v5051_v50, %v5050_v45  ;;  %v5053_v13 = vpop.f32.mrb[98].mxu1  ;;  %v4990_v59 = vpop.f32.mrb[99].mxu0 }
 0x27f   : > { %v3697_v18 = vadd.f32 %v4988_v3, %v6506_v36  ;;  %v4991_v60 = vadd.f32 %v4990_v59, %v4989_v52  ;;  %v5054_v61 = vpop.f32.mrb[99].mxu1 }
 0x280   : > { %v5055_v23 = vadd.f32 %v5054_v61, %v5053_v13 }
 0x281   : > { %v3794_v63 = vadd.f32 %v5052_v56, %v3697_v18  ;;  %v3700_v53 = vadd.f32 %v4991_v60, %v6509_v5 }
 0x283   : > { %v3797_v24 = vadd.f32 %v5055_v23, %v3700_v53  ;;  %v4992_v0 = vpop.f32.mrb[100].mxu0  ;;  %v3878_v1 = vmul.f32 %v3794_v63, %v3794_v63 }
 0x284   : > { %v5056_v31 = vpop.f32.mrb[100].mxu1  ;;  %v4993_v49 = vpop.f32.mrb[101].mxu0 }
 0x285   : > { %v3856_v6 = vadd.f32 %v3797_v24, %v3794_v63  ;;  %v3879_v10 = vmul.f32 %v3797_v24, %v3797_v24  ;;  %v4542_v12 = vpack.c.bf16 %v3797_v24, %v3794_v63  ;;  %v4994_v30 = vadd.f32 %v4993_v49, %v4992_v0  ;;  %v5057_v15 = vpop.f32.mrb[101].mxu1  ;;  %v4995_v16 = vpop.f32.mrb[102].mxu0 }
 0x286   : > { %v5058_v36 = vadd.f32 %v5057_v15, %v5056_v31  ;;  %v5059_v17 = vpop.f32.mrb[102].mxu1  ;;  %v4996_v39 = vpop.f32.mrb[103].mxu0 }
 0x287   : > { %v3894_v19 = vadd.f32 %v3879_v10, %v3878_v1  ;;  %4543 = vst [vmem:[%s6557_s28] sm:$0xff] %v4542_v12   ;;  %v3705_v5 = vadd.f32 %v4994_v30, %v6512_v58  ;;  %v4997_v42 = vadd.f32 %v4996_v39, %v4995_v16  ;;  %v5060_v20 = vpop.f32.mrb[103].mxu1 }
 0x288   : > { %v5061_v22 = vadd.f32 %v5060_v20, %v5059_v17 }
 0x289   : > { %v3802_v55 = vadd.f32 %v5058_v36, %v3705_v5  ;;  %v3708_v7 = vadd.f32 %v4997_v42, %v6515_v21 }
 0x28b   : > { %v3857_v26 = vadd.f32 %v3856_v6, %v3802_v55  ;;  %v3880_v27 = vmul.f32 %v3802_v55, %v3802_v55  ;;  %v3805_v51 = vadd.f32 %v5061_v22, %v3708_v7  ;;  %v4998_v47 = vpop.f32.mrb[104].mxu0 }
 0x28c   : > { %v5062_v33 = vpop.f32.mrb[104].mxu1  ;;  %v4999_v34 = vpop.f32.mrb[105].mxu0 }
 0x28d   : > { %v3895_v35 = vadd.f32 %v3894_v19, %v3880_v27  ;;  %v3858_v57 = vadd.f32 %v3857_v26, %v3805_v51  ;;  %v3881_v38 = vmul.f32 %v3805_v51, %v3805_v51  ;;  %v4547_v62 = vpack.c.bf16 %v3805_v51, %v3802_v55  ;;  %v5063_v40 = vpop.f32.mrb[105].mxu1  ;;  %v5001_v41 = vpop.f32.mrb[106].mxu0 }
 0x28e   : > { %v5000_v58 = vadd.f32 %v4999_v34, %v4998_v47  ;;  %v5064_v8 = vadd.f32 %v5063_v40, %v5062_v33  ;;  %v5065_v29 = vpop.f32.mrb[106].mxu1  ;;  %v5002_v44 = vpop.f32.mrb[107].mxu0 }
 0x28f   : > { %v3896_v45 = vadd.f32 %v3895_v35, %v3881_v38  ;;  %4579 = vst [vmem:[%s6557_s28 + $0x8] sm:$0xff] %v4547_v62   ;;  %v5003_v21 = vadd.f32 %v5002_v44, %v5001_v41  ;;  %v5066_v9 = vpop.f32.mrb[107].mxu1 }
 0x290   : > { %v3713_v3 = vadd.f32 %v5000_v58, %v6518_v14  ;;  %v5067_v50 = vadd.f32 %v5066_v9, %v5065_v29 }
 0x291   : > { %v3716_v52 = vadd.f32 %v5003_v21, %v6521_v37 }
 0x292   : > { %v3810_v56 = vadd.f32 %v5064_v8, %v3713_v3 }
 0x293   : > { %v3813_v13 = vadd.f32 %v5067_v50, %v3716_v52  ;;  %v5004_v59 = vpop.f32.mrb[108].mxu0 }
 0x294   : > { %v3859_v18 = vadd.f32 %v3858_v57, %v3810_v56  ;;  %v3882_v60 = vmul.f32 %v3810_v56, %v3810_v56  ;;  %v5068_v61 = vpop.f32.mrb[108].mxu1  ;;  %v5005_v23 = vpop.f32.mrb[109].mxu0 }
 0x295   : > { %v3883_v63 = vmul.f32 %v3813_v13, %v3813_v13  ;;  %v4552_v53 = vpack.c.bf16 %v3813_v13, %v3810_v56  ;;  %v5006_v24 = vadd.f32 %v5005_v23, %v5004_v59  ;;  %v5069_v0 = vpop.f32.mrb[109].mxu1  ;;  %v5007_v1 = vpop.f32.mrb[110].mxu0 }
 0x296   : > { %v3897_v31 = vadd.f32 %v3896_v45, %v3882_v60  ;;  %v3860_v49 = vadd.f32 %v3859_v18, %v3813_v13  ;;  %v5070_v6 = vadd.f32 %v5069_v0, %v5068_v61  ;;  %v5071_v14 = vpop.f32.mrb[110].mxu1  ;;  %v5008_v10 = vpop.f32.mrb[111].mxu0 }
 0x297   : > { %4580 = vst [vmem:[%s6557_s28 + $0x10] sm:$0xff] %v4552_v53   ;;  %v3721_v37 = vadd.f32 %v5006_v24, %v6524_v32  ;;  %v5009_v12 = vadd.f32 %v5008_v10, %v5007_v1  ;;  %v5072_v30 = vpop.f32.mrb[111].mxu1 }
 0x298   : > { %v3898_v15 = vadd.f32 %v3897_v31, %v3883_v63  ;;  %v5073_v16 = vadd.f32 %v5072_v30, %v5071_v14 }
 0x299   : > { %v3818_v36 = vadd.f32 %v5070_v6, %v3721_v37  ;;  %v3724_v17 = vadd.f32 %v5009_v12, %v6527_v54 }
 0x29b   : > { %v3861_v39 = vadd.f32 %v3860_v49, %v3818_v36  ;;  %v3884_v19 = vmul.f32 %v3818_v36, %v3818_v36  ;;  %v3821_v5 = vadd.f32 %v5073_v16, %v3724_v17  ;;  %v5010_v42 = vpop.f32.mrb[112].mxu0 }
 0x29c   : > { %v5074_v20 = vpop.f32.mrb[112].mxu1  ;;  %v5011_v22 = vpop.f32.mrb[113].mxu0 }
 0x29d   : > { %v3899_v55 = vadd.f32 %v3898_v15, %v3884_v19  ;;  %v3862_v7 = vadd.f32 %v3861_v39, %v3821_v5  ;;  %v3885_v26 = vmul.f32 %v3821_v5, %v3821_v5  ;;  %v4557_v27 = vpack.c.bf16 %v3821_v5, %v3818_v36  ;;  %v5075_v51 = vpop.f32.mrb[113].mxu1  ;;  %v5013_v32 = vpop.f32.mrb[114].mxu0 }
 0x29e   : > { %v5012_v47 = vadd.f32 %v5011_v22, %v5010_v42  ;;  %v5076_v33 = vadd.f32 %v5075_v51, %v5074_v20  ;;  %v5077_v34 = vpop.f32.mrb[114].mxu1  ;;  %v5014_v35 = vpop.f32.mrb[115].mxu0 }
 0x29f   : > { %v3900_v57 = vadd.f32 %v3899_v55, %v3885_v26  ;;  %4581 = vst [vmem:[%s6557_s28 + $0x18] sm:$0xff] %v4557_v27   ;;  %v5015_v54 = vadd.f32 %v5014_v35, %v5013_v32  ;;  %v5078_v38 = vpop.f32.mrb[115].mxu1 }
 0x2a0   : > { %v3729_v62 = vadd.f32 %v5012_v47, %v6530_v48  ;;  %v5079_v40 = vadd.f32 %v5078_v38, %v5077_v34 }
 0x2a1   : > { %v3732_v41 = vadd.f32 %v5015_v54, %v6533_v11 }
 0x2a2   : > { %v3826_v58 = vadd.f32 %v5076_v33, %v3729_v62 }
 0x2a3   : > { %v3829_v8 = vadd.f32 %v5079_v40, %v3732_v41  ;;  %v5016_v29 = vpop.f32.mrb[116].mxu0 }
 0x2a4   : > { %v3863_v44 = vadd.f32 %v3862_v7, %v3826_v58  ;;  %v3886_v45 = vmul.f32 %v3826_v58, %v3826_v58  ;;  %v5080_v21 = vpop.f32.mrb[116].mxu1  ;;  %v5017_v9 = vpop.f32.mrb[117].mxu0 }
 0x2a5   : > { %v3887_v3 = vmul.f32 %v3829_v8, %v3829_v8  ;;  %v4562_v50 = vpack.c.bf16 %v3829_v8, %v3826_v58  ;;  %v5018_v52 = vadd.f32 %v5017_v9, %v5016_v29  ;;  %v5081_v56 = vpop.f32.mrb[117].mxu1  ;;  %v5019_v13 = vpop.f32.mrb[118].mxu0 }
 0x2a6   : > { %v3901_v59 = vadd.f32 %v3900_v57, %v3886_v45  ;;  %v3864_v18 = vadd.f32 %v3863_v44, %v3829_v8  ;;  %v5082_v60 = vadd.f32 %v5081_v56, %v5080_v21  ;;  %v5083_v48 = vpop.f32.mrb[118].mxu1  ;;  %v5020_v61 = vpop.f32.mrb[119].mxu0 }
 0x2a7   : > { %4582 = vst [vmem:[%s6557_s28 + $0x20] sm:$0xff] %v4562_v50   ;;  %v3737_v11 = vadd.f32 %v5018_v52, %v6536_v4  ;;  %v5021_v23 = vadd.f32 %v5020_v61, %v5019_v13  ;;  %v5084_v63 = vpop.f32.mrb[119].mxu1 }
 0x2a8   : > { %v3902_v53 = vadd.f32 %v3901_v59, %v3887_v3  ;;  %v5085_v24 = vadd.f32 %v5084_v63, %v5083_v48 }
 0x2a9   : > { %v3834_v0 = vadd.f32 %v5082_v60, %v3737_v11  ;;  %v3740_v1 = vadd.f32 %v5021_v23, %v6539_v28 }
 0x2ab   : > { %v3865_v31 = vadd.f32 %v3864_v18, %v3834_v0  ;;  %v3888_v49 = vmul.f32 %v3834_v0, %v3834_v0  ;;  %v3837_v6 = vadd.f32 %v5085_v24, %v3740_v1  ;;  %v5022_v14 = vpop.f32.mrb[120].mxu0 }
 0x2ac   : > { %v5086_v10 = vpop.f32.mrb[120].mxu1  ;;  %v5023_v37 = vpop.f32.mrb[121].mxu0 }
 0x2ad   : > { %v3903_v12 = vadd.f32 %v3902_v53, %v3888_v49  ;;  %v3866_v30 = vadd.f32 %v3865_v31, %v3837_v6  ;;  %v3889_v15 = vmul.f32 %v3837_v6, %v3837_v6  ;;  %v4567_v16 = vpack.c.bf16 %v3837_v6, %v3834_v0  ;;  %v5087_v36 = vpop.f32.mrb[121].mxu1  ;;  %v5025_v4 = vpop.f32.mrb[122].mxu0  ;;  %v4031_v6 = vld [vmem:[%s6557_s28] sm:$0xf] (%p5361_p6) }
 0x2ae   : > { %v5024_v17 = vadd.f32 %v5023_v37, %v5022_v14  ;;  %v5088_v39 = vadd.f32 %v5087_v36, %v5086_v10  ;;  %v5089_v19 = vpop.f32.mrb[122].mxu1  ;;  %v5026_v5 = vpop.f32.mrb[123].mxu0  ;;  %v4033_v14 = vld [vmem:[%s6557_s28 + $0x4] sm:$0xf] (%p5361_p6)  ;;  %v4035_v10 = vld [vmem:[%s6557_s28 + $0x8] sm:$0xf] (%p5361_p6) }
 0x2af   : > { %v3904_v42 = vadd.f32 %v3903_v12, %v3889_v15  ;;  %4583 = vst [vmem:[%s6557_s28 + $0x28] sm:$0xff] %v4567_v16   ;;  %v5027_v28 = vadd.f32 %v5026_v5, %v5025_v4  ;;  %v5090_v20 = vpop.f32.mrb[123].mxu1  ;;  %v4037_v37 = vld [vmem:[%s6557_s28 + $0xc] sm:$0xf] (%p5361_p6)  ;;  %v4039_v12 = vld [vmem:[%s6557_s28 + $0x10] sm:$0xf] (%p5361_p6) }
 0x2b0   : > { %v3745_v22 = vadd.f32 %v5024_v17, %v6542_v25  ;;  %v5091_v55 = vadd.f32 %v5090_v20, %v5089_v19  ;;  %4032 = vst [vmem:[%s4015_s9] sm:$0xf] (%p5361_p6), %v4031_v6  ;;  %4034 = vst [vmem:[%s4015_s9 + $0x8] sm:$0xf] (%p5361_p6), %v4033_v14  ;;  %v4043_v15 = vld [vmem:[%s6557_s28 + $0x18] sm:$0xf] (%p5361_p6) }
 0x2b1   : > { %v3748_v7 = vadd.f32 %v5027_v28, %v6545_v46  ;;  %4036 = vst [vmem:[%s4015_s9 + $0x10] sm:$0xf] (%p5361_p6), %v4035_v10  ;;  %4038 = vst [vmem:[%s4015_s9 + $0x18] sm:$0xf] (%p5361_p6), %v4037_v37  ;;  %v4045_v16 = vld [vmem:[%s6557_s28 + $0x1c] sm:$0xf] (%p5361_p6) }
 0x2b2   : > { %v3842_v26 = vadd.f32 %v5088_v39, %v3745_v22  ;;  %4040 = vst [vmem:[%s4015_s9 + $0x20] sm:$0xf] (%p5361_p6), %v4039_v12  ;;  %4044 = vst [vmem:[%s4015_s9 + $0x30] sm:$0xf] (%p5361_p6), %v4043_v15  ;;  %v4047_v36 = vld [vmem:[%s6557_s28 + $0x20] sm:$0xf] (%p5361_p6) }
 0x2b3   : > { %v3845_v27 = vadd.f32 %v5091_v55, %v3748_v7  ;;  %v5028_v51 = vpop.f32.mrb[124].mxu0  ;;  %4046 = vst [vmem:[%s4015_s9 + $0x38] sm:$0xf] (%p5361_p6), %v4045_v16  ;;  %v4049_v4 = vld [vmem:[%s6557_s28 + $0x24] sm:$0xf] (%p5361_p6) }
 0x2b4   : > { %v3867_v32 = vadd.f32 %v3866_v30, %v3842_v26  ;;  %v3890_v47 = vmul.f32 %v3842_v26, %v3842_v26  ;;  %v5092_v33 = vpop.f32.mrb[124].mxu1  ;;  %v5029_v34 = vpop.f32.mrb[125].mxu0  ;;  %v4041_v30 = vld [vmem:[%s6557_s28 + $0x14] sm:$0xf] (%p5361_p6)  ;;  %4048 = vst [vmem:[%s4015_s9 + $0x40] sm:$0xf] (%p5361_p6), %v4047_v36 }
 0x2b5   : > { %v3891_v35 = vmul.f32 %v3845_v27, %v3845_v27  ;;  %v4572_v57 = vpack.c.bf16 %v3845_v27, %v3842_v26  ;;  %v5030_v54 = vadd.f32 %v5029_v34, %v5028_v51  ;;  %v5093_v38 = vpop.f32.mrb[125].mxu1  ;;  %v5031_v62 = vpop.f32.mrb[126].mxu0  ;;  %4042 = vst [vmem:[%s4015_s9 + $0x28] sm:$0xf] (%p5361_p6), %v4041_v30  ;;  %4050 = vst [vmem:[%s4015_s9 + $0x48] sm:$0xf] (%p5361_p6), %v4049_v4 }
 0x2b6   : > { %v3905_v40 = vadd.f32 %v3904_v42, %v3890_v47  ;;  %v3868_v41 = vadd.f32 %v3867_v32, %v3845_v27  ;;  %v5094_v25 = vadd.f32 %v5093_v38, %v5092_v33  ;;  %v5095_v58 = vpop.f32.mrb[126].mxu1  ;;  %v5032_v8 = vpop.f32.mrb[127].mxu0  ;;  %v4051_v17 = vld [vmem:[%s6557_s28 + $0x28] sm:$0xf] (%p5361_p6)  ;;  %v4053_v39 = vld [vmem:[%s6557_s28 + $0x2c] sm:$0xf] (%p5361_p6) }
 0x2b7   : > { %4584 = vst [vmem:[%s6557_s28 + $0x30] sm:$0xff] %v4572_v57   ;;  %v3753_v46 = vadd.f32 %v5030_v54, %v6548_v43  ;;  %v5033_v29 = vadd.f32 %v5032_v8, %v5031_v62  ;;  %v5096_v44 = vpop.f32.mrb[127].mxu1  ;;  %4052 = vst [vmem:[%s4015_s9 + $0x50] sm:$0xf] (%p5361_p6), %v4051_v17 }
 0x2b8   : > { %v3906_v45 = vadd.f32 %v3905_v40, %v3891_v35  ;;  %v5097_v21 = vadd.f32 %v5096_v44, %v5095_v58  ;;  %4054 = vst [vmem:[%s4015_s9 + $0x58] sm:$0xf] (%p5361_p6), %v4053_v39 }
 0x2b9   : > { %v3850_v9 = vadd.f32 %v5094_v25, %v3753_v46  ;;  %v3756_v3 = vadd.f32 %v5033_v29, %v6551_v2 }
 0x2bb   : > { %v3869_v50 = vadd.f32 %v3868_v41, %v3850_v9  ;;  %v3892_v52 = vmul.f32 %v3850_v9, %v3850_v9  ;;  %v3853_v56 = vadd.f32 %v5097_v21, %v3756_v3 }
 0x2bd   : > { %v3907_v13 = vadd.f32 %v3906_v45, %v3892_v52  ;;  %v3870_v59 = vadd.f32 %v3869_v50, %v3853_v56  ;;  %v3893_v18 = vmul.f32 %v3853_v56, %v3853_v56  ;;  %v4577_v60 = vpack.c.bf16 %v3853_v56, %v3850_v9 }
 0x2be   : > { %v4055_v19 = vld [vmem:[%s6557_s28 + $0x30] sm:$0xf] (%p5361_p6)  ;;  %v4057_v5 = vld [vmem:[%s6557_s28 + $0x34] sm:$0xf] (%p5361_p6) }
 0x2bf   : > { %v3871_v48 = vrot.slane %v3870_v59, 4  ;;  %v3908_v61 = vadd.f32 %v3907_v13, %v3893_v18  ;;  %4585 = vst [vmem:[%s6557_s28 + $0x38] sm:$0xff] %v4577_v60   ;;  %4056 = vst [vmem:[%s4015_s9 + $0x60] sm:$0xf] (%p5361_p6), %v4055_v19 }
 0x2c0   : > { %4058 = vst [vmem:[%s4015_s9 + $0x68] sm:$0xf] (%p5361_p6), %v4057_v5 }
 0x2c1   : > { %v3872_v43 = vadd.f32 %v3871_v48, %v3870_v59  ;;  %v3909_v11 = vrot.slane %v3908_v61, 4 }
 0x2c3   : > { %v3873_v23 = vrot.slane %v3872_v43, 2  ;;  %v3910_v63 = vadd.f32 %v3909_v11, %v3908_v61 }
 0x2c5   : > { %v3874_v53 = vadd.f32 %v3873_v23, %v3872_v43  ;;  %v3911_v24 = vrot.slane %v3910_v63, 2 }
 0x2c6   : > { %v4059_v42 = vld [vmem:[%s6557_s28 + $0x38] sm:$0xf] (%p5361_p6)  ;;  %v4061_v28 = vld [vmem:[%s6557_s28 + $0x3c] sm:$0xf] (%p5361_p6) }
 0x2c7   : > { %v3875_v2 = vrot.slane %v3874_v53, 1  ;;  %v3912_v0 = vadd.f32 %v3911_v24, %v3910_v63  ;;  %4010 = sbr.rel (!%p5361_p6) target bundleno = 718 (0x2ce), region = 73  ;;  %4060 = vst [vmem:[%s4015_s9 + $0x70] sm:$0xf] (%p5361_p6), %v4059_v42  ;;  %4062 = vst [vmem:[%s4015_s9 + $0x78] sm:$0xf] (%p5361_p6), %v4061_v28 }
 0x2c9   : > { %v3876_v1 = vadd.f32 %v3875_v2, %v3874_v53  ;;  %v3913_v31 = vrot.slane %v3912_v0, 1 }
 0x2cb   : > { %3877 = vst [vmem:[%s1286_s5] sm:$0x1] %v3876_v1  ;;  %v3914_v49 = vadd.f32 %v3913_v31, %v3912_v0 }
 0x2cd   : > { %3915 = vst [vmem:[%s1286_s5 + $0x1] sm:$0x1] %v3914_v49 }
 0x2ce PF: > { %s14_s16 = sadd.s32 1, %s5304_s16   ;;  %s6628_s12 = smov %s5292_s13 }
 0x2cf   : > { %p11_p12 = scmp.ge.s32.totalorder %s14_s16, 4   ;;  %s6629_s13 = smov %s5366_s22 }
 0x2d0   : > { %s6630_s14 = smov %s5300_s15  ;;  %s6631_s15 = smov %s6633_s17 }
 0x2d1   :  { %13 = sbr.rel (!%p11_p12) target bundleno = 3 (0x3), region = 160 }

// kernel: discriminator_forward.9
= control target key start
LH: loop header
LB: loop body
LE: loop exit
PB: predicated region body
PF: predicated region fallthrough
CT: control target
= control target key end

     0   :  { %s10612_s12 = smov 0   ;;  %s10614_s13 = smov 0   ;;  %s12570_s0 = inlined_call_operand.vmem [shape: bf16[32,4096], index: 0, kind: input, shape index: {}]   ;;  %s12571_s1 = inlined_call_operand.vmem [shape: bf16[4096,512], index: 1, kind: input, shape index: {}]   ;;  %s12572_s2 = inlined_call_operand.vmem [shape: bf16[32,512], index: 2, kind: output, shape index: {0}]   ;;  %s12573_s3 = inlined_call_operand.vmem [shape: f32[1,8,512], index: 3, kind: output, shape index: {1}]  }
   0x1   :  { %s10616_s14 = smov 0   ;;  %s10618_s15 = smov 0  }
   0x2   :  { %s10620_s16 = smov 0  }
   0x3 LB: > { %s23_s17 = sadd.s32 1, %s10585_s15  ;;  %s9017_s18 = sadd.s32 4294967295, %s10589_s16   ;;  %s10589_s16 = sphi %s10620_s16, %s14_s16   ;;  %s10585_s15 = sphi %s10618_s15, %s12578_s15   ;;  %s10581_s14 = sphi %s10616_s14, %s12577_s14   ;;  %s10577_s13 = sphi %s10614_s13, %s12576_s13   ;;  %s10573_s12 = sphi %s10612_s12, %s12575_s12  }
   0x4   : > { %p24_p0 = scmp.ge.s32.totalorder %s23_s17, 2  ;;  %p66_p1 = scmp.ne.s32.totalorder %s10577_s13, %s10573_s12 }
   0x5   : > { %p67_p2 = scmp.eq.s32.totalorder %s10589_s16, 0  ;;  %p98_p4 = scmp.eq.s32.totalorder %s9017_s18, 1 }
   0x6   : > { %s12580_s17 = smov (%p24_p0, %s23_s17), 0  ;;  %s59_s20 = sadd.s32 1, %s10577_s13 }
   0x7   : > { %p68_p3 = por %p67_p2, %p66_p1  ;;  %s56_s19 = ssub.s32 %s10585_s15, %s12580_s17 }
   0x8   : > { %p57_p5 = scmp.eq.s32.totalorder %s56_s19, 0  ;;  %p10647_p6 = por %p98_p4, %p66_p1 }
   0x9   : > { %p9021_p7 = scmp.ge.s32.totalorder %s10589_s16, 2 }
   0xa   : > { %s10652_s22 = scalar_select %p57_p5, %s10577_s13, %s59_s20  }
   0xb   : > { %158 = sbr.rel (%p9021_p7) target bundleno = 278 (0x116), region = 20 }
  0x12   : > { %161 = sbr.rel (!%p68_p3) target bundleno = 278 (0x116), region = 24  ;;  %s163_s23 = sand.u32 (%p68_p3), 1, %s10577_s13  }
  0x13   : > { %s9616_s24 = sshll.u32 (%p68_p3), %s10585_s15, 3  ;;  %s9022_s25 = sshll.u32 (%p68_p3), %s163_s23, 12 }
  0x14   : > { %s10660_s28 = scalar_lea.vmem (%p68_p3), %s12571_s1, %s9616_s24  ;;  %s10665_s29 = scalar_lea.vmem (%p68_p3), [#allocation2], %s9022_s25 }
  0x15   : > { %v1221_v0 = vld [vmem:[%s10660_s28] sm:$0xff] (%p68_p3)  ;;  %v1223_v1 = vld [vmem:[%s10660_s28 + $0x10] sm:$0xff] (%p68_p3) }
  0x16   : > { %v1225_v2 = vld [vmem:[%s10660_s28 + $0x20] sm:$0xff] (%p68_p3)  ;;  %1222 = vst [vmem:[%s10665_s29] sm:$0xff] (%p68_p3), %v1221_v0  ;;  %1224 = vst [vmem:[%s10665_s29 + $0x8] sm:$0xff] (%p68_p3), %v1223_v1  ;;  %v1227_v3 = vld [vmem:[%s10660_s28 + $0x30] sm:$0xff] (%p68_p3) }
  0x17   : > { %1226 = vst [vmem:[%s10665_s29 + $0x10] sm:$0xff] (%p68_p3), %v1225_v2  ;;  %v1229_v4 = vld [vmem:[%s10660_s28 + $0x40] sm:$0xff] (%p68_p3)  ;;  %v1231_v5 = vld [vmem:[%s10660_s28 + $0x50] sm:$0xff] (%p68_p3)  ;;  %1228 = vst [vmem:[%s10665_s29 + $0x18] sm:$0xff] (%p68_p3), %v1227_v3 }
  0x18   : > { %1230 = vst [vmem:[%s10665_s29 + $0x20] sm:$0xff] (%p68_p3), %v1229_v4  ;;  %1232 = vst [vmem:[%s10665_s29 + $0x28] sm:$0xff] (%p68_p3), %v1231_v5  ;;  %v1233_v6 = vld [vmem:[%s10660_s28 + $0x60] sm:$0xff] (%p68_p3)  ;;  %v1235_v7 = vld [vmem:[%s10660_s28 + $0x70] sm:$0xff] (%p68_p3) }
  0x19   : > { %v1237_v8 = vld [vmem:[%s10660_s28 + $0x80] sm:$0xff]  ;;  %1234 = vst [vmem:[%s10665_s29 + $0x30] sm:$0xff] %v1233_v6  ;;  %1236 = vst [vmem:[%s10665_s29 + $0x38] sm:$0xff] %v1235_v7  ;;  %v1239_v9 = vld [vmem:[%s10660_s28 + $0x90] sm:$0xff] }
  0x1a   : > { %1238 = vst [vmem:[%s10665_s29 + $0x40] sm:$0xff] %v1237_v8  ;;  %v1241_v10 = vld [vmem:[%s10660_s28 + $0xa0] sm:$0xff]  ;;  %v1243_v11 = vld [vmem:[%s10660_s28 + $0xb0] sm:$0xff]  ;;  %1240 = vst [vmem:[%s10665_s29 + $0x48] sm:$0xff] %v1239_v9 }
  0x1b   : > { %1242 = vst [vmem:[%s10665_s29 + $0x50] sm:$0xff] %v1241_v10  ;;  %1244 = vst [vmem:[%s10665_s29 + $0x58] sm:$0xff] %v1243_v11  ;;  %v1245_v12 = vld [vmem:[%s10660_s28 + $0xc0] sm:$0xff]  ;;  %v1247_v13 = vld [vmem:[%s10660_s28 + $0xd0] sm:$0xff] }
  0x1c   : > { %v1249_v14 = vld [vmem:[%s10660_s28 + $0xe0] sm:$0xff]  ;;  %1246 = vst [vmem:[%s10665_s29 + $0x60] sm:$0xff] %v1245_v12  ;;  %1248 = vst [vmem:[%s10665_s29 + $0x68] sm:$0xff] %v1247_v13  ;;  %v1251_v15 = vld [vmem:[%s10660_s28 + $0xf0] sm:$0xff] }
  0x1d   : > { %1250 = vst [vmem:[%s10665_s29 + $0x70] sm:$0xff] %v1249_v14  ;;  %v1253_v16 = vld [vmem:[%s10660_s28 + $0x100] sm:$0xff]  ;;  %v1255_v17 = vld [vmem:[%s10660_s28 + $0x110] sm:$0xff]  ;;  %1252 = vst [vmem:[%s10665_s29 + $0x78] sm:$0xff] %v1251_v15 }
  0x1e   : > { %1254 = vst [vmem:[%s10665_s29 + $0x80] sm:$0xff] %v1253_v16  ;;  %1256 = vst [vmem:[%s10665_s29 + $0x88] sm:$0xff] %v1255_v17  ;;  %v1257_v18 = vld [vmem:[%s10660_s28 + $0x120] sm:$0xff]  ;;  %v1259_v19 = vld [vmem:[%s10660_s28 + $0x130] sm:$0xff] }
  0x1f   : > { %v1261_v20 = vld [vmem:[%s10660_s28 + $0x140] sm:$0xff]  ;;  %1258 = vst [vmem:[%s10665_s29 + $0x90] sm:$0xff] %v1257_v18  ;;  %1260 = vst [vmem:[%s10665_s29 + $0x98] sm:$0xff] %v1259_v19  ;;  %v1263_v21 = vld [vmem:[%s10660_s28 + $0x150] sm:$0xff] }
  0x20   : > { %1262 = vst [vmem:[%s10665_s29 + $0xa0] sm:$0xff] %v1261_v20  ;;  %v1265_v22 = vld [vmem:[%s10660_s28 + $0x160] sm:$0xff]  ;;  %v1267_v23 = vld [vmem:[%s10660_s28 + $0x170] sm:$0xff]  ;;  %1264 = vst [vmem:[%s10665_s29 + $0xa8] sm:$0xff] %v1263_v21 }
  0x21   : > { %1266 = vst [vmem:[%s10665_s29 + $0xb0] sm:$0xff] %v1265_v22  ;;  %1268 = vst [vmem:[%s10665_s29 + $0xb8] sm:$0xff] %v1267_v23  ;;  %v1269_v24 = vld [vmem:[%s10660_s28 + $0x180] sm:$0xff]  ;;  %v1271_v25 = vld [vmem:[%s10660_s28 + $0x190] sm:$0xff] }
  0x22   : > { %v1273_v26 = vld [vmem:[%s10660_s28 + $0x1a0] sm:$0xff]  ;;  %1270 = vst [vmem:[%s10665_s29 + $0xc0] sm:$0xff] %v1269_v24  ;;  %1272 = vst [vmem:[%s10665_s29 + $0xc8] sm:$0xff] %v1271_v25  ;;  %v1275_v27 = vld [vmem:[%s10660_s28 + $0x1b0] sm:$0xff] }
  0x23   : > { %1274 = vst [vmem:[%s10665_s29 + $0xd0] sm:$0xff] %v1273_v26  ;;  %v1277_v28 = vld [vmem:[%s10660_s28 + $0x1c0] sm:$0xff]  ;;  %v1279_v29 = vld [vmem:[%s10660_s28 + $0x1d0] sm:$0xff]  ;;  %1276 = vst [vmem:[%s10665_s29 + $0xd8] sm:$0xff] %v1275_v27 }
  0x24   : > { %1278 = vst [vmem:[%s10665_s29 + $0xe0] sm:$0xff] %v1277_v28  ;;  %1280 = vst [vmem:[%s10665_s29 + $0xe8] sm:$0xff] %v1279_v29  ;;  %v1281_v30 = vld [vmem:[%s10660_s28 + $0x1e0] sm:$0xff]  ;;  %v1283_v31 = vld [vmem:[%s10660_s28 + $0x1f0] sm:$0xff] }
  0x25   : > { %v1285_v32 = vld [vmem:[%s10660_s28 + $0x200] sm:$0xff]  ;;  %1282 = vst [vmem:[%s10665_s29 + $0xf0] sm:$0xff] %v1281_v30  ;;  %1284 = vst [vmem:[%s10665_s29 + $0xf8] sm:$0xff] %v1283_v31  ;;  %v1287_v33 = vld [vmem:[%s10660_s28 + $0x210] sm:$0xff] }
  0x26   : > { %1286 = vst [vmem:[%s10665_s29 + $0x100] sm:$0xff] %v1285_v32  ;;  %v1289_v34 = vld [vmem:[%s10660_s28 + $0x220] sm:$0xff]  ;;  %v1291_v35 = vld [vmem:[%s10660_s28 + $0x230] sm:$0xff]  ;;  %1288 = vst [vmem:[%s10665_s29 + $0x108] sm:$0xff] %v1287_v33 }
  0x27   : > { %1290 = vst [vmem:[%s10665_s29 + $0x110] sm:$0xff] %v1289_v34  ;;  %1292 = vst [vmem:[%s10665_s29 + $0x118] sm:$0xff] %v1291_v35  ;;  %v1293_v36 = vld [vmem:[%s10660_s28 + $0x240] sm:$0xff]  ;;  %v1295_v37 = vld [vmem:[%s10660_s28 + $0x250] sm:$0xff] }
  0x28   : > { %v1297_v38 = vld [vmem:[%s10660_s28 + $0x260] sm:$0xff]  ;;  %1294 = vst [vmem:[%s10665_s29 + $0x120] sm:$0xff] %v1293_v36  ;;  %1296 = vst [vmem:[%s10665_s29 + $0x128] sm:$0xff] %v1295_v37  ;;  %v1299_v39 = vld [vmem:[%s10660_s28 + $0x270] sm:$0xff] }
  0x29   : > { %1298 = vst [vmem:[%s10665_s29 + $0x130] sm:$0xff] %v1297_v38  ;;  %v1301_v40 = vld [vmem:[%s10660_s28 + $0x280] sm:$0xff]  ;;  %v1303_v41 = vld [vmem:[%s10660_s28 + $0x290] sm:$0xff]  ;;  %1300 = vst [vmem:[%s10665_s29 + $0x138] sm:$0xff] %v1299_v39 }
  0x2a   : > { %1302 = vst [vmem:[%s10665_s29 + $0x140] sm:$0xff] %v1301_v40  ;;  %1304 = vst [vmem:[%s10665_s29 + $0x148] sm:$0xff] %v1303_v41  ;;  %v1305_v42 = vld [vmem:[%s10660_s28 + $0x2a0] sm:$0xff]  ;;  %v1307_v43 = vld [vmem:[%s10660_s28 + $0x2b0] sm:$0xff] }
  0x2b   : > { %v1309_v44 = vld [vmem:[%s10660_s28 + $0x2c0] sm:$0xff]  ;;  %1306 = vst [vmem:[%s10665_s29 + $0x150] sm:$0xff] %v1305_v42  ;;  %1308 = vst [vmem:[%s10665_s29 + $0x158] sm:$0xff] %v1307_v43  ;;  %v1311_v45 = vld [vmem:[%s10660_s28 + $0x2d0] sm:$0xff] }
  0x2c   : > { %1310 = vst [vmem:[%s10665_s29 + $0x160] sm:$0xff] %v1309_v44  ;;  %v1313_v46 = vld [vmem:[%s10660_s28 + $0x2e0] sm:$0xff]  ;;  %v1315_v47 = vld [vmem:[%s10660_s28 + $0x2f0] sm:$0xff]  ;;  %1312 = vst [vmem:[%s10665_s29 + $0x168] sm:$0xff] %v1311_v45 }
  0x2d   : > { %1314 = vst [vmem:[%s10665_s29 + $0x170] sm:$0xff] %v1313_v46  ;;  %1316 = vst [vmem:[%s10665_s29 + $0x178] sm:$0xff] %v1315_v47  ;;  %v1317_v48 = vld [vmem:[%s10660_s28 + $0x300] sm:$0xff]  ;;  %v1319_v49 = vld [vmem:[%s10660_s28 + $0x310] sm:$0xff] }
  0x2e   : > { %v1321_v50 = vld [vmem:[%s10660_s28 + $0x320] sm:$0xff]  ;;  %1318 = vst [vmem:[%s10665_s29 + $0x180] sm:$0xff] %v1317_v48  ;;  %1320 = vst [vmem:[%s10665_s29 + $0x188] sm:$0xff] %v1319_v49  ;;  %v1323_v51 = vld [vmem:[%s10660_s28 + $0x330] sm:$0xff] }
  0x2f   : > { %1322 = vst [vmem:[%s10665_s29 + $0x190] sm:$0xff] %v1321_v50  ;;  %v1325_v52 = vld [vmem:[%s10660_s28 + $0x340] sm:$0xff]  ;;  %v1327_v53 = vld [vmem:[%s10660_s28 + $0x350] sm:$0xff]  ;;  %1324 = vst [vmem:[%s10665_s29 + $0x198] sm:$0xff] %v1323_v51 }
  0x30   : > { %1326 = vst [vmem:[%s10665_s29 + $0x1a0] sm:$0xff] %v1325_v52  ;;  %1328 = vst [vmem:[%s10665_s29 + $0x1a8] sm:$0xff] %v1327_v53  ;;  %v1329_v54 = vld [vmem:[%s10660_s28 + $0x360] sm:$0xff]  ;;  %v1331_v55 = vld [vmem:[%s10660_s28 + $0x370] sm:$0xff] }
  0x31   : > { %v1333_v56 = vld [vmem:[%s10660_s28 + $0x380] sm:$0xff]  ;;  %1330 = vst [vmem:[%s10665_s29 + $0x1b0] sm:$0xff] %v1329_v54  ;;  %1332 = vst [vmem:[%s10665_s29 + $0x1b8] sm:$0xff] %v1331_v55  ;;  %v1335_v57 = vld [vmem:[%s10660_s28 + $0x390] sm:$0xff] }
  0x32   : > { %1334 = vst [vmem:[%s10665_s29 + $0x1c0] sm:$0xff] %v1333_v56  ;;  %v1337_v58 = vld [vmem:[%s10660_s28 + $0x3a0] sm:$0xff]  ;;  %v1339_v59 = vld [vmem:[%s10660_s28 + $0x3b0] sm:$0xff]  ;;  %1336 = vst [vmem:[%s10665_s29 + $0x1c8] sm:$0xff] %v1335_v57 }
  0x33   : > { %1338 = vst [vmem:[%s10665_s29 + $0x1d0] sm:$0xff] %v1337_v58  ;;  %1340 = vst [vmem:[%s10665_s29 + $0x1d8] sm:$0xff] %v1339_v59  ;;  %v1341_v60 = vld [vmem:[%s10660_s28 + $0x3c0] sm:$0xff]  ;;  %v1343_v61 = vld [vmem:[%s10660_s28 + $0x3d0] sm:$0xff] }
  0x34   : > { %v1345_v62 = vld [vmem:[%s10660_s28 + $0x3e0] sm:$0xff]  ;;  %1342 = vst [vmem:[%s10665_s29 + $0x1e0] sm:$0xff] %v1341_v60  ;;  %1344 = vst [vmem:[%s10665_s29 + $0x1e8] sm:$0xff] %v1343_v61  ;;  %v1347_v63 = vld [vmem:[%s10660_s28 + $0x3f0] sm:$0xff] }
  0x35   : > { %1346 = vst [vmem:[%s10665_s29 + $0x1f0] sm:$0xff] %v1345_v62  ;;  %v1349_v0 = vld [vmem:[%s10660_s28 + $0x400] sm:$0xff]  ;;  %v1351_v1 = vld [vmem:[%s10660_s28 + $0x410] sm:$0xff]  ;;  %1348 = vst [vmem:[%s10665_s29 + $0x1f8] sm:$0xff] %v1347_v63 }
  0x36   : > { %1350 = vst [vmem:[%s10665_s29 + $0x200] sm:$0xff] %v1349_v0  ;;  %1352 = vst [vmem:[%s10665_s29 + $0x208] sm:$0xff] %v1351_v1  ;;  %v1353_v2 = vld [vmem:[%s10660_s28 + $0x420] sm:$0xff]  ;;  %v1355_v3 = vld [vmem:[%s10660_s28 + $0x430] sm:$0xff] }
  0x37   : > { %v1357_v4 = vld [vmem:[%s10660_s28 + $0x440] sm:$0xff]  ;;  %1354 = vst [vmem:[%s10665_s29 + $0x210] sm:$0xff] %v1353_v2  ;;  %1356 = vst [vmem:[%s10665_s29 + $0x218] sm:$0xff] %v1355_v3  ;;  %v1359_v5 = vld [vmem:[%s10660_s28 + $0x450] sm:$0xff] }
  0x38   : > { %1358 = vst [vmem:[%s10665_s29 + $0x220] sm:$0xff] %v1357_v4  ;;  %v1361_v6 = vld [vmem:[%s10660_s28 + $0x460] sm:$0xff]  ;;  %v1363_v7 = vld [vmem:[%s10660_s28 + $0x470] sm:$0xff]  ;;  %1360 = vst [vmem:[%s10665_s29 + $0x228] sm:$0xff] %v1359_v5 }
  0x39   : > { %1362 = vst [vmem:[%s10665_s29 + $0x230] sm:$0xff] %v1361_v6  ;;  %1364 = vst [vmem:[%s10665_s29 + $0x238] sm:$0xff] %v1363_v7  ;;  %v1365_v8 = vld [vmem:[%s10660_s28 + $0x480] sm:$0xff]  ;;  %v1367_v9 = vld [vmem:[%s10660_s28 + $0x490] sm:$0xff] }
  0x3a   : > { %v1369_v10 = vld [vmem:[%s10660_s28 + $0x4a0] sm:$0xff]  ;;  %1366 = vst [vmem:[%s10665_s29 + $0x240] sm:$0xff] %v1365_v8  ;;  %1368 = vst [vmem:[%s10665_s29 + $0x248] sm:$0xff] %v1367_v9  ;;  %v1371_v11 = vld [vmem:[%s10660_s28 + $0x4b0] sm:$0xff] }
  0x3b   : > { %1370 = vst [vmem:[%s10665_s29 + $0x250] sm:$0xff] %v1369_v10  ;;  %v1373_v12 = vld [vmem:[%s10660_s28 + $0x4c0] sm:$0xff]  ;;  %v1375_v13 = vld [vmem:[%s10660_s28 + $0x4d0] sm:$0xff]  ;;  %1372 = vst [vmem:[%s10665_s29 + $0x258] sm:$0xff] %v1371_v11 }
  0x3c   : > { %1374 = vst [vmem:[%s10665_s29 + $0x260] sm:$0xff] %v1373_v12  ;;  %1376 = vst [vmem:[%s10665_s29 + $0x268] sm:$0xff] %v1375_v13  ;;  %v1377_v14 = vld [vmem:[%s10660_s28 + $0x4e0] sm:$0xff]  ;;  %v1379_v15 = vld [vmem:[%s10660_s28 + $0x4f0] sm:$0xff] }
  0x3d   : > { %v1381_v16 = vld [vmem:[%s10660_s28 + $0x500] sm:$0xff]  ;;  %1378 = vst [vmem:[%s10665_s29 + $0x270] sm:$0xff] %v1377_v14  ;;  %1380 = vst [vmem:[%s10665_s29 + $0x278] sm:$0xff] %v1379_v15  ;;  %v1383_v17 = vld [vmem:[%s10660_s28 + $0x510] sm:$0xff] }
  0x3e   : > { %1382 = vst [vmem:[%s10665_s29 + $0x280] sm:$0xff] %v1381_v16  ;;  %v1385_v18 = vld [vmem:[%s10660_s28 + $0x520] sm:$0xff]  ;;  %v1387_v19 = vld [vmem:[%s10660_s28 + $0x530] sm:$0xff]  ;;  %1384 = vst [vmem:[%s10665_s29 + $0x288] sm:$0xff] %v1383_v17 }
  0x3f   : > { %1386 = vst [vmem:[%s10665_s29 + $0x290] sm:$0xff] %v1385_v18  ;;  %1388 = vst [vmem:[%s10665_s29 + $0x298] sm:$0xff] %v1387_v19  ;;  %v1389_v20 = vld [vmem:[%s10660_s28 + $0x540] sm:$0xff]  ;;  %v1391_v21 = vld [vmem:[%s10660_s28 + $0x550] sm:$0xff] }
  0x40   : > { %v1393_v22 = vld [vmem:[%s10660_s28 + $0x560] sm:$0xff]  ;;  %1390 = vst [vmem:[%s10665_s29 + $0x2a0] sm:$0xff] %v1389_v20  ;;  %1392 = vst [vmem:[%s10665_s29 + $0x2a8] sm:$0xff] %v1391_v21  ;;  %v1395_v23 = vld [vmem:[%s10660_s28 + $0x570] sm:$0xff] }
  0x41   : > { %1394 = vst [vmem:[%s10665_s29 + $0x2b0] sm:$0xff] %v1393_v22  ;;  %v1397_v24 = vld [vmem:[%s10660_s28 + $0x580] sm:$0xff]  ;;  %v1399_v25 = vld [vmem:[%s10660_s28 + $0x590] sm:$0xff]  ;;  %1396 = vst [vmem:[%s10665_s29 + $0x2b8] sm:$0xff] %v1395_v23 }
  0x42   : > { %1398 = vst [vmem:[%s10665_s29 + $0x2c0] sm:$0xff] %v1397_v24  ;;  %1400 = vst [vmem:[%s10665_s29 + $0x2c8] sm:$0xff] %v1399_v25  ;;  %v1401_v26 = vld [vmem:[%s10660_s28 + $0x5a0] sm:$0xff]  ;;  %v1403_v27 = vld [vmem:[%s10660_s28 + $0x5b0] sm:$0xff] }
  0x43   : > { %v1405_v28 = vld [vmem:[%s10660_s28 + $0x5c0] sm:$0xff]  ;;  %1402 = vst [vmem:[%s10665_s29 + $0x2d0] sm:$0xff] %v1401_v26  ;;  %1404 = vst [vmem:[%s10665_s29 + $0x2d8] sm:$0xff] %v1403_v27  ;;  %v1407_v29 = vld [vmem:[%s10660_s28 + $0x5d0] sm:$0xff] }
  0x44   : > { %1406 = vst [vmem:[%s10665_s29 + $0x2e0] sm:$0xff] %v1405_v28  ;;  %v1409_v30 = vld [vmem:[%s10660_s28 + $0x5e0] sm:$0xff]  ;;  %v1411_v31 = vld [vmem:[%s10660_s28 + $0x5f0] sm:$0xff]  ;;  %1408 = vst [vmem:[%s10665_s29 + $0x2e8] sm:$0xff] %v1407_v29 }
  0x45   : > { %1410 = vst [vmem:[%s10665_s29 + $0x2f0] sm:$0xff] %v1409_v30  ;;  %1412 = vst [vmem:[%s10665_s29 + $0x2f8] sm:$0xff] %v1411_v31  ;;  %v1413_v32 = vld [vmem:[%s10660_s28 + $0x600] sm:$0xff]  ;;  %v1415_v33 = vld [vmem:[%s10660_s28 + $0x610] sm:$0xff] }
  0x46   : > { %v1417_v34 = vld [vmem:[%s10660_s28 + $0x620] sm:$0xff]  ;;  %1414 = vst [vmem:[%s10665_s29 + $0x300] sm:$0xff] %v1413_v32  ;;  %1416 = vst [vmem:[%s10665_s29 + $0x308] sm:$0xff] %v1415_v33  ;;  %v1419_v35 = vld [vmem:[%s10660_s28 + $0x630] sm:$0xff] }
  0x47   : > { %1418 = vst [vmem:[%s10665_s29 + $0x310] sm:$0xff] %v1417_v34  ;;  %v1421_v36 = vld [vmem:[%s10660_s28 + $0x640] sm:$0xff]  ;;  %v1423_v37 = vld [vmem:[%s10660_s28 + $0x650] sm:$0xff]  ;;  %1420 = vst [vmem:[%s10665_s29 + $0x318] sm:$0xff] %v1419_v35 }
  0x48   : > { %1422 = vst [vmem:[%s10665_s29 + $0x320] sm:$0xff] %v1421_v36  ;;  %1424 = vst [vmem:[%s10665_s29 + $0x328] sm:$0xff] %v1423_v37  ;;  %v1425_v38 = vld [vmem:[%s10660_s28 + $0x660] sm:$0xff]  ;;  %v1427_v39 = vld [vmem:[%s10660_s28 + $0x670] sm:$0xff] }
  0x49   : > { %v1429_v40 = vld [vmem:[%s10660_s28 + $0x680] sm:$0xff]  ;;  %1426 = vst [vmem:[%s10665_s29 + $0x330] sm:$0xff] %v1425_v38  ;;  %1428 = vst [vmem:[%s10665_s29 + $0x338] sm:$0xff] %v1427_v39  ;;  %v1431_v41 = vld [vmem:[%s10660_s28 + $0x690] sm:$0xff] }
  0x4a   : > { %1430 = vst [vmem:[%s10665_s29 + $0x340] sm:$0xff] %v1429_v40  ;;  %v1433_v42 = vld [vmem:[%s10660_s28 + $0x6a0] sm:$0xff]  ;;  %v1435_v43 = vld [vmem:[%s10660_s28 + $0x6b0] sm:$0xff]  ;;  %1432 = vst [vmem:[%s10665_s29 + $0x348] sm:$0xff] %v1431_v41 }
  0x4b   : > { %1434 = vst [vmem:[%s10665_s29 + $0x350] sm:$0xff] %v1433_v42  ;;  %1436 = vst [vmem:[%s10665_s29 + $0x358] sm:$0xff] %v1435_v43  ;;  %v1437_v44 = vld [vmem:[%s10660_s28 + $0x6c0] sm:$0xff]  ;;  %v1439_v45 = vld [vmem:[%s10660_s28 + $0x6d0] sm:$0xff] }
  0x4c   : > { %v1441_v46 = vld [vmem:[%s10660_s28 + $0x6e0] sm:$0xff]  ;;  %1438 = vst [vmem:[%s10665_s29 + $0x360] sm:$0xff] %v1437_v44  ;;  %1440 = vst [vmem:[%s10665_s29 + $0x368] sm:$0xff] %v1439_v45  ;;  %v1443_v47 = vld [vmem:[%s10660_s28 + $0x6f0] sm:$0xff] }
  0x4d   : > { %1442 = vst [vmem:[%s10665_s29 + $0x370] sm:$0xff] %v1441_v46  ;;  %v1445_v48 = vld [vmem:[%s10660_s28 + $0x700] sm:$0xff]  ;;  %v1447_v49 = vld [vmem:[%s10660_s28 + $0x710] sm:$0xff]  ;;  %1444 = vst [vmem:[%s10665_s29 + $0x378] sm:$0xff] %v1443_v47 }
  0x4e   : > { %1446 = vst [vmem:[%s10665_s29 + $0x380] sm:$0xff] %v1445_v48  ;;  %1448 = vst [vmem:[%s10665_s29 + $0x388] sm:$0xff] %v1447_v49  ;;  %v1449_v50 = vld [vmem:[%s10660_s28 + $0x720] sm:$0xff]  ;;  %v1451_v51 = vld [vmem:[%s10660_s28 + $0x730] sm:$0xff] }
  0x4f   : > { %v1453_v52 = vld [vmem:[%s10660_s28 + $0x740] sm:$0xff]  ;;  %1450 = vst [vmem:[%s10665_s29 + $0x390] sm:$0xff] %v1449_v50  ;;  %1452 = vst [vmem:[%s10665_s29 + $0x398] sm:$0xff] %v1451_v51  ;;  %v1455_v53 = vld [vmem:[%s10660_s28 + $0x750] sm:$0xff] }
  0x50   : > { %1454 = vst [vmem:[%s10665_s29 + $0x3a0] sm:$0xff] %v1453_v52  ;;  %v1457_v54 = vld [vmem:[%s10660_s28 + $0x760] sm:$0xff]  ;;  %v1459_v55 = vld [vmem:[%s10660_s28 + $0x770] sm:$0xff]  ;;  %1456 = vst [vmem:[%s10665_s29 + $0x3a8] sm:$0xff] %v1455_v53 }
  0x51   : > { %1458 = vst [vmem:[%s10665_s29 + $0x3b0] sm:$0xff] %v1457_v54  ;;  %1460 = vst [vmem:[%s10665_s29 + $0x3b8] sm:$0xff] %v1459_v55  ;;  %v1461_v56 = vld [vmem:[%s10660_s28 + $0x780] sm:$0xff]  ;;  %v1463_v57 = vld [vmem:[%s10660_s28 + $0x790] sm:$0xff] }
  0x52   : > { %v1465_v58 = vld [vmem:[%s10660_s28 + $0x7a0] sm:$0xff]  ;;  %1462 = vst [vmem:[%s10665_s29 + $0x3c0] sm:$0xff] %v1461_v56  ;;  %1464 = vst [vmem:[%s10665_s29 + $0x3c8] sm:$0xff] %v1463_v57  ;;  %v1467_v59 = vld [vmem:[%s10660_s28 + $0x7b0] sm:$0xff] }
  0x53   : > { %1466 = vst [vmem:[%s10665_s29 + $0x3d0] sm:$0xff] %v1465_v58  ;;  %v1469_v60 = vld [vmem:[%s10660_s28 + $0x7c0] sm:$0xff]  ;;  %v1471_v61 = vld [vmem:[%s10660_s28 + $0x7d0] sm:$0xff]  ;;  %1468 = vst [vmem:[%s10665_s29 + $0x3d8] sm:$0xff] %v1467_v59 }
  0x54   : > { %1470 = vst [vmem:[%s10665_s29 + $0x3e0] sm:$0xff] %v1469_v60  ;;  %1472 = vst [vmem:[%s10665_s29 + $0x3e8] sm:$0xff] %v1471_v61  ;;  %v1473_v62 = vld [vmem:[%s10660_s28 + $0x7e0] sm:$0xff]  ;;  %v1475_v63 = vld [vmem:[%s10660_s28 + $0x7f0] sm:$0xff] }
  0x55   : > { %v1477_v0 = vld [vmem:[%s10660_s28 + $0x800] sm:$0xff]  ;;  %1474 = vst [vmem:[%s10665_s29 + $0x3f0] sm:$0xff] %v1473_v62  ;;  %1476 = vst [vmem:[%s10665_s29 + $0x3f8] sm:$0xff] %v1475_v63  ;;  %v1479_v1 = vld [vmem:[%s10660_s28 + $0x810] sm:$0xff] }
  0x56   : > { %1478 = vst [vmem:[%s10665_s29 + $0x400] sm:$0xff] %v1477_v0  ;;  %v1481_v2 = vld [vmem:[%s10660_s28 + $0x820] sm:$0xff]  ;;  %v1483_v3 = vld [vmem:[%s10660_s28 + $0x830] sm:$0xff]  ;;  %1480 = vst [vmem:[%s10665_s29 + $0x408] sm:$0xff] %v1479_v1 }
  0x57   : > { %1482 = vst [vmem:[%s10665_s29 + $0x410] sm:$0xff] %v1481_v2  ;;  %1484 = vst [vmem:[%s10665_s29 + $0x418] sm:$0xff] %v1483_v3  ;;  %v1485_v4 = vld [vmem:[%s10660_s28 + $0x840] sm:$0xff]  ;;  %v1487_v5 = vld [vmem:[%s10660_s28 + $0x850] sm:$0xff] }
  0x58   : > { %v1489_v6 = vld [vmem:[%s10660_s28 + $0x860] sm:$0xff]  ;;  %1486 = vst [vmem:[%s10665_s29 + $0x420] sm:$0xff] %v1485_v4  ;;  %1488 = vst [vmem:[%s10665_s29 + $0x428] sm:$0xff] %v1487_v5  ;;  %v1491_v7 = vld [vmem:[%s10660_s28 + $0x870] sm:$0xff] }
  0x59   : > { %1490 = vst [vmem:[%s10665_s29 + $0x430] sm:$0xff] %v1489_v6  ;;  %v1493_v8 = vld [vmem:[%s10660_s28 + $0x880] sm:$0xff]  ;;  %v1495_v9 = vld [vmem:[%s10660_s28 + $0x890] sm:$0xff]  ;;  %1492 = vst [vmem:[%s10665_s29 + $0x438] sm:$0xff] %v1491_v7 }
  0x5a   : > { %1494 = vst [vmem:[%s10665_s29 + $0x440] sm:$0xff] %v1493_v8  ;;  %1496 = vst [vmem:[%s10665_s29 + $0x448] sm:$0xff] %v1495_v9  ;;  %v1497_v10 = vld [vmem:[%s10660_s28 + $0x8a0] sm:$0xff]  ;;  %v1499_v11 = vld [vmem:[%s10660_s28 + $0x8b0] sm:$0xff] }
  0x5b   : > { %v1501_v12 = vld [vmem:[%s10660_s28 + $0x8c0] sm:$0xff]  ;;  %1498 = vst [vmem:[%s10665_s29 + $0x450] sm:$0xff] %v1497_v10  ;;  %1500 = vst [vmem:[%s10665_s29 + $0x458] sm:$0xff] %v1499_v11  ;;  %v1503_v13 = vld [vmem:[%s10660_s28 + $0x8d0] sm:$0xff] }
  0x5c   : > { %1502 = vst [vmem:[%s10665_s29 + $0x460] sm:$0xff] %v1501_v12  ;;  %v1505_v14 = vld [vmem:[%s10660_s28 + $0x8e0] sm:$0xff]  ;;  %v1507_v15 = vld [vmem:[%s10660_s28 + $0x8f0] sm:$0xff]  ;;  %1504 = vst [vmem:[%s10665_s29 + $0x468] sm:$0xff] %v1503_v13 }
  0x5d   : > { %1506 = vst [vmem:[%s10665_s29 + $0x470] sm:$0xff] %v1505_v14  ;;  %1508 = vst [vmem:[%s10665_s29 + $0x478] sm:$0xff] %v1507_v15  ;;  %v1509_v16 = vld [vmem:[%s10660_s28 + $0x900] sm:$0xff]  ;;  %v1511_v17 = vld [vmem:[%s10660_s28 + $0x910] sm:$0xff] }
  0x5e   : > { %v1513_v18 = vld [vmem:[%s10660_s28 + $0x920] sm:$0xff]  ;;  %1510 = vst [vmem:[%s10665_s29 + $0x480] sm:$0xff] %v1509_v16  ;;  %1512 = vst [vmem:[%s10665_s29 + $0x488] sm:$0xff] %v1511_v17  ;;  %v1515_v19 = vld [vmem:[%s10660_s28 + $0x930] sm:$0xff] }
  0x5f   : > { %1514 = vst [vmem:[%s10665_s29 + $0x490] sm:$0xff] %v1513_v18  ;;  %v1517_v20 = vld [vmem:[%s10660_s28 + $0x940] sm:$0xff]  ;;  %v1519_v21 = vld [vmem:[%s10660_s28 + $0x950] sm:$0xff]  ;;  %1516 = vst [vmem:[%s10665_s29 + $0x498] sm:$0xff] %v1515_v19 }
  0x60   : > { %1518 = vst [vmem:[%s10665_s29 + $0x4a0] sm:$0xff] %v1517_v20  ;;  %1520 = vst [vmem:[%s10665_s29 + $0x4a8] sm:$0xff] %v1519_v21  ;;  %v1521_v22 = vld [vmem:[%s10660_s28 + $0x960] sm:$0xff]  ;;  %v1523_v23 = vld [vmem:[%s10660_s28 + $0x970] sm:$0xff] }
  0x61   : > { %v1525_v24 = vld [vmem:[%s10660_s28 + $0x980] sm:$0xff]  ;;  %1522 = vst [vmem:[%s10665_s29 + $0x4b0] sm:$0xff] %v1521_v22  ;;  %1524 = vst [vmem:[%s10665_s29 + $0x4b8] sm:$0xff] %v1523_v23  ;;  %v1527_v25 = vld [vmem:[%s10660_s28 + $0x990] sm:$0xff] }
  0x62   : > { %1526 = vst [vmem:[%s10665_s29 + $0x4c0] sm:$0xff] %v1525_v24  ;;  %v1529_v26 = vld [vmem:[%s10660_s28 + $0x9a0] sm:$0xff]  ;;  %v1531_v27 = vld [vmem:[%s10660_s28 + $0x9b0] sm:$0xff]  ;;  %1528 = vst [vmem:[%s10665_s29 + $0x4c8] sm:$0xff] %v1527_v25 }
  0x63   : > { %1530 = vst [vmem:[%s10665_s29 + $0x4d0] sm:$0xff] %v1529_v26  ;;  %1532 = vst [vmem:[%s10665_s29 + $0x4d8] sm:$0xff] %v1531_v27  ;;  %v1533_v28 = vld [vmem:[%s10660_s28 + $0x9c0] sm:$0xff]  ;;  %v1535_v29 = vld [vmem:[%s10660_s28 + $0x9d0] sm:$0xff] }
  0x64   : > { %v1537_v30 = vld [vmem:[%s10660_s28 + $0x9e0] sm:$0xff]  ;;  %1534 = vst [vmem:[%s10665_s29 + $0x4e0] sm:$0xff] %v1533_v28  ;;  %1536 = vst [vmem:[%s10665_s29 + $0x4e8] sm:$0xff] %v1535_v29  ;;  %v1539_v31 = vld [vmem:[%s10660_s28 + $0x9f0] sm:$0xff] }
  0x65   : > { %1538 = vst [vmem:[%s10665_s29 + $0x4f0] sm:$0xff] %v1537_v30  ;;  %v1541_v32 = vld [vmem:[%s10660_s28 + $0xa00] sm:$0xff]  ;;  %v1543_v33 = vld [vmem:[%s10660_s28 + $0xa10] sm:$0xff]  ;;  %1540 = vst [vmem:[%s10665_s29 + $0x4f8] sm:$0xff] %v1539_v31 }
  0x66   : > { %1542 = vst [vmem:[%s10665_s29 + $0x500] sm:$0xff] %v1541_v32  ;;  %1544 = vst [vmem:[%s10665_s29 + $0x508] sm:$0xff] %v1543_v33  ;;  %v1545_v34 = vld [vmem:[%s10660_s28 + $0xa20] sm:$0xff]  ;;  %v1547_v35 = vld [vmem:[%s10660_s28 + $0xa30] sm:$0xff] }
  0x67   : > { %v1549_v36 = vld [vmem:[%s10660_s28 + $0xa40] sm:$0xff]  ;;  %1546 = vst [vmem:[%s10665_s29 + $0x510] sm:$0xff] %v1545_v34  ;;  %1548 = vst [vmem:[%s10665_s29 + $0x518] sm:$0xff] %v1547_v35  ;;  %v1551_v37 = vld [vmem:[%s10660_s28 + $0xa50] sm:$0xff] }
  0x68   : > { %1550 = vst [vmem:[%s10665_s29 + $0x520] sm:$0xff] %v1549_v36  ;;  %v1553_v38 = vld [vmem:[%s10660_s28 + $0xa60] sm:$0xff]  ;;  %v1555_v39 = vld [vmem:[%s10660_s28 + $0xa70] sm:$0xff]  ;;  %1552 = vst [vmem:[%s10665_s29 + $0x528] sm:$0xff] %v1551_v37 }
  0x69   : > { %1554 = vst [vmem:[%s10665_s29 + $0x530] sm:$0xff] %v1553_v38  ;;  %1556 = vst [vmem:[%s10665_s29 + $0x538] sm:$0xff] %v1555_v39  ;;  %v1557_v40 = vld [vmem:[%s10660_s28 + $0xa80] sm:$0xff]  ;;  %v1559_v41 = vld [vmem:[%s10660_s28 + $0xa90] sm:$0xff] }
  0x6a   : > { %v1561_v42 = vld [vmem:[%s10660_s28 + $0xaa0] sm:$0xff]  ;;  %1558 = vst [vmem:[%s10665_s29 + $0x540] sm:$0xff] %v1557_v40  ;;  %1560 = vst [vmem:[%s10665_s29 + $0x548] sm:$0xff] %v1559_v41  ;;  %v1563_v43 = vld [vmem:[%s10660_s28 + $0xab0] sm:$0xff] }
  0x6b   : > { %1562 = vst [vmem:[%s10665_s29 + $0x550] sm:$0xff] %v1561_v42  ;;  %v1565_v44 = vld [vmem:[%s10660_s28 + $0xac0] sm:$0xff]  ;;  %v1567_v45 = vld [vmem:[%s10660_s28 + $0xad0] sm:$0xff]  ;;  %1564 = vst [vmem:[%s10665_s29 + $0x558] sm:$0xff] %v1563_v43 }
  0x6c   : > { %1566 = vst [vmem:[%s10665_s29 + $0x560] sm:$0xff] %v1565_v44  ;;  %1568 = vst [vmem:[%s10665_s29 + $0x568] sm:$0xff] %v1567_v45  ;;  %v1569_v46 = vld [vmem:[%s10660_s28 + $0xae0] sm:$0xff]  ;;  %v1571_v47 = vld [vmem:[%s10660_s28 + $0xaf0] sm:$0xff] }
  0x6d   : > { %v1573_v48 = vld [vmem:[%s10660_s28 + $0xb00] sm:$0xff]  ;;  %1570 = vst [vmem:[%s10665_s29 + $0x570] sm:$0xff] %v1569_v46  ;;  %1572 = vst [vmem:[%s10665_s29 + $0x578] sm:$0xff] %v1571_v47  ;;  %v1575_v49 = vld [vmem:[%s10660_s28 + $0xb10] sm:$0xff] }
  0x6e   : > { %1574 = vst [vmem:[%s10665_s29 + $0x580] sm:$0xff] %v1573_v48  ;;  %v1577_v50 = vld [vmem:[%s10660_s28 + $0xb20] sm:$0xff]  ;;  %v1579_v51 = vld [vmem:[%s10660_s28 + $0xb30] sm:$0xff]  ;;  %1576 = vst [vmem:[%s10665_s29 + $0x588] sm:$0xff] %v1575_v49 }
  0x6f   : > { %1578 = vst [vmem:[%s10665_s29 + $0x590] sm:$0xff] %v1577_v50  ;;  %1580 = vst [vmem:[%s10665_s29 + $0x598] sm:$0xff] %v1579_v51  ;;  %v1581_v52 = vld [vmem:[%s10660_s28 + $0xb40] sm:$0xff]  ;;  %v1583_v53 = vld [vmem:[%s10660_s28 + $0xb50] sm:$0xff] }
  0x70   : > { %v1585_v54 = vld [vmem:[%s10660_s28 + $0xb60] sm:$0xff]  ;;  %1582 = vst [vmem:[%s10665_s29 + $0x5a0] sm:$0xff] %v1581_v52  ;;  %1584 = vst [vmem:[%s10665_s29 + $0x5a8] sm:$0xff] %v1583_v53  ;;  %v1587_v55 = vld [vmem:[%s10660_s28 + $0xb70] sm:$0xff] }
  0x71   : > { %1586 = vst [vmem:[%s10665_s29 + $0x5b0] sm:$0xff] %v1585_v54  ;;  %v1589_v56 = vld [vmem:[%s10660_s28 + $0xb80] sm:$0xff]  ;;  %v1591_v57 = vld [vmem:[%s10660_s28 + $0xb90] sm:$0xff]  ;;  %1588 = vst [vmem:[%s10665_s29 + $0x5b8] sm:$0xff] %v1587_v55 }
  0x72   : > { %1590 = vst [vmem:[%s10665_s29 + $0x5c0] sm:$0xff] %v1589_v56  ;;  %1592 = vst [vmem:[%s10665_s29 + $0x5c8] sm:$0xff] %v1591_v57  ;;  %v1593_v58 = vld [vmem:[%s10660_s28 + $0xba0] sm:$0xff]  ;;  %v1595_v59 = vld [vmem:[%s10660_s28 + $0xbb0] sm:$0xff] }
  0x73   : > { %v1597_v60 = vld [vmem:[%s10660_s28 + $0xbc0] sm:$0xff]  ;;  %1594 = vst [vmem:[%s10665_s29 + $0x5d0] sm:$0xff] %v1593_v58  ;;  %1596 = vst [vmem:[%s10665_s29 + $0x5d8] sm:$0xff] %v1595_v59  ;;  %v1599_v61 = vld [vmem:[%s10660_s28 + $0xbd0] sm:$0xff] }
  0x74   : > { %1598 = vst [vmem:[%s10665_s29 + $0x5e0] sm:$0xff] %v1597_v60  ;;  %v1601_v62 = vld [vmem:[%s10660_s28 + $0xbe0] sm:$0xff]  ;;  %v1603_v63 = vld [vmem:[%s10660_s28 + $0xbf0] sm:$0xff]  ;;  %1600 = vst [vmem:[%s10665_s29 + $0x5e8] sm:$0xff] %v1599_v61 }
  0x75   : > { %1602 = vst [vmem:[%s10665_s29 + $0x5f0] sm:$0xff] %v1601_v62  ;;  %1604 = vst [vmem:[%s10665_s29 + $0x5f8] sm:$0xff] %v1603_v63  ;;  %v1605_v0 = vld [vmem:[%s10660_s28 + $0xc00] sm:$0xff]  ;;  %v1607_v1 = vld [vmem:[%s10660_s28 + $0xc10] sm:$0xff] }
  0x76   : > { %v1609_v2 = vld [vmem:[%s10660_s28 + $0xc20] sm:$0xff]  ;;  %1606 = vst [vmem:[%s10665_s29 + $0x600] sm:$0xff] %v1605_v0  ;;  %1608 = vst [vmem:[%s10665_s29 + $0x608] sm:$0xff] %v1607_v1  ;;  %v1611_v3 = vld [vmem:[%s10660_s28 + $0xc30] sm:$0xff] }
  0x77   : > { %1610 = vst [vmem:[%s10665_s29 + $0x610] sm:$0xff] %v1609_v2  ;;  %v1613_v4 = vld [vmem:[%s10660_s28 + $0xc40] sm:$0xff]  ;;  %v1615_v5 = vld [vmem:[%s10660_s28 + $0xc50] sm:$0xff]  ;;  %1612 = vst [vmem:[%s10665_s29 + $0x618] sm:$0xff] %v1611_v3 }
  0x78   : > { %1614 = vst [vmem:[%s10665_s29 + $0x620] sm:$0xff] %v1613_v4  ;;  %1616 = vst [vmem:[%s10665_s29 + $0x628] sm:$0xff] %v1615_v5  ;;  %v1617_v6 = vld [vmem:[%s10660_s28 + $0xc60] sm:$0xff]  ;;  %v1619_v7 = vld [vmem:[%s10660_s28 + $0xc70] sm:$0xff] }
  0x79   : > { %v1621_v8 = vld [vmem:[%s10660_s28 + $0xc80] sm:$0xff]  ;;  %1618 = vst [vmem:[%s10665_s29 + $0x630] sm:$0xff] %v1617_v6  ;;  %1620 = vst [vmem:[%s10665_s29 + $0x638] sm:$0xff] %v1619_v7  ;;  %v1623_v9 = vld [vmem:[%s10660_s28 + $0xc90] sm:$0xff] }
  0x7a   : > { %1622 = vst [vmem:[%s10665_s29 + $0x640] sm:$0xff] %v1621_v8  ;;  %v1625_v10 = vld [vmem:[%s10660_s28 + $0xca0] sm:$0xff]  ;;  %v1627_v11 = vld [vmem:[%s10660_s28 + $0xcb0] sm:$0xff]  ;;  %1624 = vst [vmem:[%s10665_s29 + $0x648] sm:$0xff] %v1623_v9 }
  0x7b   : > { %1626 = vst [vmem:[%s10665_s29 + $0x650] sm:$0xff] %v1625_v10  ;;  %1628 = vst [vmem:[%s10665_s29 + $0x658] sm:$0xff] %v1627_v11  ;;  %v1629_v12 = vld [vmem:[%s10660_s28 + $0xcc0] sm:$0xff]  ;;  %v1631_v13 = vld [vmem:[%s10660_s28 + $0xcd0] sm:$0xff] }
  0x7c   : > { %v1633_v14 = vld [vmem:[%s10660_s28 + $0xce0] sm:$0xff]  ;;  %1630 = vst [vmem:[%s10665_s29 + $0x660] sm:$0xff] %v1629_v12  ;;  %1632 = vst [vmem:[%s10665_s29 + $0x668] sm:$0xff] %v1631_v13  ;;  %v1635_v15 = vld [vmem:[%s10660_s28 + $0xcf0] sm:$0xff] }
  0x7d   : > { %1634 = vst [vmem:[%s10665_s29 + $0x670] sm:$0xff] %v1633_v14  ;;  %v1637_v16 = vld [vmem:[%s10660_s28 + $0xd00] sm:$0xff]  ;;  %v1639_v17 = vld [vmem:[%s10660_s28 + $0xd10] sm:$0xff]  ;;  %1636 = vst [vmem:[%s10665_s29 + $0x678] sm:$0xff] %v1635_v15 }
  0x7e   : > { %1638 = vst [vmem:[%s10665_s29 + $0x680] sm:$0xff] %v1637_v16  ;;  %1640 = vst [vmem:[%s10665_s29 + $0x688] sm:$0xff] %v1639_v17  ;;  %v1641_v18 = vld [vmem:[%s10660_s28 + $0xd20] sm:$0xff]  ;;  %v1643_v19 = vld [vmem:[%s10660_s28 + $0xd30] sm:$0xff] }
  0x7f   : > { %v1645_v20 = vld [vmem:[%s10660_s28 + $0xd40] sm:$0xff]  ;;  %1642 = vst [vmem:[%s10665_s29 + $0x690] sm:$0xff] %v1641_v18  ;;  %1644 = vst [vmem:[%s10665_s29 + $0x698] sm:$0xff] %v1643_v19  ;;  %v1647_v21 = vld [vmem:[%s10660_s28 + $0xd50] sm:$0xff] }
  0x80   : > { %1646 = vst [vmem:[%s10665_s29 + $0x6a0] sm:$0xff] %v1645_v20  ;;  %v1649_v22 = vld [vmem:[%s10660_s28 + $0xd60] sm:$0xff]  ;;  %v1651_v23 = vld [vmem:[%s10660_s28 + $0xd70] sm:$0xff]  ;;  %1648 = vst [vmem:[%s10665_s29 + $0x6a8] sm:$0xff] %v1647_v21 }
  0x81   : > { %1650 = vst [vmem:[%s10665_s29 + $0x6b0] sm:$0xff] %v1649_v22  ;;  %1652 = vst [vmem:[%s10665_s29 + $0x6b8] sm:$0xff] %v1651_v23  ;;  %v1653_v24 = vld [vmem:[%s10660_s28 + $0xd80] sm:$0xff]  ;;  %v1655_v25 = vld [vmem:[%s10660_s28 + $0xd90] sm:$0xff] }
  0x82   : > { %v1657_v26 = vld [vmem:[%s10660_s28 + $0xda0] sm:$0xff]  ;;  %1654 = vst [vmem:[%s10665_s29 + $0x6c0] sm:$0xff] %v1653_v24  ;;  %1656 = vst [vmem:[%s10665_s29 + $0x6c8] sm:$0xff] %v1655_v25  ;;  %v1659_v27 = vld [vmem:[%s10660_s28 + $0xdb0] sm:$0xff] }
  0x83   : > { %1658 = vst [vmem:[%s10665_s29 + $0x6d0] sm:$0xff] %v1657_v26  ;;  %v1661_v28 = vld [vmem:[%s10660_s28 + $0xdc0] sm:$0xff]  ;;  %v1663_v29 = vld [vmem:[%s10660_s28 + $0xdd0] sm:$0xff]  ;;  %1660 = vst [vmem:[%s10665_s29 + $0x6d8] sm:$0xff] %v1659_v27 }
  0x84   : > { %1662 = vst [vmem:[%s10665_s29 + $0x6e0] sm:$0xff] %v1661_v28  ;;  %1664 = vst [vmem:[%s10665_s29 + $0x6e8] sm:$0xff] %v1663_v29  ;;  %v1665_v30 = vld [vmem:[%s10660_s28 + $0xde0] sm:$0xff]  ;;  %v1667_v31 = vld [vmem:[%s10660_s28 + $0xdf0] sm:$0xff] }
  0x85   : > { %v1669_v32 = vld [vmem:[%s10660_s28 + $0xe00] sm:$0xff]  ;;  %1666 = vst [vmem:[%s10665_s29 + $0x6f0] sm:$0xff] %v1665_v30  ;;  %1668 = vst [vmem:[%s10665_s29 + $0x6f8] sm:$0xff] %v1667_v31  ;;  %v1671_v33 = vld [vmem:[%s10660_s28 + $0xe10] sm:$0xff] }
  0x86   : > { %1670 = vst [vmem:[%s10665_s29 + $0x700] sm:$0xff] %v1669_v32  ;;  %v1673_v34 = vld [vmem:[%s10660_s28 + $0xe20] sm:$0xff]  ;;  %v1675_v35 = vld [vmem:[%s10660_s28 + $0xe30] sm:$0xff]  ;;  %1672 = vst [vmem:[%s10665_s29 + $0x708] sm:$0xff] %v1671_v33 }
  0x87   : > { %1674 = vst [vmem:[%s10665_s29 + $0x710] sm:$0xff] %v1673_v34  ;;  %1676 = vst [vmem:[%s10665_s29 + $0x718] sm:$0xff] %v1675_v35  ;;  %v1677_v36 = vld [vmem:[%s10660_s28 + $0xe40] sm:$0xff]  ;;  %v1679_v37 = vld [vmem:[%s10660_s28 + $0xe50] sm:$0xff] }
  0x88   : > { %v1681_v38 = vld [vmem:[%s10660_s28 + $0xe60] sm:$0xff]  ;;  %1678 = vst [vmem:[%s10665_s29 + $0x720] sm:$0xff] %v1677_v36  ;;  %1680 = vst [vmem:[%s10665_s29 + $0x728] sm:$0xff] %v1679_v37  ;;  %v1683_v39 = vld [vmem:[%s10660_s28 + $0xe70] sm:$0xff] }
  0x89   : > { %1682 = vst [vmem:[%s10665_s29 + $0x730] sm:$0xff] %v1681_v38  ;;  %v1685_v40 = vld [vmem:[%s10660_s28 + $0xe80] sm:$0xff]  ;;  %v1687_v41 = vld [vmem:[%s10660_s28 + $0xe90] sm:$0xff]  ;;  %1684 = vst [vmem:[%s10665_s29 + $0x738] sm:$0xff] %v1683_v39 }
  0x8a   : > { %1686 = vst [vmem:[%s10665_s29 + $0x740] sm:$0xff] %v1685_v40  ;;  %1688 = vst [vmem:[%s10665_s29 + $0x748] sm:$0xff] %v1687_v41  ;;  %v1689_v42 = vld [vmem:[%s10660_s28 + $0xea0] sm:$0xff]  ;;  %v1691_v43 = vld [vmem:[%s10660_s28 + $0xeb0] sm:$0xff] }
  0x8b   : > { %v1693_v44 = vld [vmem:[%s10660_s28 + $0xec0] sm:$0xff]  ;;  %1690 = vst [vmem:[%s10665_s29 + $0x750] sm:$0xff] %v1689_v42  ;;  %1692 = vst [vmem:[%s10665_s29 + $0x758] sm:$0xff] %v1691_v43  ;;  %v1695_v45 = vld [vmem:[%s10660_s28 + $0xed0] sm:$0xff] }
  0x8c   : > { %1694 = vst [vmem:[%s10665_s29 + $0x760] sm:$0xff] %v1693_v44  ;;  %v1697_v46 = vld [vmem:[%s10660_s28 + $0xee0] sm:$0xff]  ;;  %v1699_v47 = vld [vmem:[%s10660_s28 + $0xef0] sm:$0xff]  ;;  %1696 = vst [vmem:[%s10665_s29 + $0x768] sm:$0xff] %v1695_v45 }
  0x8d   : > { %1698 = vst [vmem:[%s10665_s29 + $0x770] sm:$0xff] %v1697_v46  ;;  %1700 = vst [vmem:[%s10665_s29 + $0x778] sm:$0xff] %v1699_v47  ;;  %v1701_v48 = vld [vmem:[%s10660_s28 + $0xf00] sm:$0xff]  ;;  %v1703_v49 = vld [vmem:[%s10660_s28 + $0xf10] sm:$0xff] }
  0x8e   : > { %v1705_v50 = vld [vmem:[%s10660_s28 + $0xf20] sm:$0xff]  ;;  %1702 = vst [vmem:[%s10665_s29 + $0x780] sm:$0xff] %v1701_v48  ;;  %1704 = vst [vmem:[%s10665_s29 + $0x788] sm:$0xff] %v1703_v49  ;;  %v1707_v51 = vld [vmem:[%s10660_s28 + $0xf30] sm:$0xff] }
  0x8f   : > { %1706 = vst [vmem:[%s10665_s29 + $0x790] sm:$0xff] %v1705_v50  ;;  %v1709_v52 = vld [vmem:[%s10660_s28 + $0xf40] sm:$0xff]  ;;  %v1711_v53 = vld [vmem:[%s10660_s28 + $0xf50] sm:$0xff]  ;;  %1708 = vst [vmem:[%s10665_s29 + $0x798] sm:$0xff] %v1707_v51 }
  0x90   : > { %1710 = vst [vmem:[%s10665_s29 + $0x7a0] sm:$0xff] %v1709_v52  ;;  %1712 = vst [vmem:[%s10665_s29 + $0x7a8] sm:$0xff] %v1711_v53  ;;  %v1713_v54 = vld [vmem:[%s10660_s28 + $0xf60] sm:$0xff]  ;;  %v1715_v55 = vld [vmem:[%s10660_s28 + $0xf70] sm:$0xff] }
  0x91   : > { %v1717_v56 = vld [vmem:[%s10660_s28 + $0xf80] sm:$0xff]  ;;  %1714 = vst [vmem:[%s10665_s29 + $0x7b0] sm:$0xff] %v1713_v54  ;;  %1716 = vst [vmem:[%s10665_s29 + $0x7b8] sm:$0xff] %v1715_v55  ;;  %v1719_v57 = vld [vmem:[%s10660_s28 + $0xf90] sm:$0xff] }
  0x92   : > { %1718 = vst [vmem:[%s10665_s29 + $0x7c0] sm:$0xff] %v1717_v56  ;;  %v1721_v58 = vld [vmem:[%s10660_s28 + $0xfa0] sm:$0xff]  ;;  %v1723_v59 = vld [vmem:[%s10660_s28 + $0xfb0] sm:$0xff]  ;;  %1720 = vst [vmem:[%s10665_s29 + $0x7c8] sm:$0xff] %v1719_v57 }
  0x93   : > { %1722 = vst [vmem:[%s10665_s29 + $0x7d0] sm:$0xff] %v1721_v58  ;;  %1724 = vst [vmem:[%s10665_s29 + $0x7d8] sm:$0xff] %v1723_v59  ;;  %v1725_v60 = vld [vmem:[%s10660_s28 + $0xfc0] sm:$0xff]  ;;  %v1727_v61 = vld [vmem:[%s10660_s28 + $0xfd0] sm:$0xff] }
  0x94   : > { %v1729_v62 = vld [vmem:[%s10660_s28 + $0xfe0] sm:$0xff]  ;;  %1726 = vst [vmem:[%s10665_s29 + $0x7e0] sm:$0xff] %v1725_v60  ;;  %1728 = vst [vmem:[%s10665_s29 + $0x7e8] sm:$0xff] %v1727_v61  ;;  %v1731_v63 = vld [vmem:[%s10660_s28 + $0xff0] sm:$0xff] }
  0x95   : > { %1730 = vst [vmem:[%s10665_s29 + $0x7f0] sm:$0xff] %v1729_v62  ;;  %v1733_v0 = vld [vmem:[%s10660_s28 + $0x1000] sm:$0xff]  ;;  %v1735_v1 = vld [vmem:[%s10660_s28 + $0x1010] sm:$0xff]  ;;  %1732 = vst [vmem:[%s10665_s29 + $0x7f8] sm:$0xff] %v1731_v63 }
  0x96   : > { %1734 = vst [vmem:[%s10665_s29 + $0x800] sm:$0xff] %v1733_v0  ;;  %1736 = vst [vmem:[%s10665_s29 + $0x808] sm:$0xff] %v1735_v1  ;;  %v1737_v2 = vld [vmem:[%s10660_s28 + $0x1020] sm:$0xff]  ;;  %v1739_v3 = vld [vmem:[%s10660_s28 + $0x1030] sm:$0xff] }
  0x97   : > { %v1741_v4 = vld [vmem:[%s10660_s28 + $0x1040] sm:$0xff]  ;;  %1738 = vst [vmem:[%s10665_s29 + $0x810] sm:$0xff] %v1737_v2  ;;  %1740 = vst [vmem:[%s10665_s29 + $0x818] sm:$0xff] %v1739_v3  ;;  %v1743_v5 = vld [vmem:[%s10660_s28 + $0x1050] sm:$0xff] }
  0x98   : > { %1742 = vst [vmem:[%s10665_s29 + $0x820] sm:$0xff] %v1741_v4  ;;  %v1745_v6 = vld [vmem:[%s10660_s28 + $0x1060] sm:$0xff]  ;;  %v1747_v7 = vld [vmem:[%s10660_s28 + $0x1070] sm:$0xff]  ;;  %1744 = vst [vmem:[%s10665_s29 + $0x828] sm:$0xff] %v1743_v5 }
  0x99   : > { %1746 = vst [vmem:[%s10665_s29 + $0x830] sm:$0xff] %v1745_v6  ;;  %1748 = vst [vmem:[%s10665_s29 + $0x838] sm:$0xff] %v1747_v7  ;;  %v1749_v8 = vld [vmem:[%s10660_s28 + $0x1080] sm:$0xff]  ;;  %v1751_v9 = vld [vmem:[%s10660_s28 + $0x1090] sm:$0xff] }
  0x9a   : > { %v1753_v10 = vld [vmem:[%s10660_s28 + $0x10a0] sm:$0xff]  ;;  %1750 = vst [vmem:[%s10665_s29 + $0x840] sm:$0xff] %v1749_v8  ;;  %1752 = vst [vmem:[%s10665_s29 + $0x848] sm:$0xff] %v1751_v9  ;;  %v1755_v11 = vld [vmem:[%s10660_s28 + $0x10b0] sm:$0xff] }
  0x9b   : > { %1754 = vst [vmem:[%s10665_s29 + $0x850] sm:$0xff] %v1753_v10  ;;  %v1757_v12 = vld [vmem:[%s10660_s28 + $0x10c0] sm:$0xff]  ;;  %v1759_v13 = vld [vmem:[%s10660_s28 + $0x10d0] sm:$0xff]  ;;  %1756 = vst [vmem:[%s10665_s29 + $0x858] sm:$0xff] %v1755_v11 }
  0x9c   : > { %1758 = vst [vmem:[%s10665_s29 + $0x860] sm:$0xff] %v1757_v12  ;;  %1760 = vst [vmem:[%s10665_s29 + $0x868] sm:$0xff] %v1759_v13  ;;  %v1761_v14 = vld [vmem:[%s10660_s28 + $0x10e0] sm:$0xff]  ;;  %v1763_v15 = vld [vmem:[%s10660_s28 + $0x10f0] sm:$0xff] }
  0x9d   : > { %v1765_v16 = vld [vmem:[%s10660_s28 + $0x1100] sm:$0xff]  ;;  %1762 = vst [vmem:[%s10665_s29 + $0x870] sm:$0xff] %v1761_v14  ;;  %1764 = vst [vmem:[%s10665_s29 + $0x878] sm:$0xff] %v1763_v15  ;;  %v1767_v17 = vld [vmem:[%s10660_s28 + $0x1110] sm:$0xff] }
  0x9e   : > { %1766 = vst [vmem:[%s10665_s29 + $0x880] sm:$0xff] %v1765_v16  ;;  %v1769_v18 = vld [vmem:[%s10660_s28 + $0x1120] sm:$0xff]  ;;  %v1771_v19 = vld [vmem:[%s10660_s28 + $0x1130] sm:$0xff]  ;;  %1768 = vst [vmem:[%s10665_s29 + $0x888] sm:$0xff] %v1767_v17 }
  0x9f   : > { %1770 = vst [vmem:[%s10665_s29 + $0x890] sm:$0xff] %v1769_v18  ;;  %1772 = vst [vmem:[%s10665_s29 + $0x898] sm:$0xff] %v1771_v19  ;;  %v1773_v20 = vld [vmem:[%s10660_s28 + $0x1140] sm:$0xff]  ;;  %v1775_v21 = vld [vmem:[%s10660_s28 + $0x1150] sm:$0xff] }
  0xa0   : > { %v1777_v22 = vld [vmem:[%s10660_s28 + $0x1160] sm:$0xff]  ;;  %1774 = vst [vmem:[%s10665_s29 + $0x8a0] sm:$0xff] %v1773_v20  ;;  %1776 = vst [vmem:[%s10665_s29 + $0x8a8] sm:$0xff] %v1775_v21  ;;  %v1779_v23 = vld [vmem:[%s10660_s28 + $0x1170] sm:$0xff] }
  0xa1   : > { %1778 = vst [vmem:[%s10665_s29 + $0x8b0] sm:$0xff] %v1777_v22  ;;  %v1781_v24 = vld [vmem:[%s10660_s28 + $0x1180] sm:$0xff]  ;;  %v1783_v25 = vld [vmem:[%s10660_s28 + $0x1190] sm:$0xff]  ;;  %1780 = vst [vmem:[%s10665_s29 + $0x8b8] sm:$0xff] %v1779_v23 }
  0xa2   : > { %1782 = vst [vmem:[%s10665_s29 + $0x8c0] sm:$0xff] %v1781_v24  ;;  %1784 = vst [vmem:[%s10665_s29 + $0x8c8] sm:$0xff] %v1783_v25  ;;  %v1785_v26 = vld [vmem:[%s10660_s28 + $0x11a0] sm:$0xff]  ;;  %v1787_v27 = vld [vmem:[%s10660_s28 + $0x11b0] sm:$0xff] }
  0xa3   : > { %v1789_v28 = vld [vmem:[%s10660_s28 + $0x11c0] sm:$0xff]  ;;  %1786 = vst [vmem:[%s10665_s29 + $0x8d0] sm:$0xff] %v1785_v26  ;;  %1788 = vst [vmem:[%s10665_s29 + $0x8d8] sm:$0xff] %v1787_v27  ;;  %v1791_v29 = vld [vmem:[%s10660_s28 + $0x11d0] sm:$0xff] }
  0xa4   : > { %1790 = vst [vmem:[%s10665_s29 + $0x8e0] sm:$0xff] %v1789_v28  ;;  %v1793_v30 = vld [vmem:[%s10660_s28 + $0x11e0] sm:$0xff]  ;;  %v1795_v31 = vld [vmem:[%s10660_s28 + $0x11f0] sm:$0xff]  ;;  %1792 = vst [vmem:[%s10665_s29 + $0x8e8] sm:$0xff] %v1791_v29 }
  0xa5   : > { %1794 = vst [vmem:[%s10665_s29 + $0x8f0] sm:$0xff] %v1793_v30  ;;  %1796 = vst [vmem:[%s10665_s29 + $0x8f8] sm:$0xff] %v1795_v31  ;;  %v1797_v32 = vld [vmem:[%s10660_s28 + $0x1200] sm:$0xff]  ;;  %v1799_v33 = vld [vmem:[%s10660_s28 + $0x1210] sm:$0xff] }
  0xa6   : > { %v1801_v34 = vld [vmem:[%s10660_s28 + $0x1220] sm:$0xff]  ;;  %1798 = vst [vmem:[%s10665_s29 + $0x900] sm:$0xff] %v1797_v32  ;;  %1800 = vst [vmem:[%s10665_s29 + $0x908] sm:$0xff] %v1799_v33  ;;  %v1803_v35 = vld [vmem:[%s10660_s28 + $0x1230] sm:$0xff] }
  0xa7   : > { %1802 = vst [vmem:[%s10665_s29 + $0x910] sm:$0xff] %v1801_v34  ;;  %v1805_v36 = vld [vmem:[%s10660_s28 + $0x1240] sm:$0xff]  ;;  %v1807_v37 = vld [vmem:[%s10660_s28 + $0x1250] sm:$0xff]  ;;  %1804 = vst [vmem:[%s10665_s29 + $0x918] sm:$0xff] %v1803_v35 }
  0xa8   : > { %1806 = vst [vmem:[%s10665_s29 + $0x920] sm:$0xff] %v1805_v36  ;;  %1808 = vst [vmem:[%s10665_s29 + $0x928] sm:$0xff] %v1807_v37  ;;  %v1809_v38 = vld [vmem:[%s10660_s28 + $0x1260] sm:$0xff]  ;;  %v1811_v39 = vld [vmem:[%s10660_s28 + $0x1270] sm:$0xff] }
  0xa9   : > { %v1813_v40 = vld [vmem:[%s10660_s28 + $0x1280] sm:$0xff]  ;;  %1810 = vst [vmem:[%s10665_s29 + $0x930] sm:$0xff] %v1809_v38  ;;  %1812 = vst [vmem:[%s10665_s29 + $0x938] sm:$0xff] %v1811_v39  ;;  %v1815_v41 = vld [vmem:[%s10660_s28 + $0x1290] sm:$0xff] }
  0xaa   : > { %1814 = vst [vmem:[%s10665_s29 + $0x940] sm:$0xff] %v1813_v40  ;;  %v1817_v42 = vld [vmem:[%s10660_s28 + $0x12a0] sm:$0xff]  ;;  %v1819_v43 = vld [vmem:[%s10660_s28 + $0x12b0] sm:$0xff]  ;;  %1816 = vst [vmem:[%s10665_s29 + $0x948] sm:$0xff] %v1815_v41 }
  0xab   : > { %1818 = vst [vmem:[%s10665_s29 + $0x950] sm:$0xff] %v1817_v42  ;;  %1820 = vst [vmem:[%s10665_s29 + $0x958] sm:$0xff] %v1819_v43  ;;  %v1821_v44 = vld [vmem:[%s10660_s28 + $0x12c0] sm:$0xff]  ;;  %v1823_v45 = vld [vmem:[%s10660_s28 + $0x12d0] sm:$0xff] }
  0xac   : > { %v1825_v46 = vld [vmem:[%s10660_s28 + $0x12e0] sm:$0xff]  ;;  %1822 = vst [vmem:[%s10665_s29 + $0x960] sm:$0xff] %v1821_v44  ;;  %1824 = vst [vmem:[%s10665_s29 + $0x968] sm:$0xff] %v1823_v45  ;;  %v1827_v47 = vld [vmem:[%s10660_s28 + $0x12f0] sm:$0xff] }
  0xad   : > { %1826 = vst [vmem:[%s10665_s29 + $0x970] sm:$0xff] %v1825_v46  ;;  %v1829_v48 = vld [vmem:[%s10660_s28 + $0x1300] sm:$0xff]  ;;  %v1831_v49 = vld [vmem:[%s10660_s28 + $0x1310] sm:$0xff]  ;;  %1828 = vst [vmem:[%s10665_s29 + $0x978] sm:$0xff] %v1827_v47 }
  0xae   : > { %1830 = vst [vmem:[%s10665_s29 + $0x980] sm:$0xff] %v1829_v48  ;;  %1832 = vst [vmem:[%s10665_s29 + $0x988] sm:$0xff] %v1831_v49  ;;  %v1833_v50 = vld [vmem:[%s10660_s28 + $0x1320] sm:$0xff]  ;;  %v1835_v51 = vld [vmem:[%s10660_s28 + $0x1330] sm:$0xff] }
  0xaf   : > { %v1837_v52 = vld [vmem:[%s10660_s28 + $0x1340] sm:$0xff]  ;;  %1834 = vst [vmem:[%s10665_s29 + $0x990] sm:$0xff] %v1833_v50  ;;  %1836 = vst [vmem:[%s10665_s29 + $0x998] sm:$0xff] %v1835_v51  ;;  %v1839_v53 = vld [vmem:[%s10660_s28 + $0x1350] sm:$0xff] }
  0xb0   : > { %1838 = vst [vmem:[%s10665_s29 + $0x9a0] sm:$0xff] %v1837_v52  ;;  %v1841_v54 = vld [vmem:[%s10660_s28 + $0x1360] sm:$0xff]  ;;  %v1843_v55 = vld [vmem:[%s10660_s28 + $0x1370] sm:$0xff]  ;;  %1840 = vst [vmem:[%s10665_s29 + $0x9a8] sm:$0xff] %v1839_v53 }
  0xb1   : > { %1842 = vst [vmem:[%s10665_s29 + $0x9b0] sm:$0xff] %v1841_v54  ;;  %1844 = vst [vmem:[%s10665_s29 + $0x9b8] sm:$0xff] %v1843_v55  ;;  %v1845_v56 = vld [vmem:[%s10660_s28 + $0x1380] sm:$0xff]  ;;  %v1847_v57 = vld [vmem:[%s10660_s28 + $0x1390] sm:$0xff] }
  0xb2   : > { %v1849_v58 = vld [vmem:[%s10660_s28 + $0x13a0] sm:$0xff]  ;;  %1846 = vst [vmem:[%s10665_s29 + $0x9c0] sm:$0xff] %v1845_v56  ;;  %1848 = vst [vmem:[%s10665_s29 + $0x9c8] sm:$0xff] %v1847_v57  ;;  %v1851_v59 = vld [vmem:[%s10660_s28 + $0x13b0] sm:$0xff] }
  0xb3   : > { %1850 = vst [vmem:[%s10665_s29 + $0x9d0] sm:$0xff] %v1849_v58  ;;  %v1853_v60 = vld [vmem:[%s10660_s28 + $0x13c0] sm:$0xff]  ;;  %v1855_v61 = vld [vmem:[%s10660_s28 + $0x13d0] sm:$0xff]  ;;  %1852 = vst [vmem:[%s10665_s29 + $0x9d8] sm:$0xff] %v1851_v59 }
  0xb4   : > { %1854 = vst [vmem:[%s10665_s29 + $0x9e0] sm:$0xff] %v1853_v60  ;;  %1856 = vst [vmem:[%s10665_s29 + $0x9e8] sm:$0xff] %v1855_v61  ;;  %v1857_v62 = vld [vmem:[%s10660_s28 + $0x13e0] sm:$0xff]  ;;  %v1859_v63 = vld [vmem:[%s10660_s28 + $0x13f0] sm:$0xff] }
  0xb5   : > { %v1861_v0 = vld [vmem:[%s10660_s28 + $0x1400] sm:$0xff]  ;;  %1858 = vst [vmem:[%s10665_s29 + $0x9f0] sm:$0xff] %v1857_v62  ;;  %1860 = vst [vmem:[%s10665_s29 + $0x9f8] sm:$0xff] %v1859_v63  ;;  %v1863_v1 = vld [vmem:[%s10660_s28 + $0x1410] sm:$0xff] }
  0xb6   : > { %1862 = vst [vmem:[%s10665_s29 + $0xa00] sm:$0xff] %v1861_v0  ;;  %v1865_v2 = vld [vmem:[%s10660_s28 + $0x1420] sm:$0xff]  ;;  %v1867_v3 = vld [vmem:[%s10660_s28 + $0x1430] sm:$0xff]  ;;  %1864 = vst [vmem:[%s10665_s29 + $0xa08] sm:$0xff] %v1863_v1 }
  0xb7   : > { %1866 = vst [vmem:[%s10665_s29 + $0xa10] sm:$0xff] %v1865_v2  ;;  %1868 = vst [vmem:[%s10665_s29 + $0xa18] sm:$0xff] %v1867_v3  ;;  %v1869_v4 = vld [vmem:[%s10660_s28 + $0x1440] sm:$0xff]  ;;  %v1871_v5 = vld [vmem:[%s10660_s28 + $0x1450] sm:$0xff] }
  0xb8   : > { %v1873_v6 = vld [vmem:[%s10660_s28 + $0x1460] sm:$0xff]  ;;  %1870 = vst [vmem:[%s10665_s29 + $0xa20] sm:$0xff] %v1869_v4  ;;  %1872 = vst [vmem:[%s10665_s29 + $0xa28] sm:$0xff] %v1871_v5  ;;  %v1875_v7 = vld [vmem:[%s10660_s28 + $0x1470] sm:$0xff] }
  0xb9   : > { %1874 = vst [vmem:[%s10665_s29 + $0xa30] sm:$0xff] %v1873_v6  ;;  %v1877_v8 = vld [vmem:[%s10660_s28 + $0x1480] sm:$0xff]  ;;  %v1879_v9 = vld [vmem:[%s10660_s28 + $0x1490] sm:$0xff]  ;;  %1876 = vst [vmem:[%s10665_s29 + $0xa38] sm:$0xff] %v1875_v7 }
  0xba   : > { %1878 = vst [vmem:[%s10665_s29 + $0xa40] sm:$0xff] %v1877_v8  ;;  %1880 = vst [vmem:[%s10665_s29 + $0xa48] sm:$0xff] %v1879_v9  ;;  %v1881_v10 = vld [vmem:[%s10660_s28 + $0x14a0] sm:$0xff]  ;;  %v1883_v11 = vld [vmem:[%s10660_s28 + $0x14b0] sm:$0xff] }
  0xbb   : > { %v1885_v12 = vld [vmem:[%s10660_s28 + $0x14c0] sm:$0xff]  ;;  %1882 = vst [vmem:[%s10665_s29 + $0xa50] sm:$0xff] %v1881_v10  ;;  %1884 = vst [vmem:[%s10665_s29 + $0xa58] sm:$0xff] %v1883_v11  ;;  %v1887_v13 = vld [vmem:[%s10660_s28 + $0x14d0] sm:$0xff] }
  0xbc   : > { %1886 = vst [vmem:[%s10665_s29 + $0xa60] sm:$0xff] %v1885_v12  ;;  %v1889_v14 = vld [vmem:[%s10660_s28 + $0x14e0] sm:$0xff]  ;;  %v1891_v15 = vld [vmem:[%s10660_s28 + $0x14f0] sm:$0xff]  ;;  %1888 = vst [vmem:[%s10665_s29 + $0xa68] sm:$0xff] %v1887_v13 }
  0xbd   : > { %1890 = vst [vmem:[%s10665_s29 + $0xa70] sm:$0xff] %v1889_v14  ;;  %1892 = vst [vmem:[%s10665_s29 + $0xa78] sm:$0xff] %v1891_v15  ;;  %v1893_v16 = vld [vmem:[%s10660_s28 + $0x1500] sm:$0xff]  ;;  %v1895_v17 = vld [vmem:[%s10660_s28 + $0x1510] sm:$0xff] }
  0xbe   : > { %v1897_v18 = vld [vmem:[%s10660_s28 + $0x1520] sm:$0xff]  ;;  %1894 = vst [vmem:[%s10665_s29 + $0xa80] sm:$0xff] %v1893_v16  ;;  %1896 = vst [vmem:[%s10665_s29 + $0xa88] sm:$0xff] %v1895_v17  ;;  %v1899_v19 = vld [vmem:[%s10660_s28 + $0x1530] sm:$0xff] }
  0xbf   : > { %1898 = vst [vmem:[%s10665_s29 + $0xa90] sm:$0xff] %v1897_v18  ;;  %v1901_v20 = vld [vmem:[%s10660_s28 + $0x1540] sm:$0xff]  ;;  %v1903_v21 = vld [vmem:[%s10660_s28 + $0x1550] sm:$0xff]  ;;  %1900 = vst [vmem:[%s10665_s29 + $0xa98] sm:$0xff] %v1899_v19 }
  0xc0   : > { %1902 = vst [vmem:[%s10665_s29 + $0xaa0] sm:$0xff] %v1901_v20  ;;  %1904 = vst [vmem:[%s10665_s29 + $0xaa8] sm:$0xff] %v1903_v21  ;;  %v1905_v22 = vld [vmem:[%s10660_s28 + $0x1560] sm:$0xff]  ;;  %v1907_v23 = vld [vmem:[%s10660_s28 + $0x1570] sm:$0xff] }
  0xc1   : > { %v1909_v24 = vld [vmem:[%s10660_s28 + $0x1580] sm:$0xff]  ;;  %1906 = vst [vmem:[%s10665_s29 + $0xab0] sm:$0xff] %v1905_v22  ;;  %1908 = vst [vmem:[%s10665_s29 + $0xab8] sm:$0xff] %v1907_v23  ;;  %v1911_v25 = vld [vmem:[%s10660_s28 + $0x1590] sm:$0xff] }
  0xc2   : > { %1910 = vst [vmem:[%s10665_s29 + $0xac0] sm:$0xff] %v1909_v24  ;;  %v1913_v26 = vld [vmem:[%s10660_s28 + $0x15a0] sm:$0xff]  ;;  %v1915_v27 = vld [vmem:[%s10660_s28 + $0x15b0] sm:$0xff]  ;;  %1912 = vst [vmem:[%s10665_s29 + $0xac8] sm:$0xff] %v1911_v25 }
  0xc3   : > { %1914 = vst [vmem:[%s10665_s29 + $0xad0] sm:$0xff] %v1913_v26  ;;  %1916 = vst [vmem:[%s10665_s29 + $0xad8] sm:$0xff] %v1915_v27  ;;  %v1917_v28 = vld [vmem:[%s10660_s28 + $0x15c0] sm:$0xff]  ;;  %v1919_v29 = vld [vmem:[%s10660_s28 + $0x15d0] sm:$0xff] }
  0xc4   : > { %v1921_v30 = vld [vmem:[%s10660_s28 + $0x15e0] sm:$0xff]  ;;  %1918 = vst [vmem:[%s10665_s29 + $0xae0] sm:$0xff] %v1917_v28  ;;  %1920 = vst [vmem:[%s10665_s29 + $0xae8] sm:$0xff] %v1919_v29  ;;  %v1923_v31 = vld [vmem:[%s10660_s28 + $0x15f0] sm:$0xff] }
  0xc5   : > { %1922 = vst [vmem:[%s10665_s29 + $0xaf0] sm:$0xff] %v1921_v30  ;;  %v1925_v32 = vld [vmem:[%s10660_s28 + $0x1600] sm:$0xff]  ;;  %v1927_v33 = vld [vmem:[%s10660_s28 + $0x1610] sm:$0xff]  ;;  %1924 = vst [vmem:[%s10665_s29 + $0xaf8] sm:$0xff] %v1923_v31 }
  0xc6   : > { %1926 = vst [vmem:[%s10665_s29 + $0xb00] sm:$0xff] %v1925_v32  ;;  %1928 = vst [vmem:[%s10665_s29 + $0xb08] sm:$0xff] %v1927_v33  ;;  %v1929_v34 = vld [vmem:[%s10660_s28 + $0x1620] sm:$0xff]  ;;  %v1931_v35 = vld [vmem:[%s10660_s28 + $0x1630] sm:$0xff] }
  0xc7   : > { %v1933_v36 = vld [vmem:[%s10660_s28 + $0x1640] sm:$0xff]  ;;  %1930 = vst [vmem:[%s10665_s29 + $0xb10] sm:$0xff] %v1929_v34  ;;  %1932 = vst [vmem:[%s10665_s29 + $0xb18] sm:$0xff] %v1931_v35  ;;  %v1935_v37 = vld [vmem:[%s10660_s28 + $0x1650] sm:$0xff] }
  0xc8   : > { %1934 = vst [vmem:[%s10665_s29 + $0xb20] sm:$0xff] %v1933_v36  ;;  %v1937_v38 = vld [vmem:[%s10660_s28 + $0x1660] sm:$0xff]  ;;  %v1939_v39 = vld [vmem:[%s10660_s28 + $0x1670] sm:$0xff]  ;;  %1936 = vst [vmem:[%s10665_s29 + $0xb28] sm:$0xff] %v1935_v37 }
  0xc9   : > { %1938 = vst [vmem:[%s10665_s29 + $0xb30] sm:$0xff] %v1937_v38  ;;  %1940 = vst [vmem:[%s10665_s29 + $0xb38] sm:$0xff] %v1939_v39  ;;  %v1941_v40 = vld [vmem:[%s10660_s28 + $0x1680] sm:$0xff]  ;;  %v1943_v41 = vld [vmem:[%s10660_s28 + $0x1690] sm:$0xff] }
  0xca   : > { %v1945_v42 = vld [vmem:[%s10660_s28 + $0x16a0] sm:$0xff]  ;;  %1942 = vst [vmem:[%s10665_s29 + $0xb40] sm:$0xff] %v1941_v40  ;;  %1944 = vst [vmem:[%s10665_s29 + $0xb48] sm:$0xff] %v1943_v41  ;;  %v1947_v43 = vld [vmem:[%s10660_s28 + $0x16b0] sm:$0xff] }
  0xcb   : > { %1946 = vst [vmem:[%s10665_s29 + $0xb50] sm:$0xff] %v1945_v42  ;;  %v1949_v44 = vld [vmem:[%s10660_s28 + $0x16c0] sm:$0xff]  ;;  %v1951_v45 = vld [vmem:[%s10660_s28 + $0x16d0] sm:$0xff]  ;;  %1948 = vst [vmem:[%s10665_s29 + $0xb58] sm:$0xff] %v1947_v43 }
  0xcc   : > { %1950 = vst [vmem:[%s10665_s29 + $0xb60] sm:$0xff] %v1949_v44  ;;  %1952 = vst [vmem:[%s10665_s29 + $0xb68] sm:$0xff] %v1951_v45  ;;  %v1953_v46 = vld [vmem:[%s10660_s28 + $0x16e0] sm:$0xff]  ;;  %v1955_v47 = vld [vmem:[%s10660_s28 + $0x16f0] sm:$0xff] }
  0xcd   : > { %v1957_v48 = vld [vmem:[%s10660_s28 + $0x1700] sm:$0xff]  ;;  %1954 = vst [vmem:[%s10665_s29 + $0xb70] sm:$0xff] %v1953_v46  ;;  %1956 = vst [vmem:[%s10665_s29 + $0xb78] sm:$0xff] %v1955_v47  ;;  %v1959_v49 = vld [vmem:[%s10660_s28 + $0x1710] sm:$0xff] }
  0xce   : > { %1958 = vst [vmem:[%s10665_s29 + $0xb80] sm:$0xff] %v1957_v48  ;;  %v1961_v50 = vld [vmem:[%s10660_s28 + $0x1720] sm:$0xff]  ;;  %v1963_v51 = vld [vmem:[%s10660_s28 + $0x1730] sm:$0xff]  ;;  %1960 = vst [vmem:[%s10665_s29 + $0xb88] sm:$0xff] %v1959_v49 }
  0xcf   : > { %1962 = vst [vmem:[%s10665_s29 + $0xb90] sm:$0xff] %v1961_v50  ;;  %1964 = vst [vmem:[%s10665_s29 + $0xb98] sm:$0xff] %v1963_v51  ;;  %v1965_v52 = vld [vmem:[%s10660_s28 + $0x1740] sm:$0xff]  ;;  %v1967_v53 = vld [vmem:[%s10660_s28 + $0x1750] sm:$0xff] }
  0xd0   : > { %v1969_v54 = vld [vmem:[%s10660_s28 + $0x1760] sm:$0xff]  ;;  %1966 = vst [vmem:[%s10665_s29 + $0xba0] sm:$0xff] %v1965_v52  ;;  %1968 = vst [vmem:[%s10665_s29 + $0xba8] sm:$0xff] %v1967_v53  ;;  %v1971_v55 = vld [vmem:[%s10660_s28 + $0x1770] sm:$0xff] }
  0xd1   : > { %1970 = vst [vmem:[%s10665_s29 + $0xbb0] sm:$0xff] %v1969_v54  ;;  %v1973_v56 = vld [vmem:[%s10660_s28 + $0x1780] sm:$0xff]  ;;  %v1975_v57 = vld [vmem:[%s10660_s28 + $0x1790] sm:$0xff]  ;;  %1972 = vst [vmem:[%s10665_s29 + $0xbb8] sm:$0xff] %v1971_v55 }
  0xd2   : > { %1974 = vst [vmem:[%s10665_s29 + $0xbc0] sm:$0xff] %v1973_v56  ;;  %1976 = vst [vmem:[%s10665_s29 + $0xbc8] sm:$0xff] %v1975_v57  ;;  %v1977_v58 = vld [vmem:[%s10660_s28 + $0x17a0] sm:$0xff]  ;;  %v1979_v59 = vld [vmem:[%s10660_s28 + $0x17b0] sm:$0xff] }
  0xd3   : > { %v1981_v60 = vld [vmem:[%s10660_s28 + $0x17c0] sm:$0xff]  ;;  %1978 = vst [vmem:[%s10665_s29 + $0xbd0] sm:$0xff] %v1977_v58  ;;  %1980 = vst [vmem:[%s10665_s29 + $0xbd8] sm:$0xff] %v1979_v59  ;;  %v1983_v61 = vld [vmem:[%s10660_s28 + $0x17d0] sm:$0xff] }
  0xd4   : > { %1982 = vst [vmem:[%s10665_s29 + $0xbe0] sm:$0xff] %v1981_v60  ;;  %v1985_v62 = vld [vmem:[%s10660_s28 + $0x17e0] sm:$0xff]  ;;  %v1987_v63 = vld [vmem:[%s10660_s28 + $0x17f0] sm:$0xff]  ;;  %1984 = vst [vmem:[%s10665_s29 + $0xbe8] sm:$0xff] %v1983_v61 }
  0xd5   : > { %1986 = vst [vmem:[%s10665_s29 + $0xbf0] sm:$0xff] %v1985_v62  ;;  %1988 = vst [vmem:[%s10665_s29 + $0xbf8] sm:$0xff] %v1987_v63  ;;  %v1989_v0 = vld [vmem:[%s10660_s28 + $0x1800] sm:$0xff]  ;;  %v1991_v1 = vld [vmem:[%s10660_s28 + $0x1810] sm:$0xff] }
  0xd6   : > { %v1993_v2 = vld [vmem:[%s10660_s28 + $0x1820] sm:$0xff]  ;;  %1990 = vst [vmem:[%s10665_s29 + $0xc00] sm:$0xff] %v1989_v0  ;;  %1992 = vst [vmem:[%s10665_s29 + $0xc08] sm:$0xff] %v1991_v1  ;;  %v1995_v3 = vld [vmem:[%s10660_s28 + $0x1830] sm:$0xff] }
  0xd7   : > { %1994 = vst [vmem:[%s10665_s29 + $0xc10] sm:$0xff] %v1993_v2  ;;  %v1997_v4 = vld [vmem:[%s10660_s28 + $0x1840] sm:$0xff]  ;;  %v1999_v5 = vld [vmem:[%s10660_s28 + $0x1850] sm:$0xff]  ;;  %1996 = vst [vmem:[%s10665_s29 + $0xc18] sm:$0xff] %v1995_v3 }
  0xd8   : > { %1998 = vst [vmem:[%s10665_s29 + $0xc20] sm:$0xff] %v1997_v4  ;;  %2000 = vst [vmem:[%s10665_s29 + $0xc28] sm:$0xff] %v1999_v5  ;;  %v2001_v6 = vld [vmem:[%s10660_s28 + $0x1860] sm:$0xff]  ;;  %v2003_v7 = vld [vmem:[%s10660_s28 + $0x1870] sm:$0xff] }
  0xd9   : > { %v2005_v8 = vld [vmem:[%s10660_s28 + $0x1880] sm:$0xff]  ;;  %2002 = vst [vmem:[%s10665_s29 + $0xc30] sm:$0xff] %v2001_v6  ;;  %2004 = vst [vmem:[%s10665_s29 + $0xc38] sm:$0xff] %v2003_v7  ;;  %v2007_v9 = vld [vmem:[%s10660_s28 + $0x1890] sm:$0xff] }
  0xda   : > { %2006 = vst [vmem:[%s10665_s29 + $0xc40] sm:$0xff] %v2005_v8  ;;  %v2009_v10 = vld [vmem:[%s10660_s28 + $0x18a0] sm:$0xff]  ;;  %v2011_v11 = vld [vmem:[%s10660_s28 + $0x18b0] sm:$0xff]  ;;  %2008 = vst [vmem:[%s10665_s29 + $0xc48] sm:$0xff] %v2007_v9 }
  0xdb   : > { %2010 = vst [vmem:[%s10665_s29 + $0xc50] sm:$0xff] %v2009_v10  ;;  %2012 = vst [vmem:[%s10665_s29 + $0xc58] sm:$0xff] %v2011_v11  ;;  %v2013_v12 = vld [vmem:[%s10660_s28 + $0x18c0] sm:$0xff]  ;;  %v2015_v13 = vld [vmem:[%s10660_s28 + $0x18d0] sm:$0xff] }
  0xdc   : > { %v2017_v14 = vld [vmem:[%s10660_s28 + $0x18e0] sm:$0xff]  ;;  %2014 = vst [vmem:[%s10665_s29 + $0xc60] sm:$0xff] %v2013_v12  ;;  %2016 = vst [vmem:[%s10665_s29 + $0xc68] sm:$0xff] %v2015_v13  ;;  %v2019_v15 = vld [vmem:[%s10660_s28 + $0x18f0] sm:$0xff] }
  0xdd   : > { %2018 = vst [vmem:[%s10665_s29 + $0xc70] sm:$0xff] %v2017_v14  ;;  %v2021_v16 = vld [vmem:[%s10660_s28 + $0x1900] sm:$0xff]  ;;  %v2023_v17 = vld [vmem:[%s10660_s28 + $0x1910] sm:$0xff]  ;;  %2020 = vst [vmem:[%s10665_s29 + $0xc78] sm:$0xff] %v2019_v15 }
  0xde   : > { %2022 = vst [vmem:[%s10665_s29 + $0xc80] sm:$0xff] %v2021_v16  ;;  %2024 = vst [vmem:[%s10665_s29 + $0xc88] sm:$0xff] %v2023_v17  ;;  %v2025_v18 = vld [vmem:[%s10660_s28 + $0x1920] sm:$0xff]  ;;  %v2027_v19 = vld [vmem:[%s10660_s28 + $0x1930] sm:$0xff] }
  0xdf   : > { %v2029_v20 = vld [vmem:[%s10660_s28 + $0x1940] sm:$0xff]  ;;  %2026 = vst [vmem:[%s10665_s29 + $0xc90] sm:$0xff] %v2025_v18  ;;  %2028 = vst [vmem:[%s10665_s29 + $0xc98] sm:$0xff] %v2027_v19  ;;  %v2031_v21 = vld [vmem:[%s10660_s28 + $0x1950] sm:$0xff] }
  0xe0   : > { %2030 = vst [vmem:[%s10665_s29 + $0xca0] sm:$0xff] %v2029_v20  ;;  %v2033_v22 = vld [vmem:[%s10660_s28 + $0x1960] sm:$0xff]  ;;  %v2035_v23 = vld [vmem:[%s10660_s28 + $0x1970] sm:$0xff]  ;;  %2032 = vst [vmem:[%s10665_s29 + $0xca8] sm:$0xff] %v2031_v21 }
  0xe1   : > { %2034 = vst [vmem:[%s10665_s29 + $0xcb0] sm:$0xff] %v2033_v22  ;;  %2036 = vst [vmem:[%s10665_s29 + $0xcb8] sm:$0xff] %v2035_v23  ;;  %v2037_v24 = vld [vmem:[%s10660_s28 + $0x1980] sm:$0xff]  ;;  %v2039_v25 = vld [vmem:[%s10660_s28 + $0x1990] sm:$0xff] }
  0xe2   : > { %v2041_v26 = vld [vmem:[%s10660_s28 + $0x19a0] sm:$0xff]  ;;  %2038 = vst [vmem:[%s10665_s29 + $0xcc0] sm:$0xff] %v2037_v24  ;;  %2040 = vst [vmem:[%s10665_s29 + $0xcc8] sm:$0xff] %v2039_v25  ;;  %v2043_v27 = vld [vmem:[%s10660_s28 + $0x19b0] sm:$0xff] }
  0xe3   : > { %2042 = vst [vmem:[%s10665_s29 + $0xcd0] sm:$0xff] %v2041_v26  ;;  %v2045_v28 = vld [vmem:[%s10660_s28 + $0x19c0] sm:$0xff]  ;;  %v2047_v29 = vld [vmem:[%s10660_s28 + $0x19d0] sm:$0xff]  ;;  %2044 = vst [vmem:[%s10665_s29 + $0xcd8] sm:$0xff] %v2043_v27 }
  0xe4   : > { %2046 = vst [vmem:[%s10665_s29 + $0xce0] sm:$0xff] %v2045_v28  ;;  %2048 = vst [vmem:[%s10665_s29 + $0xce8] sm:$0xff] %v2047_v29  ;;  %v2049_v30 = vld [vmem:[%s10660_s28 + $0x19e0] sm:$0xff]  ;;  %v2051_v31 = vld [vmem:[%s10660_s28 + $0x19f0] sm:$0xff] }
  0xe5   : > { %v2053_v32 = vld [vmem:[%s10660_s28 + $0x1a00] sm:$0xff]  ;;  %2050 = vst [vmem:[%s10665_s29 + $0xcf0] sm:$0xff] %v2049_v30  ;;  %2052 = vst [vmem:[%s10665_s29 + $0xcf8] sm:$0xff] %v2051_v31  ;;  %v2055_v33 = vld [vmem:[%s10660_s28 + $0x1a10] sm:$0xff] }
  0xe6   : > { %2054 = vst [vmem:[%s10665_s29 + $0xd00] sm:$0xff] %v2053_v32  ;;  %v2057_v34 = vld [vmem:[%s10660_s28 + $0x1a20] sm:$0xff]  ;;  %v2059_v35 = vld [vmem:[%s10660_s28 + $0x1a30] sm:$0xff]  ;;  %2056 = vst [vmem:[%s10665_s29 + $0xd08] sm:$0xff] %v2055_v33 }
  0xe7   : > { %2058 = vst [vmem:[%s10665_s29 + $0xd10] sm:$0xff] %v2057_v34  ;;  %2060 = vst [vmem:[%s10665_s29 + $0xd18] sm:$0xff] %v2059_v35  ;;  %v2061_v36 = vld [vmem:[%s10660_s28 + $0x1a40] sm:$0xff]  ;;  %v2063_v37 = vld [vmem:[%s10660_s28 + $0x1a50] sm:$0xff] }
  0xe8   : > { %v2065_v38 = vld [vmem:[%s10660_s28 + $0x1a60] sm:$0xff]  ;;  %2062 = vst [vmem:[%s10665_s29 + $0xd20] sm:$0xff] %v2061_v36  ;;  %2064 = vst [vmem:[%s10665_s29 + $0xd28] sm:$0xff] %v2063_v37  ;;  %v2067_v39 = vld [vmem:[%s10660_s28 + $0x1a70] sm:$0xff] }
  0xe9   : > { %2066 = vst [vmem:[%s10665_s29 + $0xd30] sm:$0xff] %v2065_v38  ;;  %v2069_v40 = vld [vmem:[%s10660_s28 + $0x1a80] sm:$0xff]  ;;  %v2071_v41 = vld [vmem:[%s10660_s28 + $0x1a90] sm:$0xff]  ;;  %2068 = vst [vmem:[%s10665_s29 + $0xd38] sm:$0xff] %v2067_v39 }
  0xea   : > { %2070 = vst [vmem:[%s10665_s29 + $0xd40] sm:$0xff] %v2069_v40  ;;  %2072 = vst [vmem:[%s10665_s29 + $0xd48] sm:$0xff] %v2071_v41  ;;  %v2073_v42 = vld [vmem:[%s10660_s28 + $0x1aa0] sm:$0xff]  ;;  %v2075_v43 = vld [vmem:[%s10660_s28 + $0x1ab0] sm:$0xff] }
  0xeb   : > { %v2077_v44 = vld [vmem:[%s10660_s28 + $0x1ac0] sm:$0xff]  ;;  %2074 = vst [vmem:[%s10665_s29 + $0xd50] sm:$0xff] %v2073_v42  ;;  %2076 = vst [vmem:[%s10665_s29 + $0xd58] sm:$0xff] %v2075_v43  ;;  %v2079_v45 = vld [vmem:[%s10660_s28 + $0x1ad0] sm:$0xff] }
  0xec   : > { %2078 = vst [vmem:[%s10665_s29 + $0xd60] sm:$0xff] %v2077_v44  ;;  %v2081_v46 = vld [vmem:[%s10660_s28 + $0x1ae0] sm:$0xff]  ;;  %v2083_v47 = vld [vmem:[%s10660_s28 + $0x1af0] sm:$0xff]  ;;  %2080 = vst [vmem:[%s10665_s29 + $0xd68] sm:$0xff] %v2079_v45 }
  0xed   : > { %2082 = vst [vmem:[%s10665_s29 + $0xd70] sm:$0xff] %v2081_v46  ;;  %2084 = vst [vmem:[%s10665_s29 + $0xd78] sm:$0xff] %v2083_v47  ;;  %v2085_v48 = vld [vmem:[%s10660_s28 + $0x1b00] sm:$0xff]  ;;  %v2087_v49 = vld [vmem:[%s10660_s28 + $0x1b10] sm:$0xff] }
  0xee   : > { %v2089_v50 = vld [vmem:[%s10660_s28 + $0x1b20] sm:$0xff]  ;;  %2086 = vst [vmem:[%s10665_s29 + $0xd80] sm:$0xff] %v2085_v48  ;;  %2088 = vst [vmem:[%s10665_s29 + $0xd88] sm:$0xff] %v2087_v49  ;;  %v2091_v51 = vld [vmem:[%s10660_s28 + $0x1b30] sm:$0xff] }
  0xef   : > { %2090 = vst [vmem:[%s10665_s29 + $0xd90] sm:$0xff] %v2089_v50  ;;  %v2093_v52 = vld [vmem:[%s10660_s28 + $0x1b40] sm:$0xff]  ;;  %v2095_v53 = vld [vmem:[%s10660_s28 + $0x1b50] sm:$0xff]  ;;  %2092 = vst [vmem:[%s10665_s29 + $0xd98] sm:$0xff] %v2091_v51 }
  0xf0   : > { %2094 = vst [vmem:[%s10665_s29 + $0xda0] sm:$0xff] %v2093_v52  ;;  %2096 = vst [vmem:[%s10665_s29 + $0xda8] sm:$0xff] %v2095_v53  ;;  %v2097_v54 = vld [vmem:[%s10660_s28 + $0x1b60] sm:$0xff]  ;;  %v2099_v55 = vld [vmem:[%s10660_s28 + $0x1b70] sm:$0xff] }
  0xf1   : > { %v2101_v56 = vld [vmem:[%s10660_s28 + $0x1b80] sm:$0xff]  ;;  %2098 = vst [vmem:[%s10665_s29 + $0xdb0] sm:$0xff] %v2097_v54  ;;  %2100 = vst [vmem:[%s10665_s29 + $0xdb8] sm:$0xff] %v2099_v55  ;;  %v2103_v57 = vld [vmem:[%s10660_s28 + $0x1b90] sm:$0xff] }
  0xf2   : > { %2102 = vst [vmem:[%s10665_s29 + $0xdc0] sm:$0xff] %v2101_v56  ;;  %v2105_v58 = vld [vmem:[%s10660_s28 + $0x1ba0] sm:$0xff]  ;;  %v2107_v59 = vld [vmem:[%s10660_s28 + $0x1bb0] sm:$0xff]  ;;  %2104 = vst [vmem:[%s10665_s29 + $0xdc8] sm:$0xff] %v2103_v57 }
  0xf3   : > { %2106 = vst [vmem:[%s10665_s29 + $0xdd0] sm:$0xff] %v2105_v58  ;;  %2108 = vst [vmem:[%s10665_s29 + $0xdd8] sm:$0xff] %v2107_v59  ;;  %v2109_v60 = vld [vmem:[%s10660_s28 + $0x1bc0] sm:$0xff]  ;;  %v2111_v61 = vld [vmem:[%s10660_s28 + $0x1bd0] sm:$0xff] }
  0xf4   : > { %v2113_v62 = vld [vmem:[%s10660_s28 + $0x1be0] sm:$0xff]  ;;  %2110 = vst [vmem:[%s10665_s29 + $0xde0] sm:$0xff] %v2109_v60  ;;  %2112 = vst [vmem:[%s10665_s29 + $0xde8] sm:$0xff] %v2111_v61  ;;  %v2115_v63 = vld [vmem:[%s10660_s28 + $0x1bf0] sm:$0xff] }
  0xf5   : > { %2114 = vst [vmem:[%s10665_s29 + $0xdf0] sm:$0xff] %v2113_v62  ;;  %v2117_v0 = vld [vmem:[%s10660_s28 + $0x1c00] sm:$0xff]  ;;  %v2119_v1 = vld [vmem:[%s10660_s28 + $0x1c10] sm:$0xff]  ;;  %2116 = vst [vmem:[%s10665_s29 + $0xdf8] sm:$0xff] %v2115_v63 }
  0xf6   : > { %2118 = vst [vmem:[%s10665_s29 + $0xe00] sm:$0xff] %v2117_v0  ;;  %2120 = vst [vmem:[%s10665_s29 + $0xe08] sm:$0xff] %v2119_v1  ;;  %v2121_v2 = vld [vmem:[%s10660_s28 + $0x1c20] sm:$0xff]  ;;  %v2123_v3 = vld [vmem:[%s10660_s28 + $0x1c30] sm:$0xff] }
  0xf7   : > { %v2125_v4 = vld [vmem:[%s10660_s28 + $0x1c40] sm:$0xff]  ;;  %2122 = vst [vmem:[%s10665_s29 + $0xe10] sm:$0xff] %v2121_v2  ;;  %2124 = vst [vmem:[%s10665_s29 + $0xe18] sm:$0xff] %v2123_v3  ;;  %v2127_v5 = vld [vmem:[%s10660_s28 + $0x1c50] sm:$0xff] }
  0xf8   : > { %2126 = vst [vmem:[%s10665_s29 + $0xe20] sm:$0xff] %v2125_v4  ;;  %v2129_v6 = vld [vmem:[%s10660_s28 + $0x1c60] sm:$0xff]  ;;  %v2131_v7 = vld [vmem:[%s10660_s28 + $0x1c70] sm:$0xff]  ;;  %2128 = vst [vmem:[%s10665_s29 + $0xe28] sm:$0xff] %v2127_v5 }
  0xf9   : > { %2130 = vst [vmem:[%s10665_s29 + $0xe30] sm:$0xff] %v2129_v6  ;;  %2132 = vst [vmem:[%s10665_s29 + $0xe38] sm:$0xff] %v2131_v7  ;;  %v2133_v8 = vld [vmem:[%s10660_s28 + $0x1c80] sm:$0xff]  ;;  %v2135_v9 = vld [vmem:[%s10660_s28 + $0x1c90] sm:$0xff] }
  0xfa   : > { %v2137_v10 = vld [vmem:[%s10660_s28 + $0x1ca0] sm:$0xff]  ;;  %2134 = vst [vmem:[%s10665_s29 + $0xe40] sm:$0xff] %v2133_v8  ;;  %2136 = vst [vmem:[%s10665_s29 + $0xe48] sm:$0xff] %v2135_v9  ;;  %v2139_v11 = vld [vmem:[%s10660_s28 + $0x1cb0] sm:$0xff] }
  0xfb   : > { %2138 = vst [vmem:[%s10665_s29 + $0xe50] sm:$0xff] %v2137_v10  ;;  %v2141_v12 = vld [vmem:[%s10660_s28 + $0x1cc0] sm:$0xff]  ;;  %v2143_v13 = vld [vmem:[%s10660_s28 + $0x1cd0] sm:$0xff]  ;;  %2140 = vst [vmem:[%s10665_s29 + $0xe58] sm:$0xff] %v2139_v11 }
  0xfc   : > { %2142 = vst [vmem:[%s10665_s29 + $0xe60] sm:$0xff] %v2141_v12  ;;  %2144 = vst [vmem:[%s10665_s29 + $0xe68] sm:$0xff] %v2143_v13  ;;  %v2145_v14 = vld [vmem:[%s10660_s28 + $0x1ce0] sm:$0xff]  ;;  %v2147_v15 = vld [vmem:[%s10660_s28 + $0x1cf0] sm:$0xff] }
  0xfd   : > { %v2149_v16 = vld [vmem:[%s10660_s28 + $0x1d00] sm:$0xff]  ;;  %2146 = vst [vmem:[%s10665_s29 + $0xe70] sm:$0xff] %v2145_v14  ;;  %2148 = vst [vmem:[%s10665_s29 + $0xe78] sm:$0xff] %v2147_v15  ;;  %v2151_v17 = vld [vmem:[%s10660_s28 + $0x1d10] sm:$0xff] }
  0xfe   : > { %2150 = vst [vmem:[%s10665_s29 + $0xe80] sm:$0xff] %v2149_v16  ;;  %v2153_v18 = vld [vmem:[%s10660_s28 + $0x1d20] sm:$0xff]  ;;  %v2155_v19 = vld [vmem:[%s10660_s28 + $0x1d30] sm:$0xff]  ;;  %2152 = vst [vmem:[%s10665_s29 + $0xe88] sm:$0xff] %v2151_v17 }
  0xff   : > { %2154 = vst [vmem:[%s10665_s29 + $0xe90] sm:$0xff] %v2153_v18  ;;  %2156 = vst [vmem:[%s10665_s29 + $0xe98] sm:$0xff] %v2155_v19  ;;  %v2157_v20 = vld [vmem:[%s10660_s28 + $0x1d40] sm:$0xff]  ;;  %v2159_v21 = vld [vmem:[%s10660_s28 + $0x1d50] sm:$0xff] }
 0x100   : > { %v2161_v22 = vld [vmem:[%s10660_s28 + $0x1d60] sm:$0xff]  ;;  %2158 = vst [vmem:[%s10665_s29 + $0xea0] sm:$0xff] %v2157_v20  ;;  %2160 = vst [vmem:[%s10665_s29 + $0xea8] sm:$0xff] %v2159_v21  ;;  %v2163_v23 = vld [vmem:[%s10660_s28 + $0x1d70] sm:$0xff] }
 0x101   : > { %2162 = vst [vmem:[%s10665_s29 + $0xeb0] sm:$0xff] %v2161_v22  ;;  %v2165_v24 = vld [vmem:[%s10660_s28 + $0x1d80] sm:$0xff]  ;;  %v2167_v25 = vld [vmem:[%s10660_s28 + $0x1d90] sm:$0xff]  ;;  %2164 = vst [vmem:[%s10665_s29 + $0xeb8] sm:$0xff] %v2163_v23 }
 0x102   : > { %2166 = vst [vmem:[%s10665_s29 + $0xec0] sm:$0xff] %v2165_v24  ;;  %2168 = vst [vmem:[%s10665_s29 + $0xec8] sm:$0xff] %v2167_v25  ;;  %v2169_v26 = vld [vmem:[%s10660_s28 + $0x1da0] sm:$0xff]  ;;  %v2171_v27 = vld [vmem:[%s10660_s28 + $0x1db0] sm:$0xff] }
 0x103   : > { %v2173_v28 = vld [vmem:[%s10660_s28 + $0x1dc0] sm:$0xff]  ;;  %2170 = vst [vmem:[%s10665_s29 + $0xed0] sm:$0xff] %v2169_v26  ;;  %2172 = vst [vmem:[%s10665_s29 + $0xed8] sm:$0xff] %v2171_v27  ;;  %v2175_v29 = vld [vmem:[%s10660_s28 + $0x1dd0] sm:$0xff] }
 0x104   : > { %2174 = vst [vmem:[%s10665_s29 + $0xee0] sm:$0xff] %v2173_v28  ;;  %v2177_v30 = vld [vmem:[%s10660_s28 + $0x1de0] sm:$0xff]  ;;  %v2179_v31 = vld [vmem:[%s10660_s28 + $0x1df0] sm:$0xff]  ;;  %2176 = vst [vmem:[%s10665_s29 + $0xee8] sm:$0xff] %v2175_v29 }
 0x105   : > { %2178 = vst [vmem:[%s10665_s29 + $0xef0] sm:$0xff] %v2177_v30  ;;  %2180 = vst [vmem:[%s10665_s29 + $0xef8] sm:$0xff] %v2179_v31  ;;  %v2181_v32 = vld [vmem:[%s10660_s28 + $0x1e00] sm:$0xff]  ;;  %v2183_v33 = vld [vmem:[%s10660_s28 + $0x1e10] sm:$0xff] }
 0x106   : > { %v2185_v34 = vld [vmem:[%s10660_s28 + $0x1e20] sm:$0xff]  ;;  %2182 = vst [vmem:[%s10665_s29 + $0xf00] sm:$0xff] %v2181_v32  ;;  %2184 = vst [vmem:[%s10665_s29 + $0xf08] sm:$0xff] %v2183_v33  ;;  %v2187_v35 = vld [vmem:[%s10660_s28 + $0x1e30] sm:$0xff] }
 0x107   : > { %2186 = vst [vmem:[%s10665_s29 + $0xf10] sm:$0xff] %v2185_v34  ;;  %v2189_v36 = vld [vmem:[%s10660_s28 + $0x1e40] sm:$0xff]  ;;  %v2191_v37 = vld [vmem:[%s10660_s28 + $0x1e50] sm:$0xff]  ;;  %2188 = vst [vmem:[%s10665_s29 + $0xf18] sm:$0xff] %v2187_v35 }
 0x108   : > { %2190 = vst [vmem:[%s10665_s29 + $0xf20] sm:$0xff] %v2189_v36  ;;  %2192 = vst [vmem:[%s10665_s29 + $0xf28] sm:$0xff] %v2191_v37  ;;  %v2193_v38 = vld [vmem:[%s10660_s28 + $0x1e60] sm:$0xff]  ;;  %v2195_v39 = vld [vmem:[%s10660_s28 + $0x1e70] sm:$0xff] }
 0x109   : > { %v2197_v40 = vld [vmem:[%s10660_s28 + $0x1e80] sm:$0xff]  ;;  %2194 = vst [vmem:[%s10665_s29 + $0xf30] sm:$0xff] %v2193_v38  ;;  %2196 = vst [vmem:[%s10665_s29 + $0xf38] sm:$0xff] %v2195_v39  ;;  %v2199_v41 = vld [vmem:[%s10660_s28 + $0x1e90] sm:$0xff] }
 0x10a   : > { %2198 = vst [vmem:[%s10665_s29 + $0xf40] sm:$0xff] %v2197_v40  ;;  %v2201_v42 = vld [vmem:[%s10660_s28 + $0x1ea0] sm:$0xff]  ;;  %v2203_v43 = vld [vmem:[%s10660_s28 + $0x1eb0] sm:$0xff]  ;;  %2200 = vst [vmem:[%s10665_s29 + $0xf48] sm:$0xff] %v2199_v41 }
 0x10b   : > { %2202 = vst [vmem:[%s10665_s29 + $0xf50] sm:$0xff] %v2201_v42  ;;  %2204 = vst [vmem:[%s10665_s29 + $0xf58] sm:$0xff] %v2203_v43  ;;  %v2205_v44 = vld [vmem:[%s10660_s28 + $0x1ec0] sm:$0xff]  ;;  %v2207_v45 = vld [vmem:[%s10660_s28 + $0x1ed0] sm:$0xff] }
 0x10c   : > { %v2209_v46 = vld [vmem:[%s10660_s28 + $0x1ee0] sm:$0xff]  ;;  %2206 = vst [vmem:[%s10665_s29 + $0xf60] sm:$0xff] %v2205_v44  ;;  %2208 = vst [vmem:[%s10665_s29 + $0xf68] sm:$0xff] %v2207_v45  ;;  %v2211_v47 = vld [vmem:[%s10660_s28 + $0x1ef0] sm:$0xff] }
 0x10d   : > { %2210 = vst [vmem:[%s10665_s29 + $0xf70] sm:$0xff] %v2209_v46  ;;  %v2213_v48 = vld [vmem:[%s10660_s28 + $0x1f00] sm:$0xff]  ;;  %v2215_v49 = vld [vmem:[%s10660_s28 + $0x1f10] sm:$0xff]  ;;  %2212 = vst [vmem:[%s10665_s29 + $0xf78] sm:$0xff] %v2211_v47 }
 0x10e   : > { %2214 = vst [vmem:[%s10665_s29 + $0xf80] sm:$0xff] %v2213_v48  ;;  %2216 = vst [vmem:[%s10665_s29 + $0xf88] sm:$0xff] %v2215_v49  ;;  %v2217_v50 = vld [vmem:[%s10660_s28 + $0x1f20] sm:$0xff]  ;;  %v2219_v51 = vld [vmem:[%s10660_s28 + $0x1f30] sm:$0xff] }
 0x10f   : > { %v2221_v52 = vld [vmem:[%s10660_s28 + $0x1f40] sm:$0xff]  ;;  %2218 = vst [vmem:[%s10665_s29 + $0xf90] sm:$0xff] %v2217_v50  ;;  %2220 = vst [vmem:[%s10665_s29 + $0xf98] sm:$0xff] %v2219_v51  ;;  %v2223_v53 = vld [vmem:[%s10660_s28 + $0x1f50] sm:$0xff] }
 0x110   : > { %2222 = vst [vmem:[%s10665_s29 + $0xfa0] sm:$0xff] %v2221_v52  ;;  %v2225_v54 = vld [vmem:[%s10660_s28 + $0x1f60] sm:$0xff]  ;;  %v2227_v55 = vld [vmem:[%s10660_s28 + $0x1f70] sm:$0xff]  ;;  %2224 = vst [vmem:[%s10665_s29 + $0xfa8] sm:$0xff] %v2223_v53 }
 0x111   : > { %2226 = vst [vmem:[%s10665_s29 + $0xfb0] sm:$0xff] %v2225_v54  ;;  %2228 = vst [vmem:[%s10665_s29 + $0xfb8] sm:$0xff] %v2227_v55  ;;  %v2229_v56 = vld [vmem:[%s10660_s28 + $0x1f80] sm:$0xff]  ;;  %v2231_v57 = vld [vmem:[%s10660_s28 + $0x1f90] sm:$0xff] }
 0x112   : > { %v2233_v58 = vld [vmem:[%s10660_s28 + $0x1fa0] sm:$0xff]  ;;  %2230 = vst [vmem:[%s10665_s29 + $0xfc0] sm:$0xff] %v2229_v56  ;;  %2232 = vst [vmem:[%s10665_s29 + $0xfc8] sm:$0xff] %v2231_v57  ;;  %v2235_v59 = vld [vmem:[%s10660_s28 + $0x1fb0] sm:$0xff] }
 0x113   : > { %2234 = vst [vmem:[%s10665_s29 + $0xfd0] sm:$0xff] %v2233_v58  ;;  %v2237_v60 = vld [vmem:[%s10660_s28 + $0x1fc0] sm:$0xff]  ;;  %v2239_v61 = vld [vmem:[%s10660_s28 + $0x1fd0] sm:$0xff]  ;;  %2236 = vst [vmem:[%s10665_s29 + $0xfd8] sm:$0xff] %v2235_v59 }
 0x114   : > { %2238 = vst [vmem:[%s10665_s29 + $0xfe0] sm:$0xff] %v2237_v60  ;;  %2240 = vst [vmem:[%s10665_s29 + $0xfe8] sm:$0xff] %v2239_v61  ;;  %v2241_v62 = vld [vmem:[%s10660_s28 + $0x1fe0] sm:$0xff]  ;;  %v2243_v63 = vld [vmem:[%s10660_s28 + $0x1ff0] sm:$0xff] }
 0x115   : > { %2242 = vst [vmem:[%s10665_s29 + $0xff0] sm:$0xff] %v2241_v62  ;;  %2244 = vst [vmem:[%s10665_s29 + $0xff8] sm:$0xff] %v2243_v63 }
 0x116 PF: > { %p9025_p8 = scmp.ge.s32.totalorder %s10589_s16, 1  ;;  %p4333_p9 = scmp.lt.s32.totalorder %s10589_s16, 3 }
 0x118   : > { %p4334_p10 = pnand %p9025_p8, %p4333_p9 }
 0x119   : > { %s4340_s30 = sand.u32 (!%p4334_p10), 1, %s10573_s12   ;;  %v11694_v0 = vld [vmem:[%s12570_s0] sm:$0xff] (!%p4334_p10)  ;;  %s9028_s12 = sshll.u32 (!%p4334_p10), %s10581_s14, 1 }
 0x11a   : > { %4337 = sbr.rel (%p4334_p10) target bundleno = 1047 (0x417), region = 76  ;;  %v11699_v1 = vld [vmem:[%s12570_s0 + $0x80] sm:$0xff] (!%p4334_p10)  ;;  %s9026_s10 = sshll.u32 (!%p4334_p10), %s4340_s30, 12 }
 0x11b   : > { %v11704_v2 = vld [vmem:[%s12570_s0 + $0x40] sm:$0xff] (!%p4334_p10)  ;;  %v9030_v3 = vcombine.low (!%p4334_p10), %v11694_v0, %v11699_v1  ;;  %v9031_v4 = vcombine.high (!%p4334_p10), %v11694_v0, %v11699_v1  ;;  %s11721_s19 = scalar_lea.vmem (!%p4334_p10), [#allocation2], %s9026_s10  ;;  %p4390_p11 = scmp.lt.s32.totalorder (!%p4334_p10), %s9028_s12, 3 }
 0x11c   : > { %v11715_v5 = vld [vmem:[%s12570_s0 + $0xc0] sm:$0xff] (!%p4334_p10)  ;;  %v9789_v12 = vld [vmem:[%s11721_s19 + $0x14] ss:$8 sps:$4 sm:$0xff] (!%p4334_p10)   ;;  %v9793_v14 = vld [vmem:[%s11721_s19 + $0x10] ss:$8 sps:$4 sm:$0xff] (!%p4334_p10)  }
 0x11d   : > { %v9046_v6 = vcombine.low (!%p4334_p10), %v11704_v2, %v11715_v5  ;;  %v9047_v7 = vcombine.high (!%p4334_p10), %v11704_v2, %v11715_v5  ;;  %v9783_v8 = vld [vmem:[%s11721_s19 + $0x4] ss:$8 sps:$4 sm:$0xff] (!%p4334_p10)   ;;  %7885 = vmatprep.mubr.bf16.mxu1 (!%p4334_p10), %v9031_v4  ;;  %v9787_v10 = vld [vmem:[%s11721_s19] ss:$8 sps:$4 sm:$0xff] (!%p4334_p10)   ;;  %v9791_v13 = vld [vmem:[%s11721_s19 + $0x814] ss:$8 sps:$4 sm:$0xff] (!%p4334_p10)  }
 0x11e   : > { %v9785_v9 = vld [vmem:[%s11721_s19 + $0x804] ss:$8 sps:$4 sm:$0xff] (!%p4334_p10)   ;;  %7853 = vmatprep.subr.bf16.mxu1 (!%p4334_p10), %v9783_v8  ;;  %v9788_v11 = vld [vmem:[%s11721_s19 + $0x800] ss:$8 sps:$4 sm:$0xff] (!%p4334_p10)   ;;  %v9794_v15 = vld [vmem:[%s11721_s19 + $0x810] ss:$8 sps:$4 sm:$0xff] (!%p4334_p10)  }
 0x11f   : > { %8309 = vmatprep.mubr.bf16.mxu0 (!%p4334_p10), %v9047_v7  ;;  %8277 = vmatprep.subr.bf16.mxu0 (!%p4334_p10), %v9785_v9  ;;  %v9795_v16 = vld [vmem:[%s11721_s19 + $0x24] ss:$8 sps:$4 sm:$0xff] (!%p4334_p10)   ;;  %v9799_v18 = vld [vmem:[%s11721_s19 + $0x20] ss:$8 sps:$4 sm:$0xff] (!%p4334_p10)   ;;  %v9801_v20 = vld [vmem:[%s11721_s19 + $0x34] ss:$8 sps:$4 sm:$0xff] (!%p4334_p10)  }
 0x120   : > { %7854 = vmatpush1.bf16.msra.mxu1 (!%p4334_p10), %v9787_v10  ;;  %8278 = vmatpush1.bf16.msra.mxu0 (!%p4334_p10), %v9788_v11  ;;  %v9797_v17 = vld [vmem:[%s11721_s19 + $0x824] ss:$8 sps:$4 sm:$0xff] (!%p4334_p10)   ;;  %v9800_v19 = vld [vmem:[%s11721_s19 + $0x820] ss:$8 sps:$4 sm:$0xff] (!%p4334_p10)   ;;  %v9803_v21 = vld [vmem:[%s11721_s19 + $0x834] ss:$8 sps:$4 sm:$0xff] (!%p4334_p10)  }
 0x121   : > { %7855 = vmatprep.subr.bf16.mxu1 %v9789_v12  ;;  %8279 = vmatprep.subr.bf16.mxu0 %v9791_v13  ;;  %v9805_v22 = vld [vmem:[%s11721_s19 + $0x30] ss:$8 sps:$4 sm:$0xff]   ;;  %v9807_v24 = vld [vmem:[%s11721_s19 + $0x44] ss:$8 sps:$4 sm:$0xff]   ;;  %v9811_v26 = vld [vmem:[%s11721_s19 + $0x40] ss:$8 sps:$4 sm:$0xff]  }
 0x122   : > { %v9806_v23 = vld [vmem:[%s11721_s19 + $0x830] ss:$8 sps:$4 sm:$0xff]   ;;  %v9809_v25 = vld [vmem:[%s11721_s19 + $0x844] ss:$8 sps:$4 sm:$0xff]   ;;  %v9812_v27 = vld [vmem:[%s11721_s19 + $0x840] ss:$8 sps:$4 sm:$0xff]  }
 0x123   : > { %v9813_v28 = vld [vmem:[%s11721_s19 + $0x54] ss:$8 sps:$4 sm:$0xff]   ;;  %v9817_v30 = vld [vmem:[%s11721_s19 + $0x50] ss:$8 sps:$4 sm:$0xff]   ;;  %v9819_v32 = vld [vmem:[%s11721_s19 + $0x64] ss:$8 sps:$4 sm:$0xff]  }
 0x124   : > { %7856 = vmatpush1.bf16.msra.mxu1 %v9793_v14  ;;  %8280 = vmatpush1.bf16.msra.mxu0 %v9794_v15  ;;  %v9815_v29 = vld [vmem:[%s11721_s19 + $0x854] ss:$8 sps:$4 sm:$0xff]   ;;  %v9818_v31 = vld [vmem:[%s11721_s19 + $0x850] ss:$8 sps:$4 sm:$0xff]   ;;  %v9821_v33 = vld [vmem:[%s11721_s19 + $0x864] ss:$8 sps:$4 sm:$0xff]  }
 0x125   : > { %7857 = vmatprep.subr.bf16.mxu1 %v9795_v16  ;;  %8281 = vmatprep.subr.bf16.mxu0 %v9797_v17  ;;  %v9823_v34 = vld [vmem:[%s11721_s19 + $0x60] ss:$8 sps:$4 sm:$0xff]   ;;  %v9825_v36 = vld [vmem:[%s11721_s19 + $0x74] ss:$8 sps:$4 sm:$0xff]   ;;  %v9829_v38 = vld [vmem:[%s11721_s19 + $0x70] ss:$8 sps:$4 sm:$0xff]  }
 0x126   : > { %v9824_v35 = vld [vmem:[%s11721_s19 + $0x860] ss:$8 sps:$4 sm:$0xff]   ;;  %v9827_v37 = vld [vmem:[%s11721_s19 + $0x874] ss:$8 sps:$4 sm:$0xff]   ;;  %v9830_v39 = vld [vmem:[%s11721_s19 + $0x870] ss:$8 sps:$4 sm:$0xff]  }
 0x127   : > { %v9831_v40 = vld [vmem:[%s11721_s19 + $0x84] ss:$8 sps:$4 sm:$0xff]   ;;  %v9835_v42 = vld [vmem:[%s11721_s19 + $0x80] ss:$8 sps:$4 sm:$0xff]   ;;  %v9837_v44 = vld [vmem:[%s11721_s19 + $0x94] ss:$8 sps:$4 sm:$0xff]  }
 0x128   : > { %7858 = vmatpush1.bf16.msra.mxu1 %v9799_v18  ;;  %8282 = vmatpush1.bf16.msra.mxu0 %v9800_v19  ;;  %v9833_v41 = vld [vmem:[%s11721_s19 + $0x884] ss:$8 sps:$4 sm:$0xff]   ;;  %v9836_v43 = vld [vmem:[%s11721_s19 + $0x880] ss:$8 sps:$4 sm:$0xff]   ;;  %v9839_v45 = vld [vmem:[%s11721_s19 + $0x894] ss:$8 sps:$4 sm:$0xff]  }
 0x129   : > { %7859 = vmatprep.subr.bf16.mxu1 %v9801_v20  ;;  %8283 = vmatprep.subr.bf16.mxu0 %v9803_v21  ;;  %v9841_v46 = vld [vmem:[%s11721_s19 + $0x90] ss:$8 sps:$4 sm:$0xff]   ;;  %v9843_v48 = vld [vmem:[%s11721_s19 + $0xa4] ss:$8 sps:$4 sm:$0xff]   ;;  %v9847_v50 = vld [vmem:[%s11721_s19 + $0xa0] ss:$8 sps:$4 sm:$0xff]  }
 0x12a   : > { %v9842_v47 = vld [vmem:[%s11721_s19 + $0x890] ss:$8 sps:$4 sm:$0xff]   ;;  %v9845_v49 = vld [vmem:[%s11721_s19 + $0x8a4] ss:$8 sps:$4 sm:$0xff]   ;;  %v9848_v51 = vld [vmem:[%s11721_s19 + $0x8a0] ss:$8 sps:$4 sm:$0xff]  }
 0x12b   : > { %v9849_v52 = vld [vmem:[%s11721_s19 + $0xb4] ss:$8 sps:$4 sm:$0xff]   ;;  %v9853_v54 = vld [vmem:[%s11721_s19 + $0xb0] ss:$8 sps:$4 sm:$0xff]   ;;  %v9855_v56 = vld [vmem:[%s11721_s19 + $0xc4] ss:$8 sps:$4 sm:$0xff]  }
 0x12c   : > { %7860 = vmatpush1.bf16.msra.mxu1 %v9805_v22  ;;  %8284 = vmatpush1.bf16.msra.mxu0 %v9806_v23  ;;  %v9851_v53 = vld [vmem:[%s11721_s19 + $0x8b4] ss:$8 sps:$4 sm:$0xff]   ;;  %v9854_v55 = vld [vmem:[%s11721_s19 + $0x8b0] ss:$8 sps:$4 sm:$0xff]   ;;  %v9857_v57 = vld [vmem:[%s11721_s19 + $0x8c4] ss:$8 sps:$4 sm:$0xff]  }
 0x12d   : > { %7861 = vmatprep.subr.bf16.mxu1 %v9807_v24  ;;  %8285 = vmatprep.subr.bf16.mxu0 %v9809_v25  ;;  %v9859_v58 = vld [vmem:[%s11721_s19 + $0xc0] ss:$8 sps:$4 sm:$0xff]   ;;  %v9861_v60 = vld [vmem:[%s11721_s19 + $0xd4] ss:$8 sps:$4 sm:$0xff]   ;;  %v9865_v62 = vld [vmem:[%s11721_s19 + $0xd0] ss:$8 sps:$4 sm:$0xff]  }
 0x12e   : > { %v9860_v59 = vld [vmem:[%s11721_s19 + $0x8c0] ss:$8 sps:$4 sm:$0xff]   ;;  %v9863_v61 = vld [vmem:[%s11721_s19 + $0x8d4] ss:$8 sps:$4 sm:$0xff]   ;;  %v9866_v63 = vld [vmem:[%s11721_s19 + $0x8d0] ss:$8 sps:$4 sm:$0xff]  }
 0x12f   : > { %v9867_v4 = vld [vmem:[%s11721_s19 + $0xe4] ss:$8 sps:$4 sm:$0xff]   ;;  %v9871_v8 = vld [vmem:[%s11721_s19 + $0xe0] ss:$8 sps:$4 sm:$0xff]   ;;  %v9873_v10 = vld [vmem:[%s11721_s19 + $0xf4] ss:$8 sps:$4 sm:$0xff]  }
 0x130   : > { %7862 = vmatpush1.bf16.msra.mxu1 %v9811_v26  ;;  %8286 = vmatpush1.bf16.msra.mxu0 %v9812_v27  ;;  %v9869_v7 = vld [vmem:[%s11721_s19 + $0x8e4] ss:$8 sps:$4 sm:$0xff]   ;;  %v9872_v9 = vld [vmem:[%s11721_s19 + $0x8e0] ss:$8 sps:$4 sm:$0xff]   ;;  %v9875_v11 = vld [vmem:[%s11721_s19 + $0x8f4] ss:$8 sps:$4 sm:$0xff]  }
 0x131   : > { %7863 = vmatprep.subr.bf16.mxu1 %v9813_v28  ;;  %8287 = vmatprep.subr.bf16.mxu0 %v9815_v29  ;;  %v9877_v12 = vld [vmem:[%s11721_s19 + $0xf0] ss:$8 sps:$4 sm:$0xff]   ;;  %v9881_v14 = vld [vmem:[%s11721_s19 + $0x104] ss:$8 sps:$4 sm:$0xff]   ;;  %v9879_v20 = vld [vmem:[%s11721_s19 + $0x100] ss:$8 sps:$4 sm:$0xff]  }
 0x132   : > { %v9878_v13 = vld [vmem:[%s11721_s19 + $0x8f0] ss:$8 sps:$4 sm:$0xff]   ;;  %v9884_v15 = vld [vmem:[%s11721_s19 + $0x904] ss:$8 sps:$4 sm:$0xff]   ;;  %v9882_v21 = vld [vmem:[%s11721_s19 + $0x900] ss:$8 sps:$4 sm:$0xff]  }
 0x133   : > { %v4429_v16 = vld [vmem:[%s12570_s0 + $0x100] sm:$0xff]  ;;  %v9887_v22 = vld [vmem:[%s11721_s19 + $0x114] ss:$8 sps:$4 sm:$0xff]   ;;  %v9885_v26 = vld [vmem:[%s11721_s19 + $0x110] ss:$8 sps:$4 sm:$0xff]   ;;  %s12582_s12 = smov (!%p4390_p11, %s9028_s12), 3 }
 0x134   : > { %7864 = vmatpush1.bf16.msra.mxu1 %v9817_v30  ;;  %8288 = vmatpush1.bf16.msra.mxu0 %v9818_v31  ;;  %v4445_v17 = vld [vmem:[%s12570_s0 + $0x180] sm:$0xff]  ;;  %v9890_v23 = vld [vmem:[%s11721_s19 + $0x914] ss:$8 sps:$4 sm:$0xff]   ;;  %v9888_v27 = vld [vmem:[%s11721_s19 + $0x910] ss:$8 sps:$4 sm:$0xff]   ;;  %s9621_s27 = sshll.u32 (%p10647_p6), %s10581_s14, 3 }
 0x135   : > { %7865 = vmatprep.subr.bf16.mxu1 %v9819_v32  ;;  %8289 = vmatprep.subr.bf16.mxu0 %v9821_v33  ;;  %v4437_v18 = vld [vmem:[%s12570_s0 + $0x140] sm:$0xff]  ;;  %v9063_v24 = vcombine.high %v4429_v16, %v4445_v17  ;;  %v9899_v5 = vld [vmem:[%s11721_s19 + $0x134] ss:$8 sps:$4 sm:$0xff]   ;;  %v9897_v30 = vld [vmem:[%s11721_s19 + $0x130] ss:$8 sps:$4 sm:$0xff]   ;;  %s8839_s4 = scalar_lea.vmem (%p10647_p6), %s12572_s2, %s9621_s27 }
 0x136   : > { %v4453_v19 = vld [vmem:[%s12570_s0 + $0x1c0] sm:$0xff]  ;;  %v9900_v31 = vld [vmem:[%s11721_s19 + $0x930] ss:$8 sps:$4 sm:$0xff]  }
 0x137   : > { %v9079_v25 = vcombine.high %v4437_v18, %v4453_v19  ;;  %v9893_v28 = vld [vmem:[%s11721_s19 + $0x124] ss:$8 sps:$4 sm:$0xff]   ;;  %v9891_v0 = vld [vmem:[%s11721_s19 + $0x120] ss:$8 sps:$4 sm:$0xff]   ;;  %v9078_v2 = vcombine.low %v4437_v18, %v4453_v19  ;;  %v9957_v18 = vld [vmem:[%s11721_s19 + $0x1d0] ss:$8 sps:$4 sm:$0xff]  }
 0x138   : > { %7866 = vmatpush1.bf16.msra.mxu1 %v9823_v34  ;;  %8290 = vmatpush1.bf16.msra.mxu0 %v9824_v35  ;;  %v9896_v29 = vld [vmem:[%s11721_s19 + $0x924] ss:$8 sps:$4 sm:$0xff]   ;;  %v9894_v1 = vld [vmem:[%s11721_s19 + $0x920] ss:$8 sps:$4 sm:$0xff]   ;;  %v9960_v19 = vld [vmem:[%s11721_s19 + $0x9d0] ss:$8 sps:$4 sm:$0xff]  }
 0x139   : > { %7867 = vmatprep.subr.bf16.mxu1 %v9825_v36  ;;  %8291 = vmatprep.subr.bf16.mxu0 %v9827_v37  ;;  %v9905_v32 = vld [vmem:[%s11721_s19 + $0x144] ss:$8 sps:$4 sm:$0xff]   ;;  %v9903_v34 = vld [vmem:[%s11721_s19 + $0x140] ss:$8 sps:$4 sm:$0xff]   ;;  %v9911_v36 = vld [vmem:[%s11721_s19 + $0x154] ss:$8 sps:$4 sm:$0xff]  }
 0x13a   : > { %v9908_v33 = vld [vmem:[%s11721_s19 + $0x944] ss:$8 sps:$4 sm:$0xff]   ;;  %v9906_v35 = vld [vmem:[%s11721_s19 + $0x940] ss:$8 sps:$4 sm:$0xff]   ;;  %v9914_v37 = vld [vmem:[%s11721_s19 + $0x954] ss:$8 sps:$4 sm:$0xff]  }
 0x13c   : > { %7868 = vmatpush1.bf16.msra.mxu1 %v9829_v38  ;;  %8292 = vmatpush1.bf16.msra.mxu0 %v9830_v39  ;;  %v9909_v38 = vld [vmem:[%s11721_s19 + $0x150] ss:$8 sps:$4 sm:$0xff]  }
 0x13d   : > { %7869 = vmatprep.subr.bf16.mxu1 %v9831_v40  ;;  %8293 = vmatprep.subr.bf16.mxu0 %v9833_v41  ;;  %v9912_v39 = vld [vmem:[%s11721_s19 + $0x950] ss:$8 sps:$4 sm:$0xff]   ;;  %v9917_v40 = vld [vmem:[%s11721_s19 + $0x164] ss:$8 sps:$4 sm:$0xff]  }
 0x13e   : > { %v9920_v41 = vld [vmem:[%s11721_s19 + $0x964] ss:$8 sps:$4 sm:$0xff]  }
 0x140   : > { %7870 = vmatpush1.bf16.msra.mxu1 %v9835_v42  ;;  %8294 = vmatpush1.bf16.msra.mxu0 %v9836_v43  ;;  %v11834_v42 = vld [vmem:[%s12570_s0 + $0x8] sm:$0xff] }
 0x141   : > { %7871 = vmatprep.subr.bf16.mxu1 %v9837_v44  ;;  %8295 = vmatprep.subr.bf16.mxu0 %v9839_v45  ;;  %v11839_v43 = vld [vmem:[%s12570_s0 + $0x88] sm:$0xff] }
 0x142   : > { %v9915_v44 = vld [vmem:[%s11721_s19 + $0x160] ss:$8 sps:$4 sm:$0xff]   ;;  %v9033_v45 = vcombine.high %v11834_v42, %v11839_v43 }
 0x144   : > { %7872 = vmatpush1.bf16.msra.mxu1 %v9841_v46  ;;  %8296 = vmatpush1.bf16.msra.mxu0 %v9842_v47  ;;  %v9918_v46 = vld [vmem:[%s11721_s19 + $0x960] ss:$8 sps:$4 sm:$0xff]  }
 0x145   : > { %7873 = vmatprep.subr.bf16.mxu1 %v9843_v48  ;;  %8297 = vmatprep.subr.bf16.mxu0 %v9845_v49  ;;  %v11848_v47 = vld [vmem:[%s12570_s0 + $0x48] sm:$0xff]  ;;  %v9923_v49 = vld [vmem:[%s11721_s19 + $0x174] ss:$8 sps:$4 sm:$0xff]  }
 0x146   : > { %v11853_v48 = vld [vmem:[%s12570_s0 + $0xc8] sm:$0xff] }
 0x148   : > { %7874 = vmatpush1.bf16.msra.mxu1 %v9847_v50  ;;  %8298 = vmatpush1.bf16.msra.mxu0 %v9848_v51  ;;  %v9049_v50 = vcombine.high %v11848_v47, %v11853_v48  ;;  %v9926_v51 = vld [vmem:[%s11721_s19 + $0x974] ss:$8 sps:$4 sm:$0xff]  }
 0x149   : > { %7875 = vmatprep.subr.bf16.mxu1 %v9849_v52  ;;  %8299 = vmatprep.subr.bf16.mxu0 %v9851_v53  ;;  %v9921_v52 = vld [vmem:[%s11721_s19 + $0x170] ss:$8 sps:$4 sm:$0xff]  }
 0x14a   : > { %v9924_v53 = vld [vmem:[%s11721_s19 + $0x970] ss:$8 sps:$4 sm:$0xff]  }
 0x14c   : > { %7876 = vmatpush1.bf16.msra.mxu1 %v9853_v54  ;;  %8300 = vmatpush1.bf16.msra.mxu0 %v9854_v55  ;;  %v9929_v54 = vld [vmem:[%s11721_s19 + $0x184] ss:$8 sps:$4 sm:$0xff]  }
 0x14d   : > { %7877 = vmatprep.subr.bf16.mxu1 %v9855_v56  ;;  %8301 = vmatprep.subr.bf16.mxu0 %v9857_v57  ;;  %v9932_v55 = vld [vmem:[%s11721_s19 + $0x984] ss:$8 sps:$4 sm:$0xff]   ;;  %v9927_v56 = vld [vmem:[%s11721_s19 + $0x180] ss:$8 sps:$4 sm:$0xff]  }
 0x14e   : > { %v9930_v57 = vld [vmem:[%s11721_s19 + $0x980] ss:$8 sps:$4 sm:$0xff]  }
 0x150   : > { %7878 = vmatpush1.bf16.msra.mxu1 %v9859_v58  ;;  %8302 = vmatpush1.bf16.msra.mxu0 %v9860_v59  ;;  %v9935_v58 = vld [vmem:[%s11721_s19 + $0x194] ss:$8 sps:$4 sm:$0xff]  }
 0x151   : > { %7879 = vmatprep.subr.bf16.mxu1 %v9861_v60  ;;  %8303 = vmatprep.subr.bf16.mxu0 %v9863_v61  ;;  %v9938_v59 = vld [vmem:[%s11721_s19 + $0x994] ss:$8 sps:$4 sm:$0xff]   ;;  %v9933_v60 = vld [vmem:[%s11721_s19 + $0x190] ss:$8 sps:$4 sm:$0xff]  }
 0x152   : > { %v9936_v61 = vld [vmem:[%s11721_s19 + $0x990] ss:$8 sps:$4 sm:$0xff]  }
 0x154   : > { %7880 = vmatpush1.bf16.msra.mxu1 %v9865_v62  ;;  %8304 = vmatpush1.bf16.msra.mxu0 %v9866_v63  ;;  %v9941_v62 = vld [vmem:[%s11721_s19 + $0x1a4] ss:$8 sps:$4 sm:$0xff]  }
 0x155   : > { %7881 = vmatprep.subr.bf16.mxu1 %v9867_v4  ;;  %8305 = vmatprep.subr.bf16.mxu0 %v9869_v7  ;;  %v9944_v63 = vld [vmem:[%s11721_s19 + $0x9a4] ss:$8 sps:$4 sm:$0xff]   ;;  %v9939_v4 = vld [vmem:[%s11721_s19 + $0x1a0] ss:$8 sps:$4 sm:$0xff]  }
 0x156   : > { %v9942_v7 = vld [vmem:[%s11721_s19 + $0x9a0] ss:$8 sps:$4 sm:$0xff]  }
 0x158   : > { %7882 = vmatpush1.bf16.msra.mxu1 %v9871_v8  ;;  %8306 = vmatpush1.bf16.msra.mxu0 %v9872_v9  ;;  %v9947_v8 = vld [vmem:[%s11721_s19 + $0x1b4] ss:$8 sps:$4 sm:$0xff]  }
 0x159   : > { %7883 = vmatprep.subr.bf16.mxu1 %v9873_v10  ;;  %8307 = vmatprep.subr.bf16.mxu0 %v9875_v11  ;;  %v9950_v9 = vld [vmem:[%s11721_s19 + $0x9b4] ss:$8 sps:$4 sm:$0xff]   ;;  %v9945_v10 = vld [vmem:[%s11721_s19 + $0x1b0] ss:$8 sps:$4 sm:$0xff]  }
 0x15a   : > { %v9948_v11 = vld [vmem:[%s11721_s19 + $0x9b0] ss:$8 sps:$4 sm:$0xff]  }
 0x15c   : > { %7884 = vmatpush1.bf16.msra.mxu1 %v9877_v12  ;;  %8308 = vmatpush1.bf16.msra.mxu0 %v9878_v13  ;;  %v9953_v12 = vld [vmem:[%s11721_s19 + $0x1c4] ss:$8 sps:$4 sm:$0xff]  }
 0x15d   : > { %7906 = vmatprep.subr.bf16.mxu1 %v9881_v14  ;;  %8330 = vmatprep.subr.bf16.mxu0 %v9884_v15  ;;  %v9956_v13 = vld [vmem:[%s11721_s19 + $0x9c4] ss:$8 sps:$4 sm:$0xff]   ;;  %v9951_v14 = vld [vmem:[%s11721_s19 + $0x1c0] ss:$8 sps:$4 sm:$0xff]  }
 0x15e   : > { %v9954_v15 = vld [vmem:[%s11721_s19 + $0x9c0] ss:$8 sps:$4 sm:$0xff]  }
 0x15f   : > { %7886 = vmatmul.mubr.bf16.vlgmr.msra.gmra.mrb[0].mxu1 %v9030_v3  ;;  %8310 = vmatmul.mubr.bf16.vlgmr.msra.gmra.mrb[0].mxu0 %v9046_v6  ;;  %v9062_v3 = vcombine.low %v4429_v16, %v4445_v17  ;;  %v9902_v6 = vld [vmem:[%s11721_s19 + $0x934] ss:$8 sps:$4 sm:$0xff]  }
 0x160   : > { %7907 = vmatpush1.bf16.msra.mxu1 %v9879_v20  ;;  %8331 = vmatpush1.bf16.msra.mxu0 %v9882_v21  ;;  %v9959_v16 = vld [vmem:[%s11721_s19 + $0x1d4] ss:$8 sps:$4 sm:$0xff]   ;;  %v9965_v20 = vld [vmem:[%s11721_s19 + $0x1e4] ss:$8 sps:$4 sm:$0xff]  }
 0x161   : > { %7908 = vmatprep.subr.bf16.mxu1 %v9887_v22  ;;  %8332 = vmatprep.subr.bf16.mxu0 %v9890_v23  ;;  %v9962_v17 = vld [vmem:[%s11721_s19 + $0x9d4] ss:$8 sps:$4 sm:$0xff]   ;;  %v9968_v21 = vld [vmem:[%s11721_s19 + $0x9e4] ss:$8 sps:$4 sm:$0xff]   ;;  %v9963_v22 = vld [vmem:[%s11721_s19 + $0x1e0] ss:$8 sps:$4 sm:$0xff]  }
 0x162   : > { %7895 = vmatprep.mubr.bf16.mxu1 %v9063_v24  ;;  %8319 = vmatprep.mubr.bf16.mxu0 %v9079_v25  ;;  %v9966_v23 = vld [vmem:[%s11721_s19 + $0x9e0] ss:$8 sps:$4 sm:$0xff]   ;;  %v9971_v24 = vld [vmem:[%s11721_s19 + $0x1f4] ss:$8 sps:$4 sm:$0xff]  }
 0x163   : > { %v9974_v25 = vld [vmem:[%s11721_s19 + $0x9f4] ss:$8 sps:$4 sm:$0xff]  }
 0x164   : > { %7909 = vmatpush1.bf16.msra.mxu1 %v9885_v26  ;;  %8333 = vmatpush1.bf16.msra.mxu0 %v9888_v27  ;;  %v9969_v26 = vld [vmem:[%s11721_s19 + $0x1f0] ss:$8 sps:$4 sm:$0xff]  }
 0x165   : > { %7910 = vmatprep.subr.bf16.mxu1 %v9893_v28  ;;  %8334 = vmatprep.subr.bf16.mxu0 %v9896_v29  ;;  %v9972_v27 = vld [vmem:[%s11721_s19 + $0x9f0] ss:$8 sps:$4 sm:$0xff]   ;;  %v9977_v28 = vld [vmem:[%s11721_s19 + $0x204] ss:$8 sps:$4 sm:$0xff]  }
 0x166   : > { %v9980_v29 = vld [vmem:[%s11721_s19 + $0xa04] ss:$8 sps:$4 sm:$0xff]  }
 0x167   : > { %7896 = vmatmul.mubr.bf16.gmra.mrb[4].mxu1 %v9062_v3  ;;  %8320 = vmatmul.mubr.bf16.gmra.mrb[4].mxu0 %v9078_v2  ;;  %v4430_v3 = vld [vmem:[%s12570_s0 + $0x108] sm:$0xff] }
 0x168   : > { %7911 = vmatpush1.bf16.msra.mxu1 %v9891_v0  ;;  %8335 = vmatpush1.bf16.msra.mxu0 %v9894_v1  ;;  %v9975_v0 = vld [vmem:[%s11721_s19 + $0x200] ss:$8 sps:$4 sm:$0xff]  }
 0x169   : > { %7912 = vmatprep.subr.bf16.mxu1 %v9899_v5  ;;  %8336 = vmatprep.subr.bf16.mxu0 %v9902_v6  ;;  %v9978_v1 = vld [vmem:[%s11721_s19 + $0xa00] ss:$8 sps:$4 sm:$0xff]   ;;  %v9032_v5 = vcombine.low %v11834_v42, %v11839_v43  ;;  %v9048_v6 = vcombine.low %v11848_v47, %v11853_v48  ;;  %v11924_v42 = vld [vmem:[%s12570_s0 + $0x10] sm:$0xff] }
 0x16a   : > { %7938 = vmatprep.mubr.bf16.mxu1 %v9033_v45  ;;  %8362 = vmatprep.mubr.bf16.mxu0 %v9049_v50  ;;  %v4446_v2 = vld [vmem:[%s12570_s0 + $0x188] sm:$0xff]  ;;  %v11929_v43 = vld [vmem:[%s12570_s0 + $0x90] sm:$0xff] }
 0x16b   : > { %v11939_v47 = vld [vmem:[%s12570_s0 + $0xd0] sm:$0xff]  ;;  %v9035_v50 = vcombine.high %v11924_v42, %v11929_v43 }
 0x16c   : > { %7913 = vmatpush1.bf16.msra.mxu1 %v9897_v30  ;;  %8337 = vmatpush1.bf16.msra.mxu0 %v9900_v31  ;;  %v4438_v30 = vld [vmem:[%s12570_s0 + $0x148] sm:$0xff]  ;;  %v9995_v48 = vld [vmem:[%s11721_s19 + $0x234] ss:$8 sps:$4 sm:$0xff]  }
 0x16d   : > { %7914 = vmatprep.subr.bf16.mxu1 %v9905_v32  ;;  %8338 = vmatprep.subr.bf16.mxu0 %v9908_v33  ;;  %v4454_v31 = vld [vmem:[%s12570_s0 + $0x1c8] sm:$0xff]  ;;  %v9983_v32 = vld [vmem:[%s11721_s19 + $0x214] ss:$8 sps:$4 sm:$0xff]  }
 0x16e   : > { %v9986_v33 = vld [vmem:[%s11721_s19 + $0xa14] ss:$8 sps:$4 sm:$0xff]   ;;  %v9080_v45 = vcombine.low %v4438_v30, %v4454_v31 }
 0x170   : > { %7915 = vmatpush1.bf16.msra.mxu1 %v9903_v34  ;;  %8339 = vmatpush1.bf16.msra.mxu0 %v9906_v35  ;;  %v9065_v34 = vcombine.high %v4430_v3, %v4446_v2  ;;  %v9081_v35 = vcombine.high %v4438_v30, %v4454_v31  ;;  %v10061_v30 = vld [vmem:[%s11721_s19 + $0x2e4] ss:$8 sps:$4 sm:$0xff]  }
 0x171   : > { %7916 = vmatprep.subr.bf16.mxu1 %v9911_v36  ;;  %8340 = vmatprep.subr.bf16.mxu0 %v9914_v37  ;;  %v9981_v36 = vld [vmem:[%s11721_s19 + $0x210] ss:$8 sps:$4 sm:$0xff]   ;;  %v10064_v31 = vld [vmem:[%s11721_s19 + $0xae4] ss:$8 sps:$4 sm:$0xff]  }
 0x172   : > { %v9984_v37 = vld [vmem:[%s11721_s19 + $0xa10] ss:$8 sps:$4 sm:$0xff]  }
 0x174   : > { %7917 = vmatpush1.bf16.msra.mxu1 %v9909_v38  ;;  %8341 = vmatpush1.bf16.msra.mxu0 %v9912_v39  ;;  %v9989_v38 = vld [vmem:[%s11721_s19 + $0x224] ss:$8 sps:$4 sm:$0xff]  }
 0x175   : > { %7918 = vmatprep.subr.bf16.mxu1 %v9917_v40  ;;  %8342 = vmatprep.subr.bf16.mxu0 %v9920_v41  ;;  %v9992_v39 = vld [vmem:[%s11721_s19 + $0xa24] ss:$8 sps:$4 sm:$0xff]   ;;  %v9987_v40 = vld [vmem:[%s11721_s19 + $0x220] ss:$8 sps:$4 sm:$0xff]  }
 0x176   : > { %v9990_v41 = vld [vmem:[%s11721_s19 + $0xa20] ss:$8 sps:$4 sm:$0xff]  }
 0x178   : > { %7919 = vmatpush1.bf16.msra.mxu1 %v9915_v44  ;;  %8343 = vmatpush1.bf16.msra.mxu0 %v9918_v46  ;;  %v9064_v44 = vcombine.low %v4430_v3, %v4446_v2  ;;  %v11934_v46 = vld [vmem:[%s12570_s0 + $0x50] sm:$0xff] }
 0x179   : > { %7920 = vmatprep.subr.bf16.mxu1 %v9923_v49  ;;  %8344 = vmatprep.subr.bf16.mxu0 %v9926_v51  ;;  %v9998_v49 = vld [vmem:[%s11721_s19 + $0xa34] ss:$8 sps:$4 sm:$0xff]   ;;  %v9051_v51 = vcombine.high %v11934_v46, %v11939_v47 }
 0x17a   : > { %v10055_v3 = vld [vmem:[%s11721_s19 + $0x2d4] ss:$8 sps:$4 sm:$0xff]  }
 0x17b   : > { %v10058_v2 = vld [vmem:[%s11721_s19 + $0xad4] ss:$8 sps:$4 sm:$0xff]  }
 0x17c   : > { %7921 = vmatpush1.bf16.msra.mxu1 %v9921_v52  ;;  %8345 = vmatpush1.bf16.msra.mxu0 %v9924_v53  ;;  %v9993_v52 = vld [vmem:[%s11721_s19 + $0x230] ss:$8 sps:$4 sm:$0xff]  }
 0x17d   : > { %7922 = vmatprep.subr.bf16.mxu1 %v9929_v54  ;;  %8346 = vmatprep.subr.bf16.mxu0 %v9932_v55  ;;  %v9996_v53 = vld [vmem:[%s11721_s19 + $0xa30] ss:$8 sps:$4 sm:$0xff]   ;;  %v10001_v54 = vld [vmem:[%s11721_s19 + $0x244] ss:$8 sps:$4 sm:$0xff]  }
 0x17e   : > { %v10004_v55 = vld [vmem:[%s11721_s19 + $0xa44] ss:$8 sps:$4 sm:$0xff]  }
 0x180   : > { %7923 = vmatpush1.bf16.msra.mxu1 %v9927_v56  ;;  %8347 = vmatpush1.bf16.msra.mxu0 %v9930_v57  ;;  %v9999_v56 = vld [vmem:[%s11721_s19 + $0x240] ss:$8 sps:$4 sm:$0xff]  }
 0x181   : > { %7924 = vmatprep.subr.bf16.mxu1 %v9935_v58  ;;  %8348 = vmatprep.subr.bf16.mxu0 %v9938_v59  ;;  %v10002_v57 = vld [vmem:[%s11721_s19 + $0xa40] ss:$8 sps:$4 sm:$0xff]   ;;  %v10007_v58 = vld [vmem:[%s11721_s19 + $0x254] ss:$8 sps:$4 sm:$0xff]  }
 0x182   : > { %v10010_v59 = vld [vmem:[%s11721_s19 + $0xa54] ss:$8 sps:$4 sm:$0xff]  }
 0x184   : > { %7925 = vmatpush1.bf16.msra.mxu1 %v9933_v60  ;;  %8349 = vmatpush1.bf16.msra.mxu0 %v9936_v61  ;;  %v10005_v60 = vld [vmem:[%s11721_s19 + $0x250] ss:$8 sps:$4 sm:$0xff]  }
 0x185   : > { %7926 = vmatprep.subr.bf16.mxu1 %v9941_v62  ;;  %8350 = vmatprep.subr.bf16.mxu0 %v9944_v63  ;;  %v10008_v61 = vld [vmem:[%s11721_s19 + $0xa50] ss:$8 sps:$4 sm:$0xff]   ;;  %v10013_v62 = vld [vmem:[%s11721_s19 + $0x264] ss:$8 sps:$4 sm:$0xff]  }
 0x186   : > { %v10016_v63 = vld [vmem:[%s11721_s19 + $0xa64] ss:$8 sps:$4 sm:$0xff]  }
 0x188   : > { %7927 = vmatpush1.bf16.msra.mxu1 %v9939_v4  ;;  %8351 = vmatpush1.bf16.msra.mxu0 %v9942_v7  ;;  %v10011_v4 = vld [vmem:[%s11721_s19 + $0x260] ss:$8 sps:$4 sm:$0xff]  }
 0x189   : > { %7928 = vmatprep.subr.bf16.mxu1 %v9947_v8  ;;  %8352 = vmatprep.subr.bf16.mxu0 %v9950_v9  ;;  %v10014_v7 = vld [vmem:[%s11721_s19 + $0xa60] ss:$8 sps:$4 sm:$0xff]   ;;  %v10019_v8 = vld [vmem:[%s11721_s19 + $0x274] ss:$8 sps:$4 sm:$0xff]  }
 0x18a   : > { %v10022_v9 = vld [vmem:[%s11721_s19 + $0xa74] ss:$8 sps:$4 sm:$0xff]  }
 0x18c   : > { %7929 = vmatpush1.bf16.msra.mxu1 %v9945_v10  ;;  %8353 = vmatpush1.bf16.msra.mxu0 %v9948_v11  ;;  %v10017_v10 = vld [vmem:[%s11721_s19 + $0x270] ss:$8 sps:$4 sm:$0xff]  }
 0x18d   : > { %7930 = vmatprep.subr.bf16.mxu1 %v9953_v12  ;;  %8354 = vmatprep.subr.bf16.mxu0 %v9956_v13  ;;  %v10020_v11 = vld [vmem:[%s11721_s19 + $0xa70] ss:$8 sps:$4 sm:$0xff]   ;;  %v10025_v12 = vld [vmem:[%s11721_s19 + $0x284] ss:$8 sps:$4 sm:$0xff]  }
 0x18e   : > { %v10028_v13 = vld [vmem:[%s11721_s19 + $0xa84] ss:$8 sps:$4 sm:$0xff]  }
 0x190   : > { %7931 = vmatpush1.bf16.msra.mxu1 %v9951_v14  ;;  %8355 = vmatpush1.bf16.msra.mxu0 %v9954_v15  ;;  %v10023_v14 = vld [vmem:[%s11721_s19 + $0x280] ss:$8 sps:$4 sm:$0xff]  }
 0x191   : > { %7932 = vmatprep.subr.bf16.mxu1 %v9959_v16  ;;  %8356 = vmatprep.subr.bf16.mxu0 %v9962_v17  ;;  %v10026_v15 = vld [vmem:[%s11721_s19 + $0xa80] ss:$8 sps:$4 sm:$0xff]   ;;  %v10031_v16 = vld [vmem:[%s11721_s19 + $0x294] ss:$8 sps:$4 sm:$0xff]  }
 0x192   : > { %v10034_v17 = vld [vmem:[%s11721_s19 + $0xa94] ss:$8 sps:$4 sm:$0xff]  }
 0x194   : > { %7933 = vmatpush1.bf16.msra.mxu1 %v9957_v18  ;;  %8357 = vmatpush1.bf16.msra.mxu0 %v9960_v19  ;;  %v10029_v18 = vld [vmem:[%s11721_s19 + $0x290] ss:$8 sps:$4 sm:$0xff]  }
 0x195   : > { %7934 = vmatprep.subr.bf16.mxu1 %v9965_v20  ;;  %8358 = vmatprep.subr.bf16.mxu0 %v9968_v21  ;;  %v10032_v19 = vld [vmem:[%s11721_s19 + $0xa90] ss:$8 sps:$4 sm:$0xff]   ;;  %v10037_v20 = vld [vmem:[%s11721_s19 + $0x2a4] ss:$8 sps:$4 sm:$0xff]  }
 0x196   : > { %v10040_v21 = vld [vmem:[%s11721_s19 + $0xaa4] ss:$8 sps:$4 sm:$0xff]  }
 0x198   : > { %7935 = vmatpush1.bf16.msra.mxu1 %v9963_v22  ;;  %8359 = vmatpush1.bf16.msra.mxu0 %v9966_v23  ;;  %v10035_v22 = vld [vmem:[%s11721_s19 + $0x2a0] ss:$8 sps:$4 sm:$0xff]  }
 0x199   : > { %7936 = vmatprep.subr.bf16.mxu1 %v9971_v24  ;;  %8360 = vmatprep.subr.bf16.mxu0 %v9974_v25  ;;  %v10038_v23 = vld [vmem:[%s11721_s19 + $0xaa0] ss:$8 sps:$4 sm:$0xff]   ;;  %v10043_v24 = vld [vmem:[%s11721_s19 + $0x2b4] ss:$8 sps:$4 sm:$0xff]  }
 0x19a   : > { %v10046_v25 = vld [vmem:[%s11721_s19 + $0xab4] ss:$8 sps:$4 sm:$0xff]  }
 0x19c   : > { %7937 = vmatpush1.bf16.msra.mxu1 %v9969_v26  ;;  %8361 = vmatpush1.bf16.msra.mxu0 %v9972_v27  ;;  %v10041_v26 = vld [vmem:[%s11721_s19 + $0x2b0] ss:$8 sps:$4 sm:$0xff]  }
 0x19d   : > { %7959 = vmatprep.subr.bf16.mxu1 %v9977_v28  ;;  %8383 = vmatprep.subr.bf16.mxu0 %v9980_v29  ;;  %v10044_v27 = vld [vmem:[%s11721_s19 + $0xab0] ss:$8 sps:$4 sm:$0xff]   ;;  %v10049_v28 = vld [vmem:[%s11721_s19 + $0x2c4] ss:$8 sps:$4 sm:$0xff]  }
 0x19e   : > { %v10052_v29 = vld [vmem:[%s11721_s19 + $0xac4] ss:$8 sps:$4 sm:$0xff]  }
 0x19f   : > { %7939 = vmatmul.mubr.bf16.vlgmr.msra.gmra.mrb[0].mxu1 %v9032_v5  ;;  %8363 = vmatmul.mubr.bf16.vlgmr.msra.gmra.mrb[0].mxu0 %v9048_v6  ;;  %v10053_v5 = vld [vmem:[%s11721_s19 + $0x2d0] ss:$8 sps:$4 sm:$0xff]  }
 0x1a0   : > { %7960 = vmatpush1.bf16.msra.mxu1 %v9975_v0  ;;  %8384 = vmatpush1.bf16.msra.mxu0 %v9978_v1  ;;  %v10047_v0 = vld [vmem:[%s11721_s19 + $0x2c0] ss:$8 sps:$4 sm:$0xff]   ;;  %v10056_v6 = vld [vmem:[%s11721_s19 + $0xad0] ss:$8 sps:$4 sm:$0xff]  }
 0x1a1   : > { %7961 = vmatprep.subr.bf16.mxu1 %v9983_v32  ;;  %8385 = vmatprep.subr.bf16.mxu0 %v9986_v33  ;;  %v10050_v1 = vld [vmem:[%s11721_s19 + $0xac0] ss:$8 sps:$4 sm:$0xff]  }
 0x1a2   : > { %7948 = vmatprep.mubr.bf16.mxu1 %v9065_v34  ;;  %8372 = vmatprep.mubr.bf16.mxu0 %v9081_v35  ;;  %v10059_v32 = vld [vmem:[%s11721_s19 + $0x2e0] ss:$8 sps:$4 sm:$0xff]   ;;  %v10067_v34 = vld [vmem:[%s11721_s19 + $0x2f4] ss:$8 sps:$4 sm:$0xff]  }
 0x1a3   : > { %v10062_v33 = vld [vmem:[%s11721_s19 + $0xae0] ss:$8 sps:$4 sm:$0xff]   ;;  %v10070_v35 = vld [vmem:[%s11721_s19 + $0xaf4] ss:$8 sps:$4 sm:$0xff]  }
 0x1a4   : > { %7962 = vmatpush1.bf16.msra.mxu1 %v9981_v36  ;;  %8386 = vmatpush1.bf16.msra.mxu0 %v9984_v37  ;;  %v10065_v36 = vld [vmem:[%s11721_s19 + $0x2f0] ss:$8 sps:$4 sm:$0xff]  }
 0x1a5   : > { %7963 = vmatprep.subr.bf16.mxu1 %v9989_v38  ;;  %8387 = vmatprep.subr.bf16.mxu0 %v9992_v39  ;;  %v10068_v37 = vld [vmem:[%s11721_s19 + $0xaf0] ss:$8 sps:$4 sm:$0xff]   ;;  %v10073_v38 = vld [vmem:[%s11721_s19 + $0x304] ss:$8 sps:$4 sm:$0xff]  }
 0x1a6   : > { %v10076_v39 = vld [vmem:[%s11721_s19 + $0xb04] ss:$8 sps:$4 sm:$0xff]  }
 0x1a7   : > { %7949 = vmatmul.mubr.bf16.gmra.mrb[4].mxu1 %v9064_v44  ;;  %8373 = vmatmul.mubr.bf16.gmra.mrb[4].mxu0 %v9080_v45  ;;  %v4431_v44 = vld [vmem:[%s12570_s0 + $0x110] sm:$0xff] }
 0x1a8   : > { %7964 = vmatpush1.bf16.msra.mxu1 %v9987_v40  ;;  %8388 = vmatpush1.bf16.msra.mxu0 %v9990_v41  ;;  %v10071_v40 = vld [vmem:[%s11721_s19 + $0x300] ss:$8 sps:$4 sm:$0xff]   ;;  %v4447_v45 = vld [vmem:[%s12570_s0 + $0x190] sm:$0xff] }
 0x1a9   : > { %7965 = vmatprep.subr.bf16.mxu1 %v9995_v48  ;;  %8389 = vmatprep.subr.bf16.mxu0 %v9998_v49  ;;  %v10074_v41 = vld [vmem:[%s11721_s19 + $0xb00] ss:$8 sps:$4 sm:$0xff]   ;;  %v9034_v48 = vcombine.low %v11924_v42, %v11929_v43  ;;  %v9050_v49 = vcombine.low %v11934_v46, %v11939_v47  ;;  %v10082_v42 = vld [vmem:[%s11721_s19 + $0xb14] ss:$8 sps:$4 sm:$0xff]   ;;  %v9067_v43 = vcombine.high %v4431_v44, %v4447_v45  ;;  %v10077_v47 = vld [vmem:[%s11721_s19 + $0x310] ss:$8 sps:$4 sm:$0xff]  }
 0x1aa   : > { %7991 = vmatprep.mubr.bf16.mxu1 %v9035_v50  ;;  %8415 = vmatprep.mubr.bf16.mxu0 %v9051_v51  ;;  %v4439_v50 = vld [vmem:[%s12570_s0 + $0x150] sm:$0xff] }
 0x1ab   : > { %v4455_v51 = vld [vmem:[%s12570_s0 + $0x1d0] sm:$0xff] }
 0x1ac   : > { %7966 = vmatpush1.bf16.msra.mxu1 %v9993_v52  ;;  %8390 = vmatpush1.bf16.msra.mxu0 %v9996_v53  ;;  %v10079_v52 = vld [vmem:[%s11721_s19 + $0x314] ss:$8 sps:$4 sm:$0xff]   ;;  %v9083_v46 = vcombine.high %v4439_v50, %v4455_v51  ;;  %v10080_v53 = vld [vmem:[%s11721_s19 + $0xb10] ss:$8 sps:$4 sm:$0xff]  }
 0x1ad   : > { %7967 = vmatprep.subr.bf16.mxu1 %v10001_v54  ;;  %8391 = vmatprep.subr.bf16.mxu0 %v10004_v55  ;;  %v10085_v54 = vld [vmem:[%s11721_s19 + $0x324] ss:$8 sps:$4 sm:$0xff]  }
 0x1ae   : > { %v10088_v55 = vld [vmem:[%s11721_s19 + $0xb24] ss:$8 sps:$4 sm:$0xff]  }
 0x1b0   : > { %7968 = vmatpush1.bf16.msra.mxu1 %v9999_v56  ;;  %8392 = vmatpush1.bf16.msra.mxu0 %v10002_v57  ;;  %v10083_v56 = vld [vmem:[%s11721_s19 + $0x320] ss:$8 sps:$4 sm:$0xff]  }
 0x1b1   : > { %7969 = vmatprep.subr.bf16.mxu1 %v10007_v58  ;;  %8393 = vmatprep.subr.bf16.mxu0 %v10010_v59  ;;  %v10086_v57 = vld [vmem:[%s11721_s19 + $0xb20] ss:$8 sps:$4 sm:$0xff]   ;;  %v12028_v58 = vld [vmem:[%s12570_s0 + $0x18] sm:$0xff] }
 0x1b2   : > { %v12033_v59 = vld [vmem:[%s12570_s0 + $0x98] sm:$0xff] }
 0x1b4   : > { %7970 = vmatpush1.bf16.msra.mxu1 %v10005_v60  ;;  %8394 = vmatpush1.bf16.msra.mxu0 %v10008_v61  ;;  %v9066_v60 = vcombine.low %v4431_v44, %v4447_v45  ;;  %v9082_v61 = vcombine.low %v4439_v50, %v4455_v51  ;;  %v10151_v44 = vld [vmem:[%s11721_s19 + $0x3d4] ss:$8 sps:$4 sm:$0xff]   ;;  %v10157_v50 = vld [vmem:[%s11721_s19 + $0x3e4] ss:$8 sps:$4 sm:$0xff]  }
 0x1b5   : > { %7971 = vmatprep.subr.bf16.mxu1 %v10013_v62  ;;  %8395 = vmatprep.subr.bf16.mxu0 %v10016_v63  ;;  %v12038_v62 = vld [vmem:[%s12570_s0 + $0x58] sm:$0xff]  ;;  %v10160_v51 = vld [vmem:[%s11721_s19 + $0xbe4] ss:$8 sps:$4 sm:$0xff]  }
 0x1b6   : > { %v12043_v63 = vld [vmem:[%s12570_s0 + $0xd8] sm:$0xff] }
 0x1b7   : > { %v10154_v45 = vld [vmem:[%s11721_s19 + $0xbd4] ss:$8 sps:$4 sm:$0xff]  }
 0x1b8   : > { %7972 = vmatpush1.bf16.msra.mxu1 %v10011_v4  ;;  %8396 = vmatpush1.bf16.msra.mxu0 %v10014_v7  ;;  %v10091_v4 = vld [vmem:[%s11721_s19 + $0x334] ss:$8 sps:$4 sm:$0xff]  }
 0x1b9   : > { %7973 = vmatprep.subr.bf16.mxu1 %v10019_v8  ;;  %8397 = vmatprep.subr.bf16.mxu0 %v10022_v9  ;;  %v10094_v7 = vld [vmem:[%s11721_s19 + $0xb34] ss:$8 sps:$4 sm:$0xff]   ;;  %v9037_v8 = vcombine.high %v12028_v58, %v12033_v59  ;;  %v9053_v9 = vcombine.high %v12038_v62, %v12043_v63 }
 0x1bc   : > { %7974 = vmatpush1.bf16.msra.mxu1 %v10017_v10  ;;  %8398 = vmatpush1.bf16.msra.mxu0 %v10020_v11  ;;  %v10089_v10 = vld [vmem:[%s11721_s19 + $0x330] ss:$8 sps:$4 sm:$0xff]  }
 0x1bd   : > { %7975 = vmatprep.subr.bf16.mxu1 %v10025_v12  ;;  %8399 = vmatprep.subr.bf16.mxu0 %v10028_v13  ;;  %v10092_v11 = vld [vmem:[%s11721_s19 + $0xb30] ss:$8 sps:$4 sm:$0xff]   ;;  %v10097_v12 = vld [vmem:[%s11721_s19 + $0x344] ss:$8 sps:$4 sm:$0xff]  }
 0x1be   : > { %v10100_v13 = vld [vmem:[%s11721_s19 + $0xb44] ss:$8 sps:$4 sm:$0xff]  }
 0x1c0   : > { %7976 = vmatpush1.bf16.msra.mxu1 %v10023_v14  ;;  %8400 = vmatpush1.bf16.msra.mxu0 %v10026_v15  ;;  %v10095_v14 = vld [vmem:[%s11721_s19 + $0x340] ss:$8 sps:$4 sm:$0xff]  }
 0x1c1   : > { %7977 = vmatprep.subr.bf16.mxu1 %v10031_v16  ;;  %8401 = vmatprep.subr.bf16.mxu0 %v10034_v17  ;;  %v10098_v15 = vld [vmem:[%s11721_s19 + $0xb40] ss:$8 sps:$4 sm:$0xff]   ;;  %v10103_v16 = vld [vmem:[%s11721_s19 + $0x354] ss:$8 sps:$4 sm:$0xff]  }
 0x1c2   : > { %v10106_v17 = vld [vmem:[%s11721_s19 + $0xb54] ss:$8 sps:$4 sm:$0xff]  }
 0x1c4   : > { %7978 = vmatpush1.bf16.msra.mxu1 %v10029_v18  ;;  %8402 = vmatpush1.bf16.msra.mxu0 %v10032_v19  ;;  %v10101_v18 = vld [vmem:[%s11721_s19 + $0x350] ss:$8 sps:$4 sm:$0xff]  }
 0x1c5   : > { %7979 = vmatprep.subr.bf16.mxu1 %v10037_v20  ;;  %8403 = vmatprep.subr.bf16.mxu0 %v10040_v21  ;;  %v10104_v19 = vld [vmem:[%s11721_s19 + $0xb50] ss:$8 sps:$4 sm:$0xff]   ;;  %v10109_v20 = vld [vmem:[%s11721_s19 + $0x364] ss:$8 sps:$4 sm:$0xff]  }
 0x1c6   : > { %v10112_v21 = vld [vmem:[%s11721_s19 + $0xb64] ss:$8 sps:$4 sm:$0xff]  }
 0x1c8   : > { %7980 = vmatpush1.bf16.msra.mxu1 %v10035_v22  ;;  %8404 = vmatpush1.bf16.msra.mxu0 %v10038_v23  ;;  %v10107_v22 = vld [vmem:[%s11721_s19 + $0x360] ss:$8 sps:$4 sm:$0xff]  }
 0x1c9   : > { %7981 = vmatprep.subr.bf16.mxu1 %v10043_v24  ;;  %8405 = vmatprep.subr.bf16.mxu0 %v10046_v25  ;;  %v10110_v23 = vld [vmem:[%s11721_s19 + $0xb60] ss:$8 sps:$4 sm:$0xff]   ;;  %v10115_v24 = vld [vmem:[%s11721_s19 + $0x374] ss:$8 sps:$4 sm:$0xff]  }
 0x1ca   : > { %v10118_v25 = vld [vmem:[%s11721_s19 + $0xb74] ss:$8 sps:$4 sm:$0xff]  }
 0x1cc   : > { %7982 = vmatpush1.bf16.msra.mxu1 %v10041_v26  ;;  %8406 = vmatpush1.bf16.msra.mxu0 %v10044_v27  ;;  %v10113_v26 = vld [vmem:[%s11721_s19 + $0x370] ss:$8 sps:$4 sm:$0xff]  }
 0x1cd   : > { %7983 = vmatprep.subr.bf16.mxu1 %v10049_v28  ;;  %8407 = vmatprep.subr.bf16.mxu0 %v10052_v29  ;;  %v10116_v27 = vld [vmem:[%s11721_s19 + $0xb70] ss:$8 sps:$4 sm:$0xff]   ;;  %v10121_v28 = vld [vmem:[%s11721_s19 + $0x384] ss:$8 sps:$4 sm:$0xff]  }
 0x1ce   : > { %v10124_v29 = vld [vmem:[%s11721_s19 + $0xb84] ss:$8 sps:$4 sm:$0xff]  }
 0x1d0   : > { %7984 = vmatpush1.bf16.msra.mxu1 %v10047_v0  ;;  %8408 = vmatpush1.bf16.msra.mxu0 %v10050_v1  ;;  %v10119_v0 = vld [vmem:[%s11721_s19 + $0x380] ss:$8 sps:$4 sm:$0xff]  }
 0x1d1   : > { %7985 = vmatprep.subr.bf16.mxu1 %v10055_v3  ;;  %8409 = vmatprep.subr.bf16.mxu0 %v10058_v2  ;;  %v10122_v1 = vld [vmem:[%s11721_s19 + $0xb80] ss:$8 sps:$4 sm:$0xff]   ;;  %v10127_v3 = vld [vmem:[%s11721_s19 + $0x394] ss:$8 sps:$4 sm:$0xff]  }
 0x1d2   : > { %v10130_v2 = vld [vmem:[%s11721_s19 + $0xb94] ss:$8 sps:$4 sm:$0xff]  }
 0x1d4   : > { %7986 = vmatpush1.bf16.msra.mxu1 %v10053_v5  ;;  %8410 = vmatpush1.bf16.msra.mxu0 %v10056_v6  ;;  %v10125_v5 = vld [vmem:[%s11721_s19 + $0x390] ss:$8 sps:$4 sm:$0xff]  }
 0x1d5   : > { %7987 = vmatprep.subr.bf16.mxu1 %v10061_v30  ;;  %8411 = vmatprep.subr.bf16.mxu0 %v10064_v31  ;;  %v10128_v6 = vld [vmem:[%s11721_s19 + $0xb90] ss:$8 sps:$4 sm:$0xff]   ;;  %v10133_v30 = vld [vmem:[%s11721_s19 + $0x3a4] ss:$8 sps:$4 sm:$0xff]  }
 0x1d6   : > { %v10136_v31 = vld [vmem:[%s11721_s19 + $0xba4] ss:$8 sps:$4 sm:$0xff]  }
 0x1d8   : > { %7988 = vmatpush1.bf16.msra.mxu1 %v10059_v32  ;;  %8412 = vmatpush1.bf16.msra.mxu0 %v10062_v33  ;;  %v10131_v32 = vld [vmem:[%s11721_s19 + $0x3a0] ss:$8 sps:$4 sm:$0xff]  }
 0x1d9   : > { %7989 = vmatprep.subr.bf16.mxu1 %v10067_v34  ;;  %8413 = vmatprep.subr.bf16.mxu0 %v10070_v35  ;;  %v10134_v33 = vld [vmem:[%s11721_s19 + $0xba0] ss:$8 sps:$4 sm:$0xff]   ;;  %v10139_v34 = vld [vmem:[%s11721_s19 + $0x3b4] ss:$8 sps:$4 sm:$0xff]  }
 0x1da   : > { %v10142_v35 = vld [vmem:[%s11721_s19 + $0xbb4] ss:$8 sps:$4 sm:$0xff]  }
 0x1dc   : > { %7990 = vmatpush1.bf16.msra.mxu1 %v10065_v36  ;;  %8414 = vmatpush1.bf16.msra.mxu0 %v10068_v37  ;;  %v10137_v36 = vld [vmem:[%s11721_s19 + $0x3b0] ss:$8 sps:$4 sm:$0xff]  }
 0x1dd   : > { %8012 = vmatprep.subr.bf16.mxu1 %v10073_v38  ;;  %8436 = vmatprep.subr.bf16.mxu0 %v10076_v39  ;;  %v10140_v37 = vld [vmem:[%s11721_s19 + $0xbb0] ss:$8 sps:$4 sm:$0xff]   ;;  %v10145_v38 = vld [vmem:[%s11721_s19 + $0x3c4] ss:$8 sps:$4 sm:$0xff]  }
 0x1de   : > { %v10148_v39 = vld [vmem:[%s11721_s19 + $0xbc4] ss:$8 sps:$4 sm:$0xff]  }
 0x1df   : > { %7992 = vmatmul.mubr.bf16.vlgmr.msra.gmra.mrb[0].mxu1 %v9034_v48  ;;  %8416 = vmatmul.mubr.bf16.vlgmr.msra.gmra.mrb[0].mxu0 %v9050_v49  ;;  %v10149_v48 = vld [vmem:[%s11721_s19 + $0x3d0] ss:$8 sps:$4 sm:$0xff]  }
 0x1e0   : > { %8013 = vmatpush1.bf16.msra.mxu1 %v10071_v40  ;;  %8437 = vmatpush1.bf16.msra.mxu0 %v10074_v41  ;;  %v10143_v40 = vld [vmem:[%s11721_s19 + $0x3c0] ss:$8 sps:$4 sm:$0xff]   ;;  %v10152_v49 = vld [vmem:[%s11721_s19 + $0xbd0] ss:$8 sps:$4 sm:$0xff]  }
 0x1e1   : > { %8014 = vmatprep.subr.bf16.mxu1 %v10079_v52  ;;  %8438 = vmatprep.subr.bf16.mxu0 %v10082_v42  ;;  %v10146_v41 = vld [vmem:[%s11721_s19 + $0xbc0] ss:$8 sps:$4 sm:$0xff]  }
 0x1e2   : > { %8001 = vmatprep.mubr.bf16.mxu1 %v9067_v43  ;;  %8425 = vmatprep.mubr.bf16.mxu0 %v9083_v46  ;;  %v10155_v52 = vld [vmem:[%s11721_s19 + $0x3e0] ss:$8 sps:$4 sm:$0xff]   ;;  %v10163_v43 = vld [vmem:[%s11721_s19 + $0x3f4] ss:$8 sps:$4 sm:$0xff]  }
 0x1e3   : > { %v10158_v42 = vld [vmem:[%s11721_s19 + $0xbe0] ss:$8 sps:$4 sm:$0xff]   ;;  %v10166_v46 = vld [vmem:[%s11721_s19 + $0xbf4] ss:$8 sps:$4 sm:$0xff]  }
 0x1e4   : > { %8015 = vmatpush1.bf16.msra.mxu1 %v10077_v47  ;;  %8439 = vmatpush1.bf16.msra.mxu0 %v10080_v53  ;;  %v10161_v47 = vld [vmem:[%s11721_s19 + $0x3f0] ss:$8 sps:$4 sm:$0xff]  }
 0x1e5   : > { %8016 = vmatprep.subr.bf16.mxu1 %v10085_v54  ;;  %8440 = vmatprep.subr.bf16.mxu0 %v10088_v55  ;;  %v10164_v53 = vld [vmem:[%s11721_s19 + $0xbf0] ss:$8 sps:$4 sm:$0xff]   ;;  %v10169_v54 = vld [vmem:[%s11721_s19 + $0x404] ss:$8 sps:$4 sm:$0xff]  }
 0x1e6   : > { %v10172_v55 = vld [vmem:[%s11721_s19 + $0xc04] ss:$8 sps:$4 sm:$0xff]  }
 0x1e7   : > { %8002 = vmatmul.mubr.bf16.gmra.mrb[4].mxu1 %v9066_v60  ;;  %8426 = vmatmul.mubr.bf16.gmra.mrb[4].mxu0 %v9082_v61  ;;  %v4432_v60 = vld [vmem:[%s12570_s0 + $0x118] sm:$0xff] }
 0x1e8   : > { %8017 = vmatpush1.bf16.msra.mxu1 %v10083_v56  ;;  %8441 = vmatpush1.bf16.msra.mxu0 %v10086_v57  ;;  %v10167_v56 = vld [vmem:[%s11721_s19 + $0x400] ss:$8 sps:$4 sm:$0xff]   ;;  %v4448_v61 = vld [vmem:[%s12570_s0 + $0x198] sm:$0xff] }
 0x1e9   : > { %8018 = vmatprep.subr.bf16.mxu1 %v10091_v4  ;;  %8442 = vmatprep.subr.bf16.mxu0 %v10094_v7  ;;  %v10170_v57 = vld [vmem:[%s11721_s19 + $0xc00] ss:$8 sps:$4 sm:$0xff]   ;;  %v9036_v4 = vcombine.low %v12028_v58, %v12033_v59  ;;  %v9052_v7 = vcombine.low %v12038_v62, %v12043_v63  ;;  %v10178_v58 = vld [vmem:[%s11721_s19 + $0xc14] ss:$8 sps:$4 sm:$0xff]   ;;  %v9069_v59 = vcombine.high %v4432_v60, %v4448_v61  ;;  %v10173_v63 = vld [vmem:[%s11721_s19 + $0x410] ss:$8 sps:$4 sm:$0xff]  }
 0x1ea   : > { %8044 = vmatprep.mubr.bf16.mxu1 %v9037_v8  ;;  %8468 = vmatprep.mubr.bf16.mxu0 %v9053_v9  ;;  %v4440_v8 = vld [vmem:[%s12570_s0 + $0x158] sm:$0xff] }
 0x1eb   : > { %v4456_v9 = vld [vmem:[%s12570_s0 + $0x1d8] sm:$0xff] }
 0x1ec   : > { %8019 = vmatpush1.bf16.msra.mxu1 %v10089_v10  ;;  %8443 = vmatpush1.bf16.msra.mxu0 %v10092_v11  ;;  %v10175_v10 = vld [vmem:[%s11721_s19 + $0x414] ss:$8 sps:$4 sm:$0xff]   ;;  %v9085_v62 = vcombine.high %v4440_v8, %v4456_v9  ;;  %v10176_v11 = vld [vmem:[%s11721_s19 + $0xc10] ss:$8 sps:$4 sm:$0xff]  }
 0x1ed   : > { %8020 = vmatprep.subr.bf16.mxu1 %v10097_v12  ;;  %8444 = vmatprep.subr.bf16.mxu0 %v10100_v13  ;;  %v10181_v12 = vld [vmem:[%s11721_s19 + $0x424] ss:$8 sps:$4 sm:$0xff]  }
 0x1ee   : > { %v10184_v13 = vld [vmem:[%s11721_s19 + $0xc24] ss:$8 sps:$4 sm:$0xff]  }
 0x1f0   : > { %8021 = vmatpush1.bf16.msra.mxu1 %v10095_v14  ;;  %8445 = vmatpush1.bf16.msra.mxu0 %v10098_v15  ;;  %v10179_v14 = vld [vmem:[%s11721_s19 + $0x420] ss:$8 sps:$4 sm:$0xff]  }
 0x1f1   : > { %8022 = vmatprep.subr.bf16.mxu1 %v10103_v16  ;;  %8446 = vmatprep.subr.bf16.mxu0 %v10106_v17  ;;  %v10182_v15 = vld [vmem:[%s11721_s19 + $0xc20] ss:$8 sps:$4 sm:$0xff]  }
 0x1f2   : > { %v12132_v16 = vld [vmem:[%s12570_s0 + $0x20] sm:$0xff] }
 0x1f3   : > { %v12137_v17 = vld [vmem:[%s12570_s0 + $0xa0] sm:$0xff] }
 0x1f4   : > { %8023 = vmatpush1.bf16.msra.mxu1 %v10101_v18  ;;  %8447 = vmatpush1.bf16.msra.mxu0 %v10104_v19  ;;  %v9068_v18 = vcombine.low %v4432_v60, %v4448_v61  ;;  %v9084_v19 = vcombine.low %v4440_v8, %v4456_v9  ;;  %v10247_v60 = vld [vmem:[%s11721_s19 + $0x4d4] ss:$8 sps:$4 sm:$0xff]   ;;  %v10253_v8 = vld [vmem:[%s11721_s19 + $0x4e4] ss:$8 sps:$4 sm:$0xff]  }
 0x1f5   : > { %8024 = vmatprep.subr.bf16.mxu1 %v10109_v20  ;;  %8448 = vmatprep.subr.bf16.mxu0 %v10112_v21  ;;  %v12142_v20 = vld [vmem:[%s12570_s0 + $0x60] sm:$0xff]  ;;  %v10250_v61 = vld [vmem:[%s11721_s19 + $0xcd4] ss:$8 sps:$4 sm:$0xff]  }
 0x1f6   : > { %v12147_v21 = vld [vmem:[%s12570_s0 + $0xe0] sm:$0xff] }
 0x1f7   : > { %v10256_v9 = vld [vmem:[%s11721_s19 + $0xce4] ss:$8 sps:$4 sm:$0xff]  }
 0x1f8   : > { %8025 = vmatpush1.bf16.msra.mxu1 %v10107_v22  ;;  %8449 = vmatpush1.bf16.msra.mxu0 %v10110_v23  ;;  %v10187_v22 = vld [vmem:[%s11721_s19 + $0x434] ss:$8 sps:$4 sm:$0xff]  }
 0x1f9   : > { %8026 = vmatprep.subr.bf16.mxu1 %v10115_v24  ;;  %8450 = vmatprep.subr.bf16.mxu0 %v10118_v25  ;;  %v10190_v23 = vld [vmem:[%s11721_s19 + $0xc34] ss:$8 sps:$4 sm:$0xff]   ;;  %v9039_v24 = vcombine.high %v12132_v16, %v12137_v17  ;;  %v9055_v25 = vcombine.high %v12142_v20, %v12147_v21 }
 0x1fc   : > { %8027 = vmatpush1.bf16.msra.mxu1 %v10113_v26  ;;  %8451 = vmatpush1.bf16.msra.mxu0 %v10116_v27  ;;  %v10185_v26 = vld [vmem:[%s11721_s19 + $0x430] ss:$8 sps:$4 sm:$0xff]  }
 0x1fd   : > { %8028 = vmatprep.subr.bf16.mxu1 %v10121_v28  ;;  %8452 = vmatprep.subr.bf16.mxu0 %v10124_v29  ;;  %v10188_v27 = vld [vmem:[%s11721_s19 + $0xc30] ss:$8 sps:$4 sm:$0xff]   ;;  %v10193_v28 = vld [vmem:[%s11721_s19 + $0x444] ss:$8 sps:$4 sm:$0xff]  }
 0x1fe   : > { %v10196_v29 = vld [vmem:[%s11721_s19 + $0xc44] ss:$8 sps:$4 sm:$0xff]  }
 0x200   : > { %8029 = vmatpush1.bf16.msra.mxu1 %v10119_v0  ;;  %8453 = vmatpush1.bf16.msra.mxu0 %v10122_v1  ;;  %v10191_v0 = vld [vmem:[%s11721_s19 + $0x440] ss:$8 sps:$4 sm:$0xff]  }
 0x201   : > { %8030 = vmatprep.subr.bf16.mxu1 %v10127_v3  ;;  %8454 = vmatprep.subr.bf16.mxu0 %v10130_v2  ;;  %v10194_v1 = vld [vmem:[%s11721_s19 + $0xc40] ss:$8 sps:$4 sm:$0xff]   ;;  %v10199_v3 = vld [vmem:[%s11721_s19 + $0x454] ss:$8 sps:$4 sm:$0xff]  }
 0x202   : > { %v10202_v2 = vld [vmem:[%s11721_s19 + $0xc54] ss:$8 sps:$4 sm:$0xff]  }
 0x204   : > { %8031 = vmatpush1.bf16.msra.mxu1 %v10125_v5  ;;  %8455 = vmatpush1.bf16.msra.mxu0 %v10128_v6  ;;  %v10197_v5 = vld [vmem:[%s11721_s19 + $0x450] ss:$8 sps:$4 sm:$0xff]  }
 0x205   : > { %8032 = vmatprep.subr.bf16.mxu1 %v10133_v30  ;;  %8456 = vmatprep.subr.bf16.mxu0 %v10136_v31  ;;  %v10200_v6 = vld [vmem:[%s11721_s19 + $0xc50] ss:$8 sps:$4 sm:$0xff]   ;;  %v10205_v30 = vld [vmem:[%s11721_s19 + $0x464] ss:$8 sps:$4 sm:$0xff]  }
 0x206   : > { %v10208_v31 = vld [vmem:[%s11721_s19 + $0xc64] ss:$8 sps:$4 sm:$0xff]  }
 0x208   : > { %8033 = vmatpush1.bf16.msra.mxu1 %v10131_v32  ;;  %8457 = vmatpush1.bf16.msra.mxu0 %v10134_v33  ;;  %v10203_v32 = vld [vmem:[%s11721_s19 + $0x460] ss:$8 sps:$4 sm:$0xff]  }
 0x209   : > { %8034 = vmatprep.subr.bf16.mxu1 %v10139_v34  ;;  %8458 = vmatprep.subr.bf16.mxu0 %v10142_v35  ;;  %v10206_v33 = vld [vmem:[%s11721_s19 + $0xc60] ss:$8 sps:$4 sm:$0xff]   ;;  %v10211_v34 = vld [vmem:[%s11721_s19 + $0x474] ss:$8 sps:$4 sm:$0xff]  }
 0x20a   : > { %v10214_v35 = vld [vmem:[%s11721_s19 + $0xc74] ss:$8 sps:$4 sm:$0xff]  }
 0x20c   : > { %8035 = vmatpush1.bf16.msra.mxu1 %v10137_v36  ;;  %8459 = vmatpush1.bf16.msra.mxu0 %v10140_v37  ;;  %v10209_v36 = vld [vmem:[%s11721_s19 + $0x470] ss:$8 sps:$4 sm:$0xff]  }
 0x20d   : > { %8036 = vmatprep.subr.bf16.mxu1 %v10145_v38  ;;  %8460 = vmatprep.subr.bf16.mxu0 %v10148_v39  ;;  %v10212_v37 = vld [vmem:[%s11721_s19 + $0xc70] ss:$8 sps:$4 sm:$0xff]   ;;  %v10217_v38 = vld [vmem:[%s11721_s19 + $0x484] ss:$8 sps:$4 sm:$0xff]  }
 0x20e   : > { %v10220_v39 = vld [vmem:[%s11721_s19 + $0xc84] ss:$8 sps:$4 sm:$0xff]  }
 0x210   : > { %8037 = vmatpush1.bf16.msra.mxu1 %v10143_v40  ;;  %8461 = vmatpush1.bf16.msra.mxu0 %v10146_v41  ;;  %v10215_v40 = vld [vmem:[%s11721_s19 + $0x480] ss:$8 sps:$4 sm:$0xff]  }
 0x211   : > { %8038 = vmatprep.subr.bf16.mxu1 %v10151_v44  ;;  %8462 = vmatprep.subr.bf16.mxu0 %v10154_v45  ;;  %v10218_v41 = vld [vmem:[%s11721_s19 + $0xc80] ss:$8 sps:$4 sm:$0xff]   ;;  %v10223_v44 = vld [vmem:[%s11721_s19 + $0x494] ss:$8 sps:$4 sm:$0xff]  }
 0x212   : > { %v10226_v45 = vld [vmem:[%s11721_s19 + $0xc94] ss:$8 sps:$4 sm:$0xff]  }
 0x214   : > { %8039 = vmatpush1.bf16.msra.mxu1 %v10149_v48  ;;  %8463 = vmatpush1.bf16.msra.mxu0 %v10152_v49  ;;  %v10221_v48 = vld [vmem:[%s11721_s19 + $0x490] ss:$8 sps:$4 sm:$0xff]  }
 0x215   : > { %8040 = vmatprep.subr.bf16.mxu1 %v10157_v50  ;;  %8464 = vmatprep.subr.bf16.mxu0 %v10160_v51  ;;  %v10224_v49 = vld [vmem:[%s11721_s19 + $0xc90] ss:$8 sps:$4 sm:$0xff]   ;;  %v10229_v50 = vld [vmem:[%s11721_s19 + $0x4a4] ss:$8 sps:$4 sm:$0xff]  }
 0x216   : > { %v10232_v51 = vld [vmem:[%s11721_s19 + $0xca4] ss:$8 sps:$4 sm:$0xff]  }
 0x218   : > { %8041 = vmatpush1.bf16.msra.mxu1 %v10155_v52  ;;  %8465 = vmatpush1.bf16.msra.mxu0 %v10158_v42  ;;  %v10227_v52 = vld [vmem:[%s11721_s19 + $0x4a0] ss:$8 sps:$4 sm:$0xff]  }
 0x219   : > { %8042 = vmatprep.subr.bf16.mxu1 %v10163_v43  ;;  %8466 = vmatprep.subr.bf16.mxu0 %v10166_v46  ;;  %v10230_v42 = vld [vmem:[%s11721_s19 + $0xca0] ss:$8 sps:$4 sm:$0xff]   ;;  %v10235_v43 = vld [vmem:[%s11721_s19 + $0x4b4] ss:$8 sps:$4 sm:$0xff]  }
 0x21a   : > { %v10238_v46 = vld [vmem:[%s11721_s19 + $0xcb4] ss:$8 sps:$4 sm:$0xff]  }
 0x21c   : > { %8043 = vmatpush1.bf16.msra.mxu1 %v10161_v47  ;;  %8467 = vmatpush1.bf16.msra.mxu0 %v10164_v53  ;;  %v10233_v47 = vld [vmem:[%s11721_s19 + $0x4b0] ss:$8 sps:$4 sm:$0xff]  }
 0x21d   : > { %8065 = vmatprep.subr.bf16.mxu1 %v10169_v54  ;;  %8489 = vmatprep.subr.bf16.mxu0 %v10172_v55  ;;  %v10236_v53 = vld [vmem:[%s11721_s19 + $0xcb0] ss:$8 sps:$4 sm:$0xff]   ;;  %v10241_v54 = vld [vmem:[%s11721_s19 + $0x4c4] ss:$8 sps:$4 sm:$0xff]  }
 0x21e   : > { %v10244_v55 = vld [vmem:[%s11721_s19 + $0xcc4] ss:$8 sps:$4 sm:$0xff]  }
 0x21f   : > { %8045 = vmatmul.mubr.bf16.vlgmr.msra.gmra.mrb[0].mxu1 %v9036_v4  ;;  %8469 = vmatmul.mubr.bf16.vlgmr.msra.gmra.mrb[0].mxu0 %v9052_v7  ;;  %v10245_v4 = vld [vmem:[%s11721_s19 + $0x4d0] ss:$8 sps:$4 sm:$0xff]  }
 0x220   : > { %8066 = vmatpush1.bf16.msra.mxu1 %v10167_v56  ;;  %8490 = vmatpush1.bf16.msra.mxu0 %v10170_v57  ;;  %v10239_v56 = vld [vmem:[%s11721_s19 + $0x4c0] ss:$8 sps:$4 sm:$0xff]   ;;  %v10248_v7 = vld [vmem:[%s11721_s19 + $0xcd0] ss:$8 sps:$4 sm:$0xff]  }
 0x221   : > { %8067 = vmatprep.subr.bf16.mxu1 %v10175_v10  ;;  %8491 = vmatprep.subr.bf16.mxu0 %v10178_v58  ;;  %v10242_v57 = vld [vmem:[%s11721_s19 + $0xcc0] ss:$8 sps:$4 sm:$0xff]  }
 0x222   : > { %8054 = vmatprep.mubr.bf16.mxu1 %v9069_v59  ;;  %8478 = vmatprep.mubr.bf16.mxu0 %v9085_v62  ;;  %v10251_v10 = vld [vmem:[%s11721_s19 + $0x4e0] ss:$8 sps:$4 sm:$0xff]   ;;  %v10259_v59 = vld [vmem:[%s11721_s19 + $0x4f4] ss:$8 sps:$4 sm:$0xff]  }
 0x223   : > { %v10254_v58 = vld [vmem:[%s11721_s19 + $0xce0] ss:$8 sps:$4 sm:$0xff]   ;;  %v10262_v62 = vld [vmem:[%s11721_s19 + $0xcf4] ss:$8 sps:$4 sm:$0xff]  }
 0x224   : > { %8068 = vmatpush1.bf16.msra.mxu1 %v10173_v63  ;;  %8492 = vmatpush1.bf16.msra.mxu0 %v10176_v11  ;;  %v10257_v63 = vld [vmem:[%s11721_s19 + $0x4f0] ss:$8 sps:$4 sm:$0xff]  }
 0x225   : > { %8069 = vmatprep.subr.bf16.mxu1 %v10181_v12  ;;  %8493 = vmatprep.subr.bf16.mxu0 %v10184_v13  ;;  %v10260_v11 = vld [vmem:[%s11721_s19 + $0xcf0] ss:$8 sps:$4 sm:$0xff]   ;;  %v10265_v12 = vld [vmem:[%s11721_s19 + $0x504] ss:$8 sps:$4 sm:$0xff]  }
 0x226   : > { %v10268_v13 = vld [vmem:[%s11721_s19 + $0xd04] ss:$8 sps:$4 sm:$0xff]  }
 0x227   : > { %8055 = vmatmul.mubr.bf16.gmra.mrb[4].mxu1 %v9068_v18  ;;  %8479 = vmatmul.mubr.bf16.gmra.mrb[4].mxu0 %v9084_v19  ;;  %v4441_v18 = vld [vmem:[%s12570_s0 + $0x160] sm:$0xff] }
 0x228   : > { %8070 = vmatpush1.bf16.msra.mxu1 %v10179_v14  ;;  %8494 = vmatpush1.bf16.msra.mxu0 %v10182_v15  ;;  %v4433_v14 = vld [vmem:[%s12570_s0 + $0x120] sm:$0xff] }
 0x229   : > { %8071 = vmatprep.subr.bf16.mxu1 %v10187_v22  ;;  %8495 = vmatprep.subr.bf16.mxu0 %v10190_v23  ;;  %v4449_v15 = vld [vmem:[%s12570_s0 + $0x1a0] sm:$0xff]  ;;  %v9038_v22 = vcombine.low %v12132_v16, %v12137_v17  ;;  %v9054_v23 = vcombine.low %v12142_v20, %v12147_v21  ;;  %v12234_v20 = vld [vmem:[%s12570_s0 + $0x28] sm:$0xff] }
 0x22a   : > { %8097 = vmatprep.mubr.bf16.mxu1 %v9039_v24  ;;  %8521 = vmatprep.mubr.bf16.mxu0 %v9055_v25  ;;  %v4457_v19 = vld [vmem:[%s12570_s0 + $0x1e0] sm:$0xff]  ;;  %v12239_v21 = vld [vmem:[%s12570_s0 + $0xa8] sm:$0xff] }
 0x22b   : > { %v10263_v24 = vld [vmem:[%s11721_s19 + $0x500] ss:$8 sps:$4 sm:$0xff]   ;;  %v10277_v16 = vld [vmem:[%s11721_s19 + $0x524] ss:$8 sps:$4 sm:$0xff]  }
 0x22c   : > { %8072 = vmatpush1.bf16.msra.mxu1 %v10185_v26  ;;  %8496 = vmatpush1.bf16.msra.mxu0 %v10188_v27  ;;  %v10266_v25 = vld [vmem:[%s11721_s19 + $0xd00] ss:$8 sps:$4 sm:$0xff]   ;;  %v10271_v26 = vld [vmem:[%s11721_s19 + $0x514] ss:$8 sps:$4 sm:$0xff]   ;;  %v10280_v17 = vld [vmem:[%s11721_s19 + $0xd24] ss:$8 sps:$4 sm:$0xff]  }
 0x22d   : > { %8073 = vmatprep.subr.bf16.mxu1 %v10193_v28  ;;  %8497 = vmatprep.subr.bf16.mxu0 %v10196_v29  ;;  %v10274_v27 = vld [vmem:[%s11721_s19 + $0xd14] ss:$8 sps:$4 sm:$0xff]   ;;  %v10269_v28 = vld [vmem:[%s11721_s19 + $0x510] ss:$8 sps:$4 sm:$0xff]  }
 0x22e   : > { %v10272_v29 = vld [vmem:[%s11721_s19 + $0xd10] ss:$8 sps:$4 sm:$0xff]  }
 0x230   : > { %8074 = vmatpush1.bf16.msra.mxu1 %v10191_v0  ;;  %8498 = vmatpush1.bf16.msra.mxu0 %v10194_v1  ;;  %v9071_v0 = vcombine.high %v4433_v14, %v4449_v15  ;;  %v9087_v1 = vcombine.high %v4441_v18, %v4457_v19 }
 0x231   : > { %8075 = vmatprep.subr.bf16.mxu1 %v10199_v3  ;;  %8499 = vmatprep.subr.bf16.mxu0 %v10202_v2  ;;  %v12244_v3 = vld [vmem:[%s12570_s0 + $0x68] sm:$0xff] }
 0x232   : > { %v12249_v2 = vld [vmem:[%s12570_s0 + $0xe8] sm:$0xff] }
 0x234   : > { %8076 = vmatpush1.bf16.msra.mxu1 %v10197_v5  ;;  %8500 = vmatpush1.bf16.msra.mxu0 %v10200_v6  ;;  %v9070_v5 = vcombine.low %v4433_v14, %v4449_v15  ;;  %v9086_v6 = vcombine.low %v4441_v18, %v4457_v19  ;;  %v10335_v14 = vld [vmem:[%s11721_s19 + $0x5c0] ss:$8 sps:$4 sm:$0xff]   ;;  %v10343_v18 = vld [vmem:[%s11721_s19 + $0x5d4] ss:$8 sps:$4 sm:$0xff]  }
 0x235   : > { %8077 = vmatprep.subr.bf16.mxu1 %v10205_v30  ;;  %8501 = vmatprep.subr.bf16.mxu0 %v10208_v31  ;;  %v10275_v30 = vld [vmem:[%s11721_s19 + $0x520] ss:$8 sps:$4 sm:$0xff]   ;;  %v10346_v19 = vld [vmem:[%s11721_s19 + $0xdd4] ss:$8 sps:$4 sm:$0xff]  }
 0x236   : > { %v10278_v31 = vld [vmem:[%s11721_s19 + $0xd20] ss:$8 sps:$4 sm:$0xff]  }
 0x237   : > { %v10338_v15 = vld [vmem:[%s11721_s19 + $0xdc0] ss:$8 sps:$4 sm:$0xff]  }
 0x238   : > { %8078 = vmatpush1.bf16.msra.mxu1 %v10203_v32  ;;  %8502 = vmatpush1.bf16.msra.mxu0 %v10206_v33  ;;  %v10283_v32 = vld [vmem:[%s11721_s19 + $0x534] ss:$8 sps:$4 sm:$0xff]  }
 0x239   : > { %8079 = vmatprep.subr.bf16.mxu1 %v10211_v34  ;;  %8503 = vmatprep.subr.bf16.mxu0 %v10214_v35  ;;  %v10286_v33 = vld [vmem:[%s11721_s19 + $0xd34] ss:$8 sps:$4 sm:$0xff]   ;;  %v9041_v34 = vcombine.high %v12234_v20, %v12239_v21  ;;  %v9057_v35 = vcombine.high %v12244_v3, %v12249_v2 }
 0x23c   : > { %8080 = vmatpush1.bf16.msra.mxu1 %v10209_v36  ;;  %8504 = vmatpush1.bf16.msra.mxu0 %v10212_v37  ;;  %v10281_v36 = vld [vmem:[%s11721_s19 + $0x530] ss:$8 sps:$4 sm:$0xff]  }
 0x23d   : > { %8081 = vmatprep.subr.bf16.mxu1 %v10217_v38  ;;  %8505 = vmatprep.subr.bf16.mxu0 %v10220_v39  ;;  %v10284_v37 = vld [vmem:[%s11721_s19 + $0xd30] ss:$8 sps:$4 sm:$0xff]   ;;  %v10289_v38 = vld [vmem:[%s11721_s19 + $0x544] ss:$8 sps:$4 sm:$0xff]  }
 0x23e   : > { %v10292_v39 = vld [vmem:[%s11721_s19 + $0xd44] ss:$8 sps:$4 sm:$0xff]  }
 0x240   : > { %8082 = vmatpush1.bf16.msra.mxu1 %v10215_v40  ;;  %8506 = vmatpush1.bf16.msra.mxu0 %v10218_v41  ;;  %v10287_v40 = vld [vmem:[%s11721_s19 + $0x540] ss:$8 sps:$4 sm:$0xff]  }
 0x241   : > { %8083 = vmatprep.subr.bf16.mxu1 %v10223_v44  ;;  %8507 = vmatprep.subr.bf16.mxu0 %v10226_v45  ;;  %v10290_v41 = vld [vmem:[%s11721_s19 + $0xd40] ss:$8 sps:$4 sm:$0xff]   ;;  %v10295_v44 = vld [vmem:[%s11721_s19 + $0x554] ss:$8 sps:$4 sm:$0xff]  }
 0x242   : > { %v10298_v45 = vld [vmem:[%s11721_s19 + $0xd54] ss:$8 sps:$4 sm:$0xff]  }
 0x244   : > { %8084 = vmatpush1.bf16.msra.mxu1 %v10221_v48  ;;  %8508 = vmatpush1.bf16.msra.mxu0 %v10224_v49  ;;  %v10293_v48 = vld [vmem:[%s11721_s19 + $0x550] ss:$8 sps:$4 sm:$0xff]  }
 0x245   : > { %8085 = vmatprep.subr.bf16.mxu1 %v10229_v50  ;;  %8509 = vmatprep.subr.bf16.mxu0 %v10232_v51  ;;  %v10296_v49 = vld [vmem:[%s11721_s19 + $0xd50] ss:$8 sps:$4 sm:$0xff]   ;;  %v10301_v50 = vld [vmem:[%s11721_s19 + $0x564] ss:$8 sps:$4 sm:$0xff]  }
 0x246   : > { %v10304_v51 = vld [vmem:[%s11721_s19 + $0xd64] ss:$8 sps:$4 sm:$0xff]  }
 0x248   : > { %8086 = vmatpush1.bf16.msra.mxu1 %v10227_v52  ;;  %8510 = vmatpush1.bf16.msra.mxu0 %v10230_v42  ;;  %v10299_v52 = vld [vmem:[%s11721_s19 + $0x560] ss:$8 sps:$4 sm:$0xff]  }
 0x249   : > { %8087 = vmatprep.subr.bf16.mxu1 %v10235_v43  ;;  %8511 = vmatprep.subr.bf16.mxu0 %v10238_v46  ;;  %v10302_v42 = vld [vmem:[%s11721_s19 + $0xd60] ss:$8 sps:$4 sm:$0xff]   ;;  %v10307_v43 = vld [vmem:[%s11721_s19 + $0x574] ss:$8 sps:$4 sm:$0xff]  }
 0x24a   : > { %v10310_v46 = vld [vmem:[%s11721_s19 + $0xd74] ss:$8 sps:$4 sm:$0xff]  }
 0x24c   : > { %8088 = vmatpush1.bf16.msra.mxu1 %v10233_v47  ;;  %8512 = vmatpush1.bf16.msra.mxu0 %v10236_v53  ;;  %v10305_v47 = vld [vmem:[%s11721_s19 + $0x570] ss:$8 sps:$4 sm:$0xff]  }
 0x24d   : > { %8089 = vmatprep.subr.bf16.mxu1 %v10241_v54  ;;  %8513 = vmatprep.subr.bf16.mxu0 %v10244_v55  ;;  %v10308_v53 = vld [vmem:[%s11721_s19 + $0xd70] ss:$8 sps:$4 sm:$0xff]   ;;  %v10313_v54 = vld [vmem:[%s11721_s19 + $0x584] ss:$8 sps:$4 sm:$0xff]  }
 0x24e   : > { %v10316_v55 = vld [vmem:[%s11721_s19 + $0xd84] ss:$8 sps:$4 sm:$0xff]  }
 0x250   : > { %8090 = vmatpush1.bf16.msra.mxu1 %v10239_v56  ;;  %8514 = vmatpush1.bf16.msra.mxu0 %v10242_v57  ;;  %v10311_v56 = vld [vmem:[%s11721_s19 + $0x580] ss:$8 sps:$4 sm:$0xff]  }
 0x251   : > { %8091 = vmatprep.subr.bf16.mxu1 %v10247_v60  ;;  %8515 = vmatprep.subr.bf16.mxu0 %v10250_v61  ;;  %v10314_v57 = vld [vmem:[%s11721_s19 + $0xd80] ss:$8 sps:$4 sm:$0xff]   ;;  %v10319_v60 = vld [vmem:[%s11721_s19 + $0x594] ss:$8 sps:$4 sm:$0xff]  }
 0x252   : > { %v10322_v61 = vld [vmem:[%s11721_s19 + $0xd94] ss:$8 sps:$4 sm:$0xff]  }
 0x254   : > { %8092 = vmatpush1.bf16.msra.mxu1 %v10245_v4  ;;  %8516 = vmatpush1.bf16.msra.mxu0 %v10248_v7  ;;  %v10317_v4 = vld [vmem:[%s11721_s19 + $0x590] ss:$8 sps:$4 sm:$0xff]  }
 0x255   : > { %8093 = vmatprep.subr.bf16.mxu1 %v10253_v8  ;;  %8517 = vmatprep.subr.bf16.mxu0 %v10256_v9  ;;  %v10320_v7 = vld [vmem:[%s11721_s19 + $0xd90] ss:$8 sps:$4 sm:$0xff]   ;;  %v10325_v8 = vld [vmem:[%s11721_s19 + $0x5a4] ss:$8 sps:$4 sm:$0xff]  }
 0x256   : > { %v10328_v9 = vld [vmem:[%s11721_s19 + $0xda4] ss:$8 sps:$4 sm:$0xff]  }
 0x258   : > { %8094 = vmatpush1.bf16.msra.mxu1 %v10251_v10  ;;  %8518 = vmatpush1.bf16.msra.mxu0 %v10254_v58  ;;  %v10323_v10 = vld [vmem:[%s11721_s19 + $0x5a0] ss:$8 sps:$4 sm:$0xff]  }
 0x259   : > { %8095 = vmatprep.subr.bf16.mxu1 %v10259_v59  ;;  %8519 = vmatprep.subr.bf16.mxu0 %v10262_v62  ;;  %v10326_v58 = vld [vmem:[%s11721_s19 + $0xda0] ss:$8 sps:$4 sm:$0xff]   ;;  %v10331_v59 = vld [vmem:[%s11721_s19 + $0x5b4] ss:$8 sps:$4 sm:$0xff]  }
 0x25a   : > { %v10334_v62 = vld [vmem:[%s11721_s19 + $0xdb4] ss:$8 sps:$4 sm:$0xff]  }
 0x25c   : > { %8096 = vmatpush1.bf16.msra.mxu1 %v10257_v63  ;;  %8520 = vmatpush1.bf16.msra.mxu0 %v10260_v11  ;;  %v10329_v63 = vld [vmem:[%s11721_s19 + $0x5b0] ss:$8 sps:$4 sm:$0xff]  }
 0x25d   : > { %8118 = vmatprep.subr.bf16.mxu1 %v10265_v12  ;;  %8542 = vmatprep.subr.bf16.mxu0 %v10268_v13  ;;  %v10332_v11 = vld [vmem:[%s11721_s19 + $0xdb0] ss:$8 sps:$4 sm:$0xff]   ;;  %v10337_v12 = vld [vmem:[%s11721_s19 + $0x5c4] ss:$8 sps:$4 sm:$0xff]  }
 0x25e   : > { %v10340_v13 = vld [vmem:[%s11721_s19 + $0xdc4] ss:$8 sps:$4 sm:$0xff]  }
 0x25f   : > { %8098 = vmatmul.mubr.bf16.vlgmr.msra.gmra.mrb[0].mxu1 %v9038_v22  ;;  %8522 = vmatmul.mubr.bf16.vlgmr.msra.gmra.mrb[0].mxu0 %v9054_v23  ;;  %v10341_v22 = vld [vmem:[%s11721_s19 + $0x5d0] ss:$8 sps:$4 sm:$0xff]  }
 0x260   : > { %8119 = vmatpush1.bf16.msra.mxu1 %v10263_v24  ;;  %8543 = vmatpush1.bf16.msra.mxu0 %v10266_v25  ;;  %v10344_v23 = vld [vmem:[%s11721_s19 + $0xdd0] ss:$8 sps:$4 sm:$0xff]   ;;  %v10349_v24 = vld [vmem:[%s11721_s19 + $0x5e4] ss:$8 sps:$4 sm:$0xff]  }
 0x261   : > { %8120 = vmatprep.subr.bf16.mxu1 %v10271_v26  ;;  %8544 = vmatprep.subr.bf16.mxu0 %v10274_v27  ;;  %v10352_v25 = vld [vmem:[%s11721_s19 + $0xde4] ss:$8 sps:$4 sm:$0xff]   ;;  %v10347_v26 = vld [vmem:[%s11721_s19 + $0x5e0] ss:$8 sps:$4 sm:$0xff]  }
 0x262   : > { %8107 = vmatprep.mubr.bf16.mxu1 %v9071_v0  ;;  %8531 = vmatprep.mubr.bf16.mxu0 %v9087_v1  ;;  %v10350_v27 = vld [vmem:[%s11721_s19 + $0xde0] ss:$8 sps:$4 sm:$0xff]   ;;  %v10353_v0 = vld [vmem:[%s11721_s19 + $0x5f0] ss:$8 sps:$4 sm:$0xff]  }
 0x263   : > { %v10356_v1 = vld [vmem:[%s11721_s19 + $0xdf0] ss:$8 sps:$4 sm:$0xff]  }
 0x264   : > { %8121 = vmatpush1.bf16.msra.mxu1 %v10269_v28  ;;  %8545 = vmatpush1.bf16.msra.mxu0 %v10272_v29  ;;  %v10355_v28 = vld [vmem:[%s11721_s19 + $0x5f4] ss:$8 sps:$4 sm:$0xff]  }
 0x265   : > { %8122 = vmatprep.subr.bf16.mxu1 %v10277_v16  ;;  %8546 = vmatprep.subr.bf16.mxu0 %v10280_v17  ;;  %v10358_v29 = vld [vmem:[%s11721_s19 + $0xdf4] ss:$8 sps:$4 sm:$0xff]   ;;  %v10361_v16 = vld [vmem:[%s11721_s19 + $0x604] ss:$8 sps:$4 sm:$0xff]  }
 0x266   : > { %v10364_v17 = vld [vmem:[%s11721_s19 + $0xe04] ss:$8 sps:$4 sm:$0xff]  }
 0x267   : > { %8108 = vmatmul.mubr.bf16.gmra.mrb[4].mxu1 %v9070_v5  ;;  %8532 = vmatmul.mubr.bf16.gmra.mrb[4].mxu0 %v9086_v6  ;;  %v4434_v5 = vld [vmem:[%s12570_s0 + $0x128] sm:$0xff]  ;;  %v9040_v6 = vcombine.low %v12234_v20, %v12239_v21 }
 0x268   : > { %8123 = vmatpush1.bf16.msra.mxu1 %v10275_v30  ;;  %8547 = vmatpush1.bf16.msra.mxu0 %v10278_v31  ;;  %v9056_v30 = vcombine.low %v12244_v3, %v12249_v2  ;;  %v4450_v31 = vld [vmem:[%s12570_s0 + $0x1a8] sm:$0xff]  ;;  %v10367_v3 = vld [vmem:[%s11721_s19 + $0x614] ss:$8 sps:$4 sm:$0xff]  }
 0x269   : > { %8124 = vmatprep.subr.bf16.mxu1 %v10283_v32  ;;  %8548 = vmatprep.subr.bf16.mxu0 %v10286_v33  ;;  %v4442_v32 = vld [vmem:[%s12570_s0 + $0x168] sm:$0xff]  ;;  %v10370_v2 = vld [vmem:[%s11721_s19 + $0xe14] ss:$8 sps:$4 sm:$0xff]  }
 0x26a   : > { %8150 = vmatprep.mubr.bf16.mxu1 %v9041_v34  ;;  %8574 = vmatprep.mubr.bf16.mxu0 %v9057_v35  ;;  %v4458_v33 = vld [vmem:[%s12570_s0 + $0x1e8] sm:$0xff]  ;;  %v9073_v34 = vcombine.high %v4434_v5, %v4450_v31 }
 0x26b   : > { %v10359_v20 = vld [vmem:[%s11721_s19 + $0x600] ss:$8 sps:$4 sm:$0xff]   ;;  %v9089_v35 = vcombine.high %v4442_v32, %v4458_v33 }
 0x26c   : > { %8125 = vmatpush1.bf16.msra.mxu1 %v10281_v36  ;;  %8549 = vmatpush1.bf16.msra.mxu0 %v10284_v37  ;;  %v10362_v21 = vld [vmem:[%s11721_s19 + $0xe00] ss:$8 sps:$4 sm:$0xff]   ;;  %v10365_v36 = vld [vmem:[%s11721_s19 + $0x610] ss:$8 sps:$4 sm:$0xff]  }
 0x26d   : > { %8126 = vmatprep.subr.bf16.mxu1 %v10289_v38  ;;  %8550 = vmatprep.subr.bf16.mxu0 %v10292_v39  ;;  %v10368_v37 = vld [vmem:[%s11721_s19 + $0xe10] ss:$8 sps:$4 sm:$0xff]   ;;  %v10373_v38 = vld [vmem:[%s11721_s19 + $0x624] ss:$8 sps:$4 sm:$0xff]  }
 0x26e   : > { %v10376_v39 = vld [vmem:[%s11721_s19 + $0xe24] ss:$8 sps:$4 sm:$0xff]  }
 0x270   : > { %8127 = vmatpush1.bf16.msra.mxu1 %v10287_v40  ;;  %8551 = vmatpush1.bf16.msra.mxu0 %v10290_v41  ;;  %v12338_v40 = vld [vmem:[%s12570_s0 + $0x30] sm:$0xff]  ;;  %v9072_v41 = vcombine.low %v4434_v5, %v4450_v31  ;;  %v10431_v5 = vld [vmem:[%s11721_s19 + $0x6c0] ss:$8 sps:$4 sm:$0xff]  }
 0x271   : > { %8128 = vmatprep.subr.bf16.mxu1 %v10295_v44  ;;  %8552 = vmatprep.subr.bf16.mxu0 %v10298_v45  ;;  %v9088_v44 = vcombine.low %v4442_v32, %v4458_v33  ;;  %v12343_v45 = vld [vmem:[%s12570_s0 + $0xb0] sm:$0xff] }
 0x272   : > { %v10442_v31 = vld [vmem:[%s11721_s19 + $0xed4] ss:$8 sps:$4 sm:$0xff]   ;;  %v10437_v32 = vld [vmem:[%s11721_s19 + $0x6d0] ss:$8 sps:$4 sm:$0xff]  }
 0x273   : > { %v10440_v33 = vld [vmem:[%s11721_s19 + $0xed0] ss:$8 sps:$4 sm:$0xff]  }
 0x274   : > { %8129 = vmatpush1.bf16.msra.mxu1 %v10293_v48  ;;  %8553 = vmatpush1.bf16.msra.mxu0 %v10296_v49  ;;  %v12348_v48 = vld [vmem:[%s12570_s0 + $0x70] sm:$0xff] }
 0x275   : > { %8130 = vmatprep.subr.bf16.mxu1 %v10301_v50  ;;  %8554 = vmatprep.subr.bf16.mxu0 %v10304_v51  ;;  %v12353_v49 = vld [vmem:[%s12570_s0 + $0xf0] sm:$0xff]  ;;  %v10371_v50 = vld [vmem:[%s11721_s19 + $0x620] ss:$8 sps:$4 sm:$0xff]  }
 0x276   : > { %v10374_v51 = vld [vmem:[%s11721_s19 + $0xe20] ss:$8 sps:$4 sm:$0xff]  }
 0x278   : > { %8131 = vmatpush1.bf16.msra.mxu1 %v10299_v52  ;;  %8555 = vmatpush1.bf16.msra.mxu0 %v10302_v42  ;;  %v10379_v52 = vld [vmem:[%s11721_s19 + $0x634] ss:$8 sps:$4 sm:$0xff]  }
 0x279   : > { %8132 = vmatprep.subr.bf16.mxu1 %v10307_v43  ;;  %8556 = vmatprep.subr.bf16.mxu0 %v10310_v46  ;;  %v10382_v42 = vld [vmem:[%s11721_s19 + $0xe34] ss:$8 sps:$4 sm:$0xff]   ;;  %v9043_v43 = vcombine.high %v12338_v40, %v12343_v45  ;;  %v9059_v46 = vcombine.high %v12348_v48, %v12353_v49 }
 0x27c   : > { %8133 = vmatpush1.bf16.msra.mxu1 %v10305_v47  ;;  %8557 = vmatpush1.bf16.msra.mxu0 %v10308_v53  ;;  %v10377_v47 = vld [vmem:[%s11721_s19 + $0x630] ss:$8 sps:$4 sm:$0xff]  }
 0x27d   : > { %8134 = vmatprep.subr.bf16.mxu1 %v10313_v54  ;;  %8558 = vmatprep.subr.bf16.mxu0 %v10316_v55  ;;  %v10380_v53 = vld [vmem:[%s11721_s19 + $0xe30] ss:$8 sps:$4 sm:$0xff]   ;;  %v10385_v54 = vld [vmem:[%s11721_s19 + $0x644] ss:$8 sps:$4 sm:$0xff]  }
 0x27e   : > { %v10388_v55 = vld [vmem:[%s11721_s19 + $0xe44] ss:$8 sps:$4 sm:$0xff]  }
 0x280   : > { %8135 = vmatpush1.bf16.msra.mxu1 %v10311_v56  ;;  %8559 = vmatpush1.bf16.msra.mxu0 %v10314_v57  ;;  %v10383_v56 = vld [vmem:[%s11721_s19 + $0x640] ss:$8 sps:$4 sm:$0xff]  }
 0x281   : > { %8136 = vmatprep.subr.bf16.mxu1 %v10319_v60  ;;  %8560 = vmatprep.subr.bf16.mxu0 %v10322_v61  ;;  %v10386_v57 = vld [vmem:[%s11721_s19 + $0xe40] ss:$8 sps:$4 sm:$0xff]   ;;  %v10391_v60 = vld [vmem:[%s11721_s19 + $0x654] ss:$8 sps:$4 sm:$0xff]  }
 0x282   : > { %v10394_v61 = vld [vmem:[%s11721_s19 + $0xe54] ss:$8 sps:$4 sm:$0xff]  }
 0x284   : > { %8137 = vmatpush1.bf16.msra.mxu1 %v10317_v4  ;;  %8561 = vmatpush1.bf16.msra.mxu0 %v10320_v7  ;;  %v10389_v4 = vld [vmem:[%s11721_s19 + $0x650] ss:$8 sps:$4 sm:$0xff]  }
 0x285   : > { %8138 = vmatprep.subr.bf16.mxu1 %v10325_v8  ;;  %8562 = vmatprep.subr.bf16.mxu0 %v10328_v9  ;;  %v10392_v7 = vld [vmem:[%s11721_s19 + $0xe50] ss:$8 sps:$4 sm:$0xff]   ;;  %v10397_v8 = vld [vmem:[%s11721_s19 + $0x664] ss:$8 sps:$4 sm:$0xff]  }
 0x286   : > { %v10400_v9 = vld [vmem:[%s11721_s19 + $0xe64] ss:$8 sps:$4 sm:$0xff]  }
 0x288   : > { %8139 = vmatpush1.bf16.msra.mxu1 %v10323_v10  ;;  %8563 = vmatpush1.bf16.msra.mxu0 %v10326_v58  ;;  %v10395_v10 = vld [vmem:[%s11721_s19 + $0x660] ss:$8 sps:$4 sm:$0xff]  }
 0x289   : > { %8140 = vmatprep.subr.bf16.mxu1 %v10331_v59  ;;  %8564 = vmatprep.subr.bf16.mxu0 %v10334_v62  ;;  %v10398_v58 = vld [vmem:[%s11721_s19 + $0xe60] ss:$8 sps:$4 sm:$0xff]   ;;  %v10403_v59 = vld [vmem:[%s11721_s19 + $0x674] ss:$8 sps:$4 sm:$0xff]  }
 0x28a   : > { %v10406_v62 = vld [vmem:[%s11721_s19 + $0xe74] ss:$8 sps:$4 sm:$0xff]  }
 0x28c   : > { %8141 = vmatpush1.bf16.msra.mxu1 %v10329_v63  ;;  %8565 = vmatpush1.bf16.msra.mxu0 %v10332_v11  ;;  %v10401_v63 = vld [vmem:[%s11721_s19 + $0x670] ss:$8 sps:$4 sm:$0xff]  }
 0x28d   : > { %8142 = vmatprep.subr.bf16.mxu1 %v10337_v12  ;;  %8566 = vmatprep.subr.bf16.mxu0 %v10340_v13  ;;  %v10404_v11 = vld [vmem:[%s11721_s19 + $0xe70] ss:$8 sps:$4 sm:$0xff]   ;;  %v10409_v12 = vld [vmem:[%s11721_s19 + $0x684] ss:$8 sps:$4 sm:$0xff]  }
 0x28e   : > { %v10412_v13 = vld [vmem:[%s11721_s19 + $0xe84] ss:$8 sps:$4 sm:$0xff]  }
 0x290   : > { %8143 = vmatpush1.bf16.msra.mxu1 %v10335_v14  ;;  %8567 = vmatpush1.bf16.msra.mxu0 %v10338_v15  ;;  %v10407_v14 = vld [vmem:[%s11721_s19 + $0x680] ss:$8 sps:$4 sm:$0xff]  }
 0x291   : > { %8144 = vmatprep.subr.bf16.mxu1 %v10343_v18  ;;  %8568 = vmatprep.subr.bf16.mxu0 %v10346_v19  ;;  %v10410_v15 = vld [vmem:[%s11721_s19 + $0xe80] ss:$8 sps:$4 sm:$0xff]   ;;  %v10415_v18 = vld [vmem:[%s11721_s19 + $0x694] ss:$8 sps:$4 sm:$0xff]  }
 0x292   : > { %v10418_v19 = vld [vmem:[%s11721_s19 + $0xe94] ss:$8 sps:$4 sm:$0xff]  }
 0x294   : > { %8145 = vmatpush1.bf16.msra.mxu1 %v10341_v22  ;;  %8569 = vmatpush1.bf16.msra.mxu0 %v10344_v23  ;;  %v10413_v22 = vld [vmem:[%s11721_s19 + $0x690] ss:$8 sps:$4 sm:$0xff]  }
 0x295   : > { %8146 = vmatprep.subr.bf16.mxu1 %v10349_v24  ;;  %8570 = vmatprep.subr.bf16.mxu0 %v10352_v25  ;;  %v10416_v23 = vld [vmem:[%s11721_s19 + $0xe90] ss:$8 sps:$4 sm:$0xff]   ;;  %v10421_v24 = vld [vmem:[%s11721_s19 + $0x6a4] ss:$8 sps:$4 sm:$0xff]  }
 0x296   : > { %v10424_v25 = vld [vmem:[%s11721_s19 + $0xea4] ss:$8 sps:$4 sm:$0xff]  }
 0x298   : > { %8147 = vmatpush1.bf16.msra.mxu1 %v10347_v26  ;;  %8571 = vmatpush1.bf16.msra.mxu0 %v10350_v27  ;;  %v10419_v26 = vld [vmem:[%s11721_s19 + $0x6a0] ss:$8 sps:$4 sm:$0xff]  }
 0x299   : > { %8148 = vmatprep.subr.bf16.mxu1 %v10355_v28  ;;  %8572 = vmatprep.subr.bf16.mxu0 %v10358_v29  ;;  %v10422_v27 = vld [vmem:[%s11721_s19 + $0xea0] ss:$8 sps:$4 sm:$0xff]   ;;  %v10427_v28 = vld [vmem:[%s11721_s19 + $0x6b4] ss:$8 sps:$4 sm:$0xff]  }
 0x29a   : > { %v10430_v29 = vld [vmem:[%s11721_s19 + $0xeb4] ss:$8 sps:$4 sm:$0xff]  }
 0x29c   : > { %8149 = vmatpush1.bf16.msra.mxu1 %v10353_v0  ;;  %8573 = vmatpush1.bf16.msra.mxu0 %v10356_v1  ;;  %v10425_v0 = vld [vmem:[%s11721_s19 + $0x6b0] ss:$8 sps:$4 sm:$0xff]  }
 0x29d   : > { %8171 = vmatprep.subr.bf16.mxu1 %v10361_v16  ;;  %8595 = vmatprep.subr.bf16.mxu0 %v10364_v17  ;;  %v10428_v1 = vld [vmem:[%s11721_s19 + $0xeb0] ss:$8 sps:$4 sm:$0xff]   ;;  %v10433_v16 = vld [vmem:[%s11721_s19 + $0x6c4] ss:$8 sps:$4 sm:$0xff]  }
 0x29e   : > { %v10436_v17 = vld [vmem:[%s11721_s19 + $0xec4] ss:$8 sps:$4 sm:$0xff]  }
 0x29f   : > { %8151 = vmatmul.mubr.bf16.vlgmr.msra.gmra.mrb[0].mxu1 %v9040_v6  ;;  %8575 = vmatmul.mubr.bf16.vlgmr.msra.gmra.mrb[0].mxu0 %v9056_v30  ;;  %v10434_v6 = vld [vmem:[%s11721_s19 + $0xec0] ss:$8 sps:$4 sm:$0xff]   ;;  %v10439_v30 = vld [vmem:[%s11721_s19 + $0x6d4] ss:$8 sps:$4 sm:$0xff]  }
 0x2a0   : > { %8172 = vmatpush1.bf16.msra.mxu1 %v10359_v20  ;;  %8596 = vmatpush1.bf16.msra.mxu0 %v10362_v21  ;;  %v10445_v20 = vld [vmem:[%s11721_s19 + $0x6e4] ss:$8 sps:$4 sm:$0xff]  }
 0x2a1   : > { %8173 = vmatprep.subr.bf16.mxu1 %v10367_v3  ;;  %8597 = vmatprep.subr.bf16.mxu0 %v10370_v2  ;;  %v10448_v21 = vld [vmem:[%s11721_s19 + $0xee4] ss:$8 sps:$4 sm:$0xff]   ;;  %v10443_v3 = vld [vmem:[%s11721_s19 + $0x6e0] ss:$8 sps:$4 sm:$0xff]  }
 0x2a2   : > { %8160 = vmatprep.mubr.bf16.mxu1 %v9073_v34  ;;  %8584 = vmatprep.mubr.bf16.mxu0 %v9089_v35  ;;  %v10446_v2 = vld [vmem:[%s11721_s19 + $0xee0] ss:$8 sps:$4 sm:$0xff]   ;;  %v10451_v34 = vld [vmem:[%s11721_s19 + $0x6f4] ss:$8 sps:$4 sm:$0xff]  }
 0x2a3   : > { %v10454_v35 = vld [vmem:[%s11721_s19 + $0xef4] ss:$8 sps:$4 sm:$0xff]  }
 0x2a4   : > { %8174 = vmatpush1.bf16.msra.mxu1 %v10365_v36  ;;  %8598 = vmatpush1.bf16.msra.mxu0 %v10368_v37  ;;  %v10449_v36 = vld [vmem:[%s11721_s19 + $0x6f0] ss:$8 sps:$4 sm:$0xff]  }
 0x2a5   : > { %8175 = vmatprep.subr.bf16.mxu1 %v10373_v38  ;;  %8599 = vmatprep.subr.bf16.mxu0 %v10376_v39  ;;  %v10452_v37 = vld [vmem:[%s11721_s19 + $0xef0] ss:$8 sps:$4 sm:$0xff]   ;;  %v10457_v38 = vld [vmem:[%s11721_s19 + $0x704] ss:$8 sps:$4 sm:$0xff]  }
 0x2a6   : > { %v10460_v39 = vld [vmem:[%s11721_s19 + $0xf04] ss:$8 sps:$4 sm:$0xff]  }
 0x2a7   : > { %8161 = vmatmul.mubr.bf16.gmra.mrb[4].mxu1 %v9072_v41  ;;  %8585 = vmatmul.mubr.bf16.gmra.mrb[4].mxu0 %v9088_v44  ;;  %v4435_v41 = vld [vmem:[%s12570_s0 + $0x130] sm:$0xff]  ;;  %v9042_v44 = vcombine.low %v12338_v40, %v12343_v45  ;;  %v10455_v40 = vld [vmem:[%s11721_s19 + $0x700] ss:$8 sps:$4 sm:$0xff]  }
 0x2a8   : > { %8176 = vmatpush1.bf16.msra.mxu1 %v10371_v50  ;;  %8600 = vmatpush1.bf16.msra.mxu0 %v10374_v51  ;;  %v9058_v50 = vcombine.low %v12348_v48, %v12353_v49  ;;  %v4451_v51 = vld [vmem:[%s12570_s0 + $0x1b0] sm:$0xff]  ;;  %v10458_v45 = vld [vmem:[%s11721_s19 + $0xf00] ss:$8 sps:$4 sm:$0xff]  }
 0x2a9   : > { %8177 = vmatprep.subr.bf16.mxu1 %v10379_v52  ;;  %8601 = vmatprep.subr.bf16.mxu0 %v10382_v42  ;;  %v4443_v52 = vld [vmem:[%s12570_s0 + $0x170] sm:$0xff] }
 0x2aa   : > { %8203 = vmatprep.mubr.bf16.mxu1 %v9043_v43  ;;  %8627 = vmatprep.mubr.bf16.mxu0 %v9059_v46  ;;  %v4459_v42 = vld [vmem:[%s12570_s0 + $0x1f0] sm:$0xff]  ;;  %v9075_v43 = vcombine.high %v4435_v41, %v4451_v51 }
 0x2ab   : > { %v10463_v48 = vld [vmem:[%s11721_s19 + $0x714] ss:$8 sps:$4 sm:$0xff]   ;;  %v9091_v46 = vcombine.high %v4443_v52, %v4459_v42 }
 0x2ac   : > { %8178 = vmatpush1.bf16.msra.mxu1 %v10377_v47  ;;  %8602 = vmatpush1.bf16.msra.mxu0 %v10380_v53  ;;  %v10466_v49 = vld [vmem:[%s11721_s19 + $0xf14] ss:$8 sps:$4 sm:$0xff]   ;;  %v10461_v47 = vld [vmem:[%s11721_s19 + $0x710] ss:$8 sps:$4 sm:$0xff]  }
 0x2ad   : > { %8179 = vmatprep.subr.bf16.mxu1 %v10385_v54  ;;  %8603 = vmatprep.subr.bf16.mxu0 %v10388_v55  ;;  %v10464_v53 = vld [vmem:[%s11721_s19 + $0xf10] ss:$8 sps:$4 sm:$0xff]   ;;  %v10469_v54 = vld [vmem:[%s11721_s19 + $0x724] ss:$8 sps:$4 sm:$0xff]  }
 0x2ae   : > { %v10472_v55 = vld [vmem:[%s11721_s19 + $0xf24] ss:$8 sps:$4 sm:$0xff]  }
 0x2b0   : > { %8180 = vmatpush1.bf16.msra.mxu1 %v10383_v56  ;;  %8604 = vmatpush1.bf16.msra.mxu0 %v10386_v57  ;;  %v12442_v56 = vld [vmem:[%s12570_s0 + $0x38] sm:$0xff]  ;;  %v9074_v57 = vcombine.low %v4435_v41, %v4451_v51  ;;  %v10527_v41 = vld [vmem:[%s11721_s19 + $0x7c0] ss:$8 sps:$4 sm:$0xff]  }
 0x2b1   : > { %8181 = vmatprep.subr.bf16.mxu1 %v10391_v60  ;;  %8605 = vmatprep.subr.bf16.mxu0 %v10394_v61  ;;  %v9090_v60 = vcombine.low %v4443_v52, %v4459_v42  ;;  %v12447_v61 = vld [vmem:[%s12570_s0 + $0xb8] sm:$0xff] }
 0x2b2   : > { %v10538_v51 = vld [vmem:[%s11721_s19 + $0xfd4] ss:$8 sps:$4 sm:$0xff]   ;;  %v10533_v52 = vld [vmem:[%s11721_s19 + $0x7d0] ss:$8 sps:$4 sm:$0xff]  }
 0x2b3   : > { %v10536_v42 = vld [vmem:[%s11721_s19 + $0xfd0] ss:$8 sps:$4 sm:$0xff]  }
 0x2b4   : > { %8182 = vmatpush1.bf16.msra.mxu1 %v10389_v4  ;;  %8606 = vmatpush1.bf16.msra.mxu0 %v10392_v7  ;;  %v12452_v4 = vld [vmem:[%s12570_s0 + $0x78] sm:$0xff] }
 0x2b5   : > { %8183 = vmatprep.subr.bf16.mxu1 %v10397_v8  ;;  %8607 = vmatprep.subr.bf16.mxu0 %v10400_v9  ;;  %v12457_v7 = vld [vmem:[%s12570_s0 + $0xf8] sm:$0xff]  ;;  %v10467_v8 = vld [vmem:[%s11721_s19 + $0x720] ss:$8 sps:$4 sm:$0xff]  }
 0x2b6   : > { %v10470_v9 = vld [vmem:[%s11721_s19 + $0xf20] ss:$8 sps:$4 sm:$0xff]  }
 0x2b8   : > { %8184 = vmatpush1.bf16.msra.mxu1 %v10395_v10  ;;  %8608 = vmatpush1.bf16.msra.mxu0 %v10398_v58  ;;  %v10475_v10 = vld [vmem:[%s11721_s19 + $0x734] ss:$8 sps:$4 sm:$0xff]  }
 0x2b9   : > { %8185 = vmatprep.subr.bf16.mxu1 %v10403_v59  ;;  %8609 = vmatprep.subr.bf16.mxu0 %v10406_v62  ;;  %v10478_v58 = vld [vmem:[%s11721_s19 + $0xf34] ss:$8 sps:$4 sm:$0xff]   ;;  %v9045_v59 = vcombine.high %v12442_v56, %v12447_v61  ;;  %v9061_v62 = vcombine.high %v12452_v4, %v12457_v7 }
 0x2bc   : > { %8186 = vmatpush1.bf16.msra.mxu1 %v10401_v63  ;;  %8610 = vmatpush1.bf16.msra.mxu0 %v10404_v11  ;;  %v10473_v63 = vld [vmem:[%s11721_s19 + $0x730] ss:$8 sps:$4 sm:$0xff]  }
 0x2bd   : > { %8187 = vmatprep.subr.bf16.mxu1 %v10409_v12  ;;  %8611 = vmatprep.subr.bf16.mxu0 %v10412_v13  ;;  %v10476_v11 = vld [vmem:[%s11721_s19 + $0xf30] ss:$8 sps:$4 sm:$0xff]   ;;  %v10481_v12 = vld [vmem:[%s11721_s19 + $0x744] ss:$8 sps:$4 sm:$0xff]  }
 0x2be   : > { %v10484_v13 = vld [vmem:[%s11721_s19 + $0xf44] ss:$8 sps:$4 sm:$0xff]  }
 0x2c0   : > { %8188 = vmatpush1.bf16.msra.mxu1 %v10407_v14  ;;  %8612 = vmatpush1.bf16.msra.mxu0 %v10410_v15  ;;  %v10479_v14 = vld [vmem:[%s11721_s19 + $0x740] ss:$8 sps:$4 sm:$0xff]  }
 0x2c1   : > { %8189 = vmatprep.subr.bf16.mxu1 %v10415_v18  ;;  %8613 = vmatprep.subr.bf16.mxu0 %v10418_v19  ;;  %v10482_v15 = vld [vmem:[%s11721_s19 + $0xf40] ss:$8 sps:$4 sm:$0xff]   ;;  %v10487_v18 = vld [vmem:[%s11721_s19 + $0x754] ss:$8 sps:$4 sm:$0xff]  }
 0x2c2   : > { %v10490_v19 = vld [vmem:[%s11721_s19 + $0xf54] ss:$8 sps:$4 sm:$0xff]  }
 0x2c4   : > { %8190 = vmatpush1.bf16.msra.mxu1 %v10413_v22  ;;  %8614 = vmatpush1.bf16.msra.mxu0 %v10416_v23  ;;  %v10485_v22 = vld [vmem:[%s11721_s19 + $0x750] ss:$8 sps:$4 sm:$0xff]  }
 0x2c5   : > { %8191 = vmatprep.subr.bf16.mxu1 %v10421_v24  ;;  %8615 = vmatprep.subr.bf16.mxu0 %v10424_v25  ;;  %v10488_v23 = vld [vmem:[%s11721_s19 + $0xf50] ss:$8 sps:$4 sm:$0xff]   ;;  %v10493_v24 = vld [vmem:[%s11721_s19 + $0x764] ss:$8 sps:$4 sm:$0xff]  }
 0x2c6   : > { %v10496_v25 = vld [vmem:[%s11721_s19 + $0xf64] ss:$8 sps:$4 sm:$0xff]  }
 0x2c8   : > { %8192 = vmatpush1.bf16.msra.mxu1 %v10419_v26  ;;  %8616 = vmatpush1.bf16.msra.mxu0 %v10422_v27  ;;  %v10491_v26 = vld [vmem:[%s11721_s19 + $0x760] ss:$8 sps:$4 sm:$0xff]  }
 0x2c9   : > { %8193 = vmatprep.subr.bf16.mxu1 %v10427_v28  ;;  %8617 = vmatprep.subr.bf16.mxu0 %v10430_v29  ;;  %v10494_v27 = vld [vmem:[%s11721_s19 + $0xf60] ss:$8 sps:$4 sm:$0xff]   ;;  %v10499_v28 = vld [vmem:[%s11721_s19 + $0x774] ss:$8 sps:$4 sm:$0xff]  }
 0x2ca   : > { %v10502_v29 = vld [vmem:[%s11721_s19 + $0xf74] ss:$8 sps:$4 sm:$0xff]  }
 0x2cc   : > { %8194 = vmatpush1.bf16.msra.mxu1 %v10425_v0  ;;  %8618 = vmatpush1.bf16.msra.mxu0 %v10428_v1  ;;  %v10497_v0 = vld [vmem:[%s11721_s19 + $0x770] ss:$8 sps:$4 sm:$0xff]  }
 0x2cd   : > { %8195 = vmatprep.subr.bf16.mxu1 %v10433_v16  ;;  %8619 = vmatprep.subr.bf16.mxu0 %v10436_v17  ;;  %v10500_v1 = vld [vmem:[%s11721_s19 + $0xf70] ss:$8 sps:$4 sm:$0xff]   ;;  %v10505_v16 = vld [vmem:[%s11721_s19 + $0x784] ss:$8 sps:$4 sm:$0xff]  }
 0x2ce   : > { %v10508_v17 = vld [vmem:[%s11721_s19 + $0xf84] ss:$8 sps:$4 sm:$0xff]  }
 0x2d0   : > { %8196 = vmatpush1.bf16.msra.mxu1 %v10431_v5  ;;  %8620 = vmatpush1.bf16.msra.mxu0 %v10434_v6  ;;  %v10503_v5 = vld [vmem:[%s11721_s19 + $0x780] ss:$8 sps:$4 sm:$0xff]  }
 0x2d1   : > { %8197 = vmatprep.subr.bf16.mxu1 %v10439_v30  ;;  %8621 = vmatprep.subr.bf16.mxu0 %v10442_v31  ;;  %v10506_v6 = vld [vmem:[%s11721_s19 + $0xf80] ss:$8 sps:$4 sm:$0xff]   ;;  %v10511_v30 = vld [vmem:[%s11721_s19 + $0x794] ss:$8 sps:$4 sm:$0xff]  }
 0x2d2   : > { %v10514_v31 = vld [vmem:[%s11721_s19 + $0xf94] ss:$8 sps:$4 sm:$0xff]  }
 0x2d4   : > { %8198 = vmatpush1.bf16.msra.mxu1 %v10437_v32  ;;  %8622 = vmatpush1.bf16.msra.mxu0 %v10440_v33  ;;  %v10509_v32 = vld [vmem:[%s11721_s19 + $0x790] ss:$8 sps:$4 sm:$0xff]  }
 0x2d5   : > { %8199 = vmatprep.subr.bf16.mxu1 %v10445_v20  ;;  %8623 = vmatprep.subr.bf16.mxu0 %v10448_v21  ;;  %v10512_v33 = vld [vmem:[%s11721_s19 + $0xf90] ss:$8 sps:$4 sm:$0xff]   ;;  %v10517_v20 = vld [vmem:[%s11721_s19 + $0x7a4] ss:$8 sps:$4 sm:$0xff]  }
 0x2d6   : > { %v10520_v21 = vld [vmem:[%s11721_s19 + $0xfa4] ss:$8 sps:$4 sm:$0xff]  }
 0x2d8   : > { %8200 = vmatpush1.bf16.msra.mxu1 %v10443_v3  ;;  %8624 = vmatpush1.bf16.msra.mxu0 %v10446_v2  ;;  %v10515_v3 = vld [vmem:[%s11721_s19 + $0x7a0] ss:$8 sps:$4 sm:$0xff]  }
 0x2d9   : > { %8201 = vmatprep.subr.bf16.mxu1 %v10451_v34  ;;  %8625 = vmatprep.subr.bf16.mxu0 %v10454_v35  ;;  %v10518_v2 = vld [vmem:[%s11721_s19 + $0xfa0] ss:$8 sps:$4 sm:$0xff]   ;;  %v10523_v34 = vld [vmem:[%s11721_s19 + $0x7b4] ss:$8 sps:$4 sm:$0xff]  }
 0x2da   : > { %v10526_v35 = vld [vmem:[%s11721_s19 + $0xfb4] ss:$8 sps:$4 sm:$0xff]  }
 0x2dc   : > { %8202 = vmatpush1.bf16.msra.mxu1 %v10449_v36  ;;  %8626 = vmatpush1.bf16.msra.mxu0 %v10452_v37  ;;  %v10521_v36 = vld [vmem:[%s11721_s19 + $0x7b0] ss:$8 sps:$4 sm:$0xff]  }
 0x2dd   : > { %8224 = vmatprep.subr.bf16.mxu1 %v10457_v38  ;;  %8648 = vmatprep.subr.bf16.mxu0 %v10460_v39  ;;  %v10524_v37 = vld [vmem:[%s11721_s19 + $0xfb0] ss:$8 sps:$4 sm:$0xff]   ;;  %v10529_v38 = vld [vmem:[%s11721_s19 + $0x7c4] ss:$8 sps:$4 sm:$0xff]  }
 0x2de   : > { %v10532_v39 = vld [vmem:[%s11721_s19 + $0xfc4] ss:$8 sps:$4 sm:$0xff]  }
 0x2df   : > { %8204 = vmatmul.mubr.bf16.vlgmr.msra.gmra.mrb[0].mxu1 %v9042_v44  ;;  %8628 = vmatmul.mubr.bf16.vlgmr.msra.gmra.mrb[0].mxu0 %v9058_v50  ;;  %v10530_v44 = vld [vmem:[%s11721_s19 + $0xfc0] ss:$8 sps:$4 sm:$0xff]   ;;  %v10535_v50 = vld [vmem:[%s11721_s19 + $0x7d4] ss:$8 sps:$4 sm:$0xff]  }
 0x2e0   : > { %8225 = vmatpush1.bf16.msra.mxu1 %v10455_v40  ;;  %8649 = vmatpush1.bf16.msra.mxu0 %v10458_v45  ;;  %v10541_v40 = vld [vmem:[%s11721_s19 + $0x7e4] ss:$8 sps:$4 sm:$0xff]  }
 0x2e1   : > { %8226 = vmatprep.subr.bf16.mxu1 %v10463_v48  ;;  %8650 = vmatprep.subr.bf16.mxu0 %v10466_v49  ;;  %v10544_v45 = vld [vmem:[%s11721_s19 + $0xfe4] ss:$8 sps:$4 sm:$0xff]   ;;  %v10539_v48 = vld [vmem:[%s11721_s19 + $0x7e0] ss:$8 sps:$4 sm:$0xff]  }
 0x2e2   : > { %8213 = vmatprep.mubr.bf16.mxu1 %v9075_v43  ;;  %8637 = vmatprep.mubr.bf16.mxu0 %v9091_v46  ;;  %v10542_v49 = vld [vmem:[%s11721_s19 + $0xfe0] ss:$8 sps:$4 sm:$0xff]   ;;  %v10547_v43 = vld [vmem:[%s11721_s19 + $0x7f4] ss:$8 sps:$4 sm:$0xff]  }
 0x2e3   : > { %v10550_v46 = vld [vmem:[%s11721_s19 + $0xff4] ss:$8 sps:$4 sm:$0xff]  }
 0x2e4   : > { %8227 = vmatpush1.bf16.msra.mxu1 %v10461_v47  ;;  %8651 = vmatpush1.bf16.msra.mxu0 %v10464_v53  ;;  %v10545_v47 = vld [vmem:[%s11721_s19 + $0x7f0] ss:$8 sps:$4 sm:$0xff]  }
 0x2e5   : > { %8228 = vmatprep.subr.bf16.mxu1 %v10469_v54  ;;  %8652 = vmatprep.subr.bf16.mxu0 %v10472_v55  ;;  %v10548_v53 = vld [vmem:[%s11721_s19 + $0xff0] ss:$8 sps:$4 sm:$0xff]   ;;  %s9027_s19 = sshll.u32 %s4340_s30, 5  ;;  %s9029_s30 = sshll.u32 %s12582_s12, 3 }
 0x2e6   : > { %v4436_v54 = vld [vmem:[%s12570_s0 + $0x138] sm:$0xff]  ;;  %s12535_s23 = scalar_lea.vmem [#allocation3], %s9027_s19  ;;  %s4395_s26 = scalar_lea.vmem %s12573_s3, %s9029_s30 }
 0x2e7   : > { %8214 = vmatmul.mubr.bf16.gmra.mrb[4].mxu1 %v9074_v57  ;;  %8638 = vmatmul.mubr.bf16.gmra.mrb[4].mxu0 %v9090_v60  ;;  %v4452_v55 = vld [vmem:[%s12570_s0 + $0x1b8] sm:$0xff] }
 0x2e8   : > { %8229 = vmatpush1.bf16.msra.mxu1 %v10467_v8  ;;  %8653 = vmatpush1.bf16.msra.mxu0 %v10470_v9  ;;  %v4444_v57 = vld [vmem:[%s12570_s0 + $0x178] sm:$0xff]  ;;  %v9044_v8 = vcombine.low %v12442_v56, %v12447_v61  ;;  %v9060_v9 = vcombine.low %v12452_v4, %v12457_v7 }
 0x2e9   : > { %8230 = vmatprep.subr.bf16.mxu1 %v10475_v10  ;;  %8654 = vmatprep.subr.bf16.mxu0 %v10478_v58  ;;  %v4460_v60 = vld [vmem:[%s12570_s0 + $0x1f8] sm:$0xff]  ;;  %v9077_v10 = vcombine.high %v4436_v54, %v4452_v55 }
 0x2ea   : > { %8256 = vmatprep.mubr.bf16.mxu1 %v9045_v59  ;;  %8680 = vmatprep.mubr.bf16.mxu0 %v9061_v62  ;;  %v9093_v58 = vcombine.high %v4444_v57, %v4460_v60  ;;  %v9076_v59 = vcombine.low %v4436_v54, %v4452_v55  ;;  %v9092_v62 = vcombine.low %v4444_v57, %v4460_v60  ;;  %v8725_v55 = vlaneseq }
 0x2ec   : > { %8231 = vmatpush1.bf16.msra.mxu1 %v10473_v63  ;;  %8655 = vmatpush1.bf16.msra.mxu0 %v10476_v11  ;;  %vm8739_vm0 = vcmp.lt.s32.totalorder %v8725_v55, 256 }
 0x2ed   : > { %8232 = vmatprep.subr.bf16.mxu1 %v10481_v12  ;;  %8656 = vmatprep.subr.bf16.mxu0 %v10484_v13 }
 0x2f0   : > { %8233 = vmatpush1.bf16.msra.mxu1 %v10479_v14  ;;  %8657 = vmatpush1.bf16.msra.mxu0 %v10482_v15 }
 0x2f1   : > { %8234 = vmatprep.subr.bf16.mxu1 %v10487_v18  ;;  %8658 = vmatprep.subr.bf16.mxu0 %v10490_v19 }
 0x2f4   : > { %8235 = vmatpush1.bf16.msra.mxu1 %v10485_v22  ;;  %8659 = vmatpush1.bf16.msra.mxu0 %v10488_v23 }
 0x2f5   : > { %8236 = vmatprep.subr.bf16.mxu1 %v10493_v24  ;;  %8660 = vmatprep.subr.bf16.mxu0 %v10496_v25 }
 0x2f8   : > { %8237 = vmatpush1.bf16.msra.mxu1 %v10491_v26  ;;  %8661 = vmatpush1.bf16.msra.mxu0 %v10494_v27 }
 0x2f9   : > { %8238 = vmatprep.subr.bf16.mxu1 %v10499_v28  ;;  %8662 = vmatprep.subr.bf16.mxu0 %v10502_v29 }
 0x2fc   : > { %8239 = vmatpush1.bf16.msra.mxu1 %v10497_v0  ;;  %8663 = vmatpush1.bf16.msra.mxu0 %v10500_v1 }
 0x2fd   : > { %8240 = vmatprep.subr.bf16.mxu1 %v10505_v16  ;;  %8664 = vmatprep.subr.bf16.mxu0 %v10508_v17 }
 0x300   : > { %8241 = vmatpush1.bf16.msra.mxu1 %v10503_v5  ;;  %8665 = vmatpush1.bf16.msra.mxu0 %v10506_v6 }
 0x301   : > { %8242 = vmatprep.subr.bf16.mxu1 %v10511_v30  ;;  %8666 = vmatprep.subr.bf16.mxu0 %v10514_v31 }
 0x304   : > { %8243 = vmatpush1.bf16.msra.mxu1 %v10509_v32  ;;  %8667 = vmatpush1.bf16.msra.mxu0 %v10512_v33 }
 0x305   : > { %8244 = vmatprep.subr.bf16.mxu1 %v10517_v20  ;;  %8668 = vmatprep.subr.bf16.mxu0 %v10520_v21 }
 0x308   : > { %8245 = vmatpush1.bf16.msra.mxu1 %v10515_v3  ;;  %8669 = vmatpush1.bf16.msra.mxu0 %v10518_v2 }
 0x309   : > { %8246 = vmatprep.subr.bf16.mxu1 %v10523_v34  ;;  %8670 = vmatprep.subr.bf16.mxu0 %v10526_v35 }
 0x30c   : > { %8247 = vmatpush1.bf16.msra.mxu1 %v10521_v36  ;;  %8671 = vmatpush1.bf16.msra.mxu0 %v10524_v37 }
 0x30d   : > { %8248 = vmatprep.subr.bf16.mxu1 %v10529_v38  ;;  %8672 = vmatprep.subr.bf16.mxu0 %v10532_v39 }
 0x310   : > { %8249 = vmatpush1.bf16.msra.mxu1 %v10527_v41  ;;  %8673 = vmatpush1.bf16.msra.mxu0 %v10530_v44 }
 0x311   : > { %8250 = vmatprep.subr.bf16.mxu1 %v10535_v50  ;;  %8674 = vmatprep.subr.bf16.mxu0 %v10538_v51 }
 0x314   : > { %8251 = vmatpush1.bf16.msra.mxu1 %v10533_v52  ;;  %8675 = vmatpush1.bf16.msra.mxu0 %v10536_v42 }
 0x315   : > { %8252 = vmatprep.subr.bf16.mxu1 %v10541_v40  ;;  %8676 = vmatprep.subr.bf16.mxu0 %v10544_v45 }
 0x318   : > { %8253 = vmatpush1.bf16.msra.mxu1 %v10539_v48  ;;  %8677 = vmatpush1.bf16.msra.mxu0 %v10542_v49 }
 0x319   : > { %8254 = vmatprep.subr.bf16.mxu1 %v10547_v43  ;;  %8678 = vmatprep.subr.bf16.mxu0 %v10550_v46 }
 0x31c   : > { %8255 = vmatpush1.bf16.msra.mxu1 %v10545_v47  ;;  %8679 = vmatpush1.bf16.msra.mxu0 %v10548_v53  ;;  %v10591_v53 = vmov 1966171168  }
 0x31d   : > { %v8723_v54 = vunpack.c.l.s4 %v10591_v53 }
 0x31f   : > { %8257 = vmatmul.mubr.bf16.vlgmr.msra.gmra.mrb[0].mxu1 %v9044_v8  ;;  %8681 = vmatmul.mubr.bf16.vlgmr.msra.gmra.mrb[0].mxu0 %v9060_v9 }
 0x320   : > { %8266 = vmatprep.mubr.bf16.mxu1 %v9077_v10  ;;  %8690 = vmatprep.mubr.bf16.mxu0 %v9093_v58 }
 0x327   : > { %8267 = vmatmul.mubr.bf16.gmra.mrb[4].mxu1 %v9076_v59  ;;  %8691 = vmatmul.mubr.bf16.gmra.mrb[4].mxu0 %v9092_v62 }
 0x3f2   : > { %v8258_v63 = vpop.f32.mrb[0].mxu1  ;;  %v8682_v11 = vpop.f32.mrb[0].mxu0 }
 0x3f3   : > { %v9622_v56 = vadd.f32 %v8682_v11, %v8258_v63  ;;  %v8260_v61 = vpop.f32.mrb[1].mxu1  ;;  %v8684_v12 = vpop.f32.mrb[1].mxu0  ;;  %v8724_v63 = vunpack.c.0.s8 %v8723_v54  ;;  %v8726_v11 = vshrl.u32 %v8725_v55, 7 }
 0x3f4   : > { %v9623_v4 = vadd.f32 %v8684_v12, %v8260_v61  ;;  %v8262_v7 = vpop.f32.mrb[2].mxu1  ;;  %v8686_v13 = vpop.f32.mrb[2].mxu0 }
 0x3f5   : > { %v9624_v14 = vadd.f32 %v8686_v13, %v8262_v7  ;;  %v8264_v15 = vpop.f32.mrb[3].mxu1  ;;  %v8688_v18 = vpop.f32.mrb[3].mxu0  ;;  %v8743_v23 = vmul.f32 %v9622_v56, %v9622_v56 }
 0x3f6   : > { %v9617_v19 = vpack.c.bf16 %v9623_v4, %v9622_v56  ;;  %v9625_v22 = vadd.f32 %v8688_v18, %v8264_v15  ;;  %v8744_v26 = vmul.f32 %v9623_v4, %v9623_v4  ;;  %v8727_v18 = vsub.s32 %v8724_v63, %v8726_v11 }
 0x3f7   : > { %v8701_v24 = vadd.f32 %v9624_v14, %v9622_v56  ;;  %v8745_v25 = vmul.f32 %v9624_v14, %v9624_v14 }
 0x3f8   : > { %8814 = vst [vmem:[%s12535_s23] sm:$0xff] %v9617_v19  ;;  %v8710_v27 = vadd.f32 %v9625_v22, %v9623_v4  ;;  %v8746_v28 = vmul.f32 %v9625_v22, %v9625_v22  ;;  %v9618_v29 = vpack.c.bf16 %v9625_v22, %v9624_v14 }
 0x3f9   : > { %v8751_v0 = vadd.f32 %v8745_v25, %v8743_v23 }
 0x3fa   : > { %v8760_v1 = vadd.f32 %v8746_v28, %v8744_v26  ;;  %8815 = vst [vmem:[%s12535_s23 + $0x8] sm:$0xff] %v9618_v29  ;;  %v8268_v16 = vpop.f32.mrb[4].mxu1  ;;  %v8692_v17 = vpop.f32.mrb[4].mxu0 }
 0x3fb   : > { %v9626_v5 = vadd.f32 %v8692_v17, %v8268_v16  ;;  %v8270_v6 = vpop.f32.mrb[5].mxu1  ;;  %v8694_v30 = vpop.f32.mrb[5].mxu0 }
 0x3fc   : > { %v9627_v31 = vadd.f32 %v8694_v30, %v8270_v6  ;;  %v8272_v32 = vpop.f32.mrb[6].mxu1  ;;  %v8696_v33 = vpop.f32.mrb[6].mxu0 }
 0x3fd   : > { %v8702_v20 = vadd.f32 %v9626_v5, %v8701_v24  ;;  %v8747_v21 = vmul.f32 %v9626_v5, %v9626_v5  ;;  %v9628_v3 = vadd.f32 %v8696_v33, %v8272_v32  ;;  %v8274_v2 = vpop.f32.mrb[7].mxu1  ;;  %v8698_v34 = vpop.f32.mrb[7].mxu0 }
 0x3fe   : > { %v8711_v35 = vadd.f32 %v9627_v31, %v8710_v27  ;;  %v8748_v36 = vmul.f32 %v9627_v31, %v9627_v31  ;;  %v9619_v37 = vpack.c.bf16 %v9627_v31, %v9626_v5  ;;  %v9629_v38 = vadd.f32 %v8698_v34, %v8274_v2 }
 0x3ff   : > { %v8752_v39 = vadd.f32 %v8751_v0, %v8747_v21  ;;  %v8703_v41 = vadd.f32 %v9628_v3, %v8702_v20  ;;  %v8749_v44 = vmul.f32 %v9628_v3, %v9628_v3  ;;  %v8873_v0 = vld [vmem:[%s12535_s23] sm:$0xff] (%p10647_p6) }
 0x400   : > { %v8761_v50 = vadd.f32 %v8760_v1, %v8748_v36  ;;  %8816 = vst [vmem:[%s12535_s23 + $0x10] sm:$0xff] %v9619_v37  ;;  %v8712_v51 = vadd.f32 %v9629_v38, %v8711_v35  ;;  %v8750_v52 = vmul.f32 %v9629_v38, %v9629_v38  ;;  %v9620_v42 = vpack.c.bf16 %v9629_v38, %v9628_v3 }
 0x401   : > { %v8704_v40 = vrot.slane %v8703_v41, 4  ;;  %v8753_v45 = vadd.f32 %v8752_v39, %v8749_v44  ;;  %v8875_v1 = vld [vmem:[%s12535_s23 + $0x8] sm:$0xff] (%p10647_p6)  ;;  %8874 = vst [vmem:[%s8839_s4] sm:$0xff] (%p10647_p6), %v8873_v0 }
 0x402   : > { %v8713_v48 = vrot.slane %v8712_v51, 4  ;;  %v8762_v49 = vadd.f32 %v8761_v50, %v8750_v52  ;;  %8817 = vst [vmem:[%s12535_s23 + $0x18] sm:$0xff] %v9620_v42  ;;  %8876 = vst [vmem:[%s8839_s4 + $0x10] sm:$0xff] (%p10647_p6), %v8875_v1 }
 0x403   : > { %v8705_v43 = vadd.f32 %v8704_v40, %v8703_v41  ;;  %v8754_v46 = vrot.slane %v8753_v45, 4 }
 0x404   : > { %v8714_v47 = vadd.f32 %v8713_v48, %v8712_v51  ;;  %v8763_v57 = vrot.slane %v8762_v49, 4 }
 0x405   : > { %v8706_v60 = vrot.slane %v8705_v43, 2  ;;  %v8755_v8 = vadd.f32 %v8754_v46, %v8753_v45 }
 0x406   : > { %v8715_v9 = vrot.slane %v8714_v47, 2  ;;  %v8764_v10 = vadd.f32 %v8763_v57, %v8762_v49 }
 0x407   : > { %v8707_v58 = vadd.f32 %v8706_v60, %v8705_v43  ;;  %v8756_v59 = vrot.slane %v8755_v8, 2  ;;  %v8877_v16 = vld [vmem:[%s12535_s23 + $0x10] sm:$0xff] (%p10647_p6) }
 0x408   : > { %v8716_v62 = vadd.f32 %v8715_v9, %v8714_v47  ;;  %v8765_v56 = vrot.slane %v8764_v10, 2  ;;  %8878 = vst [vmem:[%s8839_s4 + $0x20] sm:$0xff] (%p10647_p6), %v8877_v16 }
 0x409   : > { %v8708_v61 = vrot.slane %v8707_v58, 1  ;;  %v8757_v12 = vadd.f32 %v8756_v59, %v8755_v8  ;;  %v8879_v17 = vld [vmem:[%s12535_s23 + $0x18] sm:$0xff] (%p10647_p6) }
 0x40a   : > { %v8717_v4 = vrot.slane %v8716_v62, 1  ;;  %v8766_v7 = vadd.f32 %v8765_v56, %v8764_v10  ;;  %8880 = vst [vmem:[%s8839_s4 + $0x30] sm:$0xff] (%p10647_p6), %v8879_v17 }
 0x40b   : > { %v8709_v13 = vadd.f32 %v8708_v61, %v8707_v58  ;;  %v8758_v14 = vrot.slane %v8757_v12, 1 }
 0x40c   : > { %v8718_v15 = vadd.f32 %v8717_v4, %v8716_v62  ;;  %v8767_v19 = vrot.slane %v8766_v7, 1 }
 0x40d   : > { %v8759_v22 = vadd.f32 %v8758_v14, %v8757_v12 }
 0x40e   : > { %v8721_v23 = vcombine.low %v8709_v13, %v8718_v15  ;;  %v8768_v24 = vadd.f32 %v8767_v19, %v8766_v7 }
 0x410   : > { %v8728_v25 = vrot.slane %v8721_v23, %v8727_v18  ;;  %v8771_v26 = vcombine.low %v8759_v22, %v8768_v24  ;;  %8833 = sbr.rel (!%p10647_p6) target bundleno = 1047 (0x417), region = 84 }
 0x412   : > { %v8735_v27 = vrot.slane %v8728_v25, %v8727_v18  ;;  %v8778_v28 = vrot.slane %v8771_v26, %v8727_v18 }
 0x414   : > { %8741 = vst.msk [vmem:[%s4395_s26] ss:$8 sm:$0x3] %vm8739_vm0, %v8735_v27  ;;  %v8785_v29 = vrot.slane %v8778_v28, %v8727_v18 }
 0x416   : > { %9606 = vst.msk [vmem:[%s4395_s26 + $0x1] ss:$8 sm:$0x3] %vm8739_vm0, %v8785_v29 }
 0x417 PF: > { %s14_s16 = sadd.s32 1, %s10589_s16   ;;  %s12575_s12 = smov %s10577_s13 }
 0x418   : > { %p11_p12 = scmp.ge.s32.totalorder %s14_s16, 4   ;;  %s12576_s13 = smov %s10652_s22 }
 0x419   : > { %s12577_s14 = smov %s10585_s15  ;;  %s12578_s15 = smov %s12580_s17 }
 0x41a   :  { %13 = sbr.rel (!%p11_p12) target bundleno = 3 (0x3), region = 175 }

// kernel: discriminator_forward.10
= control target key start
LH: loop header
LB: loop body
LE: loop exit
PB: predicated region body
PF: predicated region fallthrough
CT: control target
= control target key end

     0   :  { %v40_v0 = vlaneseq  ;;  %s365_s0 = inlined_call_operand.vmem [shape: bf16[32,512], index: 0, kind: input, shape index: {}]   ;;  %s366_s1 = inlined_call_operand.vmem [shape: f32[1,512], index: 1, kind: input, shape index: {}]   ;;  %s367_s2 = inlined_call_operand.vmem [shape: f32[1,512], index: 2, kind: input, shape index: {}]   ;;  %s368_s3 = inlined_call_operand.vmem [shape: bf16[32,512], index: 3, kind: output, shape index: {}]  }
   0x1   :  { %v14_v1 = vld [vmem:[%s365_s0] sm:$0xff]  ;;  %v15_v5 = vld [vmem:[%s365_s0 + $0x8] sm:$0xff]  ;;  %v16_v6 = vld [vmem:[%s365_s0 + $0x10] sm:$0xff] }
   0x2   :  { %v22_v2 = vunpack.c.l.bf16 %v14_v1  ;;  %v23_v3 = vunpack.c.h.bf16 %v14_v1  ;;  %v41_v4 = vshrl.u32 %v40_v0, 7  ;;  %v17_v7 = vld [vmem:[%s365_s0 + $0x18] sm:$0xff]  ;;  %v38_v8 = vld [vmem:[%s366_s1] sm:$0xf]  ;;  %v24_v10 = vunpack.c.l.bf16 %v15_v5  ;;  %v19_v57 = vld [vmem:[%s365_s0 + $0x28] sm:$0xff] }
   0x3   :  { %v76_v9 = vld [vmem:[%s367_s2] sm:$0xf]  ;;  %v25_v11 = vunpack.c.h.bf16 %v15_v5  ;;  %v26_v12 = vunpack.c.l.bf16 %v16_v6  ;;  %v27_v13 = vunpack.c.h.bf16 %v16_v6  ;;  %v28_v19 = vunpack.c.l.bf16 %v17_v7 }
   0x4   :  { %v279_v14 = vld [vmem:[%s365_s0 + $0x20] sm:$0xff]  ;;  %v42_v15 = vsub.s32 0, %v41_v4  ;;  %v46_v16 = vsub.s32 1, %v41_v4  ;;  %v50_v17 = vsub.s32 2, %v41_v4  ;;  %v54_v18 = vsub.s32 3, %v41_v4  ;;  %v20_v4 = vld [vmem:[%s365_s0 + $0x30] sm:$0xff] }
   0x5   :  { %v29_v20 = vunpack.c.h.bf16 %v17_v7  ;;  %v30_v21 = vunpack.c.l.bf16 %v279_v14  ;;  %v31_v22 = vunpack.c.h.bf16 %v279_v14 }
   0x6   :  { %v283_v23 = vrot.slane %v38_v8, %v42_v15  ;;  %v285_v24 = vrot.slane %v38_v8, %v46_v16  ;;  %v287_v25 = vrot.slane %v76_v9, %v42_v15  ;;  %v289_v26 = vrot.slane %v76_v9, %v46_v16 }
   0x7   :  { %v291_v27 = vrot.slane %v38_v8, %v50_v17  ;;  %v293_v28 = vrot.slane %v38_v8, %v54_v18  ;;  %v295_v29 = vrot.slane %v76_v9, %v50_v17  ;;  %v297_v30 = vrot.slane %v76_v9, %v54_v18 }
   0x8   :  { %v60_v31 = vmul.f32 %v283_v23, %v22_v2  ;;  %v61_v32 = vmul.f32 %v285_v24, %v23_v3  ;;  %v64_v33 = vmul.f32 %v283_v23, %v26_v12  ;;  %v65_v34 = vmul.f32 %v285_v24, %v27_v13  ;;  %v21_v13 = vld [vmem:[%s365_s0 + $0x38] sm:$0xff] }
   0x9   :  { %v62_v35 = vmul.f32 %v291_v27, %v24_v10  ;;  %v63_v36 = vmul.f32 %v293_v28, %v25_v11  ;;  %v66_v37 = vmul.f32 %v291_v27, %v28_v19  ;;  %v67_v38 = vmul.f32 %v293_v28, %v29_v20 }
   0xa   :  { %v98_v39 = vadd.f32 %v287_v25, %v60_v31  ;;  %v99_v40 = vadd.f32 %v289_v26, %v61_v32  ;;  %v102_v41 = vadd.f32 %v287_v25, %v64_v33  ;;  %v103_v42 = vadd.f32 %v289_v26, %v65_v34 }
   0xb   :  { %v100_v43 = vadd.f32 %v295_v29, %v62_v35  ;;  %v101_v44 = vadd.f32 %v297_v30, %v63_v36  ;;  %v104_v45 = vadd.f32 %v295_v29, %v66_v37  ;;  %v105_v46 = vadd.f32 %v297_v30, %v67_v38 }
   0xc   :  { %vm114_vm0 = vcmp.ge.f32.partialorder %v98_v39, 0.0  ;;  %vm115_vm1 = vcmp.ge.f32.partialorder %v99_v40, 0.0  ;;  %v130_v47 = vmul.f32 0.2, %v98_v39  ;;  %v131_v48 = vmul.f32 0.2, %v99_v40 }
   0xd   :  { %vm116_vm2 = vcmp.ge.f32.partialorder %v100_v43, 0.0  ;;  %vm117_vm3 = vcmp.ge.f32.partialorder %v101_v44, 0.0  ;;  %v132_v49 = vmul.f32 0.2, %v100_v43  ;;  %v133_v50 = vmul.f32 0.2, %v101_v44 }
   0xe   :  { %v146_v51 = vsel %vm114_vm0, %v98_v39, %v130_v47  ;;  %v147_v52 = vsel %vm115_vm1, %v99_v40, %v131_v48  ;;  %vm118_vm4 = vcmp.ge.f32.partialorder %v102_v41, 0.0  ;;  %vm119_vm5 = vcmp.ge.f32.partialorder %v103_v42, 0.0 }
   0xf   :  { %v230_v53 = vpack.c.bf16 %v147_v52, %v146_v51  ;;  %v148_v54 = vsel %vm116_vm2, %v100_v43, %v132_v49  ;;  %v149_v55 = vsel %vm117_vm3, %v101_v44, %v133_v50  ;;  %v134_v56 = vmul.f32 0.2, %v102_v41 }
  0x10   :  { %v231_v58 = vpack.c.bf16 %v149_v55, %v148_v54  ;;  %v135_v59 = vmul.f32 0.2, %v103_v42  ;;  %vm120_vm6 = vcmp.ge.f32.partialorder %v104_v45, 0.0  ;;  %vm121_vm7 = vcmp.ge.f32.partialorder %v105_v46, 0.0 }
  0x11   :  { %210 = vst [vmem:[%s368_s3] sm:$0xff] %v230_v53  ;;  %v150_v60 = vsel %vm118_vm4, %v102_v41, %v134_v56  ;;  %v136_v61 = vmul.f32 0.2, %v104_v45  ;;  %v137_v62 = vmul.f32 0.2, %v105_v46  ;;  %v68_v63 = vmul.f32 %v283_v23, %v30_v21 }
  0x12   :  { %211 = vst [vmem:[%s368_s3 + $0x8] sm:$0xff] %v231_v58  ;;  %v151_v0 = vsel %vm119_vm5, %v103_v42, %v135_v59  ;;  %v69_v1 = vmul.f32 %v285_v24, %v31_v22  ;;  %v32_v2 = vunpack.c.l.bf16 %v19_v57  ;;  %v33_v3 = vunpack.c.h.bf16 %v19_v57 }
  0x13   :  { %v232_v5 = vpack.c.bf16 %v151_v0, %v150_v60  ;;  %v152_v6 = vsel %vm120_vm6, %v104_v45, %v136_v61  ;;  %v153_v7 = vsel %vm121_vm7, %v105_v46, %v137_v62  ;;  %v106_v8 = vadd.f32 %v287_v25, %v68_v63 }
  0x14   :  { %v233_v9 = vpack.c.bf16 %v153_v7, %v152_v6  ;;  %v107_v10 = vadd.f32 %v289_v26, %v69_v1  ;;  %v70_v11 = vmul.f32 %v291_v27, %v32_v2  ;;  %v71_v12 = vmul.f32 %v293_v28, %v33_v3 }
  0x15   :  { %212 = vst [vmem:[%s368_s3 + $0x10] sm:$0xff] %v232_v5  ;;  %vm122_vm8 = vcmp.ge.f32.partialorder %v106_v8, 0.0  ;;  %v138_v14 = vmul.f32 0.2, %v106_v8  ;;  %v34_v15 = vunpack.c.l.bf16 %v20_v4  ;;  %v35_v16 = vunpack.c.h.bf16 %v20_v4 }
  0x16   :  { %213 = vst [vmem:[%s368_s3 + $0x18] sm:$0xff] %v233_v9  ;;  %vm123_vm9 = vcmp.ge.f32.partialorder %v107_v10, 0.0  ;;  %v139_v17 = vmul.f32 0.2, %v107_v10  ;;  %v108_v18 = vadd.f32 %v295_v29, %v70_v11  ;;  %v109_v19 = vadd.f32 %v297_v30, %v71_v12 }
  0x17   :  { %v154_v20 = vsel %vm122_vm8, %v106_v8, %v138_v14  ;;  %v72_v21 = vmul.f32 %v283_v23, %v34_v15  ;;  %v73_v22 = vmul.f32 %v285_v24, %v35_v16  ;;  %v36_v31 = vunpack.c.l.bf16 %v21_v13 }
  0x18   :  { %v155_v32 = vsel %vm123_vm9, %v107_v10, %v139_v17  ;;  %vm124_vm10 = vcmp.ge.f32.partialorder %v108_v18, 0.0  ;;  %vm125_vm11 = vcmp.ge.f32.partialorder %v109_v19, 0.0  ;;  %v140_v33 = vmul.f32 0.2, %v108_v18 }
  0x19   :  { %v234_v34 = vpack.c.bf16 %v155_v32, %v154_v20  ;;  %v141_v35 = vmul.f32 0.2, %v109_v19  ;;  %v110_v36 = vadd.f32 %v287_v25, %v72_v21  ;;  %v111_v37 = vadd.f32 %v289_v26, %v73_v22 }
  0x1a   :  { %v156_v38 = vsel %vm124_vm10, %v108_v18, %v140_v33  ;;  %v37_v39 = vunpack.c.h.bf16 %v21_v13  ;;  %v74_v40 = vmul.f32 %v291_v27, %v36_v31 }
  0x1b   :  { %214 = vst [vmem:[%s368_s3 + $0x20] sm:$0xff] %v234_v34  ;;  %v157_v23 = vsel %vm125_vm11, %v109_v19, %v141_v35  ;;  %vm126_vm12 = vcmp.ge.f32.partialorder %v110_v36, 0.0  ;;  %vm127_vm13 = vcmp.ge.f32.partialorder %v111_v37, 0.0  ;;  %v142_v24 = vmul.f32 0.2, %v110_v36 }
  0x1c   :  { %v235_v41 = vpack.c.bf16 %v157_v23, %v156_v38  ;;  %v143_v42 = vmul.f32 0.2, %v111_v37  ;;  %v75_v43 = vmul.f32 %v293_v28, %v37_v39  ;;  %v112_v25 = vadd.f32 %v295_v29, %v74_v40 }
  0x1d   :  { %v158_v44 = vsel %vm126_vm12, %v110_v36, %v142_v24 }
  0x1e   :  { %215 = vst [vmem:[%s368_s3 + $0x28] sm:$0xff] %v235_v41  ;;  %v159_v26 = vsel %vm127_vm13, %v111_v37, %v143_v42  ;;  %v113_v27 = vadd.f32 %v297_v30, %v75_v43  ;;  %vm128_vm14 = vcmp.ge.f32.partialorder %v112_v25, 0.0  ;;  %v144_v45 = vmul.f32 0.2, %v112_v25 }
  0x1f   :  { %v236_v46 = vpack.c.bf16 %v159_v26, %v158_v44 }
  0x20   :  { %vm129_vm15 = vcmp.ge.f32.partialorder %v113_v27, 0.0  ;;  %v145_v47 = vmul.f32 0.2, %v113_v27  ;;  %v160_v48 = vsel %vm128_vm14, %v112_v25, %v144_v45 }
  0x21   :  { %216 = vst [vmem:[%s368_s3 + $0x30] sm:$0xff] %v236_v46 }
  0x22   :  { %v161_v28 = vsel %vm129_vm15, %v113_v27, %v145_v47 }
  0x23   :  { %v237_v29 = vpack.c.bf16 %v161_v28, %v160_v48 }
  0x25   :  { %217 = vst [vmem:[%s368_s3 + $0x38] sm:$0xff] %v237_v29 }

// kernel: discriminator_forward.11
= control target key start
LH: loop header
LB: loop body
LE: loop exit
PB: predicated region body
PF: predicated region fallthrough
CT: control target
= control target key end

     0   :  { %v7608_v22 = vmov 1966171168   ;;  %v1056_v24 = vlaneseq  ;;  %s9301_s1 = inlined_call_operand.vmem [shape: bf16[8192,128], index: 1, kind: input, shape index: {}]   ;;  %s9302_s0 = inlined_call_operand.vmem [shape: bf16[2,8192], index: 0, kind: input, shape index: {}]   ;;  %s9303_s2 = inlined_call_operand.vmem [shape: f32[2,128], index: 2, kind: output, shape index: {}]  }
   0x1   :  { %v7086_v0 = vld [vmem:[%s9301_s1 + $0x40] sm:$0xff]   ;;  %v7090_v4 = vld [vmem:[%s9301_s1 + $0x48] sm:$0xff]   ;;  %v7094_v8 = vld [vmem:[%s9301_s1 + $0x50] sm:$0xff]   ;;  %v1054_v23 = vunpack.c.l.s4 %v7608_v22 }
   0x2   :  { %v7087_v1 = vld [vmem:[%s9301_s1 + $0xc0] sm:$0xff]   ;;  %6381 = vmatprep.subr.bf16.mxu0 %v7086_v0  ;;  %v7091_v5 = vld [vmem:[%s9301_s1 + $0xc8] sm:$0xff]   ;;  %v7095_v9 = vld [vmem:[%s9301_s1 + $0xd0] sm:$0xff]   ;;  %v1057_v30 = vshrl.u32 %v1056_v24, 7 }
   0x3   :  { %v7088_v2 = vld [vmem:[%s9301_s1] sm:$0xff]   ;;  %6403 = vmatprep.subr.bf16.mxu1 %v7087_v1  ;;  %v7092_v6 = vld [vmem:[%s9301_s1 + $0x8] sm:$0xff]   ;;  %v7096_v10 = vld [vmem:[%s9301_s1 + $0x10] sm:$0xff]   ;;  %v1055_v29 = vunpack.c.0.s8 %v1054_v23 }
   0x4   :  { %v7089_v3 = vld [vmem:[%s9301_s1 + $0x80] sm:$0xff]   ;;  %6382 = vmatpush3.bf16.msra.mxu0 %v7088_v2  ;;  %v7093_v7 = vld [vmem:[%s9301_s1 + $0x88] sm:$0xff]   ;;  %v7097_v11 = vld [vmem:[%s9301_s1 + $0x90] sm:$0xff]  }
   0x5   :  { %6404 = vmatpush3.bf16.msra.mxu1 %v7089_v3  ;;  %6383 = vmatprep.subr.bf16.mxu0 %v7090_v4  ;;  %v7098_v12 = vld [vmem:[%s9301_s1 + $0x58] sm:$0xff]   ;;  %v7102_v16 = vld [vmem:[%s9301_s1 + $0x60] sm:$0xff]   ;;  %v7106_v20 = vld [vmem:[%s9301_s1 + $0x68] sm:$0xff]   ;;  %v7714_v35 = vsub.s32 %v1055_v29, %v1057_v30 }
   0x6   :  { %6405 = vmatprep.subr.bf16.mxu1 %v7091_v5  ;;  %v7099_v13 = vld [vmem:[%s9301_s1 + $0xd8] sm:$0xff]   ;;  %v7103_v17 = vld [vmem:[%s9301_s1 + $0xe0] sm:$0xff]   ;;  %v7107_v21 = vld [vmem:[%s9301_s1 + $0xe8] sm:$0xff]  }
   0x7   :  { %v7100_v14 = vld [vmem:[%s9301_s1 + $0x18] sm:$0xff]   ;;  %v7104_v18 = vld [vmem:[%s9301_s1 + $0x20] sm:$0xff]   ;;  %v7108_v25 = vld [vmem:[%s9301_s1 + $0x28] sm:$0xff]  }
   0x8   :  { %6384 = vmatpush3.bf16.msra.mxu0 %v7092_v6  ;;  %v7101_v15 = vld [vmem:[%s9301_s1 + $0x98] sm:$0xff]   ;;  %v7105_v19 = vld [vmem:[%s9301_s1 + $0xa0] sm:$0xff]   ;;  %v7109_v26 = vld [vmem:[%s9301_s1 + $0xa8] sm:$0xff]  }
   0x9   :  { %6406 = vmatpush3.bf16.msra.mxu1 %v7093_v7  ;;  %6385 = vmatprep.subr.bf16.mxu0 %v7094_v8  ;;  %v7110_v27 = vld [vmem:[%s9301_s1 + $0x70] sm:$0xff]   ;;  %v7114_v33 = vld [vmem:[%s9301_s1 + $0x78] sm:$0xff]   ;;  %v12_v38 = vld [vmem:[%s9302_s0] sm:$0xff] }
   0xa   :  { %6407 = vmatprep.subr.bf16.mxu1 %v7095_v9  ;;  %v7111_v28 = vld [vmem:[%s9301_s1 + $0xf0] sm:$0xff]   ;;  %v7115_v34 = vld [vmem:[%s9301_s1 + $0xf8] sm:$0xff]   ;;  %v1052_v39 = vcombine.high %v12_v38, %v12_v38  ;;  %v1059_v40 = vrot.slane %v12_v38, %v7714_v35  ;;  %v7119_v41 = vld [vmem:[%s9301_s1 + $0x140] sm:$0xff]  }
   0xb   :  { %v7112_v31 = vld [vmem:[%s9301_s1 + $0x30] sm:$0xff]   ;;  %v7116_v36 = vld [vmem:[%s9301_s1 + $0x38] sm:$0xff]   ;;  %v7120_v42 = vld [vmem:[%s9301_s1 + $0x1c0] sm:$0xff]  }
   0xc   :  { %6386 = vmatpush3.bf16.msra.mxu0 %v7096_v10  ;;  %v7113_v32 = vld [vmem:[%s9301_s1 + $0xb0] sm:$0xff]   ;;  %v7117_v37 = vld [vmem:[%s9301_s1 + $0xb8] sm:$0xff]   ;;  %v1067_v43 = vcombine.high %v1059_v40, %v1059_v40  ;;  %v1075_v44 = vrot.slane %v1059_v40, %v7714_v35  ;;  %v7734_v45 = vrot.slane %v1052_v39, %v7714_v35  ;;  %v7121_v46 = vld [vmem:[%s9301_s1 + $0x100] sm:$0xff]  }
   0xd   :  { %6408 = vmatpush3.bf16.msra.mxu1 %v7097_v11  ;;  %6387 = vmatprep.subr.bf16.mxu0 %v7098_v12  ;;  %v7122_v48 = vld [vmem:[%s9301_s1 + $0x180] sm:$0xff]   ;;  %v7123_v51 = vld [vmem:[%s9301_s1 + $0x148] sm:$0xff]   ;;  %v7127_v58 = vld [vmem:[%s9301_s1 + $0x150] sm:$0xff]  }
   0xe   :  { %6409 = vmatprep.subr.bf16.mxu1 %v7099_v13  ;;  %v1089_v47 = vrot.slane %v1067_v43, %v7714_v35  ;;  %v1068_v49 = vcombine.high %v7734_v45, %v7734_v45  ;;  %v1097_v50 = vcombine.high %v1075_v44, %v1075_v44  ;;  %v7124_v53 = vld [vmem:[%s9301_s1 + $0x1c8] sm:$0xff]   ;;  %v7128_v59 = vld [vmem:[%s9301_s1 + $0x1d0] sm:$0xff]   ;;  %v7131_v62 = vld [vmem:[%s9301_s1 + $0x158] sm:$0xff]  }
   0xf   :  { %v7125_v55 = vld [vmem:[%s9301_s1 + $0x108] sm:$0xff]   ;;  %v7129_v60 = vld [vmem:[%s9301_s1 + $0x110] sm:$0xff]   ;;  %v7132_v63 = vld [vmem:[%s9301_s1 + $0x1d8] sm:$0xff]  }
  0x10   :  { %6388 = vmatpush3.bf16.msra.mxu0 %v7100_v14  ;;  %4612 = vmatprep.mubr.bf16.mxu0 %v1089_v47  ;;  %v1099_v52 = vcombine.high %v1089_v47, %v1089_v47  ;;  %v1096_v54 = vrot.slane %v1068_v49, %v7714_v35  ;;  %v7126_v56 = vld [vmem:[%s9301_s1 + $0x188] sm:$0xff]   ;;  %v7130_v61 = vld [vmem:[%s9301_s1 + $0x190] sm:$0xff]   ;;  %v7133_v0 = vld [vmem:[%s9301_s1 + $0x118] sm:$0xff]  }
  0x11   :  { %6410 = vmatpush3.bf16.msra.mxu1 %v7101_v15  ;;  %6389 = vmatprep.subr.bf16.mxu0 %v7102_v16  ;;  %v7134_v1 = vld [vmem:[%s9301_s1 + $0x198] sm:$0xff]   ;;  %v7135_v2 = vld [vmem:[%s9301_s1 + $0x160] sm:$0xff]   ;;  %v7139_v6 = vld [vmem:[%s9301_s1 + $0x168] sm:$0xff]  }
  0x12   :  { %6411 = vmatprep.subr.bf16.mxu1 %v7103_v17  ;;  %4652 = vmatprep.mubr.bf16.mxu1 %v1099_v52  ;;  %v1100_v57 = vcombine.high %v1096_v54, %v1096_v54  ;;  %v7136_v3 = vld [vmem:[%s9301_s1 + $0x1e0] sm:$0xff]   ;;  %v7140_v7 = vld [vmem:[%s9301_s1 + $0x1e8] sm:$0xff]   ;;  %v7143_v10 = vld [vmem:[%s9301_s1 + $0x170] sm:$0xff]  }
  0x13   :  { %v7137_v4 = vld [vmem:[%s9301_s1 + $0x120] sm:$0xff]   ;;  %v7141_v8 = vld [vmem:[%s9301_s1 + $0x128] sm:$0xff]   ;;  %v7144_v11 = vld [vmem:[%s9301_s1 + $0x1f0] sm:$0xff]  }
  0x14   :  { %6390 = vmatpush3.bf16.msra.mxu0 %v7104_v18  ;;  %v7138_v5 = vld [vmem:[%s9301_s1 + $0x1a0] sm:$0xff]   ;;  %v7142_v9 = vld [vmem:[%s9301_s1 + $0x1a8] sm:$0xff]   ;;  %v7145_v12 = vld [vmem:[%s9301_s1 + $0x130] sm:$0xff]   ;;  %v1082_v18 = vrot.slane %v7734_v45, %v7714_v35 }
  0x15   :  { %6412 = vmatpush3.bf16.msra.mxu1 %v7105_v19  ;;  %6391 = vmatprep.subr.bf16.mxu0 %v7106_v20  ;;  %v7146_v13 = vld [vmem:[%s9301_s1 + $0x1b0] sm:$0xff]   ;;  %v7147_v14 = vld [vmem:[%s9301_s1 + $0x178] sm:$0xff]   ;;  %v7151_v19 = vld [vmem:[%s9301_s1 + $0x240] sm:$0xff]  }
  0x16   :  { %6413 = vmatprep.subr.bf16.mxu1 %v7107_v21  ;;  %v7148_v15 = vld [vmem:[%s9301_s1 + $0x1f8] sm:$0xff]   ;;  %v7152_v20 = vld [vmem:[%s9301_s1 + $0x2c0] sm:$0xff]   ;;  %v1098_v23 = vcombine.high %v1082_v18, %v1082_v18  ;;  %v7155_v24 = vld [vmem:[%s9301_s1 + $0x248] sm:$0xff]  }
  0x17   :  { %v7149_v16 = vld [vmem:[%s9301_s1 + $0x138] sm:$0xff]   ;;  %v7153_v21 = vld [vmem:[%s9301_s1 + $0x200] sm:$0xff]   ;;  %v7160_v29 = vld [vmem:[%s9301_s1 + $0x2d0] sm:$0xff]  }
  0x18   :  { %6392 = vmatpush3.bf16.msra.mxu0 %v7108_v25  ;;  %v7150_v17 = vld [vmem:[%s9301_s1 + $0x1b8] sm:$0xff]   ;;  %v7154_v22 = vld [vmem:[%s9301_s1 + $0x280] sm:$0xff]   ;;  %v7156_v25 = vld [vmem:[%s9301_s1 + $0x2c8] sm:$0xff]  }
  0x19   :  { %6414 = vmatpush3.bf16.msra.mxu1 %v7109_v26  ;;  %6393 = vmatprep.subr.bf16.mxu0 %v7110_v27  ;;  %v7157_v26 = vld [vmem:[%s9301_s1 + $0x208] sm:$0xff]   ;;  %v7161_v30 = vld [vmem:[%s9301_s1 + $0x210] sm:$0xff]   ;;  %v7168_v38 = vld [vmem:[%s9301_s1 + $0x2e0] sm:$0xff]  }
  0x1a   :  { %6415 = vmatprep.subr.bf16.mxu1 %v7111_v28  ;;  %v7158_v27 = vld [vmem:[%s9301_s1 + $0x288] sm:$0xff]   ;;  %v7159_v28 = vld [vmem:[%s9301_s1 + $0x250] sm:$0xff]   ;;  %v7169_v39 = vld [vmem:[%s9301_s1 + $0x220] sm:$0xff]  }
  0x1b   :  { %v7170_v40 = vld [vmem:[%s9301_s1 + $0x2a0] sm:$0xff]   ;;  %v7173_v43 = vld [vmem:[%s9301_s1 + $0x228] sm:$0xff]   ;;  %v7175_v45 = vld [vmem:[%s9301_s1 + $0x270] sm:$0xff]  }
  0x1c   :  { %6394 = vmatpush3.bf16.msra.mxu0 %v7112_v31  ;;  %v7162_v31 = vld [vmem:[%s9301_s1 + $0x290] sm:$0xff]   ;;  %v7179_v49 = vld [vmem:[%s9301_s1 + $0x278] sm:$0xff]   ;;  %v13_v52 = vld [vmem:[%s9302_s0 + $0x8] sm:$0xff] }
  0x1d   :  { %6416 = vmatpush3.bf16.msra.mxu1 %v7113_v32  ;;  %6395 = vmatprep.subr.bf16.mxu0 %v7114_v33  ;;  %v7163_v32 = vld [vmem:[%s9301_s1 + $0x258] sm:$0xff]   ;;  %v7177_v47 = vld [vmem:[%s9301_s1 + $0x230] sm:$0xff]  }
  0x1e   :  { %6417 = vmatprep.subr.bf16.mxu1 %v7115_v34  ;;  %v7164_v33 = vld [vmem:[%s9301_s1 + $0x2d8] sm:$0xff]  }
  0x1f   :  { %v7165_v34 = vld [vmem:[%s9301_s1 + $0x218] sm:$0xff]  }
  0x20   :  { %6396 = vmatpush3.bf16.msra.mxu0 %v7116_v36  ;;  %v7166_v36 = vld [vmem:[%s9301_s1 + $0x298] sm:$0xff]  }
  0x21   :  { %6418 = vmatpush3.bf16.msra.mxu1 %v7117_v37  ;;  %6425 = vmatprep.subr.bf16.mxu0 %v7119_v41  ;;  %v7167_v37 = vld [vmem:[%s9301_s1 + $0x260] sm:$0xff]   ;;  %v7171_v41 = vld [vmem:[%s9301_s1 + $0x268] sm:$0xff]  }
  0x22   :  { %6447 = vmatprep.subr.bf16.mxu1 %v7120_v42  ;;  %v7172_v42 = vld [vmem:[%s9301_s1 + $0x2e8] sm:$0xff]  }
  0x23   :  { %4613 = vmatmul.mubr.bf16.vlgmr.msra.gmra.mrb[0].mxu0 %v1075_v44  ;;  %v7174_v44 = vld [vmem:[%s9301_s1 + $0x2a8] sm:$0xff]  }
  0x24   :  { %6426 = vmatpush3.bf16.msra.mxu0 %v7121_v46  ;;  %4653 = vmatmul.mubr.bf16.vlgmr.msra.gmra.mrb[0].mxu1 %v1097_v50  ;;  %v7176_v46 = vld [vmem:[%s9301_s1 + $0x2f0] sm:$0xff]   ;;  %v7180_v50 = vld [vmem:[%s9301_s1 + $0x2f8] sm:$0xff]  }
  0x25   :  { %6427 = vmatprep.subr.bf16.mxu0 %v7123_v51  ;;  %6448 = vmatpush3.bf16.msra.mxu1 %v7122_v48  ;;  %v7178_v48 = vld [vmem:[%s9301_s1 + $0x2b0] sm:$0xff]   ;;  %v7181_v51 = vld [vmem:[%s9301_s1 + $0x238] sm:$0xff]  }
  0x26   :  { %4692 = vmatprep.mubr.bf16.mxu0 %v1096_v54  ;;  %6449 = vmatprep.subr.bf16.mxu1 %v7124_v53  ;;  %v7182_v53 = vld [vmem:[%s9301_s1 + $0x2b8] sm:$0xff]   ;;  %v1108_v54 = vrot.slane %v13_v52, %v7714_v35 }
  0x27   :  { %4732 = vmatprep.mubr.bf16.mxu1 %v1100_v57 }
  0x28   :  { %6428 = vmatpush3.bf16.msra.mxu0 %v7125_v55  ;;  %v1101_v55 = vcombine.high %v13_v52, %v13_v52  ;;  %v1116_v57 = vcombine.high %v1108_v54, %v1108_v54  ;;  %v7232_v52 = vld [vmem:[%s9301_s1 + $0x460] sm:$0xff]  }
  0x29   :  { %6429 = vmatprep.subr.bf16.mxu0 %v7127_v58  ;;  %6450 = vmatpush3.bf16.msra.mxu1 %v7126_v56  ;;  %v7183_v56 = vld [vmem:[%s9301_s1 + $0x340] sm:$0xff]   ;;  %v1124_v58 = vrot.slane %v1108_v54, %v7714_v35 }
  0x2a   :  { %6451 = vmatprep.subr.bf16.mxu1 %v7128_v59  ;;  %v7184_v59 = vld [vmem:[%s9301_s1 + $0x3c0] sm:$0xff]  }
  0x2b   :  { %v7234_v54 = vld [vmem:[%s9301_s1 + $0x420] sm:$0xff]  }
  0x2c   :  { %6430 = vmatpush3.bf16.msra.mxu0 %v7129_v60  ;;  %v7940_v60 = vrot.slane %v1101_v55, %v7714_v35  ;;  %v7235_v55 = vld [vmem:[%s9301_s1 + $0x4a0] sm:$0xff]  }
  0x2d   :  { %6431 = vmatprep.subr.bf16.mxu0 %v7131_v62  ;;  %6452 = vmatpush3.bf16.msra.mxu1 %v7130_v61  ;;  %v7185_v61 = vld [vmem:[%s9301_s1 + $0x300] sm:$0xff]   ;;  %v1138_v62 = vrot.slane %v1116_v57, %v7714_v35  ;;  %v7237_v57 = vld [vmem:[%s9301_s1 + $0x4e8] sm:$0xff]  }
  0x2e   :  { %6453 = vmatprep.subr.bf16.mxu1 %v7132_v63  ;;  %v7186_v63 = vld [vmem:[%s9301_s1 + $0x380] sm:$0xff]  }
  0x30   :  { %6432 = vmatpush3.bf16.msra.mxu0 %v7133_v0  ;;  %v1117_v0 = vcombine.high %v7940_v60, %v7940_v60 }
  0x31   :  { %6433 = vmatprep.subr.bf16.mxu0 %v7135_v2  ;;  %6454 = vmatpush3.bf16.msra.mxu1 %v7134_v1  ;;  %v1146_v1 = vcombine.high %v1124_v58, %v1124_v58  ;;  %v7187_v2 = vld [vmem:[%s9301_s1 + $0x348] sm:$0xff]  }
  0x32   :  { %6455 = vmatprep.subr.bf16.mxu1 %v7136_v3  ;;  %v1148_v3 = vcombine.high %v1138_v62, %v1138_v62 }
  0x34   :  { %6434 = vmatpush3.bf16.msra.mxu0 %v7137_v4  ;;  %v7188_v4 = vld [vmem:[%s9301_s1 + $0x3c8] sm:$0xff]  }
  0x35   :  { %6435 = vmatprep.subr.bf16.mxu0 %v7139_v6  ;;  %6456 = vmatpush3.bf16.msra.mxu1 %v7138_v5  ;;  %v1145_v5 = vrot.slane %v1117_v0, %v7714_v35  ;;  %v7189_v6 = vld [vmem:[%s9301_s1 + $0x308] sm:$0xff]   ;;  %v7244_v0 = vld [vmem:[%s9301_s1 + $0x478] sm:$0xff]  }
  0x36   :  { %6457 = vmatprep.subr.bf16.mxu1 %v7140_v7  ;;  %v7190_v7 = vld [vmem:[%s9301_s1 + $0x388] sm:$0xff]  }
  0x38   :  { %6436 = vmatpush3.bf16.msra.mxu0 %v7141_v8  ;;  %v1149_v8 = vcombine.high %v1145_v5, %v1145_v5 }
  0x39   :  { %6437 = vmatprep.subr.bf16.mxu0 %v7143_v10  ;;  %6458 = vmatpush3.bf16.msra.mxu1 %v7142_v9  ;;  %v7191_v9 = vld [vmem:[%s9301_s1 + $0x350] sm:$0xff]  }
  0x3a   :  { %6459 = vmatprep.subr.bf16.mxu1 %v7144_v11  ;;  %v7192_v10 = vld [vmem:[%s9301_s1 + $0x3d0] sm:$0xff]  }
  0x3b   :  { %v7193_v11 = vld [vmem:[%s9301_s1 + $0x310] sm:$0xff]  }
  0x3c   :  { %6438 = vmatpush3.bf16.msra.mxu0 %v7145_v12  ;;  %v7194_v12 = vld [vmem:[%s9301_s1 + $0x390] sm:$0xff]  }
  0x3d   :  { %6439 = vmatprep.subr.bf16.mxu0 %v7147_v14  ;;  %6460 = vmatpush3.bf16.msra.mxu1 %v7146_v13  ;;  %v7195_v13 = vld [vmem:[%s9301_s1 + $0x358] sm:$0xff]  }
  0x3e   :  { %6461 = vmatprep.subr.bf16.mxu1 %v7148_v15  ;;  %v7196_v14 = vld [vmem:[%s9301_s1 + $0x3d8] sm:$0xff]  }
  0x3f   :  { %v7197_v15 = vld [vmem:[%s9301_s1 + $0x318] sm:$0xff]  }
  0x40   :  { %6440 = vmatpush3.bf16.msra.mxu0 %v7149_v16  ;;  %v7198_v16 = vld [vmem:[%s9301_s1 + $0x398] sm:$0xff]  }
  0x41   :  { %6469 = vmatprep.subr.bf16.mxu0 %v7151_v19  ;;  %6462 = vmatpush3.bf16.msra.mxu1 %v7150_v17  ;;  %v7199_v17 = vld [vmem:[%s9301_s1 + $0x360] sm:$0xff]  }
  0x42   :  { %6491 = vmatprep.subr.bf16.mxu1 %v7152_v20  ;;  %v7201_v19 = vld [vmem:[%s9301_s1 + $0x320] sm:$0xff]  }
  0x43   :  { %4693 = vmatmul.mubr.bf16.vlgmr.msra.gmra.mrb[4].mxu0 %v1082_v18  ;;  %v7200_v18 = vld [vmem:[%s9301_s1 + $0x3e0] sm:$0xff]  }
  0x44   :  { %6470 = vmatpush3.bf16.msra.mxu0 %v7153_v21  ;;  %4733 = vmatmul.mubr.bf16.vlgmr.msra.gmra.mrb[4].mxu1 %v1098_v23  ;;  %v7202_v20 = vld [vmem:[%s9301_s1 + $0x3a0] sm:$0xff]   ;;  %v7203_v21 = vld [vmem:[%s9301_s1 + $0x368] sm:$0xff]  }
  0x45   :  { %6471 = vmatprep.subr.bf16.mxu0 %v7155_v24  ;;  %6492 = vmatpush3.bf16.msra.mxu1 %v7154_v22  ;;  %v7204_v22 = vld [vmem:[%s9301_s1 + $0x3e8] sm:$0xff]  }
  0x46   :  { %6493 = vmatprep.subr.bf16.mxu1 %v7156_v25  ;;  %4772 = vmatprep.mubr.bf16.mxu0 %v1138_v62  ;;  %v7205_v23 = vld [vmem:[%s9301_s1 + $0x328] sm:$0xff]   ;;  %v7207_v25 = vld [vmem:[%s9301_s1 + $0x370] sm:$0xff]  }
  0x47   :  { %4812 = vmatprep.mubr.bf16.mxu1 %v1148_v3  ;;  %v7206_v24 = vld [vmem:[%s9301_s1 + $0x3a8] sm:$0xff]   ;;  %v7242_v62 = vld [vmem:[%s9301_s1 + $0x430] sm:$0xff]  }
  0x48   :  { %6472 = vmatpush3.bf16.msra.mxu0 %v7157_v26  ;;  %v7208_v26 = vld [vmem:[%s9301_s1 + $0x3f0] sm:$0xff]  }
  0x49   :  { %6473 = vmatprep.subr.bf16.mxu0 %v7159_v28  ;;  %6494 = vmatpush3.bf16.msra.mxu1 %v7158_v27  ;;  %v7209_v27 = vld [vmem:[%s9301_s1 + $0x330] sm:$0xff]  }
  0x4a   :  { %6495 = vmatprep.subr.bf16.mxu1 %v7160_v29  ;;  %v7210_v28 = vld [vmem:[%s9301_s1 + $0x3b0] sm:$0xff]   ;;  %v7211_v29 = vld [vmem:[%s9301_s1 + $0x378] sm:$0xff]  }
  0x4b   :  { %v14_v3 = vld [vmem:[%s9302_s0 + $0x10] sm:$0xff] }
  0x4c   :  { %6474 = vmatpush3.bf16.msra.mxu0 %v7161_v30  ;;  %v7212_v30 = vld [vmem:[%s9301_s1 + $0x3f8] sm:$0xff]  }
  0x4d   :  { %6475 = vmatprep.subr.bf16.mxu0 %v7163_v32  ;;  %6496 = vmatpush3.bf16.msra.mxu1 %v7162_v31  ;;  %v7213_v31 = vld [vmem:[%s9301_s1 + $0x338] sm:$0xff]  }
  0x4e   :  { %6497 = vmatprep.subr.bf16.mxu1 %v7164_v33  ;;  %v7214_v32 = vld [vmem:[%s9301_s1 + $0x3b8] sm:$0xff]   ;;  %v1131_v33 = vrot.slane %v7940_v60, %v7714_v35  ;;  %v7240_v60 = vld [vmem:[%s9301_s1 + $0x470] sm:$0xff]  }
  0x50   :  { %6476 = vmatpush3.bf16.msra.mxu0 %v7165_v34  ;;  %v7216_v34 = vld [vmem:[%s9301_s1 + $0x440] sm:$0xff]  }
  0x51   :  { %6477 = vmatprep.subr.bf16.mxu0 %v7167_v37  ;;  %6498 = vmatpush3.bf16.msra.mxu1 %v7166_v36  ;;  %v7217_v36 = vld [vmem:[%s9301_s1 + $0x4c0] sm:$0xff]  }
  0x52   :  { %6499 = vmatprep.subr.bf16.mxu1 %v7168_v38  ;;  %v7218_v37 = vld [vmem:[%s9301_s1 + $0x400] sm:$0xff]  }
  0x53   :  { %v7219_v38 = vld [vmem:[%s9301_s1 + $0x480] sm:$0xff]  }
  0x54   :  { %6478 = vmatpush3.bf16.msra.mxu0 %v7169_v39  ;;  %v1147_v39 = vcombine.high %v1131_v33, %v1131_v33 }
  0x55   :  { %6479 = vmatprep.subr.bf16.mxu0 %v7171_v41  ;;  %6500 = vmatpush3.bf16.msra.mxu1 %v7170_v40  ;;  %v7220_v40 = vld [vmem:[%s9301_s1 + $0x448] sm:$0xff]  }
  0x56   :  { %6501 = vmatprep.subr.bf16.mxu1 %v7172_v42  ;;  %v7221_v41 = vld [vmem:[%s9301_s1 + $0x4c8] sm:$0xff]  }
  0x57   :  { %v7222_v42 = vld [vmem:[%s9301_s1 + $0x408] sm:$0xff]  }
  0x58   :  { %6480 = vmatpush3.bf16.msra.mxu0 %v7173_v43  ;;  %v7223_v43 = vld [vmem:[%s9301_s1 + $0x488] sm:$0xff]  }
  0x59   :  { %6481 = vmatprep.subr.bf16.mxu0 %v7175_v45  ;;  %6502 = vmatpush3.bf16.msra.mxu1 %v7174_v44  ;;  %v7224_v44 = vld [vmem:[%s9301_s1 + $0x450] sm:$0xff]  }
  0x5a   :  { %6503 = vmatprep.subr.bf16.mxu1 %v7176_v46  ;;  %v7225_v45 = vld [vmem:[%s9301_s1 + $0x4d0] sm:$0xff]  }
  0x5b   :  { %v7226_v46 = vld [vmem:[%s9301_s1 + $0x410] sm:$0xff]  }
  0x5c   :  { %6482 = vmatpush3.bf16.msra.mxu0 %v7177_v47  ;;  %v7227_v47 = vld [vmem:[%s9301_s1 + $0x490] sm:$0xff]  }
  0x5d   :  { %6483 = vmatprep.subr.bf16.mxu0 %v7179_v49  ;;  %6504 = vmatpush3.bf16.msra.mxu1 %v7178_v48  ;;  %v7228_v48 = vld [vmem:[%s9301_s1 + $0x458] sm:$0xff]  }
  0x5e   :  { %6505 = vmatprep.subr.bf16.mxu1 %v7180_v50  ;;  %v7229_v49 = vld [vmem:[%s9301_s1 + $0x4d8] sm:$0xff]  }
  0x5f   :  { %v7230_v50 = vld [vmem:[%s9301_s1 + $0x418] sm:$0xff]  }
  0x60   :  { %6484 = vmatpush3.bf16.msra.mxu0 %v7181_v51  ;;  %v7231_v51 = vld [vmem:[%s9301_s1 + $0x498] sm:$0xff]  }
  0x61   :  { %6513 = vmatprep.subr.bf16.mxu0 %v7183_v56  ;;  %6506 = vmatpush3.bf16.msra.mxu1 %v7182_v53  ;;  %v7233_v53 = vld [vmem:[%s9301_s1 + $0x4e0] sm:$0xff]   ;;  %v7236_v56 = vld [vmem:[%s9301_s1 + $0x468] sm:$0xff]  }
  0x62   :  { %6535 = vmatprep.subr.bf16.mxu1 %v7184_v59  ;;  %v7239_v59 = vld [vmem:[%s9301_s1 + $0x4a8] sm:$0xff]  }
  0x63   :  { %4773 = vmatmul.mubr.bf16.vlgmr.msra.gmra.mrb[8].mxu0 %v1124_v58  ;;  %v7238_v58 = vld [vmem:[%s9301_s1 + $0x428] sm:$0xff]  }
  0x64   :  { %6514 = vmatpush3.bf16.msra.mxu0 %v7185_v61  ;;  %4813 = vmatmul.mubr.bf16.vlgmr.msra.gmra.mrb[8].mxu1 %v1146_v1  ;;  %v7241_v61 = vld [vmem:[%s9301_s1 + $0x4f0] sm:$0xff]   ;;  %v7245_v1 = vld [vmem:[%s9301_s1 + $0x4f8] sm:$0xff]  }
  0x65   :  { %6515 = vmatprep.subr.bf16.mxu0 %v7187_v2  ;;  %6536 = vmatpush3.bf16.msra.mxu1 %v7186_v63  ;;  %v7243_v63 = vld [vmem:[%s9301_s1 + $0x4b0] sm:$0xff]   ;;  %v7246_v2 = vld [vmem:[%s9301_s1 + $0x438] sm:$0xff]  }
  0x66   :  { %4852 = vmatprep.mubr.bf16.mxu0 %v1145_v5  ;;  %6537 = vmatprep.subr.bf16.mxu1 %v7188_v4  ;;  %v7247_v4 = vld [vmem:[%s9301_s1 + $0x4b8] sm:$0xff]   ;;  %v1157_v5 = vrot.slane %v14_v3, %v7714_v35 }
  0x67   :  { %4892 = vmatprep.mubr.bf16.mxu1 %v1149_v8 }
  0x68   :  { %6516 = vmatpush3.bf16.msra.mxu0 %v7189_v6  ;;  %v1150_v6 = vcombine.high %v14_v3, %v14_v3  ;;  %v1165_v8 = vcombine.high %v1157_v5, %v1157_v5  ;;  %v7297_v3 = vld [vmem:[%s9301_s1 + $0x660] sm:$0xff]  }
  0x69   :  { %6517 = vmatprep.subr.bf16.mxu0 %v7191_v9  ;;  %6538 = vmatpush3.bf16.msra.mxu1 %v7190_v7  ;;  %v7248_v7 = vld [vmem:[%s9301_s1 + $0x540] sm:$0xff]   ;;  %v1173_v9 = vrot.slane %v1157_v5, %v7714_v35 }
  0x6a   :  { %6539 = vmatprep.subr.bf16.mxu1 %v7192_v10  ;;  %v7249_v10 = vld [vmem:[%s9301_s1 + $0x5c0] sm:$0xff]  }
  0x6b   :  { %v7299_v5 = vld [vmem:[%s9301_s1 + $0x620] sm:$0xff]  }
  0x6c   :  { %6518 = vmatpush3.bf16.msra.mxu0 %v7193_v11  ;;  %v8146_v11 = vrot.slane %v1150_v6, %v7714_v35  ;;  %v7300_v6 = vld [vmem:[%s9301_s1 + $0x6a0] sm:$0xff]  }
  0x6d   :  { %6519 = vmatprep.subr.bf16.mxu0 %v7195_v13  ;;  %6540 = vmatpush3.bf16.msra.mxu1 %v7194_v12  ;;  %v7250_v12 = vld [vmem:[%s9301_s1 + $0x500] sm:$0xff]   ;;  %v1187_v13 = vrot.slane %v1165_v8, %v7714_v35  ;;  %v7302_v8 = vld [vmem:[%s9301_s1 + $0x6e8] sm:$0xff]  }
  0x6e   :  { %6541 = vmatprep.subr.bf16.mxu1 %v7196_v14  ;;  %v7251_v14 = vld [vmem:[%s9301_s1 + $0x580] sm:$0xff]  }
  0x70   :  { %6520 = vmatpush3.bf16.msra.mxu0 %v7197_v15  ;;  %v1166_v15 = vcombine.high %v8146_v11, %v8146_v11 }
  0x71   :  { %6521 = vmatprep.subr.bf16.mxu0 %v7199_v17  ;;  %6542 = vmatpush3.bf16.msra.mxu1 %v7198_v16  ;;  %v1195_v16 = vcombine.high %v1173_v9, %v1173_v9  ;;  %v7252_v17 = vld [vmem:[%s9301_s1 + $0x548] sm:$0xff]  }
  0x72   :  { %6543 = vmatprep.subr.bf16.mxu1 %v7200_v18  ;;  %v1197_v18 = vcombine.high %v1187_v13, %v1187_v13 }
  0x74   :  { %6522 = vmatpush3.bf16.msra.mxu0 %v7201_v19  ;;  %v7253_v19 = vld [vmem:[%s9301_s1 + $0x5c8] sm:$0xff]  }
  0x75   :  { %6523 = vmatprep.subr.bf16.mxu0 %v7203_v21  ;;  %6544 = vmatpush3.bf16.msra.mxu1 %v7202_v20  ;;  %v1194_v20 = vrot.slane %v1166_v15, %v7714_v35  ;;  %v7254_v21 = vld [vmem:[%s9301_s1 + $0x508] sm:$0xff]   ;;  %v7309_v15 = vld [vmem:[%s9301_s1 + $0x678] sm:$0xff]  }
  0x76   :  { %6545 = vmatprep.subr.bf16.mxu1 %v7204_v22  ;;  %v7255_v22 = vld [vmem:[%s9301_s1 + $0x588] sm:$0xff]  }
  0x78   :  { %6524 = vmatpush3.bf16.msra.mxu0 %v7205_v23  ;;  %v1198_v23 = vcombine.high %v1194_v20, %v1194_v20 }
  0x79   :  { %6525 = vmatprep.subr.bf16.mxu0 %v7207_v25  ;;  %6546 = vmatpush3.bf16.msra.mxu1 %v7206_v24  ;;  %v7256_v24 = vld [vmem:[%s9301_s1 + $0x550] sm:$0xff]  }
  0x7a   :  { %6547 = vmatprep.subr.bf16.mxu1 %v7208_v26  ;;  %v7257_v25 = vld [vmem:[%s9301_s1 + $0x5d0] sm:$0xff]  }
  0x7b   :  { %v7258_v26 = vld [vmem:[%s9301_s1 + $0x510] sm:$0xff]  }
  0x7c   :  { %6526 = vmatpush3.bf16.msra.mxu0 %v7209_v27  ;;  %v7259_v27 = vld [vmem:[%s9301_s1 + $0x590] sm:$0xff]  }
  0x7d   :  { %6527 = vmatprep.subr.bf16.mxu0 %v7211_v29  ;;  %6548 = vmatpush3.bf16.msra.mxu1 %v7210_v28  ;;  %v7260_v28 = vld [vmem:[%s9301_s1 + $0x558] sm:$0xff]  }
  0x7e   :  { %6549 = vmatprep.subr.bf16.mxu1 %v7212_v30  ;;  %v7261_v29 = vld [vmem:[%s9301_s1 + $0x5d8] sm:$0xff]  }
  0x7f   :  { %v7262_v30 = vld [vmem:[%s9301_s1 + $0x518] sm:$0xff]  }
  0x80   :  { %6528 = vmatpush3.bf16.msra.mxu0 %v7213_v31  ;;  %v7263_v31 = vld [vmem:[%s9301_s1 + $0x598] sm:$0xff]  }
  0x81   :  { %6557 = vmatprep.subr.bf16.mxu0 %v7216_v34  ;;  %6550 = vmatpush3.bf16.msra.mxu1 %v7214_v32  ;;  %v7264_v32 = vld [vmem:[%s9301_s1 + $0x560] sm:$0xff]  }
  0x82   :  { %6579 = vmatprep.subr.bf16.mxu1 %v7217_v36  ;;  %v7266_v34 = vld [vmem:[%s9301_s1 + $0x520] sm:$0xff]  }
  0x83   :  { %4853 = vmatmul.mubr.bf16.vlgmr.msra.gmra.mrb[12].mxu0 %v1131_v33  ;;  %v7265_v33 = vld [vmem:[%s9301_s1 + $0x5e0] sm:$0xff]  }
  0x84   :  { %6558 = vmatpush3.bf16.msra.mxu0 %v7218_v37  ;;  %4893 = vmatmul.mubr.bf16.vlgmr.msra.gmra.mrb[12].mxu1 %v1147_v39  ;;  %v7267_v36 = vld [vmem:[%s9301_s1 + $0x5a0] sm:$0xff]   ;;  %v7268_v37 = vld [vmem:[%s9301_s1 + $0x568] sm:$0xff]  }
  0x85   :  { %6559 = vmatprep.subr.bf16.mxu0 %v7220_v40  ;;  %6580 = vmatpush3.bf16.msra.mxu1 %v7219_v38  ;;  %v7269_v38 = vld [vmem:[%s9301_s1 + $0x5e8] sm:$0xff]  }
  0x86   :  { %6581 = vmatprep.subr.bf16.mxu1 %v7221_v41  ;;  %4932 = vmatprep.mubr.bf16.mxu0 %v1187_v13  ;;  %v7270_v39 = vld [vmem:[%s9301_s1 + $0x528] sm:$0xff]   ;;  %v7272_v41 = vld [vmem:[%s9301_s1 + $0x570] sm:$0xff]  }
  0x87   :  { %4972 = vmatprep.mubr.bf16.mxu1 %v1197_v18  ;;  %v7271_v40 = vld [vmem:[%s9301_s1 + $0x5a8] sm:$0xff]   ;;  %v7307_v13 = vld [vmem:[%s9301_s1 + $0x630] sm:$0xff]   ;;  %v15_v18 = vld [vmem:[%s9302_s0 + $0x18] sm:$0xff] }
  0x88   :  { %6560 = vmatpush3.bf16.msra.mxu0 %v7222_v42  ;;  %v7273_v42 = vld [vmem:[%s9301_s1 + $0x5f0] sm:$0xff]  }
  0x89   :  { %6561 = vmatprep.subr.bf16.mxu0 %v7224_v44  ;;  %6582 = vmatpush3.bf16.msra.mxu1 %v7223_v43  ;;  %v7274_v43 = vld [vmem:[%s9301_s1 + $0x530] sm:$0xff]  }
  0x8a   :  { %6583 = vmatprep.subr.bf16.mxu1 %v7225_v45  ;;  %v7275_v44 = vld [vmem:[%s9301_s1 + $0x5b0] sm:$0xff]   ;;  %v7276_v45 = vld [vmem:[%s9301_s1 + $0x578] sm:$0xff]  }
  0x8c   :  { %6562 = vmatpush3.bf16.msra.mxu0 %v7226_v46  ;;  %v7277_v46 = vld [vmem:[%s9301_s1 + $0x5f8] sm:$0xff]  }
  0x8d   :  { %6563 = vmatprep.subr.bf16.mxu0 %v7228_v48  ;;  %6584 = vmatpush3.bf16.msra.mxu1 %v7227_v47  ;;  %v7278_v47 = vld [vmem:[%s9301_s1 + $0x538] sm:$0xff]  }
  0x8e   :  { %6585 = vmatprep.subr.bf16.mxu1 %v7229_v49  ;;  %v7279_v48 = vld [vmem:[%s9301_s1 + $0x5b8] sm:$0xff]   ;;  %v1180_v49 = vrot.slane %v8146_v11, %v7714_v35  ;;  %v7305_v11 = vld [vmem:[%s9301_s1 + $0x670] sm:$0xff]  }
  0x90   :  { %6564 = vmatpush3.bf16.msra.mxu0 %v7230_v50  ;;  %v7281_v50 = vld [vmem:[%s9301_s1 + $0x640] sm:$0xff]  }
  0x91   :  { %6565 = vmatprep.subr.bf16.mxu0 %v7232_v52  ;;  %6586 = vmatpush3.bf16.msra.mxu1 %v7231_v51  ;;  %v7282_v51 = vld [vmem:[%s9301_s1 + $0x6c0] sm:$0xff]  }
  0x92   :  { %6587 = vmatprep.subr.bf16.mxu1 %v7233_v53  ;;  %v7283_v52 = vld [vmem:[%s9301_s1 + $0x600] sm:$0xff]  }
  0x93   :  { %v7284_v53 = vld [vmem:[%s9301_s1 + $0x680] sm:$0xff]  }
  0x94   :  { %6566 = vmatpush3.bf16.msra.mxu0 %v7234_v54  ;;  %v1196_v54 = vcombine.high %v1180_v49, %v1180_v49 }
  0x95   :  { %6567 = vmatprep.subr.bf16.mxu0 %v7236_v56  ;;  %6588 = vmatpush3.bf16.msra.mxu1 %v7235_v55  ;;  %v7285_v55 = vld [vmem:[%s9301_s1 + $0x648] sm:$0xff]  }
  0x96   :  { %6589 = vmatprep.subr.bf16.mxu1 %v7237_v57  ;;  %v7286_v56 = vld [vmem:[%s9301_s1 + $0x6c8] sm:$0xff]  }
  0x97   :  { %v7287_v57 = vld [vmem:[%s9301_s1 + $0x608] sm:$0xff]  }
  0x98   :  { %6568 = vmatpush3.bf16.msra.mxu0 %v7238_v58  ;;  %v7288_v58 = vld [vmem:[%s9301_s1 + $0x688] sm:$0xff]  }
  0x99   :  { %6569 = vmatprep.subr.bf16.mxu0 %v7240_v60  ;;  %6590 = vmatpush3.bf16.msra.mxu1 %v7239_v59  ;;  %v7289_v59 = vld [vmem:[%s9301_s1 + $0x650] sm:$0xff]  }
  0x9a   :  { %6591 = vmatprep.subr.bf16.mxu1 %v7241_v61  ;;  %v7290_v60 = vld [vmem:[%s9301_s1 + $0x6d0] sm:$0xff]  }
  0x9b   :  { %v7291_v61 = vld [vmem:[%s9301_s1 + $0x610] sm:$0xff]  }
  0x9c   :  { %6570 = vmatpush3.bf16.msra.mxu0 %v7242_v62  ;;  %v7292_v62 = vld [vmem:[%s9301_s1 + $0x690] sm:$0xff]  }
  0x9d   :  { %6571 = vmatprep.subr.bf16.mxu0 %v7244_v0  ;;  %6592 = vmatpush3.bf16.msra.mxu1 %v7243_v63  ;;  %v7293_v63 = vld [vmem:[%s9301_s1 + $0x658] sm:$0xff]  }
  0x9e   :  { %6593 = vmatprep.subr.bf16.mxu1 %v7245_v1  ;;  %v7294_v0 = vld [vmem:[%s9301_s1 + $0x6d8] sm:$0xff]  }
  0x9f   :  { %v7295_v1 = vld [vmem:[%s9301_s1 + $0x618] sm:$0xff]  }
  0xa0   :  { %6572 = vmatpush3.bf16.msra.mxu0 %v7246_v2  ;;  %v7296_v2 = vld [vmem:[%s9301_s1 + $0x698] sm:$0xff]  }
  0xa1   :  { %6601 = vmatprep.subr.bf16.mxu0 %v7248_v7  ;;  %6594 = vmatpush3.bf16.msra.mxu1 %v7247_v4  ;;  %v7298_v4 = vld [vmem:[%s9301_s1 + $0x6e0] sm:$0xff]   ;;  %v7301_v7 = vld [vmem:[%s9301_s1 + $0x668] sm:$0xff]  }
  0xa2   :  { %6623 = vmatprep.subr.bf16.mxu1 %v7249_v10  ;;  %v7304_v10 = vld [vmem:[%s9301_s1 + $0x6a8] sm:$0xff]  }
  0xa3   :  { %4933 = vmatmul.mubr.bf16.vlgmr.msra.gmra.mrb[16].mxu0 %v1173_v9  ;;  %v7303_v9 = vld [vmem:[%s9301_s1 + $0x628] sm:$0xff]  }
  0xa4   :  { %6602 = vmatpush3.bf16.msra.mxu0 %v7250_v12  ;;  %4973 = vmatmul.mubr.bf16.vlgmr.msra.gmra.mrb[16].mxu1 %v1195_v16  ;;  %v7306_v12 = vld [vmem:[%s9301_s1 + $0x6f0] sm:$0xff]   ;;  %v7310_v16 = vld [vmem:[%s9301_s1 + $0x6f8] sm:$0xff]  }
  0xa5   :  { %6603 = vmatprep.subr.bf16.mxu0 %v7252_v17  ;;  %6624 = vmatpush3.bf16.msra.mxu1 %v7251_v14  ;;  %v7308_v14 = vld [vmem:[%s9301_s1 + $0x6b0] sm:$0xff]   ;;  %v7311_v17 = vld [vmem:[%s9301_s1 + $0x638] sm:$0xff]  }
  0xa6   :  { %5012 = vmatprep.mubr.bf16.mxu0 %v1194_v20  ;;  %6625 = vmatprep.subr.bf16.mxu1 %v7253_v19  ;;  %v1206_v19 = vrot.slane %v15_v18, %v7714_v35  ;;  %v7313_v20 = vld [vmem:[%s9301_s1 + $0x740] sm:$0xff]  }
  0xa7   :  { %5052 = vmatprep.mubr.bf16.mxu1 %v1198_v23 }
  0xa8   :  { %6604 = vmatpush3.bf16.msra.mxu0 %v7254_v21  ;;  %v1199_v21 = vcombine.high %v15_v18, %v15_v18  ;;  %v1214_v23 = vcombine.high %v1206_v19, %v1206_v19  ;;  %v7351_v18 = vld [vmem:[%s9301_s1 + $0x8c8] sm:$0xff]  }
  0xa9   :  { %6605 = vmatprep.subr.bf16.mxu0 %v7256_v24  ;;  %6626 = vmatpush3.bf16.msra.mxu1 %v7255_v22  ;;  %v7312_v22 = vld [vmem:[%s9301_s1 + $0x6b8] sm:$0xff]   ;;  %v1222_v24 = vrot.slane %v1206_v19, %v7714_v35  ;;  %v7352_v19 = vld [vmem:[%s9301_s1 + $0x808] sm:$0xff]  }
  0xaa   :  { %6627 = vmatprep.subr.bf16.mxu1 %v7257_v25  ;;  %v7314_v25 = vld [vmem:[%s9301_s1 + $0x7c0] sm:$0xff]  }
  0xac   :  { %6606 = vmatpush3.bf16.msra.mxu0 %v7258_v26  ;;  %v8352_v26 = vrot.slane %v1199_v21, %v7714_v35  ;;  %v7353_v21 = vld [vmem:[%s9301_s1 + $0x888] sm:$0xff]  }
  0xad   :  { %6607 = vmatprep.subr.bf16.mxu0 %v7260_v28  ;;  %6628 = vmatpush3.bf16.msra.mxu1 %v7259_v27  ;;  %v1236_v27 = vrot.slane %v1214_v23, %v7714_v35  ;;  %v7315_v28 = vld [vmem:[%s9301_s1 + $0x700] sm:$0xff]   ;;  %v7356_v23 = vld [vmem:[%s9301_s1 + $0x810] sm:$0xff]  }
  0xae   :  { %6629 = vmatprep.subr.bf16.mxu1 %v7261_v29  ;;  %v1215_v29 = vcombine.high %v8352_v26, %v8352_v26 }
  0xb0   :  { %6608 = vmatpush3.bf16.msra.mxu0 %v7262_v30  ;;  %v1244_v30 = vcombine.high %v1222_v24, %v1222_v24 }
  0xb1   :  { %6609 = vmatprep.subr.bf16.mxu0 %v7264_v32  ;;  %6630 = vmatpush3.bf16.msra.mxu1 %v7263_v31  ;;  %v7317_v31 = vld [vmem:[%s9301_s1 + $0x748] sm:$0xff]   ;;  %v1246_v32 = vcombine.high %v1236_v27, %v1236_v27 }
  0xb2   :  { %6631 = vmatprep.subr.bf16.mxu1 %v7265_v33  ;;  %v7316_v33 = vld [vmem:[%s9301_s1 + $0x780] sm:$0xff]  }
  0xb4   :  { %6610 = vmatpush3.bf16.msra.mxu0 %v7266_v34  ;;  %v1243_v34 = vrot.slane %v1215_v29, %v7714_v35  ;;  %v7361_v29 = vld [vmem:[%s9301_s1 + $0x898] sm:$0xff]  }
  0xb5   :  { %6611 = vmatprep.subr.bf16.mxu0 %v7268_v37  ;;  %6632 = vmatpush3.bf16.msra.mxu1 %v7267_v36  ;;  %v7318_v36 = vld [vmem:[%s9301_s1 + $0x7c8] sm:$0xff]  }
  0xb6   :  { %6633 = vmatprep.subr.bf16.mxu1 %v7269_v38  ;;  %v7319_v37 = vld [vmem:[%s9301_s1 + $0x708] sm:$0xff]   ;;  %v1247_v38 = vcombine.high %v1243_v34, %v1243_v34 }
  0xb8   :  { %6612 = vmatpush3.bf16.msra.mxu0 %v7270_v39  ;;  %v7321_v39 = vld [vmem:[%s9301_s1 + $0x750] sm:$0xff]  }
  0xb9   :  { %6613 = vmatprep.subr.bf16.mxu0 %v7272_v41  ;;  %6634 = vmatpush3.bf16.msra.mxu1 %v7271_v40  ;;  %v7320_v40 = vld [vmem:[%s9301_s1 + $0x788] sm:$0xff]   ;;  %v7322_v41 = vld [vmem:[%s9301_s1 + $0x7d0] sm:$0xff]  }
  0xba   :  { %6635 = vmatprep.subr.bf16.mxu1 %v7273_v42  ;;  %v7323_v42 = vld [vmem:[%s9301_s1 + $0x710] sm:$0xff]  }
  0xbc   :  { %6614 = vmatpush3.bf16.msra.mxu0 %v7274_v43  ;;  %v7325_v43 = vld [vmem:[%s9301_s1 + $0x758] sm:$0xff]  }
  0xbd   :  { %6615 = vmatprep.subr.bf16.mxu0 %v7276_v45  ;;  %6636 = vmatpush3.bf16.msra.mxu1 %v7275_v44  ;;  %v7324_v44 = vld [vmem:[%s9301_s1 + $0x790] sm:$0xff]   ;;  %v7326_v45 = vld [vmem:[%s9301_s1 + $0x7d8] sm:$0xff]  }
  0xbe   :  { %6637 = vmatprep.subr.bf16.mxu1 %v7277_v46  ;;  %v7327_v46 = vld [vmem:[%s9301_s1 + $0x718] sm:$0xff]  }
  0xc0   :  { %6616 = vmatpush3.bf16.msra.mxu0 %v7278_v47  ;;  %v7329_v47 = vld [vmem:[%s9301_s1 + $0x760] sm:$0xff]  }
  0xc1   :  { %6645 = vmatprep.subr.bf16.mxu0 %v7281_v50  ;;  %6638 = vmatpush3.bf16.msra.mxu1 %v7279_v48  ;;  %v7328_v48 = vld [vmem:[%s9301_s1 + $0x798] sm:$0xff]   ;;  %v7331_v50 = vld [vmem:[%s9301_s1 + $0x720] sm:$0xff]  }
  0xc2   :  { %6667 = vmatprep.subr.bf16.mxu1 %v7282_v51  ;;  %v7333_v51 = vld [vmem:[%s9301_s1 + $0x768] sm:$0xff]  }
  0xc3   :  { %5013 = vmatmul.mubr.bf16.vlgmr.msra.gmra.mrb[20].mxu0 %v1180_v49  ;;  %v7330_v49 = vld [vmem:[%s9301_s1 + $0x7e0] sm:$0xff]  }
  0xc4   :  { %6646 = vmatpush3.bf16.msra.mxu0 %v7283_v52  ;;  %5053 = vmatmul.mubr.bf16.vlgmr.msra.gmra.mrb[20].mxu1 %v1196_v54  ;;  %v7332_v52 = vld [vmem:[%s9301_s1 + $0x7a0] sm:$0xff]   ;;  %v7335_v54 = vld [vmem:[%s9301_s1 + $0x728] sm:$0xff]  }
  0xc5   :  { %6647 = vmatprep.subr.bf16.mxu0 %v7285_v55  ;;  %6668 = vmatpush3.bf16.msra.mxu1 %v7284_v53  ;;  %v7334_v53 = vld [vmem:[%s9301_s1 + $0x7e8] sm:$0xff]  }
  0xc6   :  { %6669 = vmatprep.subr.bf16.mxu1 %v7286_v56  ;;  %5092 = vmatprep.mubr.bf16.mxu0 %v1236_v27  ;;  %v7337_v56 = vld [vmem:[%s9301_s1 + $0x770] sm:$0xff]   ;;  %v7360_v27 = vld [vmem:[%s9301_s1 + $0x818] sm:$0xff]  }
  0xc7   :  { %5132 = vmatprep.mubr.bf16.mxu1 %v1246_v32  ;;  %v7366_v32 = vld [vmem:[%s9301_s1 + $0x868] sm:$0xff]  }
  0xc8   :  { %6648 = vmatpush3.bf16.msra.mxu0 %v7287_v57 }
  0xc9   :  { %6649 = vmatprep.subr.bf16.mxu0 %v7289_v59  ;;  %6670 = vmatpush3.bf16.msra.mxu1 %v7288_v58  ;;  %v7336_v58 = vld [vmem:[%s9301_s1 + $0x7a8] sm:$0xff]  }
  0xca   :  { %6671 = vmatprep.subr.bf16.mxu1 %v7290_v60 }
  0xcc   :  { %6650 = vmatpush3.bf16.msra.mxu0 %v7291_v61 }
  0xcd   :  { %6651 = vmatprep.subr.bf16.mxu0 %v7293_v63  ;;  %6672 = vmatpush3.bf16.msra.mxu1 %v7292_v62  ;;  %v7338_v62 = vld [vmem:[%s9301_s1 + $0x7f0] sm:$0xff]  }
  0xce   :  { %6673 = vmatprep.subr.bf16.mxu1 %v7294_v0  ;;  %v7339_v63 = vld [vmem:[%s9301_s1 + $0x730] sm:$0xff]  }
  0xd0   :  { %6652 = vmatpush3.bf16.msra.mxu0 %v7295_v1 }
  0xd1   :  { %6653 = vmatprep.subr.bf16.mxu0 %v7297_v3  ;;  %6674 = vmatpush3.bf16.msra.mxu1 %v7296_v2 }
  0xd2   :  { %6675 = vmatprep.subr.bf16.mxu1 %v7298_v4  ;;  %v7341_v4 = vld [vmem:[%s9301_s1 + $0x778] sm:$0xff]  }
  0xd4   :  { %6654 = vmatpush3.bf16.msra.mxu0 %v7299_v5 }
  0xd5   :  { %6655 = vmatprep.subr.bf16.mxu0 %v7301_v7  ;;  %6676 = vmatpush3.bf16.msra.mxu1 %v7300_v6  ;;  %v7340_v6 = vld [vmem:[%s9301_s1 + $0x7b0] sm:$0xff]  }
  0xd6   :  { %6677 = vmatprep.subr.bf16.mxu1 %v7302_v8  ;;  %v7342_v8 = vld [vmem:[%s9301_s1 + $0x7f8] sm:$0xff]  }
  0xd8   :  { %6656 = vmatpush3.bf16.msra.mxu0 %v7303_v9  ;;  %v7343_v9 = vld [vmem:[%s9301_s1 + $0x738] sm:$0xff]  }
  0xd9   :  { %6657 = vmatprep.subr.bf16.mxu0 %v7305_v11  ;;  %6678 = vmatpush3.bf16.msra.mxu1 %v7304_v10  ;;  %v1229_v10 = vrot.slane %v8352_v26, %v7714_v35  ;;  %v7346_v11 = vld [vmem:[%s9301_s1 + $0x840] sm:$0xff]   ;;  %v7359_v26 = vld [vmem:[%s9301_s1 + $0x8d8] sm:$0xff]  }
  0xda   :  { %6679 = vmatprep.subr.bf16.mxu1 %v7306_v12  ;;  %v7344_v12 = vld [vmem:[%s9301_s1 + $0x7b8] sm:$0xff]  }
  0xdc   :  { %6658 = vmatpush3.bf16.msra.mxu0 %v7307_v13  ;;  %v7347_v13 = vld [vmem:[%s9301_s1 + $0x8c0] sm:$0xff]  }
  0xdd   :  { %6659 = vmatprep.subr.bf16.mxu0 %v7309_v15  ;;  %6680 = vmatpush3.bf16.msra.mxu1 %v7308_v14  ;;  %v7348_v14 = vld [vmem:[%s9301_s1 + $0x800] sm:$0xff]   ;;  %v1245_v15 = vcombine.high %v1229_v10, %v1229_v10 }
  0xde   :  { %6681 = vmatprep.subr.bf16.mxu1 %v7310_v16  ;;  %v7350_v16 = vld [vmem:[%s9301_s1 + $0x848] sm:$0xff]  }
  0xe0   :  { %6660 = vmatpush3.bf16.msra.mxu0 %v7311_v17  ;;  %v7349_v17 = vld [vmem:[%s9301_s1 + $0x880] sm:$0xff]  }
  0xe1   :  { %6689 = vmatprep.subr.bf16.mxu0 %v7313_v20  ;;  %6682 = vmatpush3.bf16.msra.mxu1 %v7312_v22  ;;  %v7354_v20 = vld [vmem:[%s9301_s1 + $0x850] sm:$0xff]  }
  0xe2   :  { %6711 = vmatprep.subr.bf16.mxu1 %v7314_v25  ;;  %v7355_v22 = vld [vmem:[%s9301_s1 + $0x8d0] sm:$0xff]  }
  0xe3   :  { %5093 = vmatmul.mubr.bf16.vlgmr.msra.gmra.mrb[24].mxu0 %v1222_v24  ;;  %v7358_v24 = vld [vmem:[%s9301_s1 + $0x858] sm:$0xff]   ;;  %v7357_v25 = vld [vmem:[%s9301_s1 + $0x890] sm:$0xff]  }
  0xe4   :  { %6690 = vmatpush3.bf16.msra.mxu0 %v7315_v28  ;;  %5133 = vmatmul.mubr.bf16.vlgmr.msra.gmra.mrb[24].mxu1 %v1244_v30  ;;  %v7362_v28 = vld [vmem:[%s9301_s1 + $0x860] sm:$0xff]  }
  0xe5   :  { %6691 = vmatprep.subr.bf16.mxu0 %v7317_v31  ;;  %6712 = vmatpush3.bf16.msra.mxu1 %v7316_v33  ;;  %v7363_v30 = vld [vmem:[%s9301_s1 + $0x8e0] sm:$0xff]  }
  0xe6   :  { %5172 = vmatprep.mubr.bf16.mxu0 %v1243_v34  ;;  %6713 = vmatprep.subr.bf16.mxu1 %v7318_v36  ;;  %v7364_v31 = vld [vmem:[%s9301_s1 + $0x820] sm:$0xff]   ;;  %v7367_v34 = vld [vmem:[%s9301_s1 + $0x8e8] sm:$0xff]  }
  0xe7   :  { %5212 = vmatprep.mubr.bf16.mxu1 %v1247_v38  ;;  %v7365_v33 = vld [vmem:[%s9301_s1 + $0x8a0] sm:$0xff]   ;;  %v7368_v36 = vld [vmem:[%s9301_s1 + $0x828] sm:$0xff]   ;;  %v7370_v38 = vld [vmem:[%s9301_s1 + $0x870] sm:$0xff]  }
  0xe8   :  { %6692 = vmatpush3.bf16.msra.mxu0 %v7319_v37 }
  0xe9   :  { %6693 = vmatprep.subr.bf16.mxu0 %v7321_v39  ;;  %6714 = vmatpush3.bf16.msra.mxu1 %v7320_v40  ;;  %v7369_v40 = vld [vmem:[%s9301_s1 + $0x8a8] sm:$0xff]  }
  0xea   :  { %6715 = vmatprep.subr.bf16.mxu1 %v7322_v41 }
  0xec   :  { %6694 = vmatpush3.bf16.msra.mxu0 %v7323_v42 }
  0xed   :  { %6695 = vmatprep.subr.bf16.mxu0 %v7325_v43  ;;  %6716 = vmatpush3.bf16.msra.mxu1 %v7324_v44  ;;  %v7371_v44 = vld [vmem:[%s9301_s1 + $0x8f0] sm:$0xff]  }
  0xee   :  { %6717 = vmatprep.subr.bf16.mxu1 %v7326_v45  ;;  %v7372_v45 = vld [vmem:[%s9301_s1 + $0x830] sm:$0xff]  }
  0xf0   :  { %6696 = vmatpush3.bf16.msra.mxu0 %v7327_v46 }
  0xf1   :  { %6697 = vmatprep.subr.bf16.mxu0 %v7329_v47  ;;  %6718 = vmatpush3.bf16.msra.mxu1 %v7328_v48  ;;  %v7373_v48 = vld [vmem:[%s9301_s1 + $0x8b0] sm:$0xff]  }
  0xf2   :  { %6719 = vmatprep.subr.bf16.mxu1 %v7330_v49 }
  0xf4   :  { %6698 = vmatpush3.bf16.msra.mxu0 %v7331_v50 }
  0xf5   :  { %6699 = vmatprep.subr.bf16.mxu0 %v7333_v51  ;;  %6720 = vmatpush3.bf16.msra.mxu1 %v7332_v52  ;;  %v7374_v52 = vld [vmem:[%s9301_s1 + $0x878] sm:$0xff]  }
  0xf6   :  { %v6397_v55 = vpop.f32.mrb[0].mxu0  ;;  %6721 = vmatprep.subr.bf16.mxu1 %v7334_v53 }
  0xf7   :  { %v6398_v57 = vpop.f32.mrb[1].mxu0  ;;  %v6419_v59 = vpop.f32.mrb[0].mxu1 }
  0xf8   :  { %v6399_v60 = vadd.f32 %v6398_v57, %v6397_v55  ;;  %v6400_v61 = vpop.f32.mrb[2].mxu0  ;;  %v6420_v0 = vpop.f32.mrb[1].mxu1  ;;  %6700 = vmatpush3.bf16.msra.mxu0 %v7335_v54  ;;  %v7375_v54 = vld [vmem:[%s9301_s1 + $0x8f8] sm:$0xff]   ;;  %v16_v57 = vld [vmem:[%s9302_s0 + $0x20] sm:$0xff] }
  0xf9   :  { %v6401_v1 = vpop.f32.mrb[3].mxu0  ;;  %v6421_v2 = vadd.f32 %v6420_v0, %v6419_v59  ;;  %v6422_v3 = vpop.f32.mrb[2].mxu1  ;;  %6701 = vmatprep.subr.bf16.mxu0 %v7337_v56  ;;  %6722 = vmatpush3.bf16.msra.mxu1 %v7336_v58  ;;  %v7376_v56 = vld [vmem:[%s9301_s1 + $0x838] sm:$0xff]   ;;  %v1255_v58 = vrot.slane %v16_v57, %v7714_v35  ;;  %v7378_v59 = vld [vmem:[%s9301_s1 + $0x940] sm:$0xff]  }
  0xfa   :  { %v6423_v5 = vpop.f32.mrb[3].mxu1  ;;  %6723 = vmatprep.subr.bf16.mxu1 %v7338_v62  ;;  %v7377_v61 = vld [vmem:[%s9301_s1 + $0x8b8] sm:$0xff]   ;;  %v7379_v0 = vld [vmem:[%s9301_s1 + $0x9c0] sm:$0xff]  }
  0xfb   :  { %v8439_v7 = vadd.f32 %v6421_v2, %v6399_v60  ;;  %v1248_v60 = vcombine.high %v16_v57, %v16_v57  ;;  %v1263_v62 = vcombine.high %v1255_v58, %v1255_v58  ;;  %v7380_v2 = vld [vmem:[%s9301_s1 + $0x900] sm:$0xff]   ;;  %v7415_v57 = vld [vmem:[%s9301_s1 + $0xa48] sm:$0xff]  }
  0xfc   :  { %6702 = vmatpush3.bf16.msra.mxu0 %v7339_v63  ;;  %v1271_v63 = vrot.slane %v1255_v58, %v7714_v35  ;;  %v7416_v58 = vld [vmem:[%s9301_s1 + $0xac8] sm:$0xff]  }
  0xfd   :  { %6703 = vmatprep.subr.bf16.mxu0 %v7341_v4  ;;  %6724 = vmatpush3.bf16.msra.mxu1 %v7340_v6  ;;  %v8563_v1 = vrot.slane %v1248_v60, %v7714_v35  ;;  %v1285_v3 = vrot.slane %v1263_v62, %v7714_v35  ;;  %v7381_v4 = vld [vmem:[%s9301_s1 + $0x980] sm:$0xff]   ;;  %v7418_v60 = vld [vmem:[%s9301_s1 + $0xa88] sm:$0xff]   ;;  %v7420_v62 = vld [vmem:[%s9301_s1 + $0xad0] sm:$0xff]  }
  0xfe   :  { %6725 = vmatprep.subr.bf16.mxu1 %v7342_v8  ;;  %v1293_v6 = vcombine.high %v1271_v63, %v1271_v63 }
  0xff   :  { %v1264_v5 = vcombine.high %v8563_v1, %v8563_v1  ;;  %v1295_v8 = vcombine.high %v1285_v3, %v1285_v3 }
 0x100   :  { %6704 = vmatpush3.bf16.msra.mxu0 %v7343_v9  ;;  %v7383_v9 = vld [vmem:[%s9301_s1 + $0x9c8] sm:$0xff]  }
 0x101   :  { %6733 = vmatprep.subr.bf16.mxu0 %v7346_v11  ;;  %6726 = vmatpush3.bf16.msra.mxu1 %v7344_v12  ;;  %v7384_v11 = vld [vmem:[%s9301_s1 + $0x908] sm:$0xff]  }
 0x102   :  { %6755 = vmatprep.subr.bf16.mxu1 %v7347_v13  ;;  %v7385_v12 = vld [vmem:[%s9301_s1 + $0x988] sm:$0xff]  }
 0x103   :  { %5173 = vmatmul.mubr.bf16.vlgmr.msra.gmra.mrb[28].mxu0 %v1229_v10  ;;  %v1292_v10 = vrot.slane %v1264_v5, %v7714_v35  ;;  %v7427_v5 = vld [vmem:[%s9301_s1 + $0xa60] sm:$0xff]  }
 0x104   :  { %6734 = vmatpush3.bf16.msra.mxu0 %v7348_v14  ;;  %5213 = vmatmul.mubr.bf16.vlgmr.msra.gmra.mrb[28].mxu1 %v1245_v15  ;;  %v7386_v14 = vld [vmem:[%s9301_s1 + $0x950] sm:$0xff]  }
 0x105   :  { %6735 = vmatprep.subr.bf16.mxu0 %v7350_v16  ;;  %6756 = vmatpush3.bf16.msra.mxu1 %v7349_v17  ;;  %v1296_v13 = vcombine.high %v1292_v10, %v1292_v10  ;;  %v7387_v15 = vld [vmem:[%s9301_s1 + $0x9d0] sm:$0xff]  }
 0x106   :  { %6757 = vmatprep.subr.bf16.mxu1 %v7351_v18  ;;  %5252 = vmatprep.mubr.bf16.mxu0 %v1285_v3  ;;  %v7388_v16 = vld [vmem:[%s9301_s1 + $0x910] sm:$0xff]   ;;  %v7390_v18 = vld [vmem:[%s9301_s1 + $0x958] sm:$0xff]  }
 0x107   :  { %5292 = vmatprep.mubr.bf16.mxu1 %v1295_v8  ;;  %v7389_v17 = vld [vmem:[%s9301_s1 + $0x990] sm:$0xff]   ;;  %v7425_v3 = vld [vmem:[%s9301_s1 + $0xa18] sm:$0xff]   ;;  %v7430_v8 = vld [vmem:[%s9301_s1 + $0xaa0] sm:$0xff]  }
 0x108   :  { %6736 = vmatpush3.bf16.msra.mxu0 %v7352_v19  ;;  %v7391_v19 = vld [vmem:[%s9301_s1 + $0x9d8] sm:$0xff]  }
 0x109   :  { %6737 = vmatprep.subr.bf16.mxu0 %v7354_v20  ;;  %6758 = vmatpush3.bf16.msra.mxu1 %v7353_v21  ;;  %v7392_v20 = vld [vmem:[%s9301_s1 + $0x918] sm:$0xff]  }
 0x10a   :  { %6759 = vmatprep.subr.bf16.mxu1 %v7355_v22  ;;  %v7393_v21 = vld [vmem:[%s9301_s1 + $0x998] sm:$0xff]   ;;  %v7394_v22 = vld [vmem:[%s9301_s1 + $0x960] sm:$0xff]  }
 0x10c   :  { %6738 = vmatpush3.bf16.msra.mxu0 %v7356_v23  ;;  %v7395_v23 = vld [vmem:[%s9301_s1 + $0x9e0] sm:$0xff]  }
 0x10d   :  { %6739 = vmatprep.subr.bf16.mxu0 %v7358_v24  ;;  %6760 = vmatpush3.bf16.msra.mxu1 %v7357_v25  ;;  %v7396_v24 = vld [vmem:[%s9301_s1 + $0x920] sm:$0xff]  }
 0x10e   :  { %6761 = vmatprep.subr.bf16.mxu1 %v7359_v26  ;;  %v7397_v25 = vld [vmem:[%s9301_s1 + $0x9a0] sm:$0xff]   ;;  %v7398_v26 = vld [vmem:[%s9301_s1 + $0x968] sm:$0xff]  }
 0x110   :  { %6740 = vmatpush3.bf16.msra.mxu0 %v7360_v27  ;;  %v7399_v27 = vld [vmem:[%s9301_s1 + $0x9e8] sm:$0xff]  }
 0x111   :  { %6741 = vmatprep.subr.bf16.mxu0 %v7362_v28  ;;  %6762 = vmatpush3.bf16.msra.mxu1 %v7361_v29  ;;  %v7400_v28 = vld [vmem:[%s9301_s1 + $0x928] sm:$0xff]  }
 0x112   :  { %6763 = vmatprep.subr.bf16.mxu1 %v7363_v30  ;;  %v7401_v30 = vld [vmem:[%s9301_s1 + $0x9a8] sm:$0xff]  }
 0x114   :  { %6742 = vmatpush3.bf16.msra.mxu0 %v7364_v31 }
 0x115   :  { %6743 = vmatprep.subr.bf16.mxu0 %v7366_v32  ;;  %6764 = vmatpush3.bf16.msra.mxu1 %v7365_v33  ;;  %v7402_v32 = vld [vmem:[%s9301_s1 + $0x970] sm:$0xff]  }
 0x116   :  { %v6441_v37 = vpop.f32.mrb[4].mxu0  ;;  %6765 = vmatprep.subr.bf16.mxu1 %v7367_v34 }
 0x117   :  { %v6442_v39 = vpop.f32.mrb[5].mxu0  ;;  %v6463_v41 = vpop.f32.mrb[4].mxu1 }
 0x118   :  { %v6443_v42 = vadd.f32 %v6442_v39, %v6441_v37  ;;  %v6444_v43 = vpop.f32.mrb[6].mxu0  ;;  %v6464_v46 = vpop.f32.mrb[5].mxu1  ;;  %6744 = vmatpush3.bf16.msra.mxu0 %v7368_v36  ;;  %v7403_v37 = vld [vmem:[%s9301_s1 + $0x9f0] sm:$0xff]  }
 0x119   :  { %v6445_v47 = vpop.f32.mrb[7].mxu0  ;;  %v6465_v50 = vadd.f32 %v6464_v46, %v6463_v41  ;;  %v6466_v51 = vpop.f32.mrb[6].mxu1  ;;  %6745 = vmatprep.subr.bf16.mxu0 %v7370_v38  ;;  %6766 = vmatpush3.bf16.msra.mxu1 %v7369_v40  ;;  %v7404_v38 = vld [vmem:[%s9301_s1 + $0x930] sm:$0xff]   ;;  %v7406_v46 = vld [vmem:[%s9301_s1 + $0x978] sm:$0xff]  }
 0x11a   :  { %v4695_v49 = vadd.f32 %v6443_v42, %v8439_v7  ;;  %v6467_v53 = vpop.f32.mrb[7].mxu1  ;;  %6767 = vmatprep.subr.bf16.mxu1 %v7371_v44  ;;  %v7382_v7 = vld [vmem:[%s9301_s1 + $0x948] sm:$0xff]   ;;  %v7405_v44 = vld [vmem:[%s9301_s1 + $0x9b0] sm:$0xff]   ;;  %v1278_v51 = vrot.slane %v8563_v1, %v7714_v35  ;;  %v7423_v1 = vld [vmem:[%s9301_s1 + $0xa58] sm:$0xff]  }
 0x11b   :  { %v7412_v53 = vld [vmem:[%s9301_s1 + $0xac0] sm:$0xff]  }
 0x11c   :  { %v8543_v55 = vadd.f32 %v6465_v50, %v4695_v49  ;;  %6746 = vmatpush3.bf16.msra.mxu0 %v7372_v45  ;;  %v7408_v49 = vld [vmem:[%s9301_s1 + $0x938] sm:$0xff]  }
 0x11d   :  { %6747 = vmatprep.subr.bf16.mxu0 %v7374_v52  ;;  %6768 = vmatpush3.bf16.msra.mxu1 %v7373_v48  ;;  %v7407_v48 = vld [vmem:[%s9301_s1 + $0x9f8] sm:$0xff]   ;;  %v7411_v52 = vld [vmem:[%s9301_s1 + $0xa40] sm:$0xff]  }
 0x11e   :  { %6769 = vmatprep.subr.bf16.mxu1 %v7375_v54  ;;  %v7409_v50 = vld [vmem:[%s9301_s1 + $0x9b8] sm:$0xff]   ;;  %v7413_v54 = vld [vmem:[%s9301_s1 + $0xa00] sm:$0xff]  }
 0x120   :  { %6748 = vmatpush3.bf16.msra.mxu0 %v7376_v56  ;;  %v1294_v56 = vcombine.high %v1278_v51, %v1278_v51 }
 0x121   :  { %6777 = vmatprep.subr.bf16.mxu0 %v7378_v59  ;;  %6770 = vmatpush3.bf16.msra.mxu1 %v7377_v61  ;;  %v7417_v59 = vld [vmem:[%s9301_s1 + $0xa08] sm:$0xff]   ;;  %v7419_v61 = vld [vmem:[%s9301_s1 + $0xa50] sm:$0xff]  }
 0x122   :  { %6799 = vmatprep.subr.bf16.mxu1 %v7379_v0  ;;  %v7422_v0 = vld [vmem:[%s9301_s1 + $0xa90] sm:$0xff]  }
 0x123   :  { %5253 = vmatmul.mubr.bf16.vlgmr.msra.gmra.mrb[32].mxu0 %v1271_v63  ;;  %v7421_v63 = vld [vmem:[%s9301_s1 + $0xa10] sm:$0xff]  }
 0x124   :  { %6778 = vmatpush3.bf16.msra.mxu0 %v7380_v2  ;;  %5293 = vmatmul.mubr.bf16.vlgmr.msra.gmra.mrb[32].mxu1 %v1293_v6  ;;  %v7424_v2 = vld [vmem:[%s9301_s1 + $0xad8] sm:$0xff]   ;;  %v7428_v6 = vld [vmem:[%s9301_s1 + $0xae0] sm:$0xff]  }
 0x125   :  { %6779 = vmatprep.subr.bf16.mxu0 %v7382_v7  ;;  %6800 = vmatpush3.bf16.msra.mxu1 %v7381_v4  ;;  %v7426_v4 = vld [vmem:[%s9301_s1 + $0xa98] sm:$0xff]   ;;  %v7429_v7 = vld [vmem:[%s9301_s1 + $0xa20] sm:$0xff]  }
 0x126   :  { %5332 = vmatprep.mubr.bf16.mxu0 %v1292_v10  ;;  %6801 = vmatprep.subr.bf16.mxu1 %v7383_v9  ;;  %v7431_v9 = vld [vmem:[%s9301_s1 + $0xa68] sm:$0xff]  }
 0x127   :  { %5372 = vmatprep.mubr.bf16.mxu1 %v1296_v13  ;;  %v7432_v10 = vld [vmem:[%s9301_s1 + $0xae8] sm:$0xff]  }
 0x128   :  { %6780 = vmatpush3.bf16.msra.mxu0 %v7384_v11  ;;  %v7433_v11 = vld [vmem:[%s9301_s1 + $0xa28] sm:$0xff]  }
 0x129   :  { %6781 = vmatprep.subr.bf16.mxu0 %v7386_v14  ;;  %6802 = vmatpush3.bf16.msra.mxu1 %v7385_v12  ;;  %v7434_v13 = vld [vmem:[%s9301_s1 + $0xaa8] sm:$0xff]  }
 0x12a   :  { %6803 = vmatprep.subr.bf16.mxu1 %v7387_v15  ;;  %v7435_v15 = vld [vmem:[%s9301_s1 + $0xa70] sm:$0xff]  }
 0x12c   :  { %6782 = vmatpush3.bf16.msra.mxu0 %v7388_v16 }
 0x12d   :  { %6783 = vmatprep.subr.bf16.mxu0 %v7390_v18  ;;  %6804 = vmatpush3.bf16.msra.mxu1 %v7389_v17 }
 0x12e   :  { %6805 = vmatprep.subr.bf16.mxu1 %v7391_v19  ;;  %v7436_v19 = vld [vmem:[%s9301_s1 + $0xaf0] sm:$0xff]  }
 0x130   :  { %6784 = vmatpush3.bf16.msra.mxu0 %v7392_v20  ;;  %v7437_v20 = vld [vmem:[%s9301_s1 + $0xa30] sm:$0xff]  }
 0x131   :  { %6785 = vmatprep.subr.bf16.mxu0 %v7394_v22  ;;  %6806 = vmatpush3.bf16.msra.mxu1 %v7393_v21 }
 0x132   :  { %6807 = vmatprep.subr.bf16.mxu1 %v7395_v23 }
 0x134   :  { %6786 = vmatpush3.bf16.msra.mxu0 %v7396_v24 }
 0x135   :  { %6787 = vmatprep.subr.bf16.mxu0 %v7398_v26  ;;  %6808 = vmatpush3.bf16.msra.mxu1 %v7397_v25  ;;  %v7438_v26 = vld [vmem:[%s9301_s1 + $0xab0] sm:$0xff]  }
 0x136   :  { %v6485_v29 = vpop.f32.mrb[8].mxu0  ;;  %6809 = vmatprep.subr.bf16.mxu1 %v7399_v27 }
 0x137   :  { %v6486_v31 = vpop.f32.mrb[9].mxu0  ;;  %v6507_v33 = vpop.f32.mrb[8].mxu1 }
 0x138   :  { %v6487_v34 = vadd.f32 %v6486_v31, %v6485_v29  ;;  %v6488_v36 = vpop.f32.mrb[10].mxu0  ;;  %v6508_v39 = vpop.f32.mrb[9].mxu1  ;;  %6788 = vmatpush3.bf16.msra.mxu0 %v7400_v28  ;;  %v7439_v28 = vld [vmem:[%s9301_s1 + $0xa78] sm:$0xff]  }
 0x139   :  { %v6489_v40 = vpop.f32.mrb[11].mxu0  ;;  %v6509_v42 = vadd.f32 %v6508_v39, %v6507_v33  ;;  %v6510_v43 = vpop.f32.mrb[10].mxu1  ;;  %6789 = vmatprep.subr.bf16.mxu0 %v7402_v32  ;;  %6810 = vmatpush3.bf16.msra.mxu1 %v7401_v30  ;;  %v7440_v30 = vld [vmem:[%s9301_s1 + $0xaf8] sm:$0xff]   ;;  %v17_v32 = vld [vmem:[%s9302_s0 + $0x28] sm:$0xff] }
 0x13a   :  { %v4775_v41 = vadd.f32 %v6487_v34, %v8543_v55  ;;  %v6511_v45 = vpop.f32.mrb[11].mxu1  ;;  %6811 = vmatprep.subr.bf16.mxu1 %v7403_v37  ;;  %v7414_v55 = vld [vmem:[%s9301_s1 + $0xa80] sm:$0xff]   ;;  %v7441_v31 = vld [vmem:[%s9301_s1 + $0xa38] sm:$0xff]   ;;  %v1304_v33 = vrot.slane %v17_v32, %v7714_v35  ;;  %v1297_v36 = vcombine.high %v17_v32, %v17_v32  ;;  %v7480_v32 = vld [vmem:[%s9301_s1 + $0xc48] sm:$0xff]  }
 0x13b   :  { %v7443_v34 = vld [vmem:[%s9301_s1 + $0xb40] sm:$0xff]   ;;  %v7442_v37 = vld [vmem:[%s9301_s1 + $0xab8] sm:$0xff]  }
 0x13c   :  { %v8651_v47 = vadd.f32 %v6509_v42, %v4775_v41  ;;  %6790 = vmatpush3.bf16.msra.mxu0 %v7404_v38  ;;  %v1312_v38 = vcombine.high %v1304_v33, %v1304_v33  ;;  %v1320_v39 = vrot.slane %v1304_v33, %v7714_v35  ;;  %v7444_v40 = vld [vmem:[%s9301_s1 + $0xbc0] sm:$0xff]   ;;  %v8775_v41 = vrot.slane %v1297_v36, %v7714_v35  ;;  %v7481_v33 = vld [vmem:[%s9301_s1 + $0xcc8] sm:$0xff]  }
 0x13d   :  { %6791 = vmatprep.subr.bf16.mxu0 %v7406_v46  ;;  %6812 = vmatpush3.bf16.msra.mxu1 %v7405_v44  ;;  %v7445_v42 = vld [vmem:[%s9301_s1 + $0xb00] sm:$0xff]   ;;  %v7483_v36 = vld [vmem:[%s9301_s1 + $0xc88] sm:$0xff]  }
 0x13e   :  { %6813 = vmatprep.subr.bf16.mxu1 %v7407_v48  ;;  %v1334_v43 = vrot.slane %v1312_v38, %v7714_v35  ;;  %v7446_v44 = vld [vmem:[%s9301_s1 + $0xb80] sm:$0xff]   ;;  %v1313_v45 = vcombine.high %v8775_v41, %v8775_v41  ;;  %v1342_v46 = vcombine.high %v1320_v39, %v1320_v39  ;;  %v7485_v38 = vld [vmem:[%s9301_s1 + $0xcd0] sm:$0xff]  }
 0x140   :  { %6792 = vmatpush3.bf16.msra.mxu0 %v7408_v49  ;;  %v1344_v48 = vcombine.high %v1334_v43, %v1334_v43  ;;  %v7448_v49 = vld [vmem:[%s9301_s1 + $0xbc8] sm:$0xff]  }
 0x141   :  { %6821 = vmatprep.subr.bf16.mxu0 %v7411_v52  ;;  %6814 = vmatpush3.bf16.msra.mxu1 %v7409_v50  ;;  %v1341_v50 = vrot.slane %v1313_v45, %v7714_v35  ;;  %v7450_v52 = vld [vmem:[%s9301_s1 + $0xb88] sm:$0xff]   ;;  %v7492_v45 = vld [vmem:[%s9301_s1 + $0xc60] sm:$0xff]  }
 0x142   :  { %6843 = vmatprep.subr.bf16.mxu1 %v7412_v53 }
 0x143   :  { %5333 = vmatmul.mubr.bf16.vlgmr.msra.gmra.mrb[36].mxu0 %v1278_v51  ;;  %v7449_v51 = vld [vmem:[%s9301_s1 + $0xb08] sm:$0xff]   ;;  %v1345_v53 = vcombine.high %v1341_v50, %v1341_v50 }
 0x144   :  { %6822 = vmatpush3.bf16.msra.mxu0 %v7413_v54  ;;  %5373 = vmatmul.mubr.bf16.vlgmr.msra.gmra.mrb[36].mxu1 %v1294_v56  ;;  %v7451_v54 = vld [vmem:[%s9301_s1 + $0xb50] sm:$0xff]  }
 0x145   :  { %6823 = vmatprep.subr.bf16.mxu0 %v7415_v57  ;;  %6844 = vmatpush3.bf16.msra.mxu1 %v7414_v55  ;;  %v7452_v55 = vld [vmem:[%s9301_s1 + $0xbd0] sm:$0xff]  }
 0x146   :  { %6845 = vmatprep.subr.bf16.mxu1 %v7416_v58  ;;  %5412 = vmatprep.mubr.bf16.mxu0 %v1334_v43  ;;  %v7453_v56 = vld [vmem:[%s9301_s1 + $0xb10] sm:$0xff]   ;;  %v7455_v58 = vld [vmem:[%s9301_s1 + $0xb58] sm:$0xff]  }
 0x147   :  { %5452 = vmatprep.mubr.bf16.mxu1 %v1344_v48  ;;  %v7454_v57 = vld [vmem:[%s9301_s1 + $0xb90] sm:$0xff]   ;;  %v7490_v43 = vld [vmem:[%s9301_s1 + $0xc18] sm:$0xff]   ;;  %v7495_v48 = vld [vmem:[%s9301_s1 + $0xca0] sm:$0xff]  }
 0x148   :  { %6824 = vmatpush3.bf16.msra.mxu0 %v7417_v59  ;;  %v7456_v59 = vld [vmem:[%s9301_s1 + $0xbd8] sm:$0xff]  }
 0x149   :  { %6825 = vmatprep.subr.bf16.mxu0 %v7419_v61  ;;  %6846 = vmatpush3.bf16.msra.mxu1 %v7418_v60  ;;  %v7457_v60 = vld [vmem:[%s9301_s1 + $0xb18] sm:$0xff]  }
 0x14a   :  { %6847 = vmatprep.subr.bf16.mxu1 %v7420_v62  ;;  %v7458_v61 = vld [vmem:[%s9301_s1 + $0xb98] sm:$0xff]   ;;  %v7459_v62 = vld [vmem:[%s9301_s1 + $0xb60] sm:$0xff]  }
 0x14c   :  { %6826 = vmatpush3.bf16.msra.mxu0 %v7421_v63  ;;  %v7460_v63 = vld [vmem:[%s9301_s1 + $0xbe0] sm:$0xff]  }
 0x14d   :  { %6827 = vmatprep.subr.bf16.mxu0 %v7423_v1  ;;  %6848 = vmatpush3.bf16.msra.mxu1 %v7422_v0  ;;  %v7461_v0 = vld [vmem:[%s9301_s1 + $0xb20] sm:$0xff]  }
 0x14e   :  { %6849 = vmatprep.subr.bf16.mxu1 %v7424_v2  ;;  %v7462_v1 = vld [vmem:[%s9301_s1 + $0xba0] sm:$0xff]   ;;  %v7463_v2 = vld [vmem:[%s9301_s1 + $0xb68] sm:$0xff]  }
 0x150   :  { %6828 = vmatpush3.bf16.msra.mxu0 %v7425_v3  ;;  %v7464_v3 = vld [vmem:[%s9301_s1 + $0xbe8] sm:$0xff]  }
 0x151   :  { %6829 = vmatprep.subr.bf16.mxu0 %v7427_v5  ;;  %6850 = vmatpush3.bf16.msra.mxu1 %v7426_v4  ;;  %v7465_v5 = vld [vmem:[%s9301_s1 + $0xb28] sm:$0xff]  }
 0x152   :  { %6851 = vmatprep.subr.bf16.mxu1 %v7428_v6 }
 0x154   :  { %6830 = vmatpush3.bf16.msra.mxu0 %v7429_v7  ;;  %v7466_v7 = vld [vmem:[%s9301_s1 + $0xba8] sm:$0xff]  }
 0x155   :  { %6831 = vmatprep.subr.bf16.mxu0 %v7431_v9  ;;  %6852 = vmatpush3.bf16.msra.mxu1 %v7430_v8 }
 0x156   :  { %v6529_v12 = vpop.f32.mrb[12].mxu0  ;;  %6853 = vmatprep.subr.bf16.mxu1 %v7432_v10 }
 0x157   :  { %v6530_v14 = vpop.f32.mrb[13].mxu0  ;;  %v6551_v16 = vpop.f32.mrb[12].mxu1 }
 0x158   :  { %v6531_v17 = vadd.f32 %v6530_v14, %v6529_v12  ;;  %v6532_v18 = vpop.f32.mrb[14].mxu0  ;;  %v6552_v21 = vpop.f32.mrb[13].mxu1  ;;  %6832 = vmatpush3.bf16.msra.mxu0 %v7433_v11  ;;  %v7467_v11 = vld [vmem:[%s9301_s1 + $0xb70] sm:$0xff]  }
 0x159   :  { %v6533_v22 = vpop.f32.mrb[15].mxu0  ;;  %v6553_v24 = vadd.f32 %v6552_v21, %v6551_v16  ;;  %v6554_v25 = vpop.f32.mrb[14].mxu1  ;;  %6833 = vmatprep.subr.bf16.mxu0 %v7435_v15  ;;  %6854 = vmatpush3.bf16.msra.mxu1 %v7434_v13  ;;  %v7468_v12 = vld [vmem:[%s9301_s1 + $0xbf0] sm:$0xff]  }
 0x15a   :  { %v4855_v23 = vadd.f32 %v6531_v17, %v8651_v47  ;;  %v6555_v27 = vpop.f32.mrb[15].mxu1  ;;  %6855 = vmatprep.subr.bf16.mxu1 %v7436_v19  ;;  %v7447_v47 = vld [vmem:[%s9301_s1 + $0xb48] sm:$0xff]   ;;  %v7469_v18 = vld [vmem:[%s9301_s1 + $0xb30] sm:$0xff]   ;;  %v7471_v22 = vld [vmem:[%s9301_s1 + $0xb78] sm:$0xff]  }
 0x15b   :  { %v7474_v25 = vld [vmem:[%s9301_s1 + $0xbb8] sm:$0xff]   ;;  %v7476_v27 = vld [vmem:[%s9301_s1 + $0xc40] sm:$0xff]  }
 0x15c   :  { %v8752_v29 = vadd.f32 %v6553_v24, %v4855_v23  ;;  %6834 = vmatpush3.bf16.msra.mxu0 %v7437_v20  ;;  %v7470_v20 = vld [vmem:[%s9301_s1 + $0xbb0] sm:$0xff]   ;;  %v7472_v23 = vld [vmem:[%s9301_s1 + $0xbf8] sm:$0xff]  }
 0x15d   :  { %6835 = vmatprep.subr.bf16.mxu0 %v7439_v28  ;;  %6856 = vmatpush3.bf16.msra.mxu1 %v7438_v26  ;;  %v7473_v24 = vld [vmem:[%s9301_s1 + $0xb38] sm:$0xff]   ;;  %v1327_v26 = vrot.slane %v8775_v41, %v7714_v35  ;;  %v7477_v28 = vld [vmem:[%s9301_s1 + $0xcc0] sm:$0xff]  }
 0x15e   :  { %6857 = vmatprep.subr.bf16.mxu1 %v7440_v30  ;;  %v7479_v30 = vld [vmem:[%s9301_s1 + $0xc80] sm:$0xff]   ;;  %v7488_v41 = vld [vmem:[%s9301_s1 + $0xc58] sm:$0xff]  }
 0x160   :  { %6836 = vmatpush3.bf16.msra.mxu0 %v7441_v31  ;;  %v1343_v31 = vcombine.high %v1327_v26, %v1327_v26 }
 0x161   :  { %6865 = vmatprep.subr.bf16.mxu0 %v7443_v34  ;;  %6858 = vmatpush3.bf16.msra.mxu1 %v7442_v37  ;;  %v7482_v34 = vld [vmem:[%s9301_s1 + $0xc08] sm:$0xff]   ;;  %v7484_v37 = vld [vmem:[%s9301_s1 + $0xc50] sm:$0xff]  }
 0x162   :  { %6887 = vmatprep.subr.bf16.mxu1 %v7444_v40  ;;  %v7487_v40 = vld [vmem:[%s9301_s1 + $0xc90] sm:$0xff]  }
 0x163   :  { %5413 = vmatmul.mubr.bf16.vlgmr.msra.gmra.mrb[40].mxu0 %v1320_v39  ;;  %v7486_v39 = vld [vmem:[%s9301_s1 + $0xc10] sm:$0xff]  }
 0x164   :  { %6866 = vmatpush3.bf16.msra.mxu0 %v7445_v42  ;;  %5453 = vmatmul.mubr.bf16.vlgmr.msra.gmra.mrb[40].mxu1 %v1342_v46  ;;  %v7489_v42 = vld [vmem:[%s9301_s1 + $0xcd8] sm:$0xff]   ;;  %v7493_v46 = vld [vmem:[%s9301_s1 + $0xce0] sm:$0xff]  }
 0x165   :  { %6867 = vmatprep.subr.bf16.mxu0 %v7447_v47  ;;  %6888 = vmatpush3.bf16.msra.mxu1 %v7446_v44  ;;  %v7491_v44 = vld [vmem:[%s9301_s1 + $0xc98] sm:$0xff]   ;;  %v7494_v47 = vld [vmem:[%s9301_s1 + $0xc20] sm:$0xff]  }
 0x166   :  { %5492 = vmatprep.mubr.bf16.mxu0 %v1341_v50  ;;  %6889 = vmatprep.subr.bf16.mxu1 %v7448_v49  ;;  %v7496_v49 = vld [vmem:[%s9301_s1 + $0xc68] sm:$0xff]  }
 0x167   :  { %5532 = vmatprep.mubr.bf16.mxu1 %v1345_v53  ;;  %v7497_v50 = vld [vmem:[%s9301_s1 + $0xce8] sm:$0xff]  }
 0x168   :  { %6868 = vmatpush3.bf16.msra.mxu0 %v7449_v51 }
 0x169   :  { %6869 = vmatprep.subr.bf16.mxu0 %v7451_v54  ;;  %6890 = vmatpush3.bf16.msra.mxu1 %v7450_v52  ;;  %v7498_v52 = vld [vmem:[%s9301_s1 + $0xc28] sm:$0xff]  }
 0x16a   :  { %6891 = vmatprep.subr.bf16.mxu1 %v7452_v55  ;;  %v7499_v54 = vld [vmem:[%s9301_s1 + $0xca8] sm:$0xff]  }
 0x16c   :  { %6870 = vmatpush3.bf16.msra.mxu0 %v7453_v56 }
 0x16d   :  { %6871 = vmatprep.subr.bf16.mxu0 %v7455_v58  ;;  %6892 = vmatpush3.bf16.msra.mxu1 %v7454_v57  ;;  %v7500_v58 = vld [vmem:[%s9301_s1 + $0xc70] sm:$0xff]  }
 0x16e   :  { %6893 = vmatprep.subr.bf16.mxu1 %v7456_v59  ;;  %v7501_v59 = vld [vmem:[%s9301_s1 + $0xcf0] sm:$0xff]  }
 0x170   :  { %6872 = vmatpush3.bf16.msra.mxu0 %v7457_v60 }
 0x171   :  { %6873 = vmatprep.subr.bf16.mxu0 %v7459_v62  ;;  %6894 = vmatpush3.bf16.msra.mxu1 %v7458_v61 }
 0x172   :  { %6895 = vmatprep.subr.bf16.mxu1 %v7460_v63 }
 0x174   :  { %6874 = vmatpush3.bf16.msra.mxu0 %v7461_v0 }
 0x175   :  { %6875 = vmatprep.subr.bf16.mxu0 %v7463_v2  ;;  %6896 = vmatpush3.bf16.msra.mxu1 %v7462_v1  ;;  %v7502_v1 = vld [vmem:[%s9301_s1 + $0xc30] sm:$0xff]  }
 0x176   :  { %v6573_v4 = vpop.f32.mrb[16].mxu0  ;;  %6897 = vmatprep.subr.bf16.mxu1 %v7464_v3  ;;  %v7503_v3 = vld [vmem:[%s9301_s1 + $0xcb0] sm:$0xff]  }
 0x177   :  { %v6574_v6 = vpop.f32.mrb[17].mxu0  ;;  %v6595_v8 = vpop.f32.mrb[16].mxu1 }
 0x178   :  { %v6575_v9 = vadd.f32 %v6574_v6, %v6573_v4  ;;  %v6576_v10 = vpop.f32.mrb[18].mxu0  ;;  %v6596_v13 = vpop.f32.mrb[17].mxu1  ;;  %6876 = vmatpush3.bf16.msra.mxu0 %v7465_v5  ;;  %v7504_v5 = vld [vmem:[%s9301_s1 + $0xc78] sm:$0xff]  }
 0x179   :  { %v6577_v14 = vpop.f32.mrb[19].mxu0  ;;  %v6597_v16 = vadd.f32 %v6596_v13, %v6595_v8  ;;  %v6598_v17 = vpop.f32.mrb[18].mxu1  ;;  %6877 = vmatprep.subr.bf16.mxu0 %v7467_v11  ;;  %6898 = vmatpush3.bf16.msra.mxu1 %v7466_v7  ;;  %v7505_v6 = vld [vmem:[%s9301_s1 + $0xcf8] sm:$0xff]   ;;  %v18_v8 = vld [vmem:[%s9302_s0 + $0x30] sm:$0xff]  ;;  %v7508_v10 = vld [vmem:[%s9301_s1 + $0xd40] sm:$0xff]  }
 0x17a   :  { %v4935_v15 = vadd.f32 %v6575_v9, %v8752_v29  ;;  %v6599_v19 = vpop.f32.mrb[19].mxu1  ;;  %6899 = vmatprep.subr.bf16.mxu1 %v7468_v12  ;;  %v7478_v29 = vld [vmem:[%s9301_s1 + $0xc00] sm:$0xff]   ;;  %v7506_v7 = vld [vmem:[%s9301_s1 + $0xc38] sm:$0xff]   ;;  %v1353_v9 = vrot.slane %v18_v8, %v7714_v35  ;;  %v1346_v11 = vcombine.high %v18_v8, %v18_v8  ;;  %v7545_v8 = vld [vmem:[%s9301_s1 + $0xe48] sm:$0xff]  }
 0x17b   :  { %v7507_v12 = vld [vmem:[%s9301_s1 + $0xcb8] sm:$0xff]   ;;  %v7510_v17 = vld [vmem:[%s9301_s1 + $0xd00] sm:$0xff]  }
 0x17c   :  { %v8860_v21 = vadd.f32 %v6597_v16, %v4935_v15  ;;  %6878 = vmatpush3.bf16.msra.mxu0 %v7469_v18  ;;  %v1361_v13 = vcombine.high %v1353_v9, %v1353_v9  ;;  %v1369_v14 = vrot.slane %v1353_v9, %v7714_v35  ;;  %v7509_v15 = vld [vmem:[%s9301_s1 + $0xdc0] sm:$0xff]   ;;  %v8987_v16 = vrot.slane %v1346_v11, %v7714_v35  ;;  %v7546_v9 = vld [vmem:[%s9301_s1 + $0xec8] sm:$0xff]  }
 0x17d   :  { %6879 = vmatprep.subr.bf16.mxu0 %v7471_v22  ;;  %6900 = vmatpush3.bf16.msra.mxu1 %v7470_v20  ;;  %v7511_v19 = vld [vmem:[%s9301_s1 + $0xd80] sm:$0xff]   ;;  %v7512_v22 = vld [vmem:[%s9301_s1 + $0xd48] sm:$0xff]  }
 0x17e   :  { %6901 = vmatprep.subr.bf16.mxu1 %v7472_v23  ;;  %v1383_v18 = vrot.slane %v1361_v13, %v7714_v35  ;;  %v1362_v20 = vcombine.high %v8987_v16, %v8987_v16  ;;  %v7548_v11 = vld [vmem:[%s9301_s1 + $0xe88] sm:$0xff]   ;;  %v7550_v13 = vld [vmem:[%s9301_s1 + $0xed0] sm:$0xff]  }
 0x180   :  { %6880 = vmatpush3.bf16.msra.mxu0 %v7473_v24  ;;  %v1393_v23 = vcombine.high %v1383_v18, %v1383_v18  ;;  %v7513_v24 = vld [vmem:[%s9301_s1 + $0xdc8] sm:$0xff]  }
 0x181   :  { %6909 = vmatprep.subr.bf16.mxu0 %v7476_v27  ;;  %6902 = vmatpush3.bf16.msra.mxu1 %v7474_v25  ;;  %v1390_v25 = vrot.slane %v1362_v20, %v7714_v35  ;;  %v7515_v27 = vld [vmem:[%s9301_s1 + $0xd88] sm:$0xff]   ;;  %v7557_v20 = vld [vmem:[%s9301_s1 + $0xe60] sm:$0xff]  }
 0x182   :  { %6931 = vmatprep.subr.bf16.mxu1 %v7477_v28 }
 0x183   :  { %5493 = vmatmul.mubr.bf16.vlgmr.msra.gmra.mrb[44].mxu0 %v1327_v26  ;;  %v7514_v26 = vld [vmem:[%s9301_s1 + $0xd08] sm:$0xff]   ;;  %v1394_v28 = vcombine.high %v1390_v25, %v1390_v25 }
 0x184   :  { %6910 = vmatpush3.bf16.msra.mxu0 %v7478_v29  ;;  %5533 = vmatmul.mubr.bf16.vlgmr.msra.gmra.mrb[44].mxu1 %v1343_v31  ;;  %v7516_v29 = vld [vmem:[%s9301_s1 + $0xd50] sm:$0xff]  }
 0x185   :  { %6911 = vmatprep.subr.bf16.mxu0 %v7480_v32  ;;  %6932 = vmatpush3.bf16.msra.mxu1 %v7479_v30  ;;  %v7517_v30 = vld [vmem:[%s9301_s1 + $0xdd0] sm:$0xff]  }
 0x186   :  { %6933 = vmatprep.subr.bf16.mxu1 %v7481_v33  ;;  %5572 = vmatprep.mubr.bf16.mxu0 %v1383_v18  ;;  %v7518_v31 = vld [vmem:[%s9301_s1 + $0xd10] sm:$0xff]   ;;  %v7520_v33 = vld [vmem:[%s9301_s1 + $0xd58] sm:$0xff]  }
 0x187   :  { %5612 = vmatprep.mubr.bf16.mxu1 %v1393_v23  ;;  %v7519_v32 = vld [vmem:[%s9301_s1 + $0xd90] sm:$0xff]   ;;  %v7555_v18 = vld [vmem:[%s9301_s1 + $0xe18] sm:$0xff]   ;;  %v7560_v23 = vld [vmem:[%s9301_s1 + $0xea0] sm:$0xff]  }
 0x188   :  { %6912 = vmatpush3.bf16.msra.mxu0 %v7482_v34  ;;  %v7521_v34 = vld [vmem:[%s9301_s1 + $0xdd8] sm:$0xff]  }
 0x189   :  { %6913 = vmatprep.subr.bf16.mxu0 %v7484_v37  ;;  %6934 = vmatpush3.bf16.msra.mxu1 %v7483_v36  ;;  %v7522_v36 = vld [vmem:[%s9301_s1 + $0xd18] sm:$0xff]  }
 0x18a   :  { %6935 = vmatprep.subr.bf16.mxu1 %v7485_v38  ;;  %v7523_v37 = vld [vmem:[%s9301_s1 + $0xd98] sm:$0xff]   ;;  %v7524_v38 = vld [vmem:[%s9301_s1 + $0xd60] sm:$0xff]  }
 0x18c   :  { %6914 = vmatpush3.bf16.msra.mxu0 %v7486_v39  ;;  %v7525_v39 = vld [vmem:[%s9301_s1 + $0xde0] sm:$0xff]  }
 0x18d   :  { %6915 = vmatprep.subr.bf16.mxu0 %v7488_v41  ;;  %6936 = vmatpush3.bf16.msra.mxu1 %v7487_v40  ;;  %v7526_v40 = vld [vmem:[%s9301_s1 + $0xd20] sm:$0xff]  }
 0x18e   :  { %6937 = vmatprep.subr.bf16.mxu1 %v7489_v42  ;;  %v7527_v41 = vld [vmem:[%s9301_s1 + $0xda0] sm:$0xff]   ;;  %v7528_v42 = vld [vmem:[%s9301_s1 + $0xd68] sm:$0xff]  }
 0x190   :  { %6916 = vmatpush3.bf16.msra.mxu0 %v7490_v43  ;;  %v7529_v43 = vld [vmem:[%s9301_s1 + $0xde8] sm:$0xff]  }
 0x191   :  { %6917 = vmatprep.subr.bf16.mxu0 %v7492_v45  ;;  %6938 = vmatpush3.bf16.msra.mxu1 %v7491_v44  ;;  %v7530_v45 = vld [vmem:[%s9301_s1 + $0xd28] sm:$0xff]  }
 0x192   :  { %6939 = vmatprep.subr.bf16.mxu1 %v7493_v46 }
 0x194   :  { %6918 = vmatpush3.bf16.msra.mxu0 %v7494_v47  ;;  %v7531_v47 = vld [vmem:[%s9301_s1 + $0xda8] sm:$0xff]  }
 0x195   :  { %6919 = vmatprep.subr.bf16.mxu0 %v7496_v49  ;;  %6940 = vmatpush3.bf16.msra.mxu1 %v7495_v48 }
 0x196   :  { %v6617_v51 = vpop.f32.mrb[20].mxu0  ;;  %6941 = vmatprep.subr.bf16.mxu1 %v7497_v50 }
 0x197   :  { %v6618_v53 = vpop.f32.mrb[21].mxu0  ;;  %v6639_v55 = vpop.f32.mrb[20].mxu1 }
 0x198   :  { %v6619_v56 = vadd.f32 %v6618_v53, %v6617_v51  ;;  %v6620_v57 = vpop.f32.mrb[22].mxu0  ;;  %v6640_v60 = vpop.f32.mrb[21].mxu1  ;;  %6920 = vmatpush3.bf16.msra.mxu0 %v7498_v52  ;;  %v7532_v51 = vld [vmem:[%s9301_s1 + $0xd70] sm:$0xff]  }
 0x199   :  { %v6621_v61 = vpop.f32.mrb[23].mxu0  ;;  %v6641_v63 = vadd.f32 %v6640_v60, %v6639_v55  ;;  %v6642_v0 = vpop.f32.mrb[22].mxu1  ;;  %6921 = vmatprep.subr.bf16.mxu0 %v7500_v58  ;;  %6942 = vmatpush3.bf16.msra.mxu1 %v7499_v54  ;;  %v7533_v52 = vld [vmem:[%s9301_s1 + $0xdf0] sm:$0xff]  }
 0x19a   :  { %v5015_v62 = vadd.f32 %v6619_v56, %v8860_v21  ;;  %v6643_v2 = vpop.f32.mrb[23].mxu1  ;;  %6943 = vmatprep.subr.bf16.mxu1 %v7501_v59  ;;  %v1391_v21 = vcombine.high %v1369_v14, %v1369_v14  ;;  %v7534_v58 = vld [vmem:[%s9301_s1 + $0xd30] sm:$0xff]   ;;  %v7538_v0 = vld [vmem:[%s9301_s1 + $0xd38] sm:$0xff]  }
 0x19b   :  { %v7535_v60 = vld [vmem:[%s9301_s1 + $0xdb0] sm:$0xff]   ;;  %v1376_v2 = vrot.slane %v8987_v16, %v7714_v35  ;;  %v7553_v16 = vld [vmem:[%s9301_s1 + $0xe58] sm:$0xff]  }
 0x19c   :  { %v8961_v4 = vadd.f32 %v6641_v63, %v5015_v62  ;;  %6922 = vmatpush3.bf16.msra.mxu0 %v7502_v1  ;;  %v7536_v62 = vld [vmem:[%s9301_s1 + $0xd78] sm:$0xff]  }
 0x19d   :  { %6923 = vmatprep.subr.bf16.mxu0 %v7504_v5  ;;  %6944 = vmatpush3.bf16.msra.mxu1 %v7503_v3  ;;  %v7537_v63 = vld [vmem:[%s9301_s1 + $0xdf8] sm:$0xff]   ;;  %v7541_v3 = vld [vmem:[%s9301_s1 + $0xe40] sm:$0xff]  }
 0x19e   :  { %6945 = vmatprep.subr.bf16.mxu1 %v7505_v6  ;;  %v7539_v1 = vld [vmem:[%s9301_s1 + $0xdb8] sm:$0xff]   ;;  %v7543_v5 = vld [vmem:[%s9301_s1 + $0xe00] sm:$0xff]  }
 0x19f   :  { %v7544_v6 = vld [vmem:[%s9301_s1 + $0xe80] sm:$0xff]  }
 0x1a0   :  { %6924 = vmatpush3.bf16.msra.mxu0 %v7506_v7  ;;  %v1392_v7 = vcombine.high %v1376_v2, %v1376_v2 }
 0x1a1   :  { %6953 = vmatprep.subr.bf16.mxu0 %v7508_v10  ;;  %6946 = vmatpush3.bf16.msra.mxu1 %v7507_v12  ;;  %v7547_v10 = vld [vmem:[%s9301_s1 + $0xe08] sm:$0xff]   ;;  %v7549_v12 = vld [vmem:[%s9301_s1 + $0xe50] sm:$0xff]  }
 0x1a2   :  { %6975 = vmatprep.subr.bf16.mxu1 %v7509_v15  ;;  %v7552_v15 = vld [vmem:[%s9301_s1 + $0xe90] sm:$0xff]  }
 0x1a3   :  { %5573 = vmatmul.mubr.bf16.vlgmr.msra.gmra.mrb[48].mxu0 %v1369_v14  ;;  %v7551_v14 = vld [vmem:[%s9301_s1 + $0xe10] sm:$0xff]  }
 0x1a4   :  { %6954 = vmatpush3.bf16.msra.mxu0 %v7510_v17  ;;  %5613 = vmatmul.mubr.bf16.vlgmr.msra.gmra.mrb[48].mxu1 %v1391_v21  ;;  %v7554_v17 = vld [vmem:[%s9301_s1 + $0xed8] sm:$0xff]   ;;  %v7558_v21 = vld [vmem:[%s9301_s1 + $0xee0] sm:$0xff]  }
 0x1a5   :  { %6955 = vmatprep.subr.bf16.mxu0 %v7512_v22  ;;  %6976 = vmatpush3.bf16.msra.mxu1 %v7511_v19  ;;  %v7556_v19 = vld [vmem:[%s9301_s1 + $0xe98] sm:$0xff]   ;;  %v7559_v22 = vld [vmem:[%s9301_s1 + $0xe20] sm:$0xff]  }
 0x1a6   :  { %5652 = vmatprep.mubr.bf16.mxu0 %v1390_v25  ;;  %6977 = vmatprep.subr.bf16.mxu1 %v7513_v24  ;;  %v7561_v24 = vld [vmem:[%s9301_s1 + $0xe68] sm:$0xff]  }
 0x1a7   :  { %5692 = vmatprep.mubr.bf16.mxu1 %v1394_v28  ;;  %v7562_v25 = vld [vmem:[%s9301_s1 + $0xee8] sm:$0xff]  }
 0x1a8   :  { %6956 = vmatpush3.bf16.msra.mxu0 %v7514_v26 }
 0x1a9   :  { %6957 = vmatprep.subr.bf16.mxu0 %v7516_v29  ;;  %6978 = vmatpush3.bf16.msra.mxu1 %v7515_v27  ;;  %v7563_v27 = vld [vmem:[%s9301_s1 + $0xe28] sm:$0xff]  }
 0x1aa   :  { %6979 = vmatprep.subr.bf16.mxu1 %v7517_v30  ;;  %v7564_v29 = vld [vmem:[%s9301_s1 + $0xea8] sm:$0xff]  }
 0x1ac   :  { %6958 = vmatpush3.bf16.msra.mxu0 %v7518_v31 }
 0x1ad   :  { %6959 = vmatprep.subr.bf16.mxu0 %v7520_v33  ;;  %6980 = vmatpush3.bf16.msra.mxu1 %v7519_v32  ;;  %v7565_v33 = vld [vmem:[%s9301_s1 + $0xe70] sm:$0xff]  }
 0x1ae   :  { %6981 = vmatprep.subr.bf16.mxu1 %v7521_v34  ;;  %v7566_v34 = vld [vmem:[%s9301_s1 + $0xef0] sm:$0xff]  }
 0x1b0   :  { %6960 = vmatpush3.bf16.msra.mxu0 %v7522_v36 }
 0x1b1   :  { %6961 = vmatprep.subr.bf16.mxu0 %v7524_v38  ;;  %6982 = vmatpush3.bf16.msra.mxu1 %v7523_v37 }
 0x1b2   :  { %6983 = vmatprep.subr.bf16.mxu1 %v7525_v39 }
 0x1b4   :  { %6962 = vmatpush3.bf16.msra.mxu0 %v7526_v40 }
 0x1b5   :  { %6963 = vmatprep.subr.bf16.mxu0 %v7528_v42  ;;  %6984 = vmatpush3.bf16.msra.mxu1 %v7527_v41  ;;  %v7567_v41 = vld [vmem:[%s9301_s1 + $0xe30] sm:$0xff]  }
 0x1b6   :  { %v6661_v44 = vpop.f32.mrb[24].mxu0  ;;  %6985 = vmatprep.subr.bf16.mxu1 %v7529_v43  ;;  %v7568_v43 = vld [vmem:[%s9301_s1 + $0xeb0] sm:$0xff]  }
 0x1b7   :  { %v6662_v46 = vpop.f32.mrb[25].mxu0  ;;  %v6683_v48 = vpop.f32.mrb[24].mxu1 }
 0x1b8   :  { %v6663_v49 = vadd.f32 %v6662_v46, %v6661_v44  ;;  %v6664_v50 = vpop.f32.mrb[26].mxu0  ;;  %v6684_v53 = vpop.f32.mrb[25].mxu1  ;;  %6964 = vmatpush3.bf16.msra.mxu0 %v7530_v45  ;;  %v7569_v45 = vld [vmem:[%s9301_s1 + $0xe78] sm:$0xff]  }
 0x1b9   :  { %v6665_v54 = vpop.f32.mrb[27].mxu0  ;;  %v6685_v56 = vadd.f32 %v6684_v53, %v6683_v48  ;;  %v6686_v57 = vpop.f32.mrb[26].mxu1  ;;  %6965 = vmatprep.subr.bf16.mxu0 %v7532_v51  ;;  %6986 = vmatpush3.bf16.msra.mxu1 %v7531_v47  ;;  %v7570_v46 = vld [vmem:[%s9301_s1 + $0xef8] sm:$0xff]   ;;  %v7573_v50 = vld [vmem:[%s9301_s1 + $0xf40] sm:$0xff]  }
 0x1ba   :  { %v5095_v55 = vadd.f32 %v6663_v49, %v8961_v4  ;;  %v6687_v59 = vpop.f32.mrb[27].mxu1  ;;  %6987 = vmatprep.subr.bf16.mxu1 %v7533_v52  ;;  %v7542_v4 = vld [vmem:[%s9301_s1 + $0xec0] sm:$0xff]   ;;  %v7571_v47 = vld [vmem:[%s9301_s1 + $0xe38] sm:$0xff]  }
 0x1bb   :  { %v19_v48 = vld [vmem:[%s9302_s0 + $0x38] sm:$0xff] }
 0x1bc   :  { %v9072_v61 = vadd.f32 %v6685_v56, %v5095_v55  ;;  %6966 = vmatpush3.bf16.msra.mxu0 %v7534_v58  ;;  %v1402_v49 = vrot.slane %v19_v48, %v7714_v35  ;;  %v1395_v51 = vcombine.high %v19_v48, %v19_v48  ;;  %v7572_v52 = vld [vmem:[%s9301_s1 + $0xeb8] sm:$0xff]   ;;  %v7574_v55 = vld [vmem:[%s9301_s1 + $0xfc0] sm:$0xff]  }
 0x1bd   :  { %6967 = vmatprep.subr.bf16.mxu0 %v7536_v62  ;;  %6988 = vmatpush3.bf16.msra.mxu1 %v7535_v60  ;;  %v7575_v58 = vld [vmem:[%s9301_s1 + $0xf00] sm:$0xff]  }
 0x1be   :  { %6989 = vmatprep.subr.bf16.mxu1 %v7537_v63  ;;  %v1410_v53 = vcombine.high %v1402_v49, %v1402_v49  ;;  %v1418_v54 = vrot.slane %v1402_v49, %v7714_v35  ;;  %v9199_v56 = vrot.slane %v1395_v51, %v7714_v35  ;;  %v7576_v63 = vld [vmem:[%s9301_s1 + $0xf80] sm:$0xff]  }
 0x1c0   :  { %6968 = vmatpush3.bf16.msra.mxu0 %v7538_v0  ;;  %v1432_v57 = vrot.slane %v1410_v53, %v7714_v35  ;;  %v1411_v59 = vcombine.high %v9199_v56, %v9199_v56  ;;  %v1440_v60 = vcombine.high %v1418_v54, %v1418_v54 }
 0x1c1   :  { %6997 = vmatprep.subr.bf16.mxu0 %v7541_v3  ;;  %6990 = vmatpush3.bf16.msra.mxu1 %v7539_v1  ;;  %v7578_v1 = vld [vmem:[%s9301_s1 + $0xfc8] sm:$0xff]  }
 0x1c2   :  { %7019 = vmatprep.subr.bf16.mxu1 %v7542_v4  ;;  %v1442_v62 = vcombine.high %v1432_v57, %v1432_v57  ;;  %v1439_v0 = vrot.slane %v1411_v59, %v7714_v35  ;;  %v7581_v4 = vld [vmem:[%s9301_s1 + $0xf50] sm:$0xff]  }
 0x1c3   :  { %5653 = vmatmul.mubr.bf16.vlgmr.msra.gmra.mrb[52].mxu0 %v1376_v2  ;;  %v7579_v2 = vld [vmem:[%s9301_s1 + $0xf08] sm:$0xff]  }
 0x1c4   :  { %6998 = vmatpush3.bf16.msra.mxu0 %v7543_v5  ;;  %5693 = vmatmul.mubr.bf16.vlgmr.msra.gmra.mrb[52].mxu1 %v1392_v7  ;;  %v1443_v3 = vcombine.high %v1439_v0, %v1439_v0  ;;  %v7580_v5 = vld [vmem:[%s9301_s1 + $0xf88] sm:$0xff]   ;;  %v7583_v7 = vld [vmem:[%s9301_s1 + $0xf10] sm:$0xff]  }
 0x1c5   :  { %6999 = vmatprep.subr.bf16.mxu0 %v7545_v8  ;;  %7020 = vmatpush3.bf16.msra.mxu1 %v7544_v6  ;;  %v7582_v6 = vld [vmem:[%s9301_s1 + $0xfd0] sm:$0xff]   ;;  %v7585_v8 = vld [vmem:[%s9301_s1 + $0xf58] sm:$0xff]  }
 0x1c6   :  { %7021 = vmatprep.subr.bf16.mxu1 %v7546_v9  ;;  %5732 = vmatprep.mubr.bf16.mxu0 %v1432_v57  ;;  %v7584_v9 = vld [vmem:[%s9301_s1 + $0xf90] sm:$0xff]  }
 0x1c7   :  { %5772 = vmatprep.mubr.bf16.mxu1 %v1442_v62 }
 0x1c8   :  { %7000 = vmatpush3.bf16.msra.mxu0 %v7547_v10  ;;  %v7586_v10 = vld [vmem:[%s9301_s1 + $0xfd8] sm:$0xff]  }
 0x1c9   :  { %7001 = vmatprep.subr.bf16.mxu0 %v7549_v12  ;;  %7022 = vmatpush3.bf16.msra.mxu1 %v7548_v11  ;;  %v7587_v11 = vld [vmem:[%s9301_s1 + $0xf18] sm:$0xff]   ;;  %v7589_v12 = vld [vmem:[%s9301_s1 + $0xf60] sm:$0xff]  }
 0x1ca   :  { %7023 = vmatprep.subr.bf16.mxu1 %v7550_v13  ;;  %v7588_v13 = vld [vmem:[%s9301_s1 + $0xf98] sm:$0xff]  }
 0x1cc   :  { %7002 = vmatpush3.bf16.msra.mxu0 %v7551_v14  ;;  %v7590_v14 = vld [vmem:[%s9301_s1 + $0xfe0] sm:$0xff]  }
 0x1cd   :  { %7003 = vmatprep.subr.bf16.mxu0 %v7553_v16  ;;  %7024 = vmatpush3.bf16.msra.mxu1 %v7552_v15  ;;  %v7591_v15 = vld [vmem:[%s9301_s1 + $0xf20] sm:$0xff]   ;;  %v7593_v16 = vld [vmem:[%s9301_s1 + $0xf68] sm:$0xff]  }
 0x1ce   :  { %7025 = vmatprep.subr.bf16.mxu1 %v7554_v17  ;;  %v7592_v17 = vld [vmem:[%s9301_s1 + $0xfa0] sm:$0xff]  }
 0x1d0   :  { %7004 = vmatpush3.bf16.msra.mxu0 %v7555_v18 }
 0x1d1   :  { %7005 = vmatprep.subr.bf16.mxu0 %v7557_v20  ;;  %7026 = vmatpush3.bf16.msra.mxu1 %v7556_v19  ;;  %v7594_v19 = vld [vmem:[%s9301_s1 + $0xfe8] sm:$0xff]  }
 0x1d2   :  { %7027 = vmatprep.subr.bf16.mxu1 %v7558_v21  ;;  %v7595_v21 = vld [vmem:[%s9301_s1 + $0xf28] sm:$0xff]  }
 0x1d4   :  { %7006 = vmatpush3.bf16.msra.mxu0 %v7559_v22 }
 0x1d5   :  { %7007 = vmatprep.subr.bf16.mxu0 %v7561_v24  ;;  %7028 = vmatpush3.bf16.msra.mxu1 %v7560_v23 }
 0x1d6   :  { %v6705_v26 = vpop.f32.mrb[28].mxu0  ;;  %7029 = vmatprep.subr.bf16.mxu1 %v7562_v25  ;;  %v7596_v25 = vld [vmem:[%s9301_s1 + $0xfa8] sm:$0xff]  }
 0x1d7   :  { %v6706_v28 = vpop.f32.mrb[29].mxu0  ;;  %v6727_v30 = vpop.f32.mrb[28].mxu1 }
 0x1d8   :  { %v6707_v31 = vadd.f32 %v6706_v28, %v6705_v26  ;;  %v6708_v32 = vpop.f32.mrb[30].mxu0  ;;  %v6728_v36 = vpop.f32.mrb[29].mxu1  ;;  %7008 = vmatpush3.bf16.msra.mxu0 %v7563_v27  ;;  %v7597_v26 = vld [vmem:[%s9301_s1 + $0xf70] sm:$0xff]  }
 0x1d9   :  { %v6709_v37 = vpop.f32.mrb[31].mxu0  ;;  %v6729_v39 = vadd.f32 %v6728_v36, %v6727_v30  ;;  %v6730_v40 = vpop.f32.mrb[30].mxu1  ;;  %7009 = vmatprep.subr.bf16.mxu0 %v7565_v33  ;;  %7030 = vmatpush3.bf16.msra.mxu1 %v7564_v29  ;;  %v7598_v32 = vld [vmem:[%s9301_s1 + $0xff0] sm:$0xff]  }
 0x1da   :  { %v5175_v38 = vadd.f32 %v6707_v31, %v9072_v61  ;;  %v6731_v42 = vpop.f32.mrb[31].mxu1  ;;  %7031 = vmatprep.subr.bf16.mxu1 %v7566_v34  ;;  %v7577_v61 = vld [vmem:[%s9301_s1 + $0xf48] sm:$0xff]   ;;  %v7599_v34 = vld [vmem:[%s9301_s1 + $0xf30] sm:$0xff]   ;;  %v7601_v37 = vld [vmem:[%s9301_s1 + $0xf78] sm:$0xff]  }
 0x1db   :  { %v7603_v40 = vld [vmem:[%s9301_s1 + $0xf38] sm:$0xff]  }
 0x1dc   :  { %v9173_v44 = vadd.f32 %v6729_v39, %v5175_v38  ;;  %7010 = vmatpush3.bf16.msra.mxu0 %v7567_v41  ;;  %v7600_v38 = vld [vmem:[%s9301_s1 + $0xfb0] sm:$0xff]   ;;  %v7602_v39 = vld [vmem:[%s9301_s1 + $0xff8] sm:$0xff]   ;;  %v1425_v41 = vrot.slane %v9199_v56, %v7714_v35 }
 0x1dd   :  { %7011 = vmatprep.subr.bf16.mxu0 %v7569_v45  ;;  %7032 = vmatpush3.bf16.msra.mxu1 %v7568_v43  ;;  %v7604_v42 = vld [vmem:[%s9301_s1 + $0xfb8] sm:$0xff]  }
 0x1de   :  { %7033 = vmatprep.subr.bf16.mxu1 %v7570_v46  ;;  %v1441_v43 = vcombine.high %v1425_v41, %v1425_v41 }
 0x1e0   :  { %7012 = vmatpush3.bf16.msra.mxu0 %v7571_v47 }
 0x1e1   :  { %7041 = vmatprep.subr.bf16.mxu0 %v7573_v50  ;;  %7034 = vmatpush3.bf16.msra.mxu1 %v7572_v52 }
 0x1e2   :  { %7063 = vmatprep.subr.bf16.mxu1 %v7574_v55 }
 0x1e3   :  { %5733 = vmatmul.mubr.bf16.vlgmr.msra.gmra.mrb[56].mxu0 %v1418_v54 }
 0x1e4   :  { %7042 = vmatpush3.bf16.msra.mxu0 %v7575_v58  ;;  %5773 = vmatmul.mubr.bf16.vlgmr.msra.gmra.mrb[56].mxu1 %v1440_v60 }
 0x1e5   :  { %7043 = vmatprep.subr.bf16.mxu0 %v7577_v61  ;;  %7064 = vmatpush3.bf16.msra.mxu1 %v7576_v63 }
 0x1e6   :  { %5812 = vmatprep.mubr.bf16.mxu0 %v1439_v0  ;;  %7065 = vmatprep.subr.bf16.mxu1 %v7578_v1 }
 0x1e7   :  { %5852 = vmatprep.mubr.bf16.mxu1 %v1443_v3 }
 0x1e8   :  { %7044 = vmatpush3.bf16.msra.mxu0 %v7579_v2 }
 0x1e9   :  { %7045 = vmatprep.subr.bf16.mxu0 %v7581_v4  ;;  %7066 = vmatpush3.bf16.msra.mxu1 %v7580_v5 }
 0x1ea   :  { %7067 = vmatprep.subr.bf16.mxu1 %v7582_v6 }
 0x1ec   :  { %7046 = vmatpush3.bf16.msra.mxu0 %v7583_v7 }
 0x1ed   :  { %7047 = vmatprep.subr.bf16.mxu0 %v7585_v8  ;;  %7068 = vmatpush3.bf16.msra.mxu1 %v7584_v9 }
 0x1ee   :  { %7069 = vmatprep.subr.bf16.mxu1 %v7586_v10 }
 0x1f0   :  { %7048 = vmatpush3.bf16.msra.mxu0 %v7587_v11 }
 0x1f1   :  { %7049 = vmatprep.subr.bf16.mxu0 %v7589_v12  ;;  %7070 = vmatpush3.bf16.msra.mxu1 %v7588_v13 }
 0x1f2   :  { %7071 = vmatprep.subr.bf16.mxu1 %v7590_v14 }
 0x1f4   :  { %7050 = vmatpush3.bf16.msra.mxu0 %v7591_v15 }
 0x1f5   :  { %7051 = vmatprep.subr.bf16.mxu0 %v7593_v16  ;;  %7072 = vmatpush3.bf16.msra.mxu1 %v7592_v17 }
 0x1f6   :  { %v6749_v18 = vpop.f32.mrb[32].mxu0  ;;  %7073 = vmatprep.subr.bf16.mxu1 %v7594_v19 }
 0x1f7   :  { %v6750_v20 = vpop.f32.mrb[33].mxu0  ;;  %v6771_v22 = vpop.f32.mrb[32].mxu1 }
 0x1f8   :  { %v6751_v23 = vadd.f32 %v6750_v20, %v6749_v18  ;;  %v6752_v24 = vpop.f32.mrb[34].mxu0  ;;  %v6772_v27 = vpop.f32.mrb[33].mxu1  ;;  %7052 = vmatpush3.bf16.msra.mxu0 %v7595_v21 }
 0x1f9   :  { %v6753_v28 = vpop.f32.mrb[35].mxu0  ;;  %v6773_v30 = vadd.f32 %v6772_v27, %v6771_v22  ;;  %v6774_v31 = vpop.f32.mrb[34].mxu1  ;;  %7053 = vmatprep.subr.bf16.mxu0 %v7597_v26  ;;  %7074 = vmatpush3.bf16.msra.mxu1 %v7596_v25 }
 0x1fa   :  { %v5255_v29 = vadd.f32 %v6751_v23, %v9173_v44  ;;  %v6775_v33 = vpop.f32.mrb[35].mxu1  ;;  %7075 = vmatprep.subr.bf16.mxu1 %v7598_v32 }
 0x1fc   :  { %v5295_v36 = vadd.f32 %v6773_v30, %v5255_v29  ;;  %7054 = vmatpush3.bf16.msra.mxu0 %v7599_v34 }
 0x1fd   :  { %7055 = vmatprep.subr.bf16.mxu0 %v7601_v37  ;;  %7076 = vmatpush3.bf16.msra.mxu1 %v7600_v38 }
 0x1fe   :  { %7077 = vmatprep.subr.bf16.mxu1 %v7602_v39 }
 0x200   :  { %7056 = vmatpush3.bf16.msra.mxu0 %v7603_v40 }
 0x201   :  { %7078 = vmatpush3.bf16.msra.mxu1 %v7604_v42 }
 0x203   :  { %5813 = vmatmul.mubr.bf16.vlgmr.msra.gmra.mrb[60].mxu0 %v1425_v41 }
 0x204   :  { %5853 = vmatmul.mubr.bf16.vlgmr.msra.gmra.mrb[60].mxu1 %v1441_v43 }
 0x216   :  { %v6793_v44 = vpop.f32.mrb[36].mxu0 }
 0x217   :  { %v6794_v45 = vpop.f32.mrb[37].mxu0  ;;  %v6815_v46 = vpop.f32.mrb[36].mxu1 }
 0x218   :  { %v6795_v47 = vadd.f32 %v6794_v45, %v6793_v44  ;;  %v6796_v48 = vpop.f32.mrb[38].mxu0  ;;  %v6816_v49 = vpop.f32.mrb[37].mxu1 }
 0x219   :  { %v6797_v50 = vpop.f32.mrb[39].mxu0  ;;  %v6817_v35 = vadd.f32 %v6816_v49, %v6815_v46  ;;  %v6818_v52 = vpop.f32.mrb[38].mxu1 }
 0x21a   :  { %v5335_v51 = vadd.f32 %v6795_v47, %v5295_v36  ;;  %v6819_v53 = vpop.f32.mrb[39].mxu1 }
 0x21c   :  { %v5375_v54 = vadd.f32 %v6817_v35, %v5335_v51 }
 0x236   :  { %v6837_v55 = vpop.f32.mrb[40].mxu0 }
 0x237   :  { %v6838_v56 = vpop.f32.mrb[41].mxu0  ;;  %v6859_v57 = vpop.f32.mrb[40].mxu1 }
 0x238   :  { %v6839_v58 = vadd.f32 %v6838_v56, %v6837_v55  ;;  %v6840_v59 = vpop.f32.mrb[42].mxu0  ;;  %v6860_v60 = vpop.f32.mrb[41].mxu1 }
 0x239   :  { %v6841_v61 = vpop.f32.mrb[43].mxu0  ;;  %v6861_v63 = vadd.f32 %v6860_v60, %v6859_v57  ;;  %v6862_v0 = vpop.f32.mrb[42].mxu1 }
 0x23a   :  { %v5415_v62 = vadd.f32 %v6839_v58, %v5375_v54  ;;  %v6863_v1 = vpop.f32.mrb[43].mxu1 }
 0x23c   :  { %v5455_v2 = vadd.f32 %v6861_v63, %v5415_v62 }
 0x256   :  { %v6881_v3 = vpop.f32.mrb[44].mxu0 }
 0x257   :  { %v6882_v4 = vpop.f32.mrb[45].mxu0  ;;  %v6903_v5 = vpop.f32.mrb[44].mxu1 }
 0x258   :  { %v6883_v6 = vadd.f32 %v6882_v4, %v6881_v3  ;;  %v6884_v7 = vpop.f32.mrb[46].mxu0  ;;  %v6904_v8 = vpop.f32.mrb[45].mxu1 }
 0x259   :  { %v6885_v9 = vpop.f32.mrb[47].mxu0  ;;  %v6905_v11 = vadd.f32 %v6904_v8, %v6903_v5  ;;  %v6906_v12 = vpop.f32.mrb[46].mxu1 }
 0x25a   :  { %v5495_v10 = vadd.f32 %v6883_v6, %v5455_v2  ;;  %v6907_v13 = vpop.f32.mrb[47].mxu1 }
 0x25c   :  { %v5535_v14 = vadd.f32 %v6905_v11, %v5495_v10 }
 0x276   :  { %v6925_v15 = vpop.f32.mrb[48].mxu0 }
 0x277   :  { %v6926_v16 = vpop.f32.mrb[49].mxu0  ;;  %v6947_v17 = vpop.f32.mrb[48].mxu1 }
 0x278   :  { %v6927_v18 = vadd.f32 %v6926_v16, %v6925_v15  ;;  %v6928_v19 = vpop.f32.mrb[50].mxu0  ;;  %v6948_v20 = vpop.f32.mrb[49].mxu1 }
 0x279   :  { %v6929_v21 = vpop.f32.mrb[51].mxu0  ;;  %v6949_v23 = vadd.f32 %v6948_v20, %v6947_v17  ;;  %v6950_v24 = vpop.f32.mrb[50].mxu1 }
 0x27a   :  { %v5575_v22 = vadd.f32 %v6927_v18, %v5535_v14  ;;  %v6951_v25 = vpop.f32.mrb[51].mxu1 }
 0x27c   :  { %v5615_v26 = vadd.f32 %v6949_v23, %v5575_v22 }
 0x296   :  { %v6969_v27 = vpop.f32.mrb[52].mxu0 }
 0x297   :  { %v6970_v28 = vpop.f32.mrb[53].mxu0  ;;  %v6991_v29 = vpop.f32.mrb[52].mxu1 }
 0x298   :  { %v6971_v30 = vadd.f32 %v6970_v28, %v6969_v27  ;;  %v6972_v31 = vpop.f32.mrb[54].mxu0  ;;  %v6992_v32 = vpop.f32.mrb[53].mxu1 }
 0x299   :  { %v6973_v33 = vpop.f32.mrb[55].mxu0  ;;  %v6993_v36 = vadd.f32 %v6992_v32, %v6991_v29  ;;  %v6994_v37 = vpop.f32.mrb[54].mxu1 }
 0x29a   :  { %v5655_v34 = vadd.f32 %v6971_v30, %v5615_v26  ;;  %v6995_v38 = vpop.f32.mrb[55].mxu1 }
 0x29c   :  { %v5695_v39 = vadd.f32 %v6993_v36, %v5655_v34 }
 0x2b6   :  { %v7013_v40 = vpop.f32.mrb[56].mxu0 }
 0x2b7   :  { %v7014_v41 = vpop.f32.mrb[57].mxu0  ;;  %v7035_v42 = vpop.f32.mrb[56].mxu1 }
 0x2b8   :  { %v7015_v43 = vadd.f32 %v7014_v41, %v7013_v40  ;;  %v7016_v44 = vpop.f32.mrb[58].mxu0  ;;  %v7036_v45 = vpop.f32.mrb[57].mxu1 }
 0x2b9   :  { %v7017_v46 = vpop.f32.mrb[59].mxu0  ;;  %v7037_v48 = vadd.f32 %v7036_v45, %v7035_v42  ;;  %v7038_v49 = vpop.f32.mrb[58].mxu1 }
 0x2ba   :  { %v5735_v47 = vadd.f32 %v7015_v43, %v5695_v39  ;;  %v7039_v50 = vpop.f32.mrb[59].mxu1 }
 0x2bc   :  { %v5775_v51 = vadd.f32 %v7037_v48, %v5735_v47 }
 0x2d6   :  { %v7057_v35 = vpop.f32.mrb[60].mxu0 }
 0x2d7   :  { %v7058_v52 = vpop.f32.mrb[61].mxu0  ;;  %v7079_v53 = vpop.f32.mrb[60].mxu1 }
 0x2d8   :  { %v7059_v54 = vadd.f32 %v7058_v52, %v7057_v35  ;;  %v7060_v55 = vpop.f32.mrb[62].mxu0  ;;  %v7080_v56 = vpop.f32.mrb[61].mxu1 }
 0x2d9   :  { %v7061_v57 = vpop.f32.mrb[63].mxu0  ;;  %v7081_v59 = vadd.f32 %v7080_v56, %v7079_v53  ;;  %v7082_v60 = vpop.f32.mrb[62].mxu1 }
 0x2da   :  { %v5815_v58 = vadd.f32 %v7059_v54, %v5775_v51  ;;  %v7083_v61 = vpop.f32.mrb[63].mxu1 }
 0x2dc   :  { %v5855_v62 = vadd.f32 %v7081_v59, %v5815_v58 }
 0x2de   :  { %v5860_v63 = vmul.f32 0.5, %v5855_v62 }
 0x2e0   :  { %7606 = vtanh.f32 %v5860_v63 }
 0x2ea   :  { %v7607_v0 = vpop.eup %7606 }
 0x2eb   :  { %v5862_v1 = vadd.f32 1.0, %v7607_v0 }
 0x2ed   :  { %v5863_v2 = vmul.f32 0.5, %v5862_v1 }
 0x2ef   :  { %5864 = vst [vmem:[%s9303_s2] sm:$0x3] %v5863_v2 }

</bundles_post_ra>
